<compile_context>
chip_gen: v7x
topology: tpu7x:2x2x1
jax: 0.10.0
libtpu: 0.0.40
codegen_flags: <defaults>
</compile_context>

<pallas_src>
import functools

import jax
import jax.numpy as jnp
from jax.experimental import pallas as pl
from jax.experimental.pallas import tpu as pltpu

# FaceNeRF defaults (from the PyTorch module).
D = 8
W = 256
W2 = W // 2                         # 128
INPUT_CH = 3
INPUT_CH_VIEWS = 3
DIM_AUD = 32
OUTPUT_CH = 4
SKIPS = (4,)
INPUT_CH_ALL = INPUT_CH + DIM_AUD   # 35

# Host-side zero padding of the small feature axes (zeros do not change math).
PTS_PAD = 48     # 35 -> 48  (multiple of 16 for bf16 sublane tiling)
VIEWS_PAD = 16   # 3  -> 16


# ---------------------------------------------------------------------------
# Pallas kernel
# ---------------------------------------------------------------------------
def _facenerf_kernel(use_viewdirs, bf16_epilogue, *refs):
    if use_viewdirs:
        (pts_ref, views_ref, w0p_ref, wt_ref, bt_ref,
         fw_ref, fb_ref, wvv_ref, vw_ref, vb_ref, wr_ref, br_ref,
         out_ref) = refs
    else:
        (pts_ref, w0p_ref, wt_ref, bt_ref, wo_ref, bo_ref, out_ref) = refs

    f32 = jnp.float32

    def relu_bf16(z):
        # cast-then-max == max-then-cast (rounding is monotone and round(0)=0),
        # so this is bitwise identical either way; doing the max in bf16 halves
        # the epilogue vreg work on v6e/v7x (bf16 VPU).
        if bf16_epilogue:
            return jnp.maximum(z.astype(jnp.bfloat16), 0)
        return jnp.maximum(z, 0.0).astype(jnp.bfloat16)

    # ----- trunk: pts_linears ------------------------------------------------
    h = pts_ref[...]                                          # bf16 [tm, 48]
    for i in range(D):
        b = bt_ref[i]                                         # f32 [1, 256]
        if i == 0:
            z = jnp.dot(h, w0p_ref[0], preferred_element_type=f32) + b
        elif (i - 1) in SKIPS:
            # torch: layer input is cat([input_pts, h_prev], -1); weight was
            # pre-split host-side (pts part in w0p_ref[1], h part in wt stack).
            z = (jnp.dot(pts_ref[...], w0p_ref[1], preferred_element_type=f32)
                 + jnp.dot(h, wt_ref[i - 1], preferred_element_type=f32) + b)
        else:
            z = jnp.dot(h, wt_ref[i - 1], preferred_element_type=f32) + b
        h = relu_bf16(z)                                      # F.relu

    if use_viewdirs:
        # Fused matmul: cols 0:128 = views_linears[0] (feature/h part),
        # cols 128:256 = alpha_linear padded slab (alpha in col 131 -> lane 3).
        z = jnp.dot(h, fw_ref[...], preferred_element_type=f32) + fb_ref[...]

        # Park [0, 0, 0, alpha] in the VMEM-resident output tile instead of
        # holding a wide f32 slab live across the views MLP.
        out_ref[...] = z[:, W2:W2 + OUTPUT_CH]

        # views_linears[0]: torch input is cat([feature, input_views], -1).
        hv = z[:, :W2] + jnp.dot(views_ref[...], wvv_ref[...],
                                 preferred_element_type=f32)
        hv = relu_bf16(hv)
        for j in range(D // 4):
            zz = jnp.dot(hv, vw_ref[j], preferred_element_type=f32) + vb_ref[j]
            hv = relu_bf16(zz)

        # rgb_linear padded into cols 0:3 of [128, 128]; lane 3 stays 0, so
        # accumulating onto the parked alpha reproduces cat([rgb, alpha], -1).
        rgb = jnp.dot(hv, wr_ref[...], preferred_element_type=f32) + br_ref[...]
        out_ref[...] = out_ref[...] + rgb[:, :OUTPUT_CH]
    else:
        # output_linear padded into cols 0:4 of [256, 128].
        slab = jnp.dot(h, wo_ref[...], preferred_element_type=f32) + bo_ref[...]
        out_ref[...] = slab[:, :OUTPUT_CH]


# ---------------------------------------------------------------------------
# Wrapper
# ---------------------------------------------------------------------------
def _bf16_epilogue_ok():
    # bf16 VALU exists on v6e / v7x; keep f32 epilogue on v5e / unknown devices.
    try:
        kind = jax.devices()[0].device_kind.lower()
    except Exception:
        return False
    return ("v6" in kind) or ("v7" in kind)


def _flops_per_row(use_viewdirs):
    f = 2 * PTS_PAD * W                    # layer 0
    f += 2 * 4 * W * W                     # layers 1-4
    f += 2 * (PTS_PAD * W + W * W)         # skip layer 5 (split matmul)
    f += 2 * 2 * W * W                     # layers 6, 7
    if use_viewdirs:
        f += 2 * W * W                     # fused alpha + views0 h-part
        f += 2 * VIEWS_PAD * W2            # views0 view-part
        f += 2 * (D // 4) * W2 * W2        # views_linears[1:]
        f += 2 * W2 * W2                   # rgb_linear (padded)
    else:
        f += 2 * W * W2                    # output_linear (padded)
    return f


def facenerf_pallas(x, kernel_params, use_viewdirs, tm=512):
    n = x.shape[0]
    assert tm % 8 == 0
    n_pad = ((n + tm - 1) // tm) * tm      # pad rows; garbage rows sliced off
    grid = n_pad // tm

    bfd = jnp.bfloat16
    pts = jnp.zeros((n_pad, PTS_PAD), bfd)
    pts = pts.at[:n, :INPUT_CH_ALL].set(x[:, :INPUT_CH_ALL].astype(bfd))
    inputs = [pts]
    in_specs = [pl.BlockSpec((tm, PTS_PAD), lambda i: (i, 0))]
    if use_viewdirs:
        views = jnp.zeros((n_pad, VIEWS_PAD), bfd)
        views = views.at[:n, :INPUT_CH_VIEWS].set(
            x[:, INPUT_CH_ALL:].astype(bfd))
        inputs.append(views)
        in_specs.append(pl.BlockSpec((tm, VIEWS_PAD), lambda i: (i, 0)))
    for p in kernel_params:
        # Constant block index -> parameters stay resident in VMEM.
        in_specs.append(pl.BlockSpec(p.shape, lambda i, _z=(0,) * p.ndim: _z))
    out_spec = pl.BlockSpec((tm, OUTPUT_CH), lambda i: (i, 0))

    param_bytes = sum(int(p.size) * p.dtype.itemsize for p in kernel_params)
    io_bytes = n_pad * (PTS_PAD * 2 + (VIEWS_PAD * 2 if use_viewdirs else 0)
                        + OUTPUT_CH * 4)
    cost = pl.CostEstimate(flops=n_pad * _flops_per_row(use_viewdirs),
                           transcendentals=0,
                           bytes_accessed=io_bytes + param_bytes)

    kernel = functools.partial(_facenerf_kernel, use_viewdirs,
                               _bf16_epilogue_ok())
    out = pl.pallas_call(
        kernel,
        out_shape=jax.ShapeDtypeStruct((n_pad, OUTPUT_CH), jnp.float32),
        grid_spec=pltpu.PrefetchScalarGridSpec(
            num_scalar_prefetch=0,
            grid=(grid,),
            in_specs=in_specs,
            out_specs=out_spec,
        ),
        compiler_params=pltpu.CompilerParams(
            dimension_semantics=("parallel",)),
        cost_estimate=cost,
    )(*inputs, *kernel_params)
    return out[:n]


# ---------------------------------------------------------------------------
# Deterministic parameter init (PyTorch nn.Linear-style uniform)
# ---------------------------------------------------------------------------
def _init_linear(key, fan_in, fan_out):
    kw, kb = jax.random.split(key)
    bound = float(1.0 / (fan_in ** 0.5))
    w = jax.random.uniform(kw, (fan_in, fan_out), jnp.float32, -bound, bound)
    b = jax.random.uniform(kb, (1, fan_out), jnp.float32, -bound, bound)
    return w, b


def init_raw_params(key, use_viewdirs):
    keys = iter(jax.random.split(key, 32))
    raw = {"pts": []}
    for i in range(D):
        in_dim = INPUT_CH_ALL if i == 0 else (
            W + INPUT_CH_ALL if (i - 1) in SKIPS else W)
        raw["pts"].append(_init_linear(next(keys), in_dim, W))
    if use_viewdirs:
        raw["alpha"] = _init_linear(next(keys), W, 1)
        raw["views"] = [_init_linear(next(keys), INPUT_CH_VIEWS + W, W2)]
        for _ in range(D // 4):
            raw["views"].append(_init_linear(next(keys), W2, W2))
        raw["rgb"] = _init_linear(next(keys), W2, 3)
    else:
        raw["output"] = _init_linear(next(keys), W, OUTPUT_CH)
    return raw


# ---------------------------------------------------------------------------
# Host-side parameter prep: split / pad / stack / cast for the kernel
# ---------------------------------------------------------------------------
def _pad_rows(w, rows):
    return jnp.pad(w, ((0, rows - w.shape[0]), (0, 0)))


def to_kernel_params(raw, use_viewdirs):
    bf = lambda a: a.astype(jnp.bfloat16)
    f32 = lambda a: a.astype(jnp.float32)

    w0p, wt, bt = [], [], []
    for i, (w, b) in enumerate(raw["pts"]):
        bt.append(b)                                     # [1, 256]
        if i == 0:
            w0p.append(_pad_rows(w, PTS_PAD))
        elif (i - 1) in SKIPS:
            # torch cat order is [input_pts, h] -> rows 0:35 are the pts part.
            w0p.append(_pad_rows(w[:INPUT_CH_ALL], PTS_PAD))
            wt.append(w[INPUT_CH_ALL:])
        else:
            wt.append(w)
    params = [bf(jnp.stack(w0p)),                        # [2, 48, 256]
              bf(jnp.stack(wt)),                         # [7, 256, 256]
              f32(jnp.stack(bt))]                        # [8, 1, 256]

    if use_viewdirs:
        wa, ba = raw["alpha"]                            # [256, 1], [1, 1]
        wv0, bv0 = raw["views"][0]                       # [259, 128], [1, 128]
        # Fused weight: cols 0:128 = views0 feature part, col 131 = alpha.
        fused_w = jnp.zeros((W, W), jnp.float32)
        fused_w = fused_w.at[:, :W2].set(wv0[:W])
        fused_w = fused_w.at[:, W2 + 3:W2 + 4].set(wa)
        fused_b = jnp.zeros((1, W), jnp.float32)
        fused_b = fused_b.at[:, :W2].set(bv0)
        fused_b = fused_b.at[:, W2 + 3:W2 + 4].set(ba)
        wv_v = _pad_rows(wv0[W:], VIEWS_PAD)             # [16, 128]
        vw = jnp.stack([w for w, _ in raw["views"][1:]])  # [2, 128, 128]
        vb = jnp.stack([b for _, b in raw["views"][1:]])  # [2, 1, 128]
        wr, br = raw["rgb"]                              # [128, 3], [1, 3]
        wr_p = jnp.zeros((W2, W2), jnp.float32).at[:, :3].set(wr)
        br_p = jnp.zeros((1, W2), jnp.float32).at[:, :3].set(br)
        params += [bf(fused_w), f32(fused_b), bf(wv_v), bf(vw),
                   f32(vb), bf(wr_p), f32(br_p)]
    else:
        wo, bo = raw["output"]                           # [256, 4], [1, 4]
        wo_p = jnp.zeros((W, W2), jnp.float32).at[:, :OUTPUT_CH].set(wo)
        bo_p = jnp.zeros((1, W2), jnp.float32).at[:, :OUTPUT_CH].set(bo)
        params += [bf(wo_p), f32(bo_p)]
    return params


# ---------------------------------------------------------------------------
# Pure-JAX reference (mirrors the torch forward exactly, with real concats)
# ---------------------------------------------------------------------------
def facenerf_ref(x, raw, use_viewdirs):
    input_pts = x[:, :INPUT_CH_ALL]
    input_views = x[:, INPUT_CH_ALL:]
    h = input_pts
    for i, (w, b) in enumerate(raw["pts"]):
        h = jax.nn.relu(h @ w + b)
        if i in SKIPS:
            h = jnp.concatenate([input_pts, h], -1)
    if use_viewdirs:
        wa, ba = raw["alpha"]
        alpha = h @ wa + ba
        hv = jnp.concatenate([h, input_views], -1)
        for w, b in raw["views"]:
            hv = jax.nn.relu(hv @ w + b)
        wr, br = raw["rgb"]
        rgb = hv @ wr + br
        return jnp.concatenate([rgb, alpha], -1)
    wo, bo = raw["output"]
    return h @ wo + bo


# ---------------------------------------------------------------------------
if __name__ == "__main__":
    key = jax.random.PRNGKey(0)
    kx, kp_true, kp_false = jax.random.split(key, 3)

    N = 1000    # not a multiple of tm -> exercises the row-padding path
    TM = 512    # rows padded to 1024 -> 2 "parallel" grid steps
    x = jax.random.normal(kx, (N, INPUT_CH_ALL + INPUT_CH_VIEWS), jnp.float32)

    for use_viewdirs, kp in ((True, kp_true), (False, kp_false)):
        raw = init_raw_params(kp, use_viewdirs)
        kparams = to_kernel_params(raw, use_viewdirs)

        out = facenerf_pallas(x, kparams, use_viewdirs, tm=TM)
        out = jax.block_until_ready(out)

        ref = facenerf_ref(x, raw, use_viewdirs)
        assert out.shape == (N, OUTPUT_CH), out.shape
        err = jnp.max(jnp.abs(out - ref))
        assert jnp.allclose(out, ref, rtol=3e-2, atol=3e-2), (
            f"mismatch (use_viewdirs={use_viewdirs}): max_err={err}")

    print("KERNEL_OK")
</pallas_src>

<mosaic_0001>
module attributes {stable_mosaic.version = 11 : i64} {
  func.func @_facenerf_kernel(%arg0: i32, %arg1: memref<512x48xbf16, #tpu.memory_space<vmem>>, %arg2: memref<512x16xbf16, #tpu.memory_space<vmem>>, %arg3: memref<2x48x256xbf16, #tpu.memory_space<vmem>>, %arg4: memref<7x256x256xbf16, #tpu.memory_space<vmem>>, %arg5: memref<8x1x256xf32, #tpu.memory_space<vmem>>, %arg6: memref<256x256xbf16, #tpu.memory_space<vmem>>, %arg7: memref<1x256xf32, #tpu.memory_space<vmem>>, %arg8: memref<16x128xbf16, #tpu.memory_space<vmem>>, %arg9: memref<2x128x128xbf16, #tpu.memory_space<vmem>>, %arg10: memref<2x1x128xf32, #tpu.memory_space<vmem>>, %arg11: memref<128x128xbf16, #tpu.memory_space<vmem>>, %arg12: memref<1x128xf32, #tpu.memory_space<vmem>>, %arg13: memref<512x4xf32, #tpu.memory_space<vmem>>) attributes {dimension_semantics = [#tpu.dimension_semantics<parallel>], iteration_bounds = array<i64: 2>, scalar_prefetch = 0 : i64, scratch_operands = 0 : i64, tpu.core_type = #tpu.core_type<tc>, window_params = [{transform_indices = @transform_0, window_bounds = array<i64: 512, 48>}, {transform_indices = @transform_1, window_bounds = array<i64: 512, 16>}, {pipeline_mode = #tpu.pipeline_mode<synchronous>, transform_indices = @transform_2, window_bounds = array<i64: 2, 48, 256>}, {pipeline_mode = #tpu.pipeline_mode<synchronous>, transform_indices = @transform_3, window_bounds = array<i64: 7, 256, 256>}, {pipeline_mode = #tpu.pipeline_mode<synchronous>, transform_indices = @transform_4, window_bounds = array<i64: 8, 1, 256>}, {pipeline_mode = #tpu.pipeline_mode<synchronous>, transform_indices = @transform_5, window_bounds = array<i64: 256, 256>}, {pipeline_mode = #tpu.pipeline_mode<synchronous>, transform_indices = @transform_6, window_bounds = array<i64: 1, 256>}, {pipeline_mode = #tpu.pipeline_mode<synchronous>, transform_indices = @transform_7, window_bounds = array<i64: 16, 128>}, {pipeline_mode = #tpu.pipeline_mode<synchronous>, transform_indices = @transform_8, window_bounds = array<i64: 2, 128, 128>}, {pipeline_mode = #tpu.pipeline_mode<synchronous>, transform_indices = @transform_9, window_bounds = array<i64: 2, 1, 128>}, {pipeline_mode = #tpu.pipeline_mode<synchronous>, transform_indices = @transform_10, window_bounds = array<i64: 128, 128>}, {pipeline_mode = #tpu.pipeline_mode<synchronous>, transform_indices = @transform_11, window_bounds = array<i64: 1, 128>}, {transform_indices = @transform_12, window_bounds = array<i64: 512, 4>}]} {
    %c0 = arith.constant 0 : index
    %c0_0 = arith.constant 0 : index
    %0 = vector.load %arg1[%c0, %c0_0] : memref<512x48xbf16, #tpu.memory_space<vmem>>, vector<512x48xbf16>
    %c0_1 = arith.constant 0 : index
    %c0_2 = arith.constant 0 : index
    %c0_3 = arith.constant 0 : index
    %1 = vector.load %arg5[%c0_1, %c0_2, %c0_3] : memref<8x1x256xf32, #tpu.memory_space<vmem>>, vector<1x1x256xf32>
    %2 = vector.shape_cast %1 : vector<1x1x256xf32> to vector<1x256xf32>
    %c0_4 = arith.constant 0 : index
    %c0_5 = arith.constant 0 : index
    %c0_6 = arith.constant 0 : index
    %3 = vector.load %arg3[%c0_4, %c0_5, %c0_6] : memref<2x48x256xbf16, #tpu.memory_space<vmem>>, vector<1x48x256xbf16>
    %4 = vector.shape_cast %3 : vector<1x48x256xbf16> to vector<48x256xbf16>
    %cst = arith.constant dense<0.000000e+00> : vector<512x256xf32>
    %5 = tpu.matmul %0, %4, %cst {dimension_numbers = #tpu.dot_dimension_numbers<[1], [0], [0], [1], [0, 0, 1, 1], [], []>} : vector<512x48xbf16>, vector<48x256xbf16>, vector<512x256xf32> -> vector<512x256xf32>
    %6 = vector.broadcast %2 : vector<1x256xf32> to vector<512x256xf32>
    %7 = arith.addf %5, %6 : vector<512x256xf32>
    %cst_7 = arith.constant 0.000000e+00 : f32
    %8 = vector.broadcast %cst_7 : f32 to vector<512x256xf32>
    %9 = arith.maximumf %7, %8 : vector<512x256xf32>
    %10 = arith.truncf %9 : vector<512x256xf32> to vector<512x256xbf16>
    %c1 = arith.constant 1 : index
    %c0_8 = arith.constant 0 : index
    %c0_9 = arith.constant 0 : index
    %11 = vector.load %arg5[%c1, %c0_8, %c0_9] : memref<8x1x256xf32, #tpu.memory_space<vmem>>, vector<1x1x256xf32>
    %12 = vector.shape_cast %11 : vector<1x1x256xf32> to vector<1x256xf32>
    %c0_10 = arith.constant 0 : index
    %c0_11 = arith.constant 0 : index
    %c0_12 = arith.constant 0 : index
    %13 = vector.load %arg4[%c0_10, %c0_11, %c0_12] : memref<7x256x256xbf16, #tpu.memory_space<vmem>>, vector<1x256x256xbf16>
    %14 = vector.shape_cast %13 : vector<1x256x256xbf16> to vector<256x256xbf16>
    %cst_13 = arith.constant dense<0.000000e+00> : vector<512x256xf32>
    %15 = tpu.matmul %10, %14, %cst_13 {dimension_numbers = #tpu.dot_dimension_numbers<[1], [0], [0], [1], [0, 0, 1, 1], [], []>} : vector<512x256xbf16>, vector<256x256xbf16>, vector<512x256xf32> -> vector<512x256xf32>
    %16 = vector.broadcast %12 : vector<1x256xf32> to vector<512x256xf32>
    %17 = arith.addf %15, %16 : vector<512x256xf32>
    %cst_14 = arith.constant 0.000000e+00 : f32
    %18 = vector.broadcast %cst_14 : f32 to vector<512x256xf32>
    %19 = arith.maximumf %17, %18 : vector<512x256xf32>
    %20 = arith.truncf %19 : vector<512x256xf32> to vector<512x256xbf16>
    %c2 = arith.constant 2 : index
    %c0_15 = arith.constant 0 : index
    %c0_16 = arith.constant 0 : index
    %21 = vector.load %arg5[%c2, %c0_15, %c0_16] : memref<8x1x256xf32, #tpu.memory_space<vmem>>, vector<1x1x256xf32>
    %22 = vector.shape_cast %21 : vector<1x1x256xf32> to vector<1x256xf32>
    %c1_17 = arith.constant 1 : index
    %c0_18 = arith.constant 0 : index
    %c0_19 = arith.constant 0 : index
    %23 = vector.load %arg4[%c1_17, %c0_18, %c0_19] : memref<7x256x256xbf16, #tpu.memory_space<vmem>>, vector<1x256x256xbf16>
    %24 = vector.shape_cast %23 : vector<1x256x256xbf16> to vector<256x256xbf16>
    %cst_20 = arith.constant dense<0.000000e+00> : vector<512x256xf32>
    %25 = tpu.matmul %20, %24, %cst_20 {dimension_numbers = #tpu.dot_dimension_numbers<[1], [0], [0], [1], [0, 0, 1, 1], [], []>} : vector<512x256xbf16>, vector<256x256xbf16>, vector<512x256xf32> -> vector<512x256xf32>
    %26 = vector.broadcast %22 : vector<1x256xf32> to vector<512x256xf32>
    %27 = arith.addf %25, %26 : vector<512x256xf32>
    %cst_21 = arith.constant 0.000000e+00 : f32
    %28 = vector.broadcast %cst_21 : f32 to vector<512x256xf32>
    %29 = arith.maximumf %27, %28 : vector<512x256xf32>
    %30 = arith.truncf %29 : vector<512x256xf32> to vector<512x256xbf16>
    %c3 = arith.constant 3 : index
    %c0_22 = arith.constant 0 : index
    %c0_23 = arith.constant 0 : index
    %31 = vector.load %arg5[%c3, %c0_22, %c0_23] : memref<8x1x256xf32, #tpu.memory_space<vmem>>, vector<1x1x256xf32>
    %32 = vector.shape_cast %31 : vector<1x1x256xf32> to vector<1x256xf32>
    %c2_24 = arith.constant 2 : index
    %c0_25 = arith.constant 0 : index
    %c0_26 = arith.constant 0 : index
    %33 = vector.load %arg4[%c2_24, %c0_25, %c0_26] : memref<7x256x256xbf16, #tpu.memory_space<vmem>>, vector<1x256x256xbf16>
    %34 = vector.shape_cast %33 : vector<1x256x256xbf16> to vector<256x256xbf16>
    %cst_27 = arith.constant dense<0.000000e+00> : vector<512x256xf32>
    %35 = tpu.matmul %30, %34, %cst_27 {dimension_numbers = #tpu.dot_dimension_numbers<[1], [0], [0], [1], [0, 0, 1, 1], [], []>} : vector<512x256xbf16>, vector<256x256xbf16>, vector<512x256xf32> -> vector<512x256xf32>
    %36 = vector.broadcast %32 : vector<1x256xf32> to vector<512x256xf32>
    %37 = arith.addf %35, %36 : vector<512x256xf32>
    %cst_28 = arith.constant 0.000000e+00 : f32
    %38 = vector.broadcast %cst_28 : f32 to vector<512x256xf32>
    %39 = arith.maximumf %37, %38 : vector<512x256xf32>
    %40 = arith.truncf %39 : vector<512x256xf32> to vector<512x256xbf16>
    %c4 = arith.constant 4 : index
    %c0_29 = arith.constant 0 : index
    %c0_30 = arith.constant 0 : index
    %41 = vector.load %arg5[%c4, %c0_29, %c0_30] : memref<8x1x256xf32, #tpu.memory_space<vmem>>, vector<1x1x256xf32>
    %42 = vector.shape_cast %41 : vector<1x1x256xf32> to vector<1x256xf32>
    %c3_31 = arith.constant 3 : index
    %c0_32 = arith.constant 0 : index
    %c0_33 = arith.constant 0 : index
    %43 = vector.load %arg4[%c3_31, %c0_32, %c0_33] : memref<7x256x256xbf16, #tpu.memory_space<vmem>>, vector<1x256x256xbf16>
    %44 = vector.shape_cast %43 : vector<1x256x256xbf16> to vector<256x256xbf16>
    %cst_34 = arith.constant dense<0.000000e+00> : vector<512x256xf32>
    %45 = tpu.matmul %40, %44, %cst_34 {dimension_numbers = #tpu.dot_dimension_numbers<[1], [0], [0], [1], [0, 0, 1, 1], [], []>} : vector<512x256xbf16>, vector<256x256xbf16>, vector<512x256xf32> -> vector<512x256xf32>
    %46 = vector.broadcast %42 : vector<1x256xf32> to vector<512x256xf32>
    %47 = arith.addf %45, %46 : vector<512x256xf32>
    %cst_35 = arith.constant 0.000000e+00 : f32
    %48 = vector.broadcast %cst_35 : f32 to vector<512x256xf32>
    %49 = arith.maximumf %47, %48 : vector<512x256xf32>
    %50 = arith.truncf %49 : vector<512x256xf32> to vector<512x256xbf16>
    %c5 = arith.constant 5 : index
    %c0_36 = arith.constant 0 : index
    %c0_37 = arith.constant 0 : index
    %51 = vector.load %arg5[%c5, %c0_36, %c0_37] : memref<8x1x256xf32, #tpu.memory_space<vmem>>, vector<1x1x256xf32>
    %52 = vector.shape_cast %51 : vector<1x1x256xf32> to vector<1x256xf32>
    %c0_38 = arith.constant 0 : index
    %c0_39 = arith.constant 0 : index
    %53 = vector.load %arg1[%c0_38, %c0_39] : memref<512x48xbf16, #tpu.memory_space<vmem>>, vector<512x48xbf16>
    %c1_40 = arith.constant 1 : index
    %c0_41 = arith.constant 0 : index
    %c0_42 = arith.constant 0 : index
    %54 = vector.load %arg3[%c1_40, %c0_41, %c0_42] : memref<2x48x256xbf16, #tpu.memory_space<vmem>>, vector<1x48x256xbf16>
    %55 = vector.shape_cast %54 : vector<1x48x256xbf16> to vector<48x256xbf16>
    %cst_43 = arith.constant dense<0.000000e+00> : vector<512x256xf32>
    %56 = tpu.matmul %53, %55, %cst_43 {dimension_numbers = #tpu.dot_dimension_numbers<[1], [0], [0], [1], [0, 0, 1, 1], [], []>} : vector<512x48xbf16>, vector<48x256xbf16>, vector<512x256xf32> -> vector<512x256xf32>
    %c4_44 = arith.constant 4 : index
    %c0_45 = arith.constant 0 : index
    %c0_46 = arith.constant 0 : index
    %57 = vector.load %arg4[%c4_44, %c0_45, %c0_46] : memref<7x256x256xbf16, #tpu.memory_space<vmem>>, vector<1x256x256xbf16>
    %58 = vector.shape_cast %57 : vector<1x256x256xbf16> to vector<256x256xbf16>
    %cst_47 = arith.constant dense<0.000000e+00> : vector<512x256xf32>
    %59 = tpu.matmul %50, %58, %cst_47 {dimension_numbers = #tpu.dot_dimension_numbers<[1], [0], [0], [1], [0, 0, 1, 1], [], []>} : vector<512x256xbf16>, vector<256x256xbf16>, vector<512x256xf32> -> vector<512x256xf32>
    %60 = arith.addf %56, %59 : vector<512x256xf32>
    %61 = vector.broadcast %52 : vector<1x256xf32> to vector<512x256xf32>
    %62 = arith.addf %60, %61 : vector<512x256xf32>
    %cst_48 = arith.constant 0.000000e+00 : f32
    %63 = vector.broadcast %cst_48 : f32 to vector<512x256xf32>
    %64 = arith.maximumf %62, %63 : vector<512x256xf32>
    %65 = arith.truncf %64 : vector<512x256xf32> to vector<512x256xbf16>
    %c6 = arith.constant 6 : index
    %c0_49 = arith.constant 0 : index
    %c0_50 = arith.constant 0 : index
    %66 = vector.load %arg5[%c6, %c0_49, %c0_50] : memref<8x1x256xf32, #tpu.memory_space<vmem>>, vector<1x1x256xf32>
    %67 = vector.shape_cast %66 : vector<1x1x256xf32> to vector<1x256xf32>
    %c5_51 = arith.constant 5 : index
    %c0_52 = arith.constant 0 : index
    %c0_53 = arith.constant 0 : index
    %68 = vector.load %arg4[%c5_51, %c0_52, %c0_53] : memref<7x256x256xbf16, #tpu.memory_space<vmem>>, vector<1x256x256xbf16>
    %69 = vector.shape_cast %68 : vector<1x256x256xbf16> to vector<256x256xbf16>
    %cst_54 = arith.constant dense<0.000000e+00> : vector<512x256xf32>
    %70 = tpu.matmul %65, %69, %cst_54 {dimension_numbers = #tpu.dot_dimension_numbers<[1], [0], [0], [1], [0, 0, 1, 1], [], []>} : vector<512x256xbf16>, vector<256x256xbf16>, vector<512x256xf32> -> vector<512x256xf32>
    %71 = vector.broadcast %67 : vector<1x256xf32> to vector<512x256xf32>
    %72 = arith.addf %70, %71 : vector<512x256xf32>
    %cst_55 = arith.constant 0.000000e+00 : f32
    %73 = vector.broadcast %cst_55 : f32 to vector<512x256xf32>
    %74 = arith.maximumf %72, %73 : vector<512x256xf32>
    %75 = arith.truncf %74 : vector<512x256xf32> to vector<512x256xbf16>
    %c7 = arith.constant 7 : index
    %c0_56 = arith.constant 0 : index
    %c0_57 = arith.constant 0 : index
    %76 = vector.load %arg5[%c7, %c0_56, %c0_57] : memref<8x1x256xf32, #tpu.memory_space<vmem>>, vector<1x1x256xf32>
    %77 = vector.shape_cast %76 : vector<1x1x256xf32> to vector<1x256xf32>
    %c6_58 = arith.constant 6 : index
    %c0_59 = arith.constant 0 : index
    %c0_60 = arith.constant 0 : index
    %78 = vector.load %arg4[%c6_58, %c0_59, %c0_60] : memref<7x256x256xbf16, #tpu.memory_space<vmem>>, vector<1x256x256xbf16>
    %79 = vector.shape_cast %78 : vector<1x256x256xbf16> to vector<256x256xbf16>
    %cst_61 = arith.constant dense<0.000000e+00> : vector<512x256xf32>
    %80 = tpu.matmul %75, %79, %cst_61 {dimension_numbers = #tpu.dot_dimension_numbers<[1], [0], [0], [1], [0, 0, 1, 1], [], []>} : vector<512x256xbf16>, vector<256x256xbf16>, vector<512x256xf32> -> vector<512x256xf32>
    %81 = vector.broadcast %77 : vector<1x256xf32> to vector<512x256xf32>
    %82 = arith.addf %80, %81 : vector<512x256xf32>
    %cst_62 = arith.constant 0.000000e+00 : f32
    %83 = vector.broadcast %cst_62 : f32 to vector<512x256xf32>
    %84 = arith.maximumf %82, %83 : vector<512x256xf32>
    %85 = arith.truncf %84 : vector<512x256xf32> to vector<512x256xbf16>
    %c0_63 = arith.constant 0 : index
    %c0_64 = arith.constant 0 : index
    %86 = vector.load %arg6[%c0_63, %c0_64] : memref<256x256xbf16, #tpu.memory_space<vmem>>, vector<256x256xbf16>
    %cst_65 = arith.constant dense<0.000000e+00> : vector<512x256xf32>
    %87 = tpu.matmul %85, %86, %cst_65 {dimension_numbers = #tpu.dot_dimension_numbers<[1], [0], [0], [1], [0, 0, 1, 1], [], []>} : vector<512x256xbf16>, vector<256x256xbf16>, vector<512x256xf32> -> vector<512x256xf32>
    %c0_66 = arith.constant 0 : index
    %c0_67 = arith.constant 0 : index
    %88 = vector.load %arg7[%c0_66, %c0_67] : memref<1x256xf32, #tpu.memory_space<vmem>>, vector<1x256xf32>
    %89 = vector.broadcast %88 : vector<1x256xf32> to vector<512x256xf32>
    %90 = arith.addf %87, %89 : vector<512x256xf32>
    %91 = vector.extract_strided_slice %90 {offsets = [0, 128], sizes = [512, 4], strides = [1, 1]} : vector<512x256xf32> to vector<512x4xf32>
    %c0_68 = arith.constant 0 : index
    %c0_69 = arith.constant 0 : index
    %92 = vector.load %arg13[%c0_68, %c0_69] : memref<512x4xf32, #tpu.memory_space<vmem>>, vector<512x4xf32>
    tpu.vector_store %arg13[%c0_68, %c0_69], %91 {strides = array<i32>} : memref<512x4xf32, #tpu.memory_space<vmem>>, vector<512x4xf32>,
    %93 = vector.extract_strided_slice %90 {offsets = [0, 0], sizes = [512, 128], strides = [1, 1]} : vector<512x256xf32> to vector<512x128xf32>
    %c0_70 = arith.constant 0 : index
    %c0_71 = arith.constant 0 : index
    %94 = vector.load %arg2[%c0_70, %c0_71] : memref<512x16xbf16, #tpu.memory_space<vmem>>, vector<512x16xbf16>
    %c0_72 = arith.constant 0 : index
    %c0_73 = arith.constant 0 : index
    %95 = vector.load %arg8[%c0_72, %c0_73] : memref<16x128xbf16, #tpu.memory_space<vmem>>, vector<16x128xbf16>
    %cst_74 = arith.constant dense<0.000000e+00> : vector<512x128xf32>
    %96 = tpu.matmul %94, %95, %cst_74 {dimension_numbers = #tpu.dot_dimension_numbers<[1], [0], [0], [1], [0, 0, 1, 1], [], []>} : vector<512x16xbf16>, vector<16x128xbf16>, vector<512x128xf32> -> vector<512x128xf32>
    %97 = arith.addf %93, %96 : vector<512x128xf32>
    %cst_75 = arith.constant 0.000000e+00 : f32
    %98 = vector.broadcast %cst_75 : f32 to vector<512x128xf32>
    %99 = arith.maximumf %97, %98 : vector<512x128xf32>
    %100 = arith.truncf %99 : vector<512x128xf32> to vector<512x128xbf16>
    %c0_76 = arith.constant 0 : index
    %c0_77 = arith.constant 0 : index
    %c0_78 = arith.constant 0 : index
    %101 = vector.load %arg9[%c0_76, %c0_77, %c0_78] : memref<2x128x128xbf16, #tpu.memory_space<vmem>>, vector<1x128x128xbf16>
    %102 = vector.shape_cast %101 : vector<1x128x128xbf16> to vector<128x128xbf16>
    %cst_79 = arith.constant dense<0.000000e+00> : vector<512x128xf32>
    %103 = tpu.matmul %100, %102, %cst_79 {dimension_numbers = #tpu.dot_dimension_numbers<[1], [0], [0], [1], [0, 0, 1, 1], [], []>} : vector<512x128xbf16>, vector<128x128xbf16>, vector<512x128xf32> -> vector<512x128xf32>
    %c0_80 = arith.constant 0 : index
    %c0_81 = arith.constant 0 : index
    %c0_82 = arith.constant 0 : index
    %104 = vector.load %arg10[%c0_80, %c0_81, %c0_82] : memref<2x1x128xf32, #tpu.memory_space<vmem>>, vector<1x1x128xf32>
    %105 = vector.shape_cast %104 : vector<1x1x128xf32> to vector<1x128xf32>
    %106 = vector.broadcast %105 : vector<1x128xf32> to vector<512x128xf32>
    %107 = arith.addf %103, %106 : vector<512x128xf32>
    %cst_83 = arith.constant 0.000000e+00 : f32
    %108 = vector.broadcast %cst_83 : f32 to vector<512x128xf32>
    %109 = arith.maximumf %107, %108 : vector<512x128xf32>
    %110 = arith.truncf %109 : vector<512x128xf32> to vector<512x128xbf16>
    %c1_84 = arith.constant 1 : index
    %c0_85 = arith.constant 0 : index
    %c0_86 = arith.constant 0 : index
    %111 = vector.load %arg9[%c1_84, %c0_85, %c0_86] : memref<2x128x128xbf16, #tpu.memory_space<vmem>>, vector<1x128x128xbf16>
    %112 = vector.shape_cast %111 : vector<1x128x128xbf16> to vector<128x128xbf16>
    %cst_87 = arith.constant dense<0.000000e+00> : vector<512x128xf32>
    %113 = tpu.matmul %110, %112, %cst_87 {dimension_numbers = #tpu.dot_dimension_numbers<[1], [0], [0], [1], [0, 0, 1, 1], [], []>} : vector<512x128xbf16>, vector<128x128xbf16>, vector<512x128xf32> -> vector<512x128xf32>
    %c1_88 = arith.constant 1 : index
    %c0_89 = arith.constant 0 : index
    %c0_90 = arith.constant 0 : index
    %114 = vector.load %arg10[%c1_88, %c0_89, %c0_90] : memref<2x1x128xf32, #tpu.memory_space<vmem>>, vector<1x1x128xf32>
    %115 = vector.shape_cast %114 : vector<1x1x128xf32> to vector<1x128xf32>
    %116 = vector.broadcast %115 : vector<1x128xf32> to vector<512x128xf32>
    %117 = arith.addf %113, %116 : vector<512x128xf32>
    %cst_91 = arith.constant 0.000000e+00 : f32
    %118 = vector.broadcast %cst_91 : f32 to vector<512x128xf32>
    %119 = arith.maximumf %117, %118 : vector<512x128xf32>
    %120 = arith.truncf %119 : vector<512x128xf32> to vector<512x128xbf16>
    %c0_92 = arith.constant 0 : index
    %c0_93 = arith.constant 0 : index
    %121 = vector.load %arg11[%c0_92, %c0_93] : memref<128x128xbf16, #tpu.memory_space<vmem>>, vector<128x128xbf16>
    %cst_94 = arith.constant dense<0.000000e+00> : vector<512x128xf32>
    %122 = tpu.matmul %120, %121, %cst_94 {dimension_numbers = #tpu.dot_dimension_numbers<[1], [0], [0], [1], [0, 0, 1, 1], [], []>} : vector<512x128xbf16>, vector<128x128xbf16>, vector<512x128xf32> -> vector<512x128xf32>
    %c0_95 = arith.constant 0 : index
    %c0_96 = arith.constant 0 : index
    %123 = vector.load %arg12[%c0_95, %c0_96] : memref<1x128xf32, #tpu.memory_space<vmem>>, vector<1x128xf32>
    %124 = vector.broadcast %123 : vector<1x128xf32> to vector<512x128xf32>
    %125 = arith.addf %122, %124 : vector<512x128xf32>
    %c0_97 = arith.constant 0 : index
    %c0_98 = arith.constant 0 : index
    %126 = vector.load %arg13[%c0_97, %c0_98] : memref<512x4xf32, #tpu.memory_space<vmem>>, vector<512x4xf32>
    %127 = vector.extract_strided_slice %125 {offsets = [0, 0], sizes = [512, 4], strides = [1, 1]} : vector<512x128xf32> to vector<512x4xf32>
    %128 = arith.addf %126, %127 : vector<512x4xf32>
    %c0_99 = arith.constant 0 : index
    %c0_100 = arith.constant 0 : index
    %129 = vector.load %arg13[%c0_99, %c0_100] : memref<512x4xf32, #tpu.memory_space<vmem>>, vector<512x4xf32>
    tpu.vector_store %arg13[%c0_99, %c0_100], %128 {strides = array<i32>} : memref<512x4xf32, #tpu.memory_space<vmem>>, vector<512x4xf32>,
    return
  }
  func.func @transform_0(%arg0: i32) -> (i32, i32) {
    %c0_i32 = arith.constant 0 : i32
    %c0_i32_0 = arith.constant 0 : i32
    return %arg0, %c0_i32 : i32, i32
  }
  func.func @transform_1(%arg0: i32) -> (i32, i32) {
    %c0_i32 = arith.constant 0 : i32
    %c0_i32_0 = arith.constant 0 : i32
    return %arg0, %c0_i32 : i32, i32
  }
  func.func @transform_2(%arg0: i32) -> (i32, i32, i32) {
    %c0_i32 = arith.constant 0 : i32
    %c0_i32_0 = arith.constant 0 : i32
    %c0_i32_1 = arith.constant 0 : i32
    %c0_i32_2 = arith.constant 0 : i32
    return %c0_i32, %c0_i32_0, %c0_i32_1 : i32, i32, i32
  }
  func.func @transform_3(%arg0: i32) -> (i32, i32, i32) {
    %c0_i32 = arith.constant 0 : i32
    %c0_i32_0 = arith.constant 0 : i32
    %c0_i32_1 = arith.constant 0 : i32
    %c0_i32_2 = arith.constant 0 : i32
    return %c0_i32, %c0_i32_0, %c0_i32_1 : i32, i32, i32
  }
  func.func @transform_4(%arg0: i32) -> (i32, i32, i32) {
    %c0_i32 = arith.constant 0 : i32
    %c0_i32_0 = arith.constant 0 : i32
    %c0_i32_1 = arith.constant 0 : i32
    %c0_i32_2 = arith.constant 0 : i32
    return %c0_i32, %c0_i32_0, %c0_i32_1 : i32, i32, i32
  }
  func.func @transform_5(%arg0: i32) -> (i32, i32) {
    %c0_i32 = arith.constant 0 : i32
    %c0_i32_0 = arith.constant 0 : i32
    %c0_i32_1 = arith.constant 0 : i32
    return %c0_i32, %c0_i32_0 : i32, i32
  }
  func.func @transform_6(%arg0: i32) -> (i32, i32) {
    %c0_i32 = arith.constant 0 : i32
    %c0_i32_0 = arith.constant 0 : i32
    %c0_i32_1 = arith.constant 0 : i32
    return %c0_i32, %c0_i32_0 : i32, i32
  }
  func.func @transform_7(%arg0: i32) -> (i32, i32) {
    %c0_i32 = arith.constant 0 : i32
    %c0_i32_0 = arith.constant 0 : i32
    %c0_i32_1 = arith.constant 0 : i32
    return %c0_i32, %c0_i32_0 : i32, i32
  }
  func.func @transform_8(%arg0: i32) -> (i32, i32, i32) {
    %c0_i32 = arith.constant 0 : i32
    %c0_i32_0 = arith.constant 0 : i32
    %c0_i32_1 = arith.constant 0 : i32
    %c0_i32_2 = arith.constant 0 : i32
    return %c0_i32, %c0_i32_0, %c0_i32_1 : i32, i32, i32
  }
  func.func @transform_9(%arg0: i32) -> (i32, i32, i32) {
    %c0_i32 = arith.constant 0 : i32
    %c0_i32_0 = arith.constant 0 : i32
    %c0_i32_1 = arith.constant 0 : i32
    %c0_i32_2 = arith.constant 0 : i32
    return %c0_i32, %c0_i32_0, %c0_i32_1 : i32, i32, i32
  }
  func.func @transform_10(%arg0: i32) -> (i32, i32) {
    %c0_i32 = arith.constant 0 : i32
    %c0_i32_0 = arith.constant 0 : i32
    %c0_i32_1 = arith.constant 0 : i32
    return %c0_i32, %c0_i32_0 : i32, i32
  }
  func.func @transform_11(%arg0: i32) -> (i32, i32) {
    %c0_i32 = arith.constant 0 : i32
    %c0_i32_0 = arith.constant 0 : i32
    %c0_i32_1 = arith.constant 0 : i32
    return %c0_i32, %c0_i32_0 : i32, i32
  }
  func.func @transform_12(%arg0: i32) -> (i32, i32) {
    %c0_i32 = arith.constant 0 : i32
    %c0_i32_0 = arith.constant 0 : i32
    return %arg0, %c0_i32 : i32, i32
  }
}

</mosaic_0001>

<bundles_post_ra>
// kernel: tpu_custom_call.1
= control target key start
LH: loop header
LB: loop body
LE: loop exit
PB: predicated region body
PF: predicated region fallthrough
CT: control target
= control target key end

     0   :  { %17 = vsyncpa [#allocation3], 0  ;;  %s11863_s21 = smov 0   ;;  %s14557_s0 = inlined_call_operand.vmem [shape: bf16[1024,48], index: 0, kind: input, shape index: {}]   ;;  %s14558_s1 = inlined_call_operand.vmem [shape: bf16[1024,16], index: 1, kind: input, shape index: {}]   ;;  %s14559_s2 = inlined_call_operand.vmem [shape: bf16[2,48,256], index: 2, kind: input, shape index: {}]   ;;  %s14560_s3 = inlined_call_operand.hbm [shape: bf16[7,256,256], index: 3, kind: input, shape index: {}]   ;;  %s14561_s4 = inlined_call_operand.vmem [shape: f32[8,1,256], index: 4, kind: input, shape index: {}]   ;;  %s14562_s5 = inlined_call_operand.vmem [shape: bf16[256,256], index: 5, kind: input, shape index: {}]   ;;  %s14563_s6 = inlined_call_operand.vmem [shape: f32[1,256], index: 6, kind: input, shape index: {}]   ;;  %s14564_s7 = inlined_call_operand.vmem [shape: bf16[16,128], index: 7, kind: input, shape index: {}]   ;;  %s14565_s8 = inlined_call_operand.vmem [shape: bf16[2,128,128], index: 8, kind: input, shape index: {}]   ;;  %s14566_s9 = inlined_call_operand.vmem [shape: f32[2,1,128], index: 9, kind: input, shape index: {}]   ;;  %s14567_s10 = inlined_call_operand.vmem [shape: bf16[128,128], index: 10, kind: input, shape index: {}]   ;;  %s14568_s11 = inlined_call_operand.vmem [shape: f32[1,128], index: 11, kind: input, shape index: {}]   ;;  %s14569_s12 = inlined_call_operand.vmem [shape: f32[1024,4], index: 12, kind: output, shape index: {}]  }
   0x1 LB: > { %s10089_s22 = sadd.s32 4294967295, %s11792_s21   ;;  %p10091_p0 = scmp.ge.s32.totalorder %s11792_s21, 1  ;;  %s11792_s21 = sphi %s11863_s21, %s23_s21  }
   0x2   : > { %p316_p1 = scmp.lt.s32.totalorder %s11792_s21, 3  ;;  %s11794_s23 = smov [#allocation2]  }
   0x3   : > { %s331_s24 = sshll.u32 %s11794_s23, 4  ;;  %p11877_p3 = scmp.eq.s32.totalorder %s10089_s22, 0  ;;  %s332_s24 = int_to_ptr.vmem [resolvable:$true] %s331_s24 }
   0x4   : > { %p11871_p2 = pnand %p10091_p0, %p316_p1  ;;  %s11754_s30 = scalar_lea.hbm %s14560_s3, 28672 }
   0x5   : > { %s14574_s26 = scalar_select %p11877_p3, 1, 0 }
   0x6   : > { %s14573_s25 = scalar_select %p11871_p2, 1, 0 }
   0x7   : > { %p11213_p4 = pneg %p11871_p2  ;;  %p11755_p6 = scmp.ne.s32.totalorder %s14560_s3, %s11754_s30 }
   0x8   : > { %p11761_p10 = scmp.lt.u32.totalorder %s11754_s30, %s14560_s3 }
   0x9   : > { %p11885_p5 = pnand %p11877_p3, %p11213_p4 }
   0xb   : > { %p11756_p7 = pneg %p11885_p5 }
   0xd   : > { %p11757_p8 = pnand %p11756_p7, %p11755_p6 }
   0xf   : > { %p11758_p9 = pneg %p11757_p8 }
  0x11   : > { %p11763_p11 = pnand %p11761_p10, %p11758_p9 }
  0x13   : > { %11766 = shalt.err (!%p11763_p11)
}
  0x14   : > { %s11767_s17 = scalar_lea.vmem %s332_s24, 28672  ;;  %p11775_p1 = scmp.lt.s32.totalorder %s332_s24, %s332_s24 }
  0x15   : > { %p11768_p12 = scmp.ne.s32.totalorder %s332_s24, %s11767_s17  ;;  %p11776_p4 = scmp.lt.s32.totalorder %s11767_s17, %s11767_s17 }
  0x17   : > { %p11770_p13 = pnand %p11768_p12, %p11756_p7  ;;  %p11777_p3 = por %p11776_p4, %p11775_p1 }
  0x19   : > { %p11771_p0 = pneg %p11770_p13 }
  0x1b   : > { %p11778_p2 = pnand %p11777_p3, %p11771_p0 }
  0x1d   : > { %11781 = shalt.err (!%p11778_p2)
}
  0x1e   : > { %s11795_s18 = smov 128   ;;  %s11796_s19 = smov 8  }
  0x1f   : > { %11216 = dma.hbm_to_vmem [thread:$0]  (!%p11885_p5), %s14560_s3, 28672, %s332_s24, [#allocation3], %s11795_s18, %s11795_s18, %s11796_s19  }
  0x20   : > { %p14576_p6 = scmp.ne.s32.totalorder %s14573_s25, 0 }
  0x21   : > { %p14577_p8 = scmp.ne.s32.totalorder (!%p14576_p6), %s14574_s26, 0 }
  0x22   : > { %389 = sbr.rel (%p14576_p6) target bundleno = 3255 (0xcb7), region = 68 }
  0x29   : > { %11787 = dma.done.wait (%p14577_p8), [#allocation3], 28672  }
  0x2a   : > { %11789 = vsyncadd (%p14577_p8), [#allocation3], 4294938624  ;;  %s10096_s28 = sshll.u32 %s10089_s22, 6  ;;  %v11797_v0 = vmov 0   ;;  %v11231_v1 = vld [vmem:[%s14559_s2 + $0x4] ss:$8 sps:$4 sm:$0xff]  }
  0x2b   : > { %856 = vmatprep.mubr.bf16.mxu0 %v11797_v0  ;;  %p437_p2 = scmp.lt.s32.totalorder %s10096_s28, 127  ;;  %v11233_v2 = vld [vmem:[%s14559_s2] ss:$8 sps:$4 sm:$0xff]   ;;  %824 = vmatprep.subr.bf16.mxu0 %v11231_v1  ;;  %v11234_v3 = vld [vmem:[%s14559_s2 + $0x14] ss:$8 sps:$4 sm:$0xff]   ;;  %vm727_vm0 = vcmask 392192  }
  0x2c   : > { %825 = vmatpush1.bf16.msra.mxu0 %v11233_v2  ;;  %v11236_v4 = vld [vmem:[%s14559_s2 + $0x10] ss:$8 sps:$4 sm:$0xff]   ;;  %v11237_v5 = vld [vmem:[%s14559_s2 + $0x24] ss:$8 sps:$4 sm:$0xff]   ;;  %v11239_v6 = vld [vmem:[%s14559_s2 + $0x20] ss:$8 sps:$4 sm:$0xff]  }
  0x2d   : > { %s14579_s28 = smov (!%p437_p2, %s10096_s28), 127  ;;  %826 = vmatprep.subr.bf16.mxu0 %v11234_v3  ;;  %v11260_v11 = vld [vmem:[#allocation2 + $0x4] ss:$8 sps:$4 sm:$0xff]   ;;  %v11262_v12 = vld [vmem:[#allocation2] ss:$8 sps:$4 sm:$0xff]   ;;  %vm7997_vm1 = vcmask 130048  }
  0x2e   : > { %s10097_s25 = sshll.u32 %s14579_s28, 2  ;;  %1574 = vmatprep.subr.bf16.mxu1 %v11260_v11  ;;  %v11264_v14 = vld [vmem:[#allocation2 + $0x14] ss:$8 sps:$4 sm:$0xff]   ;;  %v11266_v15 = vld [vmem:[#allocation2 + $0x10] ss:$8 sps:$4 sm:$0xff]   ;;  %s10101_s16 = sshll.u32 %s14579_s28, 3 }
  0x2f   : > { %s11934_s17 = scalar_lea.vmem %s14557_s0, %s10097_s25  ;;  %1575 = vmatpush1.bf16.msra.mxu1 %v11262_v12  ;;  %v11267_v16 = vld [vmem:[#allocation2 + $0x24] ss:$8 sps:$4 sm:$0xff]   ;;  %v11269_v17 = vld [vmem:[#allocation2 + $0x20] ss:$8 sps:$4 sm:$0xff]   ;;  %v11271_v19 = vld [vmem:[#allocation2 + $0x34] ss:$8 sps:$4 sm:$0xff]   ;;  %s13396_s22 = scalar_lea.vmem %s14558_s1, %s10097_s25 }
  0x30   : > { %827 = vmatpush1.bf16.msra.mxu0 %v11236_v4  ;;  %v11240_v7 = vld [vmem:[%s11934_s17] sm:$0xff]   ;;  %v11241_v8 = vld [vmem:[%s11934_s17 + $0x8] sm:$0xff]   ;;  %v11242_v9 = vld [vmem:[%s11934_s17 + $0x10] sm:$0xff]   ;;  %1576 = vmatprep.subr.bf16.mxu1 %v11264_v14  ;;  %s13729_s19 = scalar_lea.vmem %s14569_s12, %s10101_s16  ;;  %vm7700_vm2 = vcmask 31744  }
  0x31   : > { %828 = vmatprep.subr.bf16.mxu0 %v11237_v5  ;;  %v11243_v10 = vld [vmem:[%s11934_s17 + $0x18] sm:$0xff]   ;;  %v11244_v13 = vld [vmem:[%s11934_s17 + $0x20] sm:$0xff]   ;;  %v11245_v18 = vld [vmem:[%s11934_s17 + $0x28] sm:$0xff]  }
  0x32   : > { %v11273_v20 = vld [vmem:[#allocation2 + $0x30] ss:$8 sps:$4 sm:$0xff]   ;;  %v11274_v21 = vld [vmem:[#allocation2 + $0x44] ss:$8 sps:$4 sm:$0xff]   ;;  %v11276_v22 = vld [vmem:[#allocation2 + $0x40] ss:$8 sps:$4 sm:$0xff]  }
  0x33   : > { %1577 = vmatpush1.bf16.msra.mxu1 %v11266_v15  ;;  %v11246_v23 = vld [vmem:[%s11934_s17 + $0x30] sm:$0xff]   ;;  %v11281_v26 = vld [vmem:[#allocation2 + $0x64] ss:$8 sps:$4 sm:$0xff]   ;;  %v11283_v27 = vld [vmem:[#allocation2 + $0x60] ss:$8 sps:$4 sm:$0xff]  }
  0x34   : > { %829 = vmatpush1.bf16.msra.mxu0 %v11239_v6  ;;  %1578 = vmatprep.subr.bf16.mxu1 %v11267_v16  ;;  %v11278_v24 = vld [vmem:[#allocation2 + $0x54] ss:$8 sps:$4 sm:$0xff]   ;;  %v11280_v25 = vld [vmem:[#allocation2 + $0x50] ss:$8 sps:$4 sm:$0xff]   ;;  %v11288_v31 = vld [vmem:[#allocation2 + $0x100] ss:$8 sps:$4 sm:$0xff]  }
  0x35   : > { %v11247_v28 = vld [vmem:[%s11934_s17 + $0x38] sm:$0xff]   ;;  %v11290_v32 = vld [vmem:[#allocation2 + $0x104] ss:$8 sps:$4 sm:$0xff]   ;;  %v11293_v35 = vld [vmem:[#allocation2 + $0x80] ss:$8 sps:$4 sm:$0xff]  }
  0x36   : > { %v11285_v29 = vld [vmem:[#allocation2 + $0x74] ss:$8 sps:$4 sm:$0xff]   ;;  %v11287_v30 = vld [vmem:[#allocation2 + $0x70] ss:$8 sps:$4 sm:$0xff]   ;;  %v11291_v33 = vld [vmem:[#allocation2 + $0x84] ss:$8 sps:$4 sm:$0xff]   ;;  %2325 = vmatprep.subr.bf16.mxu0 %v11290_v32 }
  0x37   : > { %10140 = vmatmul.mubr.msk.bf16.vlgmr.msra.gmra.mrb[0].mxu0 %vm727_vm0, %v11240_v7  ;;  %1579 = vmatpush1.bf16.msra.mxu1 %v11269_v17  ;;  %v11248_v34 = vld [vmem:[%s11934_s17 + $0x40] sm:$0xff]   ;;  %v11295_v36 = vld [vmem:[#allocation2 + $0x94] ss:$8 sps:$4 sm:$0xff]   ;;  %v11297_v37 = vld [vmem:[#allocation2 + $0x90] ss:$8 sps:$4 sm:$0xff]  }
  0x38   : > { %866 = vmatprep.mubr.bf16.mxu0 %v11797_v0  ;;  %1580 = vmatprep.subr.bf16.mxu1 %v11271_v19  ;;  %v11298_v38 = vld [vmem:[#allocation2 + $0xa4] ss:$8 sps:$4 sm:$0xff]   ;;  %v11300_v39 = vld [vmem:[#allocation2 + $0xa0] ss:$8 sps:$4 sm:$0xff]   ;;  %v11302_v41 = vld [vmem:[#allocation2 + $0xb4] ss:$8 sps:$4 sm:$0xff]  }
  0x39   : > { %2326 = vmatpush1.bf16.msra.mxu0 %v11288_v31  ;;  %v11249_v40 = vld [vmem:[%s11934_s17 + $0x48] sm:$0xff]   ;;  %v11304_v42 = vld [vmem:[#allocation2 + $0xb0] ss:$8 sps:$4 sm:$0xff]   ;;  %v11307_v44 = vld [vmem:[#allocation2 + $0x114] ss:$8 sps:$4 sm:$0xff]  }
  0x3a   : > { %v11305_v43 = vld [vmem:[#allocation2 + $0x110] ss:$8 sps:$4 sm:$0xff]   ;;  %v11308_v45 = vld [vmem:[#allocation2 + $0xc4] ss:$8 sps:$4 sm:$0xff]   ;;  %v11310_v47 = vld [vmem:[#allocation2 + $0xc0] ss:$8 sps:$4 sm:$0xff]   ;;  %2327 = vmatprep.subr.bf16.mxu0 %v11307_v44 }
  0x3b   : > { %1581 = vmatpush1.bf16.msra.mxu1 %v11273_v20  ;;  %v11250_v46 = vld [vmem:[%s11934_s17 + $0x50] sm:$0xff]   ;;  %v11251_v50 = vld [vmem:[%s11934_s17 + $0x58] sm:$0xff]   ;;  %v11315_v51 = vld [vmem:[#allocation2 + $0xe4] ss:$8 sps:$4 sm:$0xff]   ;;  %v527_v20 = vlaneseq }
  0x3c   : > { %1582 = vmatprep.subr.bf16.mxu1 %v11274_v21  ;;  %v11312_v48 = vld [vmem:[#allocation2 + $0xd4] ss:$8 sps:$4 sm:$0xff]   ;;  %v11314_v49 = vld [vmem:[#allocation2 + $0xd0] ss:$8 sps:$4 sm:$0xff]   ;;  %v11317_v52 = vld [vmem:[#allocation2 + $0xe0] ss:$8 sps:$4 sm:$0xff]  }
  0x3d   : > { %2328 = vmatpush1.bf16.msra.mxu0 %v11305_v43  ;;  %v11319_v53 = vld [vmem:[#allocation2 + $0xf4] ss:$8 sps:$4 sm:$0xff]   ;;  %v11321_v54 = vld [vmem:[#allocation2 + $0xf0] ss:$8 sps:$4 sm:$0xff]   ;;  %v11252_v55 = vld [vmem:[%s11934_s17 + $0x60] sm:$0xff]   ;;  %v528_v21 = vshrl.u32 %v527_v20, 7 }
  0x3e   : > { %v11322_v56 = vld [vmem:[#allocation2 + $0x120] ss:$8 sps:$4 sm:$0xff]   ;;  %v11324_v57 = vld [vmem:[#allocation2 + $0x124] ss:$8 sps:$4 sm:$0xff]   ;;  %v11254_v59 = vld [vmem:[%s11934_s17 + $0x70] sm:$0xff]  }
  0x3f   : > { %10141 = vmatmul.mubr.msk.bf16.gmra.mrb[4].mxu0 %vm727_vm0, %v11241_v8  ;;  %1583 = vmatpush1.bf16.msra.mxu1 %v11276_v22  ;;  %v11253_v58 = vld [vmem:[%s11934_s17 + $0x68] sm:$0xff]   ;;  %v11327_v60 = vld [vmem:[#allocation2 + $0x130] ss:$8 sps:$4 sm:$0xff]   ;;  %v11329_v61 = vld [vmem:[#allocation2 + $0x134] ss:$8 sps:$4 sm:$0xff]  }
  0x40   : > { %876 = vmatprep.mubr.bf16.mxu0 %v11797_v0  ;;  %1584 = vmatprep.subr.bf16.mxu1 %v11278_v24  ;;  %v11255_v62 = vld [vmem:[%s11934_s17 + $0x78] sm:$0xff]   ;;  %v11256_v63 = vld [vmem:[%s11934_s17 + $0x80] sm:$0xff]   ;;  %v11257_v3 = vld [vmem:[%s11934_s17 + $0x88] sm:$0xff]  }
  0x41   : > { %2329 = vmatprep.subr.bf16.mxu0 %v11324_v57  ;;  %v11332_v1 = vld [vmem:[#allocation2 + $0x140] ss:$8 sps:$4 sm:$0xff]   ;;  %v11334_v2 = vld [vmem:[#allocation2 + $0x144] ss:$8 sps:$4 sm:$0xff]   ;;  %v11258_v4 = vld [vmem:[%s11934_s17 + $0x90] sm:$0xff]  }
  0x42   : > { %2330 = vmatpush1.bf16.msra.mxu0 %v11322_v56  ;;  %v11335_v5 = vld [vmem:[#allocation2 + $0x150] ss:$8 sps:$4 sm:$0xff]   ;;  %v11337_v6 = vld [vmem:[#allocation2 + $0x154] ss:$8 sps:$4 sm:$0xff]   ;;  %v11263_v8 = vld [vmem:[%s11934_s17 + $0xa0] sm:$0xff]  }
  0x43   : > { %1585 = vmatpush1.bf16.msra.mxu1 %v11280_v25  ;;  %2331 = vmatprep.subr.bf16.mxu0 %v11329_v61  ;;  %v11259_v7 = vld [vmem:[%s11934_s17 + $0x98] sm:$0xff]   ;;  %v11270_v11 = vld [vmem:[%s11934_s17 + $0xa8] sm:$0xff]   ;;  %v11277_v12 = vld [vmem:[%s11934_s17 + $0xb0] sm:$0xff]   ;;  %v12026_v25 = vsub.s32 1, %v528_v21 }
  0x44   : > { %1586 = vmatprep.subr.bf16.mxu1 %v11281_v26  ;;  %v11343_v14 = vld [vmem:[#allocation2 + $0x174] ss:$8 sps:$4 sm:$0xff]   ;;  %v11294_v16 = vld [vmem:[%s11934_s17 + $0xc0] sm:$0xff]   ;;  %v11301_v19 = vld [vmem:[%s11934_s17 + $0xc8] sm:$0xff]  }
  0x45   : > { %v11284_v15 = vld [vmem:[%s11934_s17 + $0xb8] sm:$0xff]   ;;  %v11344_v17 = vld [vmem:[#allocation2 + $0x180] ss:$8 sps:$4 sm:$0xff]   ;;  %v11311_v22 = vld [vmem:[%s11934_s17 + $0xd0] sm:$0xff]  }
  0x46   : > { %2332 = vmatpush1.bf16.msra.mxu0 %v11327_v60  ;;  %v519_v24 = vld [vmem:[%s14561_s4] sm:$0x3]  ;;  %v11347_v26 = vld [vmem:[#allocation2 + $0x190] ss:$8 sps:$4 sm:$0xff]  }
  0x47   : > { %10142 = vmatmul.mubr.msk.bf16.gmra.mrb[8].mxu0 %vm727_vm0, %v11242_v9  ;;  %1587 = vmatpush1.bf16.msra.mxu1 %v11283_v27  ;;  %v11338_v9 = vld [vmem:[#allocation2 + $0x160] ss:$8 sps:$4 sm:$0xff]   ;;  %v11349_v27 = vld [vmem:[#allocation2 + $0x194] ss:$8 sps:$4 sm:$0xff]  }
  0x48   : > { %886 = vmatprep.mubr.bf16.mxu0 %v11797_v0  ;;  %1588 = vmatprep.subr.bf16.mxu1 %v11285_v29  ;;  %v12034_v29 = vrot.slane %v519_v24, %v12026_v25 }
  0x49   : > { %2333 = vmatprep.subr.bf16.mxu0 %v11334_v2  ;;  %v11326_v2 = vld [vmem:[%s11934_s17 + $0xe8] sm:$0xff]  }
  0x4a   : > { %2334 = vmatpush1.bf16.msra.mxu0 %v11332_v1 }
  0x4b   : > { %1589 = vmatpush1.bf16.msra.mxu1 %v11287_v30  ;;  %2335 = vmatprep.subr.bf16.mxu0 %v11337_v6 }
  0x4c   : > { %1590 = vmatprep.subr.bf16.mxu1 %v11291_v33  ;;  %v11318_v33 = vld [vmem:[%s11934_s17 + $0xd8] sm:$0xff]  }
  0x4e   : > { %2336 = vmatpush1.bf16.msra.mxu0 %v11335_v5 }
  0x4f   : > { %10143 = vmatmul.mubr.msk.bf16.gmra.mrb[12].mxu0 %vm727_vm0, %v11243_v10  ;;  %1591 = vmatpush1.bf16.msra.mxu1 %v11293_v35  ;;  %v11340_v10 = vld [vmem:[#allocation2 + $0x164] ss:$8 sps:$4 sm:$0xff]  }
  0x50   : > { %896 = vmatprep.mubr.bf16.mxu0 %v11797_v0  ;;  %1592 = vmatprep.subr.bf16.mxu1 %v11295_v36 }
  0x51   : > { %2337 = vmatprep.subr.bf16.mxu0 %v11340_v10 }
  0x52   : > { %2338 = vmatpush1.bf16.msra.mxu0 %v11338_v9 }
  0x53   : > { %1593 = vmatpush1.bf16.msra.mxu1 %v11297_v37  ;;  %2339 = vmatprep.subr.bf16.mxu0 %v11343_v14 }
  0x54   : > { %1594 = vmatprep.subr.bf16.mxu1 %v11298_v38 }
  0x57   : > { %10144 = vmatmul.mubr.msk.bf16.gmra.mrb[16].mxu0 %vm727_vm0, %v11244_v13  ;;  %1595 = vmatpush1.bf16.msra.mxu1 %v11300_v39  ;;  %v11341_v13 = vld [vmem:[#allocation2 + $0x170] ss:$8 sps:$4 sm:$0xff]  }
  0x58   : > { %906 = vmatprep.mubr.bf16.mxu0 %v11797_v0  ;;  %1596 = vmatprep.subr.bf16.mxu1 %v11302_v41 }
  0x59   : > { %2340 = vmatpush1.bf16.msra.mxu0 %v11341_v13 }
  0x5b   : > { %1597 = vmatpush1.bf16.msra.mxu1 %v11304_v42 }
  0x5c   : > { %1598 = vmatprep.subr.bf16.mxu1 %v11308_v45 }
  0x5f   : > { %10145 = vmatmul.mubr.msk.bf16.gmra.mrb[20].mxu0 %vm727_vm0, %v11245_v18  ;;  %1599 = vmatpush1.bf16.msra.mxu1 %v11310_v47  ;;  %v11346_v18 = vld [vmem:[#allocation2 + $0x184] ss:$8 sps:$4 sm:$0xff]  }
  0x60   : > { %916 = vmatprep.mubr.bf16.mxu0 %v11797_v0  ;;  %1600 = vmatprep.subr.bf16.mxu1 %v11312_v48  ;;  %v11325_v48 = vld [vmem:[%s11934_s17 + $0xe0] sm:$0xff]  }
  0x61   : > { %2341 = vmatprep.subr.bf16.mxu0 %v11346_v18 }
  0x62   : > { %2342 = vmatpush1.bf16.msra.mxu0 %v11344_v17  ;;  %v11330_v17 = vld [vmem:[%s11934_s17 + $0xf0] sm:$0xff]  }
  0x63   : > { %1601 = vmatpush1.bf16.msra.mxu1 %v11314_v49  ;;  %2343 = vmatprep.subr.bf16.mxu0 %v11349_v27 }
  0x64   : > { %1602 = vmatprep.subr.bf16.mxu1 %v11315_v51 }
  0x66   : > { %2344 = vmatpush1.bf16.msra.mxu0 %v11347_v26 }
  0x67   : > { %10146 = vmatmul.mubr.msk.bf16.gmra.mrb[24].mxu0 %vm727_vm0, %v11246_v23  ;;  %1603 = vmatpush1.bf16.msra.mxu1 %v11317_v52  ;;  %v12021_v23 = vsub.s32 0, %v528_v21 }
  0x68   : > { %926 = vmatprep.mubr.bf16.mxu0 %v11797_v0  ;;  %1604 = vmatprep.subr.bf16.mxu1 %v11319_v53  ;;  %v11350_v53 = vld [vmem:[#allocation2 + $0x1a0] ss:$8 sps:$4 sm:$0xff]  }
  0x6b   : > { %1605 = vmatpush1.bf16.msra.mxu1 %v11321_v54  ;;  %v11352_v54 = vld [vmem:[#allocation2 + $0x1a4] ss:$8 sps:$4 sm:$0xff]  }
  0x6c   : > { %2345 = vmatprep.subr.bf16.mxu0 %v11352_v54 }
  0x6d   : > { %2346 = vmatpush1.bf16.msra.mxu0 %v11350_v53 }
  0x6f   : > { %10147 = vmatmul.mubr.msk.bf16.gmra.mrb[28].mxu0 %vm727_vm0, %v11247_v28  ;;  %v12030_v28 = vrot.slane %v519_v24, %v12021_v23  ;;  %v11355_v24 = vld [vmem:[#allocation2 + $0x1b4] ss:$8 sps:$4 sm:$0xff]  }
  0x70   : > { %936 = vmatprep.mubr.bf16.mxu0 %v11797_v0  ;;  %2347 = vmatprep.subr.bf16.mxu0 %v11355_v24 }
  0x77   : > { %10148 = vmatmul.mubr.msk.bf16.gmra.mrb[32].mxu0 %vm727_vm0, %v11248_v34 }
  0x78   : > { %946 = vmatprep.mubr.bf16.mxu0 %v11797_v0 }
  0x7f   : > { %10149 = vmatmul.mubr.msk.bf16.gmra.mrb[36].mxu0 %vm727_vm0, %v11249_v40 }
  0x80   : > { %956 = vmatprep.mubr.bf16.mxu0 %v11797_v0 }
  0x87   : > { %10150 = vmatmul.mubr.msk.bf16.gmra.mrb[40].mxu0 %vm727_vm0, %v11250_v46 }
  0x88   : > { %966 = vmatprep.mubr.bf16.mxu0 %v11797_v0 }
  0x8f   : > { %10151 = vmatmul.mubr.msk.bf16.gmra.mrb[44].mxu0 %vm727_vm0, %v11251_v50 }
  0x90   : > { %976 = vmatprep.mubr.bf16.mxu0 %v11797_v0 }
  0x97   : > { %10152 = vmatmul.mubr.msk.bf16.gmra.mrb[48].mxu0 %vm727_vm0, %v11252_v55 }
  0x98   : > { %986 = vmatprep.mubr.bf16.mxu0 %v11797_v0 }
  0x9f   : > { %10153 = vmatmul.mubr.msk.bf16.gmra.mrb[52].mxu0 %vm727_vm0, %v11253_v58 }
  0xa0   : > { %996 = vmatprep.mubr.bf16.mxu0 %v11797_v0 }
  0xa7   : > { %10154 = vmatmul.mubr.msk.bf16.gmra.mrb[56].mxu0 %vm727_vm0, %v11254_v59 }
  0xa8   : > { %1006 = vmatprep.mubr.bf16.mxu0 %v11797_v0 }
  0xaf   : > { %10155 = vmatmul.mubr.msk.bf16.gmra.mrb[60].mxu0 %vm727_vm0, %v11255_v62 }
  0xb0   : > { %1016 = vmatprep.mubr.bf16.mxu0 %v11797_v0 }
  0xb7   : > { %10156 = vmatmul.mubr.msk.bf16.gmra.mrb[64].mxu0 %vm727_vm0, %v11256_v63 }
  0xb8   : > { %1026 = vmatprep.mubr.bf16.mxu0 %v11797_v0 }
  0xbf   : > { %10157 = vmatmul.mubr.msk.bf16.gmra.mrb[68].mxu0 %vm727_vm0, %v11257_v3 }
  0xc0   : > { %1036 = vmatprep.mubr.bf16.mxu0 %v11797_v0 }
  0xc7   : > { %10158 = vmatmul.mubr.msk.bf16.gmra.mrb[72].mxu0 %vm727_vm0, %v11258_v4 }
  0xc8   : > { %1046 = vmatprep.mubr.bf16.mxu0 %v11797_v0 }
  0xcf   : > { %10159 = vmatmul.mubr.msk.bf16.gmra.mrb[76].mxu0 %vm727_vm0, %v11259_v7 }
  0xd0   : > { %1056 = vmatprep.mubr.bf16.mxu0 %v11797_v0 }
  0xd7   : > { %10160 = vmatmul.mubr.msk.bf16.gmra.mrb[80].mxu0 %vm727_vm0, %v11263_v8 }
  0xd8   : > { %1066 = vmatprep.mubr.bf16.mxu0 %v11797_v0 }
  0xdf   : > { %10161 = vmatmul.mubr.msk.bf16.gmra.mrb[84].mxu0 %vm727_vm0, %v11270_v11 }
  0xe0   : > { %1076 = vmatprep.mubr.bf16.mxu0 %v11797_v0 }
  0xe7   : > { %10162 = vmatmul.mubr.msk.bf16.gmra.mrb[88].mxu0 %vm727_vm0, %v11277_v12 }
  0xe8   : > { %1086 = vmatprep.mubr.bf16.mxu0 %v11797_v0 }
  0xef   : > { %10163 = vmatmul.mubr.msk.bf16.gmra.mrb[92].mxu0 %vm727_vm0, %v11284_v15 }
  0xf0   : > { %1096 = vmatprep.mubr.bf16.mxu0 %v11797_v0 }
  0xf7   : > { %10164 = vmatmul.mubr.msk.bf16.gmra.mrb[96].mxu0 %vm727_vm0, %v11294_v16 }
  0xf8   : > { %1106 = vmatprep.mubr.bf16.mxu0 %v11797_v0 }
  0xff   : > { %10165 = vmatmul.mubr.msk.bf16.gmra.mrb[100].mxu0 %vm727_vm0, %v11301_v19 }
 0x100   : > { %1116 = vmatprep.mubr.bf16.mxu0 %v11797_v0 }
 0x107   : > { %10166 = vmatmul.mubr.msk.bf16.gmra.mrb[104].mxu0 %vm727_vm0, %v11311_v22  ;;  %v11353_v22 = vld [vmem:[#allocation2 + $0x1b0] ss:$8 sps:$4 sm:$0xff]  }
 0x108   : > { %1126 = vmatprep.mubr.bf16.mxu0 %v11797_v0  ;;  %2348 = vmatpush1.bf16.msra.mxu0 %v11353_v22 }
 0x10a   : > { %v858_v30 = vpop.f32.mrb[0].mxu0 }
 0x10b   : > { %v859_v31 = vadd.f32 %v858_v30, %v12030_v28  ;;  %v860_v32 = vpop.f32.mrb[1].mxu0 }
 0x10c   : > { %v862_v34 = vpop.f32.mrb[2].mxu0  ;;  %v861_v35 = vadd.f32 %v860_v32, %v12034_v29 }
 0x10d   : > { %v863_v36 = vadd.f32 %v862_v34, %v12030_v28  ;;  %v864_v37 = vpop.f32.mrb[3].mxu0  ;;  %v1177_v39 = vmax.f32 %v859_v31, 0.0 }
 0x10e   : > { %v865_v38 = vadd.f32 %v864_v37, %v12034_v29  ;;  %v1178_v41 = vmax.f32 %v861_v35, 0.0 }
 0x10f   : > { %v1179_v40 = vmax.f32 %v863_v36, 0.0  ;;  %10167 = vmatmul.mubr.msk.bf16.gmra.mrb[108].mxu0 %vm727_vm0, %v11318_v33 }
 0x110   : > { %v1180_v42 = vmax.f32 %v865_v38, 0.0  ;;  %1136 = vmatprep.mubr.bf16.mxu0 %v11797_v0  ;;  %v11331_v38 = vld [vmem:[%s11934_s17 + $0xf8] sm:$0xff]  }
 0x111   : > { %v1305_v43 = vpack.c.bf16 %v1179_v40, %v1177_v39 }
 0x112   : > { %v868_v44 = vpop.f32.mrb[4].mxu0  ;;  %v1306_v45 = vpack.c.bf16 %v1180_v42, %v1178_v41 }
 0x113   : > { %v869_v46 = vadd.f32 %v868_v44, %v12030_v28  ;;  %v870_v47 = vpop.f32.mrb[5].mxu0 }
 0x114   : > { %v871_v49 = vadd.f32 %v870_v47, %v12034_v29  ;;  %v872_v50 = vpop.f32.mrb[6].mxu0  ;;  %1606 = vmatprep.mubr.bf16.mxu1 %v1306_v45 }
 0x115   : > { %v873_v51 = vadd.f32 %v872_v50, %v12030_v28  ;;  %v874_v52 = vpop.f32.mrb[7].mxu0  ;;  %1607 = vmatmul.mubr.bf16.vlgmr.msra.gmra.mrb[0].mxu1 %v1305_v43  ;;  %v1181_v56 = vmax.f32 %v869_v46, 0.0 }
 0x116   : > { %v875_v55 = vadd.f32 %v874_v52, %v12034_v29  ;;  %v1182_v58 = vmax.f32 %v871_v49, 0.0 }
 0x117   : > { %v1183_v57 = vmax.f32 %v873_v51, 0.0  ;;  %10168 = vmatmul.mubr.msk.bf16.gmra.mrb[112].mxu0 %vm727_vm0, %v11325_v48 }
 0x118   : > { %v1184_v59 = vmax.f32 %v875_v55, 0.0  ;;  %1146 = vmatprep.mubr.bf16.mxu0 %v11797_v0 }
 0x119   : > { %v1307_v60 = vpack.c.bf16 %v1183_v57, %v1181_v56  ;;  %v11356_v57 = vld [vmem:[#allocation2 + $0x1c0] ss:$8 sps:$4 sm:$0xff]  }
 0x11a   : > { %v878_v61 = vpop.f32.mrb[8].mxu0  ;;  %v1308_v62 = vpack.c.bf16 %v1184_v59, %v1182_v58  ;;  %v11358_v58 = vld [vmem:[#allocation2 + $0x1c4] ss:$8 sps:$4 sm:$0xff]  }
 0x11b   : > { %v879_v63 = vadd.f32 %v878_v61, %v12030_v28  ;;  %v880_v1 = vpop.f32.mrb[9].mxu0  ;;  %2349 = vmatprep.subr.bf16.mxu0 %v11358_v58 }
 0x11c   : > { %v881_v3 = vadd.f32 %v880_v1, %v12034_v29  ;;  %v882_v4 = vpop.f32.mrb[10].mxu0  ;;  %1616 = vmatprep.mubr.bf16.mxu1 %v1308_v62  ;;  %2350 = vmatpush1.bf16.msra.mxu0 %v11356_v57 }
 0x11d   : > { %v883_v5 = vadd.f32 %v882_v4, %v12030_v28  ;;  %v884_v6 = vpop.f32.mrb[11].mxu0  ;;  %1617 = vmatmul.mubr.bf16.gmra.mrb[4].mxu1 %v1307_v60  ;;  %v1185_v8 = vmax.f32 %v879_v63, 0.0 }
 0x11e   : > { %v885_v7 = vadd.f32 %v884_v6, %v12034_v29  ;;  %v1186_v10 = vmax.f32 %v881_v3, 0.0 }
 0x11f   : > { %v1187_v9 = vmax.f32 %v883_v5, 0.0  ;;  %10169 = vmatmul.mubr.msk.bf16.gmra.mrb[116].mxu0 %vm727_vm0, %v11326_v2 }
 0x120   : > { %v1188_v11 = vmax.f32 %v885_v7, 0.0  ;;  %1156 = vmatprep.mubr.bf16.mxu0 %v11797_v0 }
 0x121   : > { %v1309_v12 = vpack.c.bf16 %v1187_v9, %v1185_v8 }
 0x122   : > { %v888_v13 = vpop.f32.mrb[12].mxu0  ;;  %v1310_v14 = vpack.c.bf16 %v1188_v11, %v1186_v10 }
 0x123   : > { %v889_v15 = vadd.f32 %v888_v13, %v12030_v28  ;;  %v890_v16 = vpop.f32.mrb[13].mxu0 }
 0x124   : > { %v891_v18 = vadd.f32 %v890_v16, %v12034_v29  ;;  %v892_v19 = vpop.f32.mrb[14].mxu0  ;;  %1626 = vmatprep.mubr.bf16.mxu1 %v1310_v14 }
 0x125   : > { %v893_v20 = vadd.f32 %v892_v19, %v12030_v28  ;;  %v894_v21 = vpop.f32.mrb[15].mxu0  ;;  %1627 = vmatmul.mubr.bf16.gmra.mrb[8].mxu1 %v1309_v12  ;;  %v1189_v27 = vmax.f32 %v889_v15, 0.0 }
 0x126   : > { %v895_v26 = vadd.f32 %v894_v21, %v12034_v29  ;;  %v1190_v31 = vmax.f32 %v891_v18, 0.0 }
 0x127   : > { %v1191_v30 = vmax.f32 %v893_v20, 0.0  ;;  %10170 = vmatmul.mubr.msk.bf16.gmra.mrb[120].mxu0 %vm727_vm0, %v11330_v17 }
 0x128   : > { %v1192_v32 = vmax.f32 %v895_v26, 0.0  ;;  %1166 = vmatprep.mubr.bf16.mxu0 %v11797_v0  ;;  %v11359_v26 = vld [vmem:[#allocation2 + $0x1d0] ss:$8 sps:$4 sm:$0xff]  }
 0x129   : > { %v1311_v33 = vpack.c.bf16 %v1191_v30, %v1189_v27  ;;  %v11361_v27 = vld [vmem:[#allocation2 + $0x1d4] ss:$8 sps:$4 sm:$0xff]  }
 0x12a   : > { %v898_v34 = vpop.f32.mrb[16].mxu0  ;;  %v1312_v35 = vpack.c.bf16 %v1192_v32, %v1190_v31  ;;  %2351 = vmatprep.subr.bf16.mxu0 %v11361_v27 }
 0x12b   : > { %v899_v36 = vadd.f32 %v898_v34, %v12030_v28  ;;  %v900_v37 = vpop.f32.mrb[17].mxu0  ;;  %2352 = vmatpush1.bf16.msra.mxu0 %v11359_v26 }
 0x12c   : > { %v901_v39 = vadd.f32 %v900_v37, %v12034_v29  ;;  %v902_v40 = vpop.f32.mrb[18].mxu0  ;;  %1636 = vmatprep.mubr.bf16.mxu1 %v1312_v35 }
 0x12d   : > { %v903_v41 = vadd.f32 %v902_v40, %v12030_v28  ;;  %v904_v42 = vpop.f32.mrb[19].mxu0  ;;  %1637 = vmatmul.mubr.bf16.gmra.mrb[12].mxu1 %v1311_v33  ;;  %v1193_v44 = vmax.f32 %v899_v36, 0.0 }
 0x12e   : > { %v905_v43 = vadd.f32 %v904_v42, %v12034_v29  ;;  %v1194_v46 = vmax.f32 %v901_v39, 0.0 }
 0x12f   : > { %v1195_v45 = vmax.f32 %v903_v41, 0.0  ;;  %10171 = vmatmul.mubr.msk.bf16.gmra.mrb[124].mxu0 %vm727_vm0, %v11331_v38 }
 0x130   : > { %v1196_v47 = vmax.f32 %v905_v43, 0.0 }
 0x131   : > { %v1313_v48 = vpack.c.bf16 %v1195_v45, %v1193_v44 }
 0x132   : > { %v908_v49 = vpop.f32.mrb[20].mxu0  ;;  %v1314_v50 = vpack.c.bf16 %v1196_v47, %v1194_v46 }
 0x133   : > { %v909_v51 = vadd.f32 %v908_v49, %v12030_v28  ;;  %v910_v52 = vpop.f32.mrb[21].mxu0  ;;  %v11362_v49 = vld [vmem:[#allocation2 + $0x200] ss:$8 sps:$4 sm:$0xff]  }
 0x134   : > { %v911_v53 = vadd.f32 %v910_v52, %v12034_v29  ;;  %v912_v54 = vpop.f32.mrb[22].mxu0  ;;  %1646 = vmatprep.mubr.bf16.mxu1 %v1314_v50  ;;  %v11364_v50 = vld [vmem:[#allocation2 + $0x204] ss:$8 sps:$4 sm:$0xff]  }
 0x135   : > { %v913_v55 = vadd.f32 %v912_v54, %v12030_v28  ;;  %v914_v56 = vpop.f32.mrb[23].mxu0  ;;  %1647 = vmatmul.mubr.bf16.gmra.mrb[16].mxu1 %v1313_v48  ;;  %v1197_v60 = vmax.f32 %v909_v51, 0.0  ;;  %3076 = vmatprep.subr.bf16.mxu1 %v11364_v50 }
 0x136   : > { %v915_v59 = vadd.f32 %v914_v56, %v12034_v29  ;;  %v1198_v62 = vmax.f32 %v911_v53, 0.0  ;;  %3077 = vmatpush1.bf16.msra.mxu1 %v11362_v49 }
 0x137   : > { %v1199_v61 = vmax.f32 %v913_v55, 0.0 }
 0x138   : > { %v1200_v63 = vmax.f32 %v915_v59, 0.0 }
 0x139   : > { %v1315_v1 = vpack.c.bf16 %v1199_v61, %v1197_v60  ;;  %v11365_v60 = vld [vmem:[#allocation2 + $0x1e0] ss:$8 sps:$4 sm:$0xff]   ;;  %v11367_v61 = vld [vmem:[#allocation2 + $0x1e4] ss:$8 sps:$4 sm:$0xff]  }
 0x13a   : > { %v918_v2 = vpop.f32.mrb[24].mxu0  ;;  %v1316_v3 = vpack.c.bf16 %v1200_v63, %v1198_v62  ;;  %2353 = vmatprep.subr.bf16.mxu0 %v11367_v61 }
 0x13b   : > { %v919_v4 = vadd.f32 %v918_v2, %v12030_v28  ;;  %v920_v5 = vpop.f32.mrb[25].mxu0  ;;  %2354 = vmatpush1.bf16.msra.mxu0 %v11365_v60 }
 0x13c   : > { %v921_v6 = vadd.f32 %v920_v5, %v12034_v29  ;;  %v922_v7 = vpop.f32.mrb[26].mxu0  ;;  %1656 = vmatprep.mubr.bf16.mxu1 %v1316_v3 }
 0x13d   : > { %v923_v8 = vadd.f32 %v922_v7, %v12030_v28  ;;  %v924_v9 = vpop.f32.mrb[27].mxu0  ;;  %1657 = vmatmul.mubr.bf16.gmra.mrb[20].mxu1 %v1315_v1  ;;  %v1201_v11 = vmax.f32 %v919_v4, 0.0 }
 0x13e   : > { %v925_v10 = vadd.f32 %v924_v9, %v12034_v29  ;;  %v1202_v13 = vmax.f32 %v921_v6, 0.0 }
 0x13f   : > { %v1203_v12 = vmax.f32 %v923_v8, 0.0 }
 0x140   : > { %v1204_v14 = vmax.f32 %v925_v10, 0.0 }
 0x141   : > { %v1317_v15 = vpack.c.bf16 %v1203_v12, %v1201_v11 }
 0x142   : > { %v928_v16 = vpop.f32.mrb[28].mxu0  ;;  %v1318_v17 = vpack.c.bf16 %v1204_v14, %v1202_v13 }
 0x143   : > { %v929_v18 = vadd.f32 %v928_v16, %v12030_v28  ;;  %v930_v19 = vpop.f32.mrb[29].mxu0 }
 0x144   : > { %v931_v20 = vadd.f32 %v930_v19, %v12034_v29  ;;  %v932_v21 = vpop.f32.mrb[30].mxu0  ;;  %1666 = vmatprep.mubr.bf16.mxu1 %v1318_v17  ;;  %v11370_v19 = vld [vmem:[#allocation2 + $0x214] ss:$8 sps:$4 sm:$0xff]  }
 0x145   : > { %v933_v22 = vadd.f32 %v932_v21, %v12030_v28  ;;  %v934_v24 = vpop.f32.mrb[31].mxu0  ;;  %1667 = vmatmul.mubr.bf16.gmra.mrb[24].mxu1 %v1317_v15  ;;  %v1205_v31 = vmax.f32 %v929_v18, 0.0  ;;  %v11368_v18 = vld [vmem:[#allocation2 + $0x210] ss:$8 sps:$4 sm:$0xff]   ;;  %3078 = vmatprep.subr.bf16.mxu1 %v11370_v19 }
 0x146   : > { %v935_v30 = vadd.f32 %v934_v24, %v12034_v29  ;;  %v1206_v33 = vmax.f32 %v931_v20, 0.0  ;;  %3079 = vmatpush1.bf16.msra.mxu1 %v11368_v18 }
 0x147   : > { %v1207_v32 = vmax.f32 %v933_v22, 0.0 }
 0x148   : > { %v1208_v34 = vmax.f32 %v935_v30, 0.0 }
 0x149   : > { %v1319_v35 = vpack.c.bf16 %v1207_v32, %v1205_v31 }
 0x14a   : > { %v938_v36 = vpop.f32.mrb[32].mxu0  ;;  %v1320_v37 = vpack.c.bf16 %v1208_v34, %v1206_v33  ;;  %v11371_v33 = vld [vmem:[#allocation2 + $0x1f0] ss:$8 sps:$4 sm:$0xff]   ;;  %v11373_v34 = vld [vmem:[#allocation2 + $0x1f4] ss:$8 sps:$4 sm:$0xff]  }
 0x14b   : > { %v939_v38 = vadd.f32 %v938_v36, %v12030_v28  ;;  %v940_v39 = vpop.f32.mrb[33].mxu0  ;;  %2355 = vmatprep.subr.bf16.mxu0 %v11373_v34 }
 0x14c   : > { %v941_v40 = vadd.f32 %v940_v39, %v12034_v29  ;;  %v942_v41 = vpop.f32.mrb[34].mxu0  ;;  %1676 = vmatprep.mubr.bf16.mxu1 %v1320_v37  ;;  %2356 = vmatpush1.bf16.msra.mxu0 %v11371_v33 }
 0x14d   : > { %v943_v42 = vadd.f32 %v942_v41, %v12030_v28  ;;  %v944_v43 = vpop.f32.mrb[35].mxu0  ;;  %1677 = vmatmul.mubr.bf16.gmra.mrb[28].mxu1 %v1319_v35  ;;  %v1209_v45 = vmax.f32 %v939_v38, 0.0 }
 0x14e   : > { %v945_v44 = vadd.f32 %v944_v43, %v12034_v29  ;;  %v1210_v47 = vmax.f32 %v941_v40, 0.0 }
 0x14f   : > { %v1211_v46 = vmax.f32 %v943_v42, 0.0 }
 0x150   : > { %v1212_v48 = vmax.f32 %v945_v44, 0.0 }
 0x151   : > { %v1321_v51 = vpack.c.bf16 %v1211_v46, %v1209_v45 }
 0x152   : > { %v948_v52 = vpop.f32.mrb[36].mxu0  ;;  %v1322_v53 = vpack.c.bf16 %v1212_v48, %v1210_v47 }
 0x153   : > { %v949_v54 = vadd.f32 %v948_v52, %v12030_v28  ;;  %v950_v55 = vpop.f32.mrb[37].mxu0 }
 0x154   : > { %v951_v56 = vadd.f32 %v950_v55, %v12034_v29  ;;  %v952_v57 = vpop.f32.mrb[38].mxu0  ;;  %1686 = vmatprep.mubr.bf16.mxu1 %v1322_v53  ;;  %v11374_v55 = vld [vmem:[#allocation2 + $0x220] ss:$8 sps:$4 sm:$0xff]  }
 0x155   : > { %v953_v58 = vadd.f32 %v952_v57, %v12030_v28  ;;  %v954_v59 = vpop.f32.mrb[39].mxu0  ;;  %1687 = vmatmul.mubr.bf16.gmra.mrb[32].mxu1 %v1321_v51  ;;  %v1213_v63 = vmax.f32 %v949_v54, 0.0 }
 0x156   : > { %v955_v62 = vadd.f32 %v954_v59, %v12034_v29  ;;  %v1214_v2 = vmax.f32 %v951_v56, 0.0  ;;  %v11376_v56 = vld [vmem:[#allocation2 + $0x224] ss:$8 sps:$4 sm:$0xff]  }
 0x157   : > { %v1215_v1 = vmax.f32 %v953_v58, 0.0  ;;  %3080 = vmatprep.subr.bf16.mxu1 %v11376_v56  ;;  %v11380_v56 = vld [vmem:[#allocation2 + $0x240] ss:$8 sps:$4 sm:$0xff]  }
 0x158   : > { %v1216_v3 = vmax.f32 %v955_v62, 0.0  ;;  %3081 = vmatpush1.bf16.msra.mxu1 %v11374_v55 }
 0x159   : > { %v1323_v4 = vpack.c.bf16 %v1215_v1, %v1213_v63 }
 0x15a   : > { %v958_v5 = vpop.f32.mrb[40].mxu0  ;;  %v1324_v6 = vpack.c.bf16 %v1216_v3, %v1214_v2 }
 0x15b   : > { %v959_v7 = vadd.f32 %v958_v5, %v12030_v28  ;;  %v960_v8 = vpop.f32.mrb[41].mxu0 }
 0x15c   : > { %v961_v9 = vadd.f32 %v960_v8, %v12034_v29  ;;  %v962_v10 = vpop.f32.mrb[42].mxu0  ;;  %1696 = vmatprep.mubr.bf16.mxu1 %v1324_v6 }
 0x15d   : > { %v963_v11 = vadd.f32 %v962_v10, %v12030_v28  ;;  %v964_v12 = vpop.f32.mrb[43].mxu0  ;;  %1697 = vmatmul.mubr.bf16.gmra.mrb[36].mxu1 %v1323_v4  ;;  %v1217_v14 = vmax.f32 %v959_v7, 0.0 }
 0x15e   : > { %v965_v13 = vadd.f32 %v964_v12, %v12034_v29  ;;  %v1218_v16 = vmax.f32 %v961_v9, 0.0 }
 0x15f   : > { %v1219_v15 = vmax.f32 %v963_v11, 0.0 }
 0x160   : > { %v1220_v17 = vmax.f32 %v965_v13, 0.0 }
 0x161   : > { %v1325_v20 = vpack.c.bf16 %v1219_v15, %v1217_v14 }
 0x162   : > { %v968_v21 = vpop.f32.mrb[44].mxu0  ;;  %v1326_v22 = vpack.c.bf16 %v1220_v17, %v1218_v16 }
 0x163   : > { %v969_v24 = vadd.f32 %v968_v21, %v12030_v28  ;;  %v970_v26 = vpop.f32.mrb[45].mxu0 }
 0x164   : > { %v971_v27 = vadd.f32 %v970_v26, %v12034_v29  ;;  %v972_v30 = vpop.f32.mrb[46].mxu0  ;;  %1706 = vmatprep.mubr.bf16.mxu1 %v1326_v22  ;;  %v11377_v22 = vld [vmem:[#allocation2 + $0x230] ss:$8 sps:$4 sm:$0xff]  }
 0x165   : > { %v973_v31 = vadd.f32 %v972_v30, %v12030_v28  ;;  %v974_v32 = vpop.f32.mrb[47].mxu0  ;;  %1707 = vmatmul.mubr.bf16.gmra.mrb[40].mxu1 %v1325_v20  ;;  %v1221_v36 = vmax.f32 %v969_v24, 0.0  ;;  %v11379_v24 = vld [vmem:[#allocation2 + $0x234] ss:$8 sps:$4 sm:$0xff]  }
 0x166   : > { %v975_v35 = vadd.f32 %v974_v32, %v12034_v29  ;;  %v1222_v38 = vmax.f32 %v971_v27, 0.0  ;;  %3082 = vmatprep.subr.bf16.mxu1 %v11379_v24  ;;  %v11383_v24 = vld [vmem:[#allocation2 + $0x250] ss:$8 sps:$4 sm:$0xff]  }
 0x167   : > { %v1223_v37 = vmax.f32 %v973_v31, 0.0  ;;  %3083 = vmatpush1.bf16.msra.mxu1 %v11377_v22 }
 0x168   : > { %v1224_v39 = vmax.f32 %v975_v35, 0.0 }
 0x169   : > { %v1327_v40 = vpack.c.bf16 %v1223_v37, %v1221_v36 }
 0x16a   : > { %v978_v41 = vpop.f32.mrb[48].mxu0  ;;  %v1328_v42 = vpack.c.bf16 %v1224_v39, %v1222_v38 }
 0x16b   : > { %v979_v43 = vadd.f32 %v978_v41, %v12030_v28  ;;  %v980_v44 = vpop.f32.mrb[49].mxu0 }
 0x16c   : > { %v981_v45 = vadd.f32 %v980_v44, %v12034_v29  ;;  %v982_v46 = vpop.f32.mrb[50].mxu0  ;;  %1716 = vmatprep.mubr.bf16.mxu1 %v1328_v42 }
 0x16d   : > { %v983_v47 = vadd.f32 %v982_v46, %v12030_v28  ;;  %v984_v48 = vpop.f32.mrb[51].mxu0  ;;  %1717 = vmatmul.mubr.bf16.gmra.mrb[44].mxu1 %v1327_v40  ;;  %v1225_v50 = vmax.f32 %v979_v43, 0.0 }
 0x16e   : > { %v985_v49 = vadd.f32 %v984_v48, %v12034_v29  ;;  %v1226_v52 = vmax.f32 %v981_v45, 0.0 }
 0x16f   : > { %v1227_v51 = vmax.f32 %v983_v47, 0.0 }
 0x170   : > { %v1228_v53 = vmax.f32 %v985_v49, 0.0 }
 0x171   : > { %v1329_v54 = vpack.c.bf16 %v1227_v51, %v1225_v50 }
 0x172   : > { %v988_v57 = vpop.f32.mrb[52].mxu0  ;;  %v1330_v58 = vpack.c.bf16 %v1228_v53, %v1226_v52 }
 0x173   : > { %v989_v59 = vadd.f32 %v988_v57, %v12030_v28  ;;  %v990_v60 = vpop.f32.mrb[53].mxu0  ;;  %v11382_v57 = vld [vmem:[#allocation2 + $0x244] ss:$8 sps:$4 sm:$0xff]  }
 0x174   : > { %v991_v61 = vadd.f32 %v990_v60, %v12034_v29  ;;  %v992_v62 = vpop.f32.mrb[54].mxu0  ;;  %1726 = vmatprep.mubr.bf16.mxu1 %v1330_v58  ;;  %3084 = vmatprep.subr.bf16.mxu1 %v11382_v57  ;;  %v11386_v57 = vld [vmem:[#allocation2 + $0x260] ss:$8 sps:$4 sm:$0xff]  }
 0x175   : > { %v993_v63 = vadd.f32 %v992_v62, %v12030_v28  ;;  %v994_v1 = vpop.f32.mrb[55].mxu0  ;;  %1727 = vmatmul.mubr.bf16.gmra.mrb[48].mxu1 %v1329_v54  ;;  %v1229_v3 = vmax.f32 %v989_v59, 0.0 }
 0x176   : > { %v995_v2 = vadd.f32 %v994_v1, %v12034_v29  ;;  %v1230_v5 = vmax.f32 %v991_v61, 0.0  ;;  %3085 = vmatpush1.bf16.msra.mxu1 %v11380_v56 }
 0x177   : > { %v1231_v4 = vmax.f32 %v993_v63, 0.0 }
 0x178   : > { %v1232_v6 = vmax.f32 %v995_v2, 0.0 }
 0x179   : > { %v1331_v7 = vpack.c.bf16 %v1231_v4, %v1229_v3 }
 0x17a   : > { %v998_v8 = vpop.f32.mrb[56].mxu0  ;;  %v1332_v9 = vpack.c.bf16 %v1232_v6, %v1230_v5 }
 0x17b   : > { %v999_v10 = vadd.f32 %v998_v8, %v12030_v28  ;;  %v1000_v11 = vpop.f32.mrb[57].mxu0 }
 0x17c   : > { %v1001_v12 = vadd.f32 %v1000_v11, %v12034_v29  ;;  %v1002_v13 = vpop.f32.mrb[58].mxu0  ;;  %1736 = vmatprep.mubr.bf16.mxu1 %v1332_v9 }
 0x17d   : > { %v1003_v14 = vadd.f32 %v1002_v13, %v12030_v28  ;;  %v1004_v15 = vpop.f32.mrb[59].mxu0  ;;  %1737 = vmatmul.mubr.bf16.gmra.mrb[52].mxu1 %v1331_v7  ;;  %v1233_v17 = vmax.f32 %v999_v10, 0.0 }
 0x17e   : > { %v1005_v16 = vadd.f32 %v1004_v15, %v12034_v29  ;;  %v1234_v19 = vmax.f32 %v1001_v12, 0.0 }
 0x17f   : > { %v1235_v18 = vmax.f32 %v1003_v14, 0.0 }
 0x180   : > { %v1236_v20 = vmax.f32 %v1005_v16, 0.0 }
 0x181   : > { %v1333_v21 = vpack.c.bf16 %v1235_v18, %v1233_v17 }
 0x182   : > { %v1008_v26 = vpop.f32.mrb[60].mxu0  ;;  %v1334_v27 = vpack.c.bf16 %v1236_v20, %v1234_v19 }
 0x183   : > { %v1009_v30 = vadd.f32 %v1008_v26, %v12030_v28  ;;  %v1010_v31 = vpop.f32.mrb[61].mxu0  ;;  %v11385_v26 = vld [vmem:[#allocation2 + $0x254] ss:$8 sps:$4 sm:$0xff]  }
 0x184   : > { %v1011_v32 = vadd.f32 %v1010_v31, %v12034_v29  ;;  %v1012_v33 = vpop.f32.mrb[62].mxu0  ;;  %1746 = vmatprep.mubr.bf16.mxu1 %v1334_v27  ;;  %3086 = vmatprep.subr.bf16.mxu1 %v11385_v26  ;;  %v11389_v26 = vld [vmem:[#allocation2 + $0x270] ss:$8 sps:$4 sm:$0xff]  }
 0x185   : > { %v1013_v34 = vadd.f32 %v1012_v33, %v12030_v28  ;;  %v1014_v35 = vpop.f32.mrb[63].mxu0  ;;  %1747 = vmatmul.mubr.bf16.gmra.mrb[56].mxu1 %v1333_v21  ;;  %v1237_v37 = vmax.f32 %v1009_v30, 0.0 }
 0x186   : > { %v1015_v36 = vadd.f32 %v1014_v35, %v12034_v29  ;;  %v1238_v39 = vmax.f32 %v1011_v32, 0.0  ;;  %3087 = vmatpush1.bf16.msra.mxu1 %v11383_v24 }
 0x187   : > { %v1239_v38 = vmax.f32 %v1013_v34, 0.0 }
 0x188   : > { %v1240_v40 = vmax.f32 %v1015_v36, 0.0 }
 0x189   : > { %v1335_v41 = vpack.c.bf16 %v1239_v38, %v1237_v37 }
 0x18a   : > { %v1018_v42 = vpop.f32.mrb[64].mxu0  ;;  %v1336_v43 = vpack.c.bf16 %v1240_v40, %v1238_v39 }
 0x18b   : > { %v1019_v44 = vadd.f32 %v1018_v42, %v12030_v28  ;;  %v1020_v45 = vpop.f32.mrb[65].mxu0 }
 0x18c   : > { %v1021_v46 = vadd.f32 %v1020_v45, %v12034_v29  ;;  %v1022_v47 = vpop.f32.mrb[66].mxu0  ;;  %1756 = vmatprep.mubr.bf16.mxu1 %v1336_v43 }
 0x18d   : > { %v1023_v48 = vadd.f32 %v1022_v47, %v12030_v28  ;;  %v1024_v49 = vpop.f32.mrb[67].mxu0  ;;  %1757 = vmatmul.mubr.bf16.gmra.mrb[60].mxu1 %v1335_v41  ;;  %v1241_v51 = vmax.f32 %v1019_v44, 0.0 }
 0x18e   : > { %v1025_v50 = vadd.f32 %v1024_v49, %v12034_v29  ;;  %v1242_v53 = vmax.f32 %v1021_v46, 0.0 }
 0x18f   : > { %v1243_v52 = vmax.f32 %v1023_v48, 0.0 }
 0x190   : > { %v1244_v54 = vmax.f32 %v1025_v50, 0.0 }
 0x191   : > { %v1337_v55 = vpack.c.bf16 %v1243_v52, %v1241_v51 }
 0x192   : > { %v1028_v58 = vpop.f32.mrb[68].mxu0  ;;  %v1338_v59 = vpack.c.bf16 %v1244_v54, %v1242_v53 }
 0x193   : > { %v1029_v60 = vadd.f32 %v1028_v58, %v12030_v28  ;;  %v1030_v61 = vpop.f32.mrb[69].mxu0  ;;  %v11388_v58 = vld [vmem:[#allocation2 + $0x264] ss:$8 sps:$4 sm:$0xff]  }
 0x194   : > { %v1031_v62 = vadd.f32 %v1030_v61, %v12034_v29  ;;  %v1032_v63 = vpop.f32.mrb[70].mxu0  ;;  %1766 = vmatprep.mubr.bf16.mxu1 %v1338_v59  ;;  %3088 = vmatprep.subr.bf16.mxu1 %v11388_v58  ;;  %v11392_v58 = vld [vmem:[#allocation2 + $0x280] ss:$8 sps:$4 sm:$0xff]  }
 0x195   : > { %v1033_v1 = vadd.f32 %v1032_v63, %v12030_v28  ;;  %v1034_v2 = vpop.f32.mrb[71].mxu0  ;;  %1767 = vmatmul.mubr.bf16.gmra.mrb[64].mxu1 %v1337_v55  ;;  %v1245_v4 = vmax.f32 %v1029_v60, 0.0 }
 0x196   : > { %v1035_v3 = vadd.f32 %v1034_v2, %v12034_v29  ;;  %v1246_v6 = vmax.f32 %v1031_v62, 0.0  ;;  %3089 = vmatpush1.bf16.msra.mxu1 %v11386_v57 }
 0x197   : > { %v1247_v5 = vmax.f32 %v1033_v1, 0.0 }
 0x198   : > { %v1248_v7 = vmax.f32 %v1035_v3, 0.0 }
 0x199   : > { %v1339_v8 = vpack.c.bf16 %v1247_v5, %v1245_v4 }
 0x19a   : > { %v1038_v9 = vpop.f32.mrb[72].mxu0  ;;  %v1340_v10 = vpack.c.bf16 %v1248_v7, %v1246_v6 }
 0x19b   : > { %v1039_v11 = vadd.f32 %v1038_v9, %v12030_v28  ;;  %v1040_v12 = vpop.f32.mrb[73].mxu0 }
 0x19c   : > { %v1041_v13 = vadd.f32 %v1040_v12, %v12034_v29  ;;  %v1042_v14 = vpop.f32.mrb[74].mxu0  ;;  %1776 = vmatprep.mubr.bf16.mxu1 %v1340_v10 }
 0x19d   : > { %v1043_v15 = vadd.f32 %v1042_v14, %v12030_v28  ;;  %v1044_v16 = vpop.f32.mrb[75].mxu0  ;;  %1777 = vmatmul.mubr.bf16.gmra.mrb[68].mxu1 %v1339_v8  ;;  %v1249_v18 = vmax.f32 %v1039_v11, 0.0 }
 0x19e   : > { %v1045_v17 = vadd.f32 %v1044_v16, %v12034_v29  ;;  %v1250_v20 = vmax.f32 %v1041_v13, 0.0 }
 0x19f   : > { %v1251_v19 = vmax.f32 %v1043_v15, 0.0 }
 0x1a0   : > { %v1252_v21 = vmax.f32 %v1045_v17, 0.0 }
 0x1a1   : > { %v1341_v22 = vpack.c.bf16 %v1251_v19, %v1249_v18 }
 0x1a2   : > { %v1048_v27 = vpop.f32.mrb[76].mxu0  ;;  %v1342_v30 = vpack.c.bf16 %v1252_v21, %v1250_v20 }
 0x1a3   : > { %v1049_v31 = vadd.f32 %v1048_v27, %v12030_v28  ;;  %v1050_v32 = vpop.f32.mrb[77].mxu0  ;;  %v11391_v27 = vld [vmem:[#allocation2 + $0x274] ss:$8 sps:$4 sm:$0xff]  }
 0x1a4   : > { %v1051_v33 = vadd.f32 %v1050_v32, %v12034_v29  ;;  %v1052_v34 = vpop.f32.mrb[78].mxu0  ;;  %1786 = vmatprep.mubr.bf16.mxu1 %v1342_v30  ;;  %3090 = vmatprep.subr.bf16.mxu1 %v11391_v27  ;;  %v11395_v27 = vld [vmem:[#allocation2 + $0x290] ss:$8 sps:$4 sm:$0xff]  }
 0x1a5   : > { %v1053_v35 = vadd.f32 %v1052_v34, %v12030_v28  ;;  %v1054_v36 = vpop.f32.mrb[79].mxu0  ;;  %1787 = vmatmul.mubr.bf16.gmra.mrb[72].mxu1 %v1341_v22  ;;  %v1253_v38 = vmax.f32 %v1049_v31, 0.0 }
 0x1a6   : > { %v1055_v37 = vadd.f32 %v1054_v36, %v12034_v29  ;;  %v1254_v40 = vmax.f32 %v1051_v33, 0.0  ;;  %3091 = vmatpush1.bf16.msra.mxu1 %v11389_v26 }
 0x1a7   : > { %v1255_v39 = vmax.f32 %v1053_v35, 0.0 }
 0x1a8   : > { %v1256_v41 = vmax.f32 %v1055_v37, 0.0 }
 0x1a9   : > { %v1343_v42 = vpack.c.bf16 %v1255_v39, %v1253_v38 }
 0x1aa   : > { %v1058_v43 = vpop.f32.mrb[80].mxu0  ;;  %v1344_v44 = vpack.c.bf16 %v1256_v41, %v1254_v40 }
 0x1ab   : > { %v1059_v45 = vadd.f32 %v1058_v43, %v12030_v28  ;;  %v1060_v46 = vpop.f32.mrb[81].mxu0 }
 0x1ac   : > { %v1061_v47 = vadd.f32 %v1060_v46, %v12034_v29  ;;  %v1062_v48 = vpop.f32.mrb[82].mxu0  ;;  %1796 = vmatprep.mubr.bf16.mxu1 %v1344_v44 }
 0x1ad   : > { %v1063_v49 = vadd.f32 %v1062_v48, %v12030_v28  ;;  %v1064_v50 = vpop.f32.mrb[83].mxu0  ;;  %1797 = vmatmul.mubr.bf16.gmra.mrb[76].mxu1 %v1343_v42  ;;  %v1257_v52 = vmax.f32 %v1059_v45, 0.0 }
 0x1ae   : > { %v1065_v51 = vadd.f32 %v1064_v50, %v12034_v29  ;;  %v1258_v54 = vmax.f32 %v1061_v47, 0.0 }
 0x1af   : > { %v1259_v53 = vmax.f32 %v1063_v49, 0.0 }
 0x1b0   : > { %v1260_v55 = vmax.f32 %v1065_v51, 0.0 }
 0x1b1   : > { %v1345_v56 = vpack.c.bf16 %v1259_v53, %v1257_v52 }
 0x1b2   : > { %v1068_v59 = vpop.f32.mrb[84].mxu0  ;;  %v1346_v60 = vpack.c.bf16 %v1260_v55, %v1258_v54 }
 0x1b3   : > { %v1069_v61 = vadd.f32 %v1068_v59, %v12030_v28  ;;  %v1070_v62 = vpop.f32.mrb[85].mxu0  ;;  %v11394_v59 = vld [vmem:[#allocation2 + $0x284] ss:$8 sps:$4 sm:$0xff]  }
 0x1b4   : > { %v1071_v63 = vadd.f32 %v1070_v62, %v12034_v29  ;;  %v1072_v1 = vpop.f32.mrb[86].mxu0  ;;  %1806 = vmatprep.mubr.bf16.mxu1 %v1346_v60  ;;  %3092 = vmatprep.subr.bf16.mxu1 %v11394_v59 }
 0x1b5   : > { %v1073_v2 = vadd.f32 %v1072_v1, %v12030_v28  ;;  %v1074_v3 = vpop.f32.mrb[87].mxu0  ;;  %1807 = vmatmul.mubr.bf16.gmra.mrb[80].mxu1 %v1345_v56  ;;  %v1261_v5 = vmax.f32 %v1069_v61, 0.0 }
 0x1b6   : > { %v1075_v4 = vadd.f32 %v1074_v3, %v12034_v29  ;;  %v1262_v7 = vmax.f32 %v1071_v63, 0.0  ;;  %3093 = vmatpush1.bf16.msra.mxu1 %v11392_v58 }
 0x1b7   : > { %v1263_v6 = vmax.f32 %v1073_v2, 0.0 }
 0x1b8   : > { %v1264_v8 = vmax.f32 %v1075_v4, 0.0 }
 0x1b9   : > { %v1347_v9 = vpack.c.bf16 %v1263_v6, %v1261_v5 }
 0x1ba   : > { %v1078_v10 = vpop.f32.mrb[88].mxu0  ;;  %v1348_v11 = vpack.c.bf16 %v1264_v8, %v1262_v7 }
 0x1bb   : > { %v1079_v12 = vadd.f32 %v1078_v10, %v12030_v28  ;;  %v1080_v13 = vpop.f32.mrb[89].mxu0 }
 0x1bc   : > { %v1081_v14 = vadd.f32 %v1080_v13, %v12034_v29  ;;  %v1082_v15 = vpop.f32.mrb[90].mxu0  ;;  %1816 = vmatprep.mubr.bf16.mxu1 %v1348_v11 }
 0x1bd   : > { %v1083_v16 = vadd.f32 %v1082_v15, %v12030_v28  ;;  %v1084_v17 = vpop.f32.mrb[91].mxu0  ;;  %1817 = vmatmul.mubr.bf16.gmra.mrb[84].mxu1 %v1347_v9  ;;  %v1265_v19 = vmax.f32 %v1079_v12, 0.0 }
 0x1be   : > { %v1085_v18 = vadd.f32 %v1084_v17, %v12034_v29  ;;  %v1266_v21 = vmax.f32 %v1081_v14, 0.0 }
 0x1bf   : > { %v1267_v20 = vmax.f32 %v1083_v16, 0.0 }
 0x1c0   : > { %v1268_v22 = vmax.f32 %v1085_v18, 0.0 }
 0x1c1   : > { %v1349_v24 = vpack.c.bf16 %v1267_v20, %v1265_v19 }
 0x1c2   : > { %v1088_v30 = vpop.f32.mrb[92].mxu0  ;;  %v1350_v31 = vpack.c.bf16 %v1268_v22, %v1266_v21 }
 0x1c3   : > { %v1089_v32 = vadd.f32 %v1088_v30, %v12030_v28  ;;  %v1090_v33 = vpop.f32.mrb[93].mxu0  ;;  %v11397_v30 = vld [vmem:[#allocation2 + $0x294] ss:$8 sps:$4 sm:$0xff]  }
 0x1c4   : > { %v1091_v34 = vadd.f32 %v1090_v33, %v12034_v29  ;;  %v1092_v35 = vpop.f32.mrb[94].mxu0  ;;  %1826 = vmatprep.mubr.bf16.mxu1 %v1350_v31  ;;  %v10172_v33 = vld [vmem:[%s14561_s4 + $0x2] sm:$0x3]  ;;  %3094 = vmatprep.subr.bf16.mxu1 %v11397_v30 }
 0x1c5   : > { %v1093_v36 = vadd.f32 %v1092_v35, %v12030_v28  ;;  %v1094_v37 = vpop.f32.mrb[95].mxu0  ;;  %1827 = vmatmul.mubr.bf16.gmra.mrb[88].mxu1 %v1349_v24  ;;  %v1269_v39 = vmax.f32 %v1089_v32, 0.0 }
 0x1c6   : > { %v1095_v38 = vadd.f32 %v1094_v37, %v12034_v29  ;;  %v1270_v41 = vmax.f32 %v1091_v34, 0.0  ;;  %3095 = vmatpush1.bf16.msra.mxu1 %v11395_v27 }
 0x1c7   : > { %v1271_v40 = vmax.f32 %v1093_v36, 0.0 }
 0x1c8   : > { %v1272_v42 = vmax.f32 %v1095_v38, 0.0 }
 0x1c9   : > { %v1351_v43 = vpack.c.bf16 %v1271_v40, %v1269_v39  ;;  %v12165_v40 = vrot.slane %v10172_v33, %v12021_v23 }
 0x1ca   : > { %v1098_v44 = vpop.f32.mrb[96].mxu0  ;;  %v1352_v45 = vpack.c.bf16 %v1272_v42, %v1270_v41  ;;  %v12169_v42 = vrot.slane %v10172_v33, %v12026_v25 }
 0x1cb   : > { %v1099_v46 = vadd.f32 %v1098_v44, %v12030_v28  ;;  %v1100_v47 = vpop.f32.mrb[97].mxu0 }
 0x1cc   : > { %v1101_v48 = vadd.f32 %v1100_v47, %v12034_v29  ;;  %v1102_v49 = vpop.f32.mrb[98].mxu0  ;;  %1836 = vmatprep.mubr.bf16.mxu1 %v1352_v45 }
 0x1cd   : > { %v1103_v50 = vadd.f32 %v1102_v49, %v12030_v28  ;;  %v1104_v51 = vpop.f32.mrb[99].mxu0  ;;  %1837 = vmatmul.mubr.bf16.gmra.mrb[92].mxu1 %v1351_v43  ;;  %v1273_v53 = vmax.f32 %v1099_v46, 0.0 }
 0x1ce   : > { %v1105_v52 = vadd.f32 %v1104_v51, %v12034_v29  ;;  %v1274_v55 = vmax.f32 %v1101_v48, 0.0 }
 0x1cf   : > { %v1275_v54 = vmax.f32 %v1103_v50, 0.0 }
 0x1d0   : > { %v1276_v56 = vmax.f32 %v1105_v52, 0.0 }
 0x1d1   : > { %v1353_v57 = vpack.c.bf16 %v1275_v54, %v1273_v53 }
 0x1d2   : > { %v1108_v60 = vpop.f32.mrb[100].mxu0  ;;  %v1354_v61 = vpack.c.bf16 %v1276_v56, %v1274_v55 }
 0x1d3   : > { %v1109_v62 = vadd.f32 %v1108_v60, %v12030_v28  ;;  %v1110_v63 = vpop.f32.mrb[101].mxu0 }
 0x1d4   : > { %v1111_v1 = vadd.f32 %v1110_v63, %v12034_v29  ;;  %v1112_v2 = vpop.f32.mrb[102].mxu0  ;;  %1846 = vmatprep.mubr.bf16.mxu1 %v1354_v61 }
 0x1d5   : > { %v1113_v3 = vadd.f32 %v1112_v2, %v12030_v28  ;;  %v1114_v4 = vpop.f32.mrb[103].mxu0  ;;  %1847 = vmatmul.mubr.bf16.gmra.mrb[96].mxu1 %v1353_v57  ;;  %v1277_v6 = vmax.f32 %v1109_v62, 0.0 }
 0x1d6   : > { %v1115_v5 = vadd.f32 %v1114_v4, %v12034_v29  ;;  %v1278_v8 = vmax.f32 %v1111_v1, 0.0 }
 0x1d7   : > { %v1279_v7 = vmax.f32 %v1113_v3, 0.0 }
 0x1d8   : > { %v1280_v9 = vmax.f32 %v1115_v5, 0.0 }
 0x1d9   : > { %v1355_v10 = vpack.c.bf16 %v1279_v7, %v1277_v6 }
 0x1da   : > { %v1118_v11 = vpop.f32.mrb[104].mxu0  ;;  %v1356_v12 = vpack.c.bf16 %v1280_v9, %v1278_v8 }
 0x1db   : > { %v1119_v13 = vadd.f32 %v1118_v11, %v12030_v28  ;;  %v1120_v14 = vpop.f32.mrb[105].mxu0 }
 0x1dc   : > { %v1121_v15 = vadd.f32 %v1120_v14, %v12034_v29  ;;  %v1122_v16 = vpop.f32.mrb[106].mxu0  ;;  %1856 = vmatprep.mubr.bf16.mxu1 %v1356_v12 }
 0x1dd   : > { %v1123_v17 = vadd.f32 %v1122_v16, %v12030_v28  ;;  %v1124_v18 = vpop.f32.mrb[107].mxu0  ;;  %1857 = vmatmul.mubr.bf16.gmra.mrb[100].mxu1 %v1355_v10  ;;  %v1281_v20 = vmax.f32 %v1119_v13, 0.0  ;;  %v11398_v16 = vld [vmem:[#allocation2 + $0x2a0] ss:$8 sps:$4 sm:$0xff]  }
 0x1de   : > { %v1125_v19 = vadd.f32 %v1124_v18, %v12034_v29  ;;  %v1282_v22 = vmax.f32 %v1121_v15, 0.0 }
 0x1df   : > { %v1283_v21 = vmax.f32 %v1123_v17, 0.0  ;;  %v11400_v17 = vld [vmem:[#allocation2 + $0x2a4] ss:$8 sps:$4 sm:$0xff]  }
 0x1e0   : > { %v1284_v24 = vmax.f32 %v1125_v19, 0.0  ;;  %3096 = vmatprep.subr.bf16.mxu1 %v11400_v17  ;;  %v11401_v17 = vld [vmem:[#allocation2 + $0x2b0] ss:$8 sps:$4 sm:$0xff]  }
 0x1e1   : > { %v1357_v26 = vpack.c.bf16 %v1283_v21, %v1281_v20  ;;  %3097 = vmatpush1.bf16.msra.mxu1 %v11398_v16 }
 0x1e2   : > { %v1128_v31 = vpop.f32.mrb[108].mxu0  ;;  %v1358_v32 = vpack.c.bf16 %v1284_v24, %v1282_v22 }
 0x1e3   : > { %v1129_v34 = vadd.f32 %v1128_v31, %v12030_v28  ;;  %v1130_v35 = vpop.f32.mrb[109].mxu0 }
 0x1e4   : > { %v1131_v36 = vadd.f32 %v1130_v35, %v12034_v29  ;;  %v1132_v37 = vpop.f32.mrb[110].mxu0  ;;  %1866 = vmatprep.mubr.bf16.mxu1 %v1358_v32 }
 0x1e5   : > { %v1133_v38 = vadd.f32 %v1132_v37, %v12030_v28  ;;  %v1134_v39 = vpop.f32.mrb[111].mxu0  ;;  %1867 = vmatmul.mubr.bf16.gmra.mrb[104].mxu1 %v1357_v26  ;;  %v1285_v43 = vmax.f32 %v1129_v34, 0.0 }
 0x1e6   : > { %v1135_v41 = vadd.f32 %v1134_v39, %v12034_v29  ;;  %v1286_v45 = vmax.f32 %v1131_v36, 0.0 }
 0x1e7   : > { %v1287_v44 = vmax.f32 %v1133_v38, 0.0 }
 0x1e8   : > { %v1288_v46 = vmax.f32 %v1135_v41, 0.0  ;;  %v1608_v47 = vpop.f32.mrb[0].mxu1 }
 0x1e9   : > { %v1609_v48 = vadd.f32 %v1608_v47, %v12165_v40  ;;  %v1610_v49 = vpop.f32.mrb[1].mxu1  ;;  %v1359_v50 = vpack.c.bf16 %v1287_v44, %v1285_v43 }
 0x1ea   : > { %v1611_v51 = vadd.f32 %v1610_v49, %v12169_v42  ;;  %v1138_v52 = vpop.f32.mrb[112].mxu0  ;;  %v1612_v53 = vpop.f32.mrb[2].mxu1  ;;  %v1360_v54 = vpack.c.bf16 %v1288_v46, %v1286_v45 }
 0x1eb   : > { %v1139_v55 = vadd.f32 %v1138_v52, %v12030_v28  ;;  %v1613_v56 = vadd.f32 %v1612_v53, %v12165_v40  ;;  %v1140_v57 = vpop.f32.mrb[113].mxu0  ;;  %v1614_v58 = vpop.f32.mrb[3].mxu1  ;;  %v1927_v62 = vmax.f32 %v1609_v48, 0.0 }
 0x1ec   : > { %v1141_v59 = vadd.f32 %v1140_v57, %v12034_v29  ;;  %v1615_v60 = vadd.f32 %v1614_v58, %v12169_v42  ;;  %v1142_v61 = vpop.f32.mrb[114].mxu0  ;;  %1876 = vmatprep.mubr.bf16.mxu1 %v1360_v54  ;;  %v1928_v4 = vmax.f32 %v1611_v51, 0.0 }
 0x1ed   : > { %v1929_v63 = vmax.f32 %v1613_v56, 0.0  ;;  %v1143_v1 = vadd.f32 %v1142_v61, %v12030_v28  ;;  %v1144_v2 = vpop.f32.mrb[115].mxu0  ;;  %1877 = vmatmul.mubr.bf16.gmra.mrb[108].mxu1 %v1359_v50  ;;  %v1289_v6 = vmax.f32 %v1139_v55, 0.0 }
 0x1ee   : > { %v1145_v3 = vadd.f32 %v1144_v2, %v12034_v29  ;;  %v1930_v5 = vmax.f32 %v1615_v60, 0.0  ;;  %v1290_v9 = vmax.f32 %v1141_v59, 0.0 }
 0x1ef   : > { %v2055_v7 = vpack.c.bf16 %v1929_v63, %v1927_v62  ;;  %v1291_v8 = vmax.f32 %v1143_v1, 0.0 }
 0x1f0   : > { %v1292_v10 = vmax.f32 %v1145_v3, 0.0  ;;  %v1618_v11 = vpop.f32.mrb[4].mxu1  ;;  %v2056_v12 = vpack.c.bf16 %v1930_v5, %v1928_v4 }
 0x1f1   : > { %v1619_v13 = vadd.f32 %v1618_v11, %v12165_v40  ;;  %v1620_v14 = vpop.f32.mrb[5].mxu1  ;;  %v1361_v15 = vpack.c.bf16 %v1291_v8, %v1289_v6 }
 0x1f2   : > { %v1621_v18 = vadd.f32 %v1620_v14, %v12169_v42  ;;  %v1148_v19 = vpop.f32.mrb[116].mxu0  ;;  %v1622_v20 = vpop.f32.mrb[6].mxu1  ;;  %2357 = vmatprep.mubr.bf16.mxu0 %v2056_v12  ;;  %v1362_v21 = vpack.c.bf16 %v1292_v10, %v1290_v9 }
 0x1f3   : > { %v1149_v22 = vadd.f32 %v1148_v19, %v12030_v28  ;;  %v1623_v24 = vadd.f32 %v1622_v20, %v12165_v40  ;;  %v1150_v26 = vpop.f32.mrb[117].mxu0  ;;  %v1624_v27 = vpop.f32.mrb[7].mxu1  ;;  %2358 = vmatmul.mubr.bf16.vlgmr.msra.gmra.mrb[128].mxu0 %v2055_v7  ;;  %v1931_v35 = vmax.f32 %v1619_v13, 0.0 }
 0x1f4   : > { %v1151_v30 = vadd.f32 %v1150_v26, %v12034_v29  ;;  %v1625_v31 = vadd.f32 %v1624_v27, %v12169_v42  ;;  %v1152_v32 = vpop.f32.mrb[118].mxu0  ;;  %1886 = vmatprep.mubr.bf16.mxu1 %v1362_v21  ;;  %v1932_v38 = vmax.f32 %v1621_v18, 0.0  ;;  %v11403_v18 = vld [vmem:[#allocation2 + $0x2b4] ss:$8 sps:$4 sm:$0xff]  }
 0x1f5   : > { %v1153_v33 = vadd.f32 %v1152_v32, %v12030_v28  ;;  %v1154_v34 = vpop.f32.mrb[119].mxu0  ;;  %1887 = vmatmul.mubr.bf16.gmra.mrb[112].mxu1 %v1361_v15  ;;  %v1933_v36 = vmax.f32 %v1623_v24, 0.0  ;;  %v1293_v41 = vmax.f32 %v1149_v22, 0.0  ;;  %3098 = vmatprep.subr.bf16.mxu1 %v11403_v18 }
 0x1f6   : > { %v1155_v37 = vadd.f32 %v1154_v34, %v12034_v29  ;;  %v1934_v39 = vmax.f32 %v1625_v31, 0.0  ;;  %v1294_v45 = vmax.f32 %v1151_v30, 0.0  ;;  %3099 = vmatpush1.bf16.msra.mxu1 %v11401_v17 }
 0x1f7   : > { %v1295_v43 = vmax.f32 %v1153_v33, 0.0  ;;  %v2057_v44 = vpack.c.bf16 %v1933_v36, %v1931_v35 }
 0x1f8   : > { %v1296_v46 = vmax.f32 %v1155_v37, 0.0  ;;  %v1628_v47 = vpop.f32.mrb[8].mxu1  ;;  %v2058_v48 = vpack.c.bf16 %v1934_v39, %v1932_v38 }
 0x1f9   : > { %v1629_v49 = vadd.f32 %v1628_v47, %v12165_v40  ;;  %v1630_v50 = vpop.f32.mrb[9].mxu1  ;;  %v1363_v51 = vpack.c.bf16 %v1295_v43, %v1293_v41 }
 0x1fa   : > { %v1631_v52 = vadd.f32 %v1630_v50, %v12169_v42  ;;  %v1158_v53 = vpop.f32.mrb[120].mxu0  ;;  %v1632_v54 = vpop.f32.mrb[10].mxu1  ;;  %2367 = vmatprep.mubr.bf16.mxu0 %v2058_v48  ;;  %v1364_v55 = vpack.c.bf16 %v1296_v46, %v1294_v45 }
 0x1fb   : > { %v1159_v56 = vadd.f32 %v1158_v53, %v12030_v28  ;;  %v1633_v57 = vadd.f32 %v1632_v54, %v12165_v40  ;;  %v1160_v58 = vpop.f32.mrb[121].mxu0  ;;  %v1634_v59 = vpop.f32.mrb[11].mxu1  ;;  %2368 = vmatmul.mubr.bf16.gmra.mrb[132].mxu0 %v2057_v44  ;;  %v1935_v2 = vmax.f32 %v1629_v49, 0.0 }
 0x1fc   : > { %v1161_v60 = vadd.f32 %v1160_v58, %v12034_v29  ;;  %v1635_v61 = vadd.f32 %v1634_v59, %v12169_v42  ;;  %v1162_v62 = vpop.f32.mrb[122].mxu0  ;;  %1896 = vmatprep.mubr.bf16.mxu1 %v1364_v55  ;;  %v1936_v5 = vmax.f32 %v1631_v52, 0.0 }
 0x1fd   : > { %v1163_v63 = vadd.f32 %v1162_v62, %v12030_v28  ;;  %v1164_v1 = vpop.f32.mrb[123].mxu0  ;;  %1897 = vmatmul.mubr.bf16.gmra.mrb[116].mxu1 %v1363_v51  ;;  %v1937_v3 = vmax.f32 %v1633_v57, 0.0  ;;  %v1297_v7 = vmax.f32 %v1159_v56, 0.0 }
 0x1fe   : > { %v1165_v4 = vadd.f32 %v1164_v1, %v12034_v29  ;;  %v1938_v6 = vmax.f32 %v1635_v61, 0.0  ;;  %v1298_v10 = vmax.f32 %v1161_v60, 0.0 }
 0x1ff   : > { %v1299_v8 = vmax.f32 %v1163_v63, 0.0  ;;  %v2059_v9 = vpack.c.bf16 %v1937_v3, %v1935_v2  ;;  %v11404_v3 = vld [vmem:[#allocation2 + $0x2c0] ss:$8 sps:$4 sm:$0xff]  }
 0x200   : > { %v1300_v11 = vmax.f32 %v1165_v4, 0.0  ;;  %v1638_v12 = vpop.f32.mrb[12].mxu1  ;;  %v2060_v13 = vpack.c.bf16 %v1938_v6, %v1936_v5  ;;  %v11406_v4 = vld [vmem:[#allocation2 + $0x2c4] ss:$8 sps:$4 sm:$0xff]  }
 0x201   : > { %v1639_v14 = vadd.f32 %v1638_v12, %v12165_v40  ;;  %v1640_v15 = vpop.f32.mrb[13].mxu1  ;;  %v1365_v16 = vpack.c.bf16 %v1299_v8, %v1297_v7  ;;  %3100 = vmatprep.subr.bf16.mxu1 %v11406_v4 }
 0x202   : > { %v1641_v19 = vadd.f32 %v1640_v15, %v12169_v42  ;;  %v1168_v20 = vpop.f32.mrb[124].mxu0  ;;  %v1642_v21 = vpop.f32.mrb[14].mxu1  ;;  %2377 = vmatprep.mubr.bf16.mxu0 %v2060_v13  ;;  %v1366_v22 = vpack.c.bf16 %v1300_v11, %v1298_v10  ;;  %3101 = vmatpush1.bf16.msra.mxu1 %v11404_v3 }
 0x203   : > { %v1169_v24 = vadd.f32 %v1168_v20, %v12030_v28  ;;  %v1643_v26 = vadd.f32 %v1642_v21, %v12165_v40  ;;  %v1170_v27 = vpop.f32.mrb[125].mxu0  ;;  %v1644_v30 = vpop.f32.mrb[15].mxu1  ;;  %2378 = vmatmul.mubr.bf16.gmra.mrb[136].mxu0 %v2059_v9  ;;  %v1939_v36 = vmax.f32 %v1639_v14, 0.0 }
 0x204   : > { %v1171_v31 = vadd.f32 %v1170_v27, %v12034_v29  ;;  %v1645_v32 = vadd.f32 %v1644_v30, %v12169_v42  ;;  %v1172_v33 = vpop.f32.mrb[126].mxu0  ;;  %1906 = vmatprep.mubr.bf16.mxu1 %v1366_v22  ;;  %v1940_v39 = vmax.f32 %v1641_v19, 0.0 }
 0x205   : > { %v1173_v34 = vadd.f32 %v1172_v33, %v12030_v28  ;;  %v1174_v35 = vpop.f32.mrb[127].mxu0  ;;  %1907 = vmatmul.mubr.bf16.gmra.mrb[120].mxu1 %v1365_v16  ;;  %v1941_v37 = vmax.f32 %v1643_v26, 0.0  ;;  %v1301_v43 = vmax.f32 %v1169_v24, 0.0 }
 0x206   : > { %v1175_v38 = vadd.f32 %v1174_v35, %v12034_v29  ;;  %v1942_v41 = vmax.f32 %v1645_v32, 0.0  ;;  %v1302_v46 = vmax.f32 %v1171_v31, 0.0 }
 0x207   : > { %v1303_v44 = vmax.f32 %v1173_v34, 0.0  ;;  %v2061_v45 = vpack.c.bf16 %v1941_v37, %v1939_v36  ;;  %v11407_v37 = vld [vmem:[#allocation2 + $0x2d0] ss:$8 sps:$4 sm:$0xff]  }
 0x208   : > { %v1304_v47 = vmax.f32 %v1175_v38, 0.0  ;;  %v1648_v48 = vpop.f32.mrb[16].mxu1  ;;  %v2062_v49 = vpack.c.bf16 %v1942_v41, %v1940_v39  ;;  %v11409_v38 = vld [vmem:[#allocation2 + $0x2d4] ss:$8 sps:$4 sm:$0xff]  }
 0x209   : > { %v1649_v50 = vadd.f32 %v1648_v48, %v12165_v40  ;;  %v1650_v51 = vpop.f32.mrb[17].mxu1  ;;  %v1367_v52 = vpack.c.bf16 %v1303_v44, %v1301_v43  ;;  %3102 = vmatprep.subr.bf16.mxu1 %v11409_v38 }
 0x20a   : > { %v1651_v28 = vadd.f32 %v1650_v51, %v12169_v42  ;;  %v1652_v53 = vpop.f32.mrb[18].mxu1  ;;  %2387 = vmatprep.mubr.bf16.mxu0 %v2062_v49  ;;  %v1368_v54 = vpack.c.bf16 %v1304_v47, %v1302_v46  ;;  %3103 = vmatpush1.bf16.msra.mxu1 %v11407_v37 }
 0x20b   : > { %v1653_v29 = vadd.f32 %v1652_v53, %v12165_v40  ;;  %v1654_v55 = vpop.f32.mrb[19].mxu1  ;;  %2388 = vmatmul.mubr.bf16.gmra.mrb[140].mxu0 %v2061_v45  ;;  %v1943_v57 = vmax.f32 %v1649_v50, 0.0 }
 0x20c   : > { %v1655_v56 = vadd.f32 %v1654_v55, %v12169_v42  ;;  %1916 = vmatprep.mubr.bf16.mxu1 %v1368_v54  ;;  %v1944_v59 = vmax.f32 %v1651_v28, 0.0 }
 0x20d   : > { %1917 = vmatmul.mubr.bf16.gmra.mrb[124].mxu1 %v1367_v52  ;;  %v1945_v58 = vmax.f32 %v1653_v29, 0.0 }
 0x20e   : > { %v1946_v60 = vmax.f32 %v1655_v56, 0.0 }
 0x20f   : > { %v2063_v61 = vpack.c.bf16 %v1945_v58, %v1943_v57  ;;  %v11410_v58 = vld [vmem:[#allocation2 + $0x300] ss:$8 sps:$4 sm:$0xff]  }
 0x210   : > { %v1658_v62 = vpop.f32.mrb[20].mxu1  ;;  %v2064_v63 = vpack.c.bf16 %v1946_v60, %v1944_v59  ;;  %v11412_v59 = vld [vmem:[#allocation2 + $0x304] ss:$8 sps:$4 sm:$0xff]  }
 0x211   : > { %v1659_v1 = vadd.f32 %v1658_v62, %v12165_v40  ;;  %v1660_v2 = vpop.f32.mrb[21].mxu1  ;;  %3827 = vmatprep.subr.bf16.mxu0 %v11412_v59 }
 0x212   : > { %v1661_v5 = vadd.f32 %v1660_v2, %v12169_v42  ;;  %v1662_v6 = vpop.f32.mrb[22].mxu1  ;;  %2397 = vmatprep.mubr.bf16.mxu0 %v2064_v63  ;;  %3828 = vmatpush1.bf16.msra.mxu0 %v11410_v58 }
 0x213   : > { %v1663_v7 = vadd.f32 %v1662_v6, %v12165_v40  ;;  %v1664_v8 = vpop.f32.mrb[23].mxu1  ;;  %2398 = vmatmul.mubr.bf16.gmra.mrb[144].mxu0 %v2063_v61  ;;  %v1947_v10 = vmax.f32 %v1659_v1, 0.0  ;;  %v11413_v6 = vld [vmem:[#allocation2 + $0x2e0] ss:$8 sps:$4 sm:$0xff]  }
 0x214   : > { %v1665_v9 = vadd.f32 %v1664_v8, %v12169_v42  ;;  %v1948_v12 = vmax.f32 %v1661_v5, 0.0 }
 0x215   : > { %v1949_v11 = vmax.f32 %v1663_v7, 0.0  ;;  %v11415_v7 = vld [vmem:[#allocation2 + $0x2e4] ss:$8 sps:$4 sm:$0xff]  }
 0x216   : > { %v1950_v13 = vmax.f32 %v1665_v9, 0.0  ;;  %3104 = vmatprep.subr.bf16.mxu1 %v11415_v7 }
 0x217   : > { %v2065_v14 = vpack.c.bf16 %v1949_v11, %v1947_v10  ;;  %3105 = vmatpush1.bf16.msra.mxu1 %v11413_v6 }
 0x218   : > { %v1668_v15 = vpop.f32.mrb[24].mxu1  ;;  %v2066_v16 = vpack.c.bf16 %v1950_v13, %v1948_v12 }
 0x219   : > { %v1669_v17 = vadd.f32 %v1668_v15, %v12165_v40  ;;  %v1670_v18 = vpop.f32.mrb[25].mxu1 }
 0x21a   : > { %v1671_v19 = vadd.f32 %v1670_v18, %v12169_v42  ;;  %v1672_v20 = vpop.f32.mrb[26].mxu1  ;;  %2407 = vmatprep.mubr.bf16.mxu0 %v2066_v16 }
 0x21b   : > { %v1673_v21 = vadd.f32 %v1672_v20, %v12165_v40  ;;  %v1674_v22 = vpop.f32.mrb[27].mxu1  ;;  %2408 = vmatmul.mubr.bf16.gmra.mrb[148].mxu0 %v2065_v14  ;;  %v1951_v26 = vmax.f32 %v1669_v17, 0.0 }
 0x21c   : > { %v1675_v24 = vadd.f32 %v1674_v22, %v12169_v42  ;;  %v1952_v30 = vmax.f32 %v1671_v19, 0.0 }
 0x21d   : > { %v1953_v27 = vmax.f32 %v1673_v21, 0.0 }
 0x21e   : > { %v1954_v31 = vmax.f32 %v1675_v24, 0.0 }
 0x21f   : > { %v2067_v32 = vpack.c.bf16 %v1953_v27, %v1951_v26 }
 0x220   : > { %v1678_v33 = vpop.f32.mrb[28].mxu1  ;;  %v2068_v34 = vpack.c.bf16 %v1954_v31, %v1952_v30  ;;  %v11416_v31 = vld [vmem:[#allocation2 + $0x310] ss:$8 sps:$4 sm:$0xff]  }
 0x221   : > { %v1679_v35 = vadd.f32 %v1678_v33, %v12165_v40  ;;  %v1680_v36 = vpop.f32.mrb[29].mxu1 }
 0x222   : > { %v1681_v39 = vadd.f32 %v1680_v36, %v12169_v42  ;;  %v1682_v41 = vpop.f32.mrb[30].mxu1  ;;  %2417 = vmatprep.mubr.bf16.mxu0 %v2068_v34 }
 0x223   : > { %v1683_v43 = vadd.f32 %v1682_v41, %v12165_v40  ;;  %v1684_v44 = vpop.f32.mrb[31].mxu1  ;;  %2418 = vmatmul.mubr.bf16.gmra.mrb[152].mxu0 %v2067_v32  ;;  %v1955_v46 = vmax.f32 %v1679_v35, 0.0  ;;  %v11418_v32 = vld [vmem:[#allocation2 + $0x314] ss:$8 sps:$4 sm:$0xff]  }
 0x224   : > { %v1685_v45 = vadd.f32 %v1684_v44, %v12169_v42  ;;  %v1956_v48 = vmax.f32 %v1681_v39, 0.0  ;;  %3829 = vmatprep.subr.bf16.mxu0 %v11418_v32  ;;  %v11419_v44 = vld [vmem:[#allocation2 + $0x2f0] ss:$8 sps:$4 sm:$0xff]  }
 0x225   : > { %v1957_v47 = vmax.f32 %v1683_v43, 0.0  ;;  %3830 = vmatpush1.bf16.msra.mxu0 %v11416_v31 }
 0x226   : > { %v1958_v49 = vmax.f32 %v1685_v45, 0.0  ;;  %v11421_v45 = vld [vmem:[#allocation2 + $0x2f4] ss:$8 sps:$4 sm:$0xff]  }
 0x227   : > { %v2069_v50 = vpack.c.bf16 %v1957_v47, %v1955_v46  ;;  %3106 = vmatprep.subr.bf16.mxu1 %v11421_v45  ;;  %v11425_v45 = vld [vmem:[#allocation2 + $0x330] ss:$8 sps:$4 sm:$0xff]  }
 0x228   : > { %v1688_v51 = vpop.f32.mrb[32].mxu1  ;;  %v2070_v52 = vpack.c.bf16 %v1958_v49, %v1956_v48  ;;  %3107 = vmatpush1.bf16.msra.mxu1 %v11419_v44 }
 0x229   : > { %v1689_v28 = vadd.f32 %v1688_v51, %v12165_v40  ;;  %v1690_v53 = vpop.f32.mrb[33].mxu1 }
 0x22a   : > { %v1691_v54 = vadd.f32 %v1690_v53, %v12169_v42  ;;  %v1692_v29 = vpop.f32.mrb[34].mxu1  ;;  %2427 = vmatprep.mubr.bf16.mxu0 %v2070_v52 }
 0x22b   : > { %v1693_v55 = vadd.f32 %v1692_v29, %v12165_v40  ;;  %v1694_v56 = vpop.f32.mrb[35].mxu1  ;;  %2428 = vmatmul.mubr.bf16.gmra.mrb[156].mxu0 %v2069_v50  ;;  %v1959_v60 = vmax.f32 %v1689_v28, 0.0 }
 0x22c   : > { %v1695_v57 = vadd.f32 %v1694_v56, %v12169_v42  ;;  %v1960_v62 = vmax.f32 %v1691_v54, 0.0 }
 0x22d   : > { %v1961_v61 = vmax.f32 %v1693_v55, 0.0 }
 0x22e   : > { %v1962_v63 = vmax.f32 %v1695_v57, 0.0 }
 0x22f   : > { %v2071_v1 = vpack.c.bf16 %v1961_v61, %v1959_v60 }
 0x230   : > { %v1698_v2 = vpop.f32.mrb[36].mxu1  ;;  %v2072_v3 = vpack.c.bf16 %v1962_v63, %v1960_v62 }
 0x231   : > { %v1699_v4 = vadd.f32 %v1698_v2, %v12165_v40  ;;  %v1700_v5 = vpop.f32.mrb[37].mxu1 }
 0x232   : > { %v1701_v8 = vadd.f32 %v1700_v5, %v12169_v42  ;;  %v1702_v9 = vpop.f32.mrb[38].mxu1  ;;  %2437 = vmatprep.mubr.bf16.mxu0 %v2072_v3 }
 0x233   : > { %v1703_v10 = vadd.f32 %v1702_v9, %v12165_v40  ;;  %v1704_v11 = vpop.f32.mrb[39].mxu1  ;;  %2438 = vmatmul.mubr.bf16.gmra.mrb[160].mxu0 %v2071_v1  ;;  %v1963_v13 = vmax.f32 %v1699_v4, 0.0  ;;  %v11422_v9 = vld [vmem:[#allocation2 + $0x320] ss:$8 sps:$4 sm:$0xff]  }
 0x234   : > { %v1705_v12 = vadd.f32 %v1704_v11, %v12169_v42  ;;  %v1964_v15 = vmax.f32 %v1701_v8, 0.0 }
 0x235   : > { %v1965_v14 = vmax.f32 %v1703_v10, 0.0  ;;  %v11424_v10 = vld [vmem:[#allocation2 + $0x324] ss:$8 sps:$4 sm:$0xff]  }
 0x236   : > { %v1966_v16 = vmax.f32 %v1705_v12, 0.0  ;;  %3831 = vmatprep.subr.bf16.mxu0 %v11424_v10  ;;  %v11428_v10 = vld [vmem:[#allocation2 + $0x340] ss:$8 sps:$4 sm:$0xff]  }
 0x237   : > { %v2073_v17 = vpack.c.bf16 %v1965_v14, %v1963_v13  ;;  %3832 = vmatpush1.bf16.msra.mxu0 %v11422_v9 }
 0x238   : > { %v1708_v18 = vpop.f32.mrb[40].mxu1  ;;  %v2074_v19 = vpack.c.bf16 %v1966_v16, %v1964_v15 }
 0x239   : > { %v1709_v20 = vadd.f32 %v1708_v18, %v12165_v40  ;;  %v1710_v21 = vpop.f32.mrb[41].mxu1 }
 0x23a   : > { %v1711_v22 = vadd.f32 %v1710_v21, %v12169_v42  ;;  %v1712_v24 = vpop.f32.mrb[42].mxu1  ;;  %2447 = vmatprep.mubr.bf16.mxu0 %v2074_v19 }
 0x23b   : > { %v1713_v26 = vadd.f32 %v1712_v24, %v12165_v40  ;;  %v1714_v27 = vpop.f32.mrb[43].mxu1  ;;  %2448 = vmatmul.mubr.bf16.gmra.mrb[164].mxu0 %v2073_v17  ;;  %v1967_v33 = vmax.f32 %v1709_v20, 0.0 }
 0x23c   : > { %v1715_v30 = vadd.f32 %v1714_v27, %v12169_v42  ;;  %v1968_v35 = vmax.f32 %v1711_v22, 0.0 }
 0x23d   : > { %v1969_v34 = vmax.f32 %v1713_v26, 0.0 }
 0x23e   : > { %v1970_v36 = vmax.f32 %v1715_v30, 0.0 }
 0x23f   : > { %v2075_v37 = vpack.c.bf16 %v1969_v34, %v1967_v33 }
 0x240   : > { %v1718_v38 = vpop.f32.mrb[44].mxu1  ;;  %v2076_v39 = vpack.c.bf16 %v1970_v36, %v1968_v35 }
 0x241   : > { %v1719_v41 = vadd.f32 %v1718_v38, %v12165_v40  ;;  %v1720_v43 = vpop.f32.mrb[45].mxu1 }
 0x242   : > { %v1721_v46 = vadd.f32 %v1720_v43, %v12169_v42  ;;  %v1722_v47 = vpop.f32.mrb[46].mxu1  ;;  %2457 = vmatprep.mubr.bf16.mxu0 %v2076_v39 }
 0x243   : > { %v1723_v48 = vadd.f32 %v1722_v47, %v12165_v40  ;;  %v1724_v49 = vpop.f32.mrb[47].mxu1  ;;  %2458 = vmatmul.mubr.bf16.gmra.mrb[168].mxu0 %v2075_v37  ;;  %v1971_v51 = vmax.f32 %v1719_v41, 0.0 }
 0x244   : > { %v1725_v50 = vadd.f32 %v1724_v49, %v12169_v42  ;;  %v1972_v28 = vmax.f32 %v1721_v46, 0.0  ;;  %v11427_v46 = vld [vmem:[#allocation2 + $0x334] ss:$8 sps:$4 sm:$0xff]  }
 0x245   : > { %v1973_v52 = vmax.f32 %v1723_v48, 0.0  ;;  %3833 = vmatprep.subr.bf16.mxu0 %v11427_v46  ;;  %v11431_v46 = vld [vmem:[#allocation2 + $0x350] ss:$8 sps:$4 sm:$0xff]  }
 0x246   : > { %v1974_v53 = vmax.f32 %v1725_v50, 0.0  ;;  %3834 = vmatpush1.bf16.msra.mxu0 %v11425_v45 }
 0x247   : > { %v2077_v54 = vpack.c.bf16 %v1973_v52, %v1971_v51 }
 0x248   : > { %v1728_v29 = vpop.f32.mrb[48].mxu1  ;;  %v2078_v55 = vpack.c.bf16 %v1974_v53, %v1972_v28 }
 0x249   : > { %v1729_v56 = vadd.f32 %v1728_v29, %v12165_v40  ;;  %v1730_v57 = vpop.f32.mrb[49].mxu1 }
 0x24a   : > { %v1731_v58 = vadd.f32 %v1730_v57, %v12169_v42  ;;  %v1732_v59 = vpop.f32.mrb[50].mxu1  ;;  %2467 = vmatprep.mubr.bf16.mxu0 %v2078_v55 }
 0x24b   : > { %v1733_v60 = vadd.f32 %v1732_v59, %v12165_v40  ;;  %v1734_v61 = vpop.f32.mrb[51].mxu1  ;;  %2468 = vmatmul.mubr.bf16.gmra.mrb[172].mxu0 %v2077_v54  ;;  %v1975_v63 = vmax.f32 %v1729_v56, 0.0 }
 0x24c   : > { %v1735_v62 = vadd.f32 %v1734_v61, %v12169_v42  ;;  %v1976_v2 = vmax.f32 %v1731_v58, 0.0 }
 0x24d   : > { %v1977_v1 = vmax.f32 %v1733_v60, 0.0 }
 0x24e   : > { %v1978_v3 = vmax.f32 %v1735_v62, 0.0 }
 0x24f   : > { %v2079_v4 = vpack.c.bf16 %v1977_v1, %v1975_v63 }
 0x250   : > { %v1738_v5 = vpop.f32.mrb[52].mxu1  ;;  %v2080_v6 = vpack.c.bf16 %v1978_v3, %v1976_v2 }
 0x251   : > { %v1739_v7 = vadd.f32 %v1738_v5, %v12165_v40  ;;  %v1740_v8 = vpop.f32.mrb[53].mxu1 }
 0x252   : > { %v1741_v11 = vadd.f32 %v1740_v8, %v12169_v42  ;;  %v1742_v12 = vpop.f32.mrb[54].mxu1  ;;  %2477 = vmatprep.mubr.bf16.mxu0 %v2080_v6 }
 0x253   : > { %v1743_v13 = vadd.f32 %v1742_v12, %v12165_v40  ;;  %v1744_v14 = vpop.f32.mrb[55].mxu1  ;;  %2478 = vmatmul.mubr.bf16.gmra.mrb[176].mxu0 %v2079_v4  ;;  %v1979_v16 = vmax.f32 %v1739_v7, 0.0 }
 0x254   : > { %v1745_v15 = vadd.f32 %v1744_v14, %v12169_v42  ;;  %v1980_v18 = vmax.f32 %v1741_v11, 0.0  ;;  %v11430_v11 = vld [vmem:[#allocation2 + $0x344] ss:$8 sps:$4 sm:$0xff]  }
 0x255   : > { %v1981_v17 = vmax.f32 %v1743_v13, 0.0  ;;  %3835 = vmatprep.subr.bf16.mxu0 %v11430_v11  ;;  %v11434_v11 = vld [vmem:[#allocation2 + $0x360] ss:$8 sps:$4 sm:$0xff]  }
 0x256   : > { %v1982_v19 = vmax.f32 %v1745_v15, 0.0  ;;  %3836 = vmatpush1.bf16.msra.mxu0 %v11428_v10 }
 0x257   : > { %v2081_v20 = vpack.c.bf16 %v1981_v17, %v1979_v16 }
 0x258   : > { %v1748_v21 = vpop.f32.mrb[56].mxu1  ;;  %v2082_v22 = vpack.c.bf16 %v1982_v19, %v1980_v18 }
 0x259   : > { %v1749_v24 = vadd.f32 %v1748_v21, %v12165_v40  ;;  %v1750_v26 = vpop.f32.mrb[57].mxu1 }
 0x25a   : > { %v1751_v27 = vadd.f32 %v1750_v26, %v12169_v42  ;;  %v1752_v30 = vpop.f32.mrb[58].mxu1  ;;  %2487 = vmatprep.mubr.bf16.mxu0 %v2082_v22 }
 0x25b   : > { %v1753_v31 = vadd.f32 %v1752_v30, %v12165_v40  ;;  %v1754_v32 = vpop.f32.mrb[59].mxu1  ;;  %2488 = vmatmul.mubr.bf16.gmra.mrb[180].mxu0 %v2081_v20  ;;  %v1983_v34 = vmax.f32 %v1749_v24, 0.0 }
 0x25c   : > { %v1755_v33 = vadd.f32 %v1754_v32, %v12169_v42  ;;  %v1984_v36 = vmax.f32 %v1751_v27, 0.0 }
 0x25d   : > { %v1985_v35 = vmax.f32 %v1753_v31, 0.0 }
 0x25e   : > { %v1986_v37 = vmax.f32 %v1755_v33, 0.0 }
 0x25f   : > { %v2083_v38 = vpack.c.bf16 %v1985_v35, %v1983_v34 }
 0x260   : > { %v1758_v39 = vpop.f32.mrb[60].mxu1  ;;  %v2084_v41 = vpack.c.bf16 %v1986_v37, %v1984_v36 }
 0x261   : > { %v1759_v43 = vadd.f32 %v1758_v39, %v12165_v40  ;;  %v1760_v44 = vpop.f32.mrb[61].mxu1 }
 0x262   : > { %v1761_v47 = vadd.f32 %v1760_v44, %v12169_v42  ;;  %v1762_v48 = vpop.f32.mrb[62].mxu1  ;;  %2497 = vmatprep.mubr.bf16.mxu0 %v2084_v41 }
 0x263   : > { %v1763_v49 = vadd.f32 %v1762_v48, %v12165_v40  ;;  %v1764_v50 = vpop.f32.mrb[63].mxu1  ;;  %2498 = vmatmul.mubr.bf16.gmra.mrb[184].mxu0 %v2083_v38  ;;  %v1987_v52 = vmax.f32 %v1759_v43, 0.0 }
 0x264   : > { %v1765_v51 = vadd.f32 %v1764_v50, %v12169_v42  ;;  %v1988_v53 = vmax.f32 %v1761_v47, 0.0  ;;  %v11433_v47 = vld [vmem:[#allocation2 + $0x354] ss:$8 sps:$4 sm:$0xff]  }
 0x265   : > { %v1989_v28 = vmax.f32 %v1763_v49, 0.0  ;;  %3837 = vmatprep.subr.bf16.mxu0 %v11433_v47  ;;  %v11437_v47 = vld [vmem:[#allocation2 + $0x370] ss:$8 sps:$4 sm:$0xff]  }
 0x266   : > { %v1990_v54 = vmax.f32 %v1765_v51, 0.0  ;;  %3838 = vmatpush1.bf16.msra.mxu0 %v11431_v46 }
 0x267   : > { %v2085_v29 = vpack.c.bf16 %v1989_v28, %v1987_v52 }
 0x268   : > { %v1768_v55 = vpop.f32.mrb[64].mxu1  ;;  %v2086_v56 = vpack.c.bf16 %v1990_v54, %v1988_v53 }
 0x269   : > { %v1769_v57 = vadd.f32 %v1768_v55, %v12165_v40  ;;  %v1770_v58 = vpop.f32.mrb[65].mxu1 }
 0x26a   : > { %v1771_v59 = vadd.f32 %v1770_v58, %v12169_v42  ;;  %v1772_v60 = vpop.f32.mrb[66].mxu1  ;;  %2507 = vmatprep.mubr.bf16.mxu0 %v2086_v56 }
 0x26b   : > { %v1773_v61 = vadd.f32 %v1772_v60, %v12165_v40  ;;  %v1774_v62 = vpop.f32.mrb[67].mxu1  ;;  %2508 = vmatmul.mubr.bf16.gmra.mrb[188].mxu0 %v2085_v29  ;;  %v1991_v1 = vmax.f32 %v1769_v57, 0.0 }
 0x26c   : > { %v1775_v63 = vadd.f32 %v1774_v62, %v12169_v42  ;;  %v1992_v3 = vmax.f32 %v1771_v59, 0.0 }
 0x26d   : > { %v1993_v2 = vmax.f32 %v1773_v61, 0.0 }
 0x26e   : > { %v1994_v4 = vmax.f32 %v1775_v63, 0.0 }
 0x26f   : > { %v2087_v5 = vpack.c.bf16 %v1993_v2, %v1991_v1 }
 0x270   : > { %v1778_v6 = vpop.f32.mrb[68].mxu1  ;;  %v2088_v7 = vpack.c.bf16 %v1994_v4, %v1992_v3 }
 0x271   : > { %v1779_v8 = vadd.f32 %v1778_v6, %v12165_v40  ;;  %v1780_v9 = vpop.f32.mrb[69].mxu1 }
 0x272   : > { %v1781_v12 = vadd.f32 %v1780_v9, %v12169_v42  ;;  %v1782_v13 = vpop.f32.mrb[70].mxu1  ;;  %2517 = vmatprep.mubr.bf16.mxu0 %v2088_v7 }
 0x273   : > { %v1783_v14 = vadd.f32 %v1782_v13, %v12165_v40  ;;  %v1784_v15 = vpop.f32.mrb[71].mxu1  ;;  %2518 = vmatmul.mubr.bf16.gmra.mrb[192].mxu0 %v2087_v5  ;;  %v1995_v17 = vmax.f32 %v1779_v8, 0.0 }
 0x274   : > { %v1785_v16 = vadd.f32 %v1784_v15, %v12169_v42  ;;  %v1996_v19 = vmax.f32 %v1781_v12, 0.0  ;;  %v11436_v12 = vld [vmem:[#allocation2 + $0x364] ss:$8 sps:$4 sm:$0xff]  }
 0x275   : > { %v1997_v18 = vmax.f32 %v1783_v14, 0.0  ;;  %3839 = vmatprep.subr.bf16.mxu0 %v11436_v12  ;;  %v11440_v12 = vld [vmem:[#allocation2 + $0x380] ss:$8 sps:$4 sm:$0xff]  }
 0x276   : > { %v1998_v20 = vmax.f32 %v1785_v16, 0.0  ;;  %3840 = vmatpush1.bf16.msra.mxu0 %v11434_v11 }
 0x277   : > { %v2089_v21 = vpack.c.bf16 %v1997_v18, %v1995_v17 }
 0x278   : > { %v1788_v22 = vpop.f32.mrb[72].mxu1  ;;  %v2090_v24 = vpack.c.bf16 %v1998_v20, %v1996_v19 }
 0x279   : > { %v1789_v26 = vadd.f32 %v1788_v22, %v12165_v40  ;;  %v1790_v27 = vpop.f32.mrb[73].mxu1 }
 0x27a   : > { %v1791_v30 = vadd.f32 %v1790_v27, %v12169_v42  ;;  %v1792_v31 = vpop.f32.mrb[74].mxu1  ;;  %2527 = vmatprep.mubr.bf16.mxu0 %v2090_v24 }
 0x27b   : > { %v1793_v32 = vadd.f32 %v1792_v31, %v12165_v40  ;;  %v1794_v33 = vpop.f32.mrb[75].mxu1  ;;  %2528 = vmatmul.mubr.bf16.gmra.mrb[196].mxu0 %v2089_v21  ;;  %v1999_v35 = vmax.f32 %v1789_v26, 0.0 }
 0x27c   : > { %v1795_v34 = vadd.f32 %v1794_v33, %v12169_v42  ;;  %v2000_v37 = vmax.f32 %v1791_v30, 0.0 }
 0x27d   : > { %v2001_v36 = vmax.f32 %v1793_v32, 0.0 }
 0x27e   : > { %v2002_v38 = vmax.f32 %v1795_v34, 0.0 }
 0x27f   : > { %v2091_v39 = vpack.c.bf16 %v2001_v36, %v1999_v35 }
 0x280   : > { %v1798_v41 = vpop.f32.mrb[76].mxu1  ;;  %v2092_v43 = vpack.c.bf16 %v2002_v38, %v2000_v37 }
 0x281   : > { %v1799_v44 = vadd.f32 %v1798_v41, %v12165_v40  ;;  %v1800_v45 = vpop.f32.mrb[77].mxu1 }
 0x282   : > { %v1801_v48 = vadd.f32 %v1800_v45, %v12169_v42  ;;  %v1802_v49 = vpop.f32.mrb[78].mxu1  ;;  %2537 = vmatprep.mubr.bf16.mxu0 %v2092_v43 }
 0x283   : > { %v1803_v50 = vadd.f32 %v1802_v49, %v12165_v40  ;;  %v1804_v51 = vpop.f32.mrb[79].mxu1  ;;  %2538 = vmatmul.mubr.bf16.gmra.mrb[200].mxu0 %v2091_v39  ;;  %v2003_v28 = vmax.f32 %v1799_v44, 0.0 }
 0x284   : > { %v1805_v52 = vadd.f32 %v1804_v51, %v12169_v42  ;;  %v2004_v54 = vmax.f32 %v1801_v48, 0.0  ;;  %v11439_v48 = vld [vmem:[#allocation2 + $0x374] ss:$8 sps:$4 sm:$0xff]  }
 0x285   : > { %v2005_v53 = vmax.f32 %v1803_v50, 0.0  ;;  %3841 = vmatprep.subr.bf16.mxu0 %v11439_v48 }
 0x286   : > { %v2006_v29 = vmax.f32 %v1805_v52, 0.0  ;;  %3842 = vmatpush1.bf16.msra.mxu0 %v11437_v47 }
 0x287   : > { %v2093_v55 = vpack.c.bf16 %v2005_v53, %v2003_v28 }
 0x288   : > { %v1808_v56 = vpop.f32.mrb[80].mxu1  ;;  %v2094_v57 = vpack.c.bf16 %v2006_v29, %v2004_v54 }
 0x289   : > { %v1809_v58 = vadd.f32 %v1808_v56, %v12165_v40  ;;  %v1810_v59 = vpop.f32.mrb[81].mxu1 }
 0x28a   : > { %v1811_v60 = vadd.f32 %v1810_v59, %v12169_v42  ;;  %v1812_v61 = vpop.f32.mrb[82].mxu1  ;;  %2547 = vmatprep.mubr.bf16.mxu0 %v2094_v57 }
 0x28b   : > { %v1813_v62 = vadd.f32 %v1812_v61, %v12165_v40  ;;  %v1814_v63 = vpop.f32.mrb[83].mxu1  ;;  %2548 = vmatmul.mubr.bf16.gmra.mrb[204].mxu0 %v2093_v55  ;;  %v2007_v2 = vmax.f32 %v1809_v58, 0.0 }
 0x28c   : > { %v1815_v1 = vadd.f32 %v1814_v63, %v12169_v42  ;;  %v2008_v4 = vmax.f32 %v1811_v60, 0.0 }
 0x28d   : > { %v2009_v3 = vmax.f32 %v1813_v62, 0.0 }
 0x28e   : > { %v2010_v5 = vmax.f32 %v1815_v1, 0.0 }
 0x28f   : > { %v2095_v6 = vpack.c.bf16 %v2009_v3, %v2007_v2 }
 0x290   : > { %v1818_v7 = vpop.f32.mrb[84].mxu1  ;;  %v2096_v8 = vpack.c.bf16 %v2010_v5, %v2008_v4 }
 0x291   : > { %v1819_v9 = vadd.f32 %v1818_v7, %v12165_v40  ;;  %v1820_v10 = vpop.f32.mrb[85].mxu1 }
 0x292   : > { %v1821_v13 = vadd.f32 %v1820_v10, %v12169_v42  ;;  %v1822_v14 = vpop.f32.mrb[86].mxu1  ;;  %2557 = vmatprep.mubr.bf16.mxu0 %v2096_v8 }
 0x293   : > { %v1823_v15 = vadd.f32 %v1822_v14, %v12165_v40  ;;  %v1824_v16 = vpop.f32.mrb[87].mxu1  ;;  %2558 = vmatmul.mubr.bf16.gmra.mrb[208].mxu0 %v2095_v6  ;;  %v2011_v18 = vmax.f32 %v1819_v9, 0.0 }
 0x294   : > { %v1825_v17 = vadd.f32 %v1824_v16, %v12169_v42  ;;  %v2012_v20 = vmax.f32 %v1821_v13, 0.0  ;;  %v11442_v13 = vld [vmem:[#allocation2 + $0x384] ss:$8 sps:$4 sm:$0xff]  }
 0x295   : > { %v2013_v19 = vmax.f32 %v1823_v15, 0.0  ;;  %3843 = vmatprep.subr.bf16.mxu0 %v11442_v13 }
 0x296   : > { %v2014_v21 = vmax.f32 %v1825_v17, 0.0  ;;  %3844 = vmatpush1.bf16.msra.mxu0 %v11440_v12 }
 0x297   : > { %v2097_v22 = vpack.c.bf16 %v2013_v19, %v2011_v18 }
 0x298   : > { %v1828_v24 = vpop.f32.mrb[88].mxu1  ;;  %v2098_v26 = vpack.c.bf16 %v2014_v21, %v2012_v20 }
 0x299   : > { %v1829_v27 = vadd.f32 %v1828_v24, %v12165_v40  ;;  %v1830_v30 = vpop.f32.mrb[89].mxu1 }
 0x29a   : > { %v1831_v31 = vadd.f32 %v1830_v30, %v12169_v42  ;;  %v1832_v32 = vpop.f32.mrb[90].mxu1  ;;  %2567 = vmatprep.mubr.bf16.mxu0 %v2098_v26 }
 0x29b   : > { %v1833_v33 = vadd.f32 %v1832_v32, %v12165_v40  ;;  %v1834_v34 = vpop.f32.mrb[91].mxu1  ;;  %2568 = vmatmul.mubr.bf16.gmra.mrb[212].mxu0 %v2097_v22  ;;  %v2015_v36 = vmax.f32 %v1829_v27, 0.0 }
 0x29c   : > { %v1835_v35 = vadd.f32 %v1834_v34, %v12169_v42  ;;  %v2016_v38 = vmax.f32 %v1831_v31, 0.0 }
 0x29d   : > { %v2017_v37 = vmax.f32 %v1833_v33, 0.0 }
 0x29e   : > { %v2018_v39 = vmax.f32 %v1835_v35, 0.0 }
 0x29f   : > { %v2099_v41 = vpack.c.bf16 %v2017_v37, %v2015_v36 }
 0x2a0   : > { %v1838_v43 = vpop.f32.mrb[92].mxu1  ;;  %v2100_v44 = vpack.c.bf16 %v2018_v39, %v2016_v38 }
 0x2a1   : > { %v1839_v45 = vadd.f32 %v1838_v43, %v12165_v40  ;;  %v1840_v46 = vpop.f32.mrb[93].mxu1 }
 0x2a2   : > { %v1841_v49 = vadd.f32 %v1840_v46, %v12169_v42  ;;  %v1842_v50 = vpop.f32.mrb[94].mxu1  ;;  %2577 = vmatprep.mubr.bf16.mxu0 %v2100_v44  ;;  %v10205_v46 = vld [vmem:[%s14561_s4 + $0x4] sm:$0x3] }
 0x2a3   : > { %v1843_v51 = vadd.f32 %v1842_v50, %v12165_v40  ;;  %v1844_v52 = vpop.f32.mrb[95].mxu1  ;;  %2578 = vmatmul.mubr.bf16.gmra.mrb[216].mxu0 %v2099_v41  ;;  %v2019_v53 = vmax.f32 %v1839_v45, 0.0  ;;  %v11445_v50 = vld [vmem:[#allocation2 + $0x394] ss:$8 sps:$4 sm:$0xff]  }
 0x2a4   : > { %v1845_v28 = vadd.f32 %v1844_v52, %v12169_v42  ;;  %v2020_v29 = vmax.f32 %v1841_v49, 0.0  ;;  %v11443_v49 = vld [vmem:[#allocation2 + $0x390] ss:$8 sps:$4 sm:$0xff]   ;;  %3845 = vmatprep.subr.bf16.mxu0 %v11445_v50 }
 0x2a5   : > { %v2021_v54 = vmax.f32 %v1843_v51, 0.0  ;;  %3846 = vmatpush1.bf16.msra.mxu0 %v11443_v49 }
 0x2a6   : > { %v2022_v55 = vmax.f32 %v1845_v28, 0.0 }
 0x2a7   : > { %v2101_v56 = vpack.c.bf16 %v2021_v54, %v2019_v53  ;;  %v12302_v54 = vrot.slane %v10205_v46, %v12021_v23 }
 0x2a8   : > { %v1848_v57 = vpop.f32.mrb[96].mxu1  ;;  %v2102_v58 = vpack.c.bf16 %v2022_v55, %v2020_v29  ;;  %v12306_v55 = vrot.slane %v10205_v46, %v12026_v25 }
 0x2a9   : > { %v1849_v59 = vadd.f32 %v1848_v57, %v12165_v40  ;;  %v1850_v60 = vpop.f32.mrb[97].mxu1 }
 0x2aa   : > { %v1851_v61 = vadd.f32 %v1850_v60, %v12169_v42  ;;  %v1852_v62 = vpop.f32.mrb[98].mxu1  ;;  %2587 = vmatprep.mubr.bf16.mxu0 %v2102_v58 }
 0x2ab   : > { %v1853_v63 = vadd.f32 %v1852_v62, %v12165_v40  ;;  %v1854_v1 = vpop.f32.mrb[99].mxu1  ;;  %2588 = vmatmul.mubr.bf16.gmra.mrb[220].mxu0 %v2101_v56  ;;  %v2023_v3 = vmax.f32 %v1849_v59, 0.0 }
 0x2ac   : > { %v1855_v2 = vadd.f32 %v1854_v1, %v12169_v42  ;;  %v2024_v5 = vmax.f32 %v1851_v61, 0.0 }
 0x2ad   : > { %v2025_v4 = vmax.f32 %v1853_v63, 0.0 }
 0x2ae   : > { %v2026_v6 = vmax.f32 %v1855_v2, 0.0 }
 0x2af   : > { %v2103_v7 = vpack.c.bf16 %v2025_v4, %v2023_v3 }
 0x2b0   : > { %v1858_v8 = vpop.f32.mrb[100].mxu1  ;;  %v2104_v9 = vpack.c.bf16 %v2026_v6, %v2024_v5 }
 0x2b1   : > { %v1859_v10 = vadd.f32 %v1858_v8, %v12165_v40  ;;  %v1860_v11 = vpop.f32.mrb[101].mxu1 }
 0x2b2   : > { %v1861_v14 = vadd.f32 %v1860_v11, %v12169_v42  ;;  %v1862_v15 = vpop.f32.mrb[102].mxu1  ;;  %2597 = vmatprep.mubr.bf16.mxu0 %v2104_v9 }
 0x2b3   : > { %v1863_v16 = vadd.f32 %v1862_v15, %v12165_v40  ;;  %v1864_v17 = vpop.f32.mrb[103].mxu1  ;;  %2598 = vmatmul.mubr.bf16.gmra.mrb[224].mxu0 %v2103_v7  ;;  %v2027_v19 = vmax.f32 %v1859_v10, 0.0 }
 0x2b4   : > { %v1865_v18 = vadd.f32 %v1864_v17, %v12169_v42  ;;  %v2028_v21 = vmax.f32 %v1861_v14, 0.0 }
 0x2b5   : > { %v2029_v20 = vmax.f32 %v1863_v16, 0.0 }
 0x2b6   : > { %v2030_v22 = vmax.f32 %v1865_v18, 0.0 }
 0x2b7   : > { %v2105_v24 = vpack.c.bf16 %v2029_v20, %v2027_v19 }
 0x2b8   : > { %v1868_v26 = vpop.f32.mrb[104].mxu1  ;;  %v2106_v27 = vpack.c.bf16 %v2030_v22, %v2028_v21 }
 0x2b9   : > { %v1869_v30 = vadd.f32 %v1868_v26, %v12165_v40  ;;  %v1870_v31 = vpop.f32.mrb[105].mxu1 }
 0x2ba   : > { %v1871_v32 = vadd.f32 %v1870_v31, %v12169_v42  ;;  %v1872_v33 = vpop.f32.mrb[106].mxu1  ;;  %2607 = vmatprep.mubr.bf16.mxu0 %v2106_v27 }
 0x2bb   : > { %v1873_v34 = vadd.f32 %v1872_v33, %v12165_v40  ;;  %v1874_v35 = vpop.f32.mrb[107].mxu1  ;;  %2608 = vmatmul.mubr.bf16.gmra.mrb[228].mxu0 %v2105_v24  ;;  %v2031_v37 = vmax.f32 %v1869_v30, 0.0 }
 0x2bc   : > { %v1875_v36 = vadd.f32 %v1874_v35, %v12169_v42  ;;  %v2032_v39 = vmax.f32 %v1871_v32, 0.0 }
 0x2bd   : > { %v2033_v38 = vmax.f32 %v1873_v34, 0.0 }
 0x2be   : > { %v2034_v41 = vmax.f32 %v1875_v36, 0.0 }
 0x2bf   : > { %v2107_v43 = vpack.c.bf16 %v2033_v38, %v2031_v37 }
 0x2c0   : > { %v1878_v44 = vpop.f32.mrb[108].mxu1  ;;  %v2108_v45 = vpack.c.bf16 %v2034_v41, %v2032_v39 }
 0x2c1   : > { %v1879_v47 = vadd.f32 %v1878_v44, %v12165_v40  ;;  %v1880_v48 = vpop.f32.mrb[109].mxu1 }
 0x2c2   : > { %v1881_v51 = vadd.f32 %v1880_v48, %v12169_v42  ;;  %v1882_v52 = vpop.f32.mrb[110].mxu1  ;;  %2617 = vmatprep.mubr.bf16.mxu0 %v2108_v45 }
 0x2c3   : > { %v1883_v28 = vadd.f32 %v1882_v52, %v12165_v40  ;;  %v1884_v53 = vpop.f32.mrb[111].mxu1  ;;  %2618 = vmatmul.mubr.bf16.gmra.mrb[232].mxu0 %v2107_v43  ;;  %v2035_v56 = vmax.f32 %v1879_v47, 0.0  ;;  %v11446_v43 = vld [vmem:[#allocation2 + $0x3a0] ss:$8 sps:$4 sm:$0xff]   ;;  %v11448_v47 = vld [vmem:[#allocation2 + $0x3a4] ss:$8 sps:$4 sm:$0xff]  }
 0x2c4   : > { %v1885_v29 = vadd.f32 %v1884_v53, %v12169_v42  ;;  %v2036_v59 = vmax.f32 %v1881_v51, 0.0  ;;  %3847 = vmatprep.subr.bf16.mxu0 %v11448_v47 }
 0x2c5   : > { %v2037_v57 = vmax.f32 %v1883_v28, 0.0  ;;  %3848 = vmatpush1.bf16.msra.mxu0 %v11446_v43 }
 0x2c6   : > { %v2359_v58 = vpop.f32.mrb[128].mxu0  ;;  %v2038_v60 = vmax.f32 %v1885_v29, 0.0 }
 0x2c7   : > { %v2360_v61 = vadd.f32 %v2359_v58, %v12302_v54  ;;  %v2361_v62 = vpop.f32.mrb[129].mxu0  ;;  %v2109_v63 = vpack.c.bf16 %v2037_v57, %v2035_v56 }
 0x2c8   : > { %v2362_v1 = vadd.f32 %v2361_v62, %v12306_v55  ;;  %v1888_v2 = vpop.f32.mrb[112].mxu1  ;;  %v2363_v3 = vpop.f32.mrb[130].mxu0  ;;  %v2110_v4 = vpack.c.bf16 %v2038_v60, %v2036_v59 }
 0x2c9   : > { %v1889_v5 = vadd.f32 %v1888_v2, %v12165_v40  ;;  %v2364_v6 = vadd.f32 %v2363_v3, %v12302_v54  ;;  %v1890_v7 = vpop.f32.mrb[113].mxu1  ;;  %v2365_v8 = vpop.f32.mrb[131].mxu0  ;;  %v2678_v12 = vmax.f32 %v2360_v61, 0.0 }
 0x2ca   : > { %v1891_v9 = vadd.f32 %v1890_v7, %v12169_v42  ;;  %v2366_v10 = vadd.f32 %v2365_v8, %v12306_v55  ;;  %v1892_v11 = vpop.f32.mrb[114].mxu1  ;;  %2627 = vmatprep.mubr.bf16.mxu0 %v2110_v4  ;;  %v2679_v16 = vmax.f32 %v2362_v1, 0.0 }
 0x2cb   : > { %v2680_v13 = vmax.f32 %v2364_v6, 0.0  ;;  %v1893_v14 = vadd.f32 %v1892_v11, %v12165_v40  ;;  %v1894_v15 = vpop.f32.mrb[115].mxu1  ;;  %2628 = vmatmul.mubr.bf16.gmra.mrb[236].mxu0 %v2109_v63  ;;  %v2039_v20 = vmax.f32 %v1889_v5, 0.0 }
 0x2cc   : > { %v2681_v17 = vmax.f32 %v2366_v10, 0.0  ;;  %v1895_v18 = vadd.f32 %v1894_v15, %v12169_v42  ;;  %v2040_v26 = vmax.f32 %v1891_v9, 0.0 }
 0x2cd   : > { %v2806_v19 = vpack.c.bf16 %v2680_v13, %v2678_v12  ;;  %v2041_v21 = vmax.f32 %v1893_v14, 0.0 }
 0x2ce   : > { %v2369_v22 = vpop.f32.mrb[132].mxu0  ;;  %v2807_v24 = vpack.c.bf16 %v2681_v17, %v2679_v16  ;;  %v2042_v27 = vmax.f32 %v1895_v18, 0.0 }
 0x2cf   : > { %v2370_v30 = vadd.f32 %v2369_v22, %v12302_v54  ;;  %v2371_v31 = vpop.f32.mrb[133].mxu0  ;;  %v2111_v32 = vpack.c.bf16 %v2041_v21, %v2039_v20 }
 0x2d0   : > { %v2372_v33 = vadd.f32 %v2371_v31, %v12306_v55  ;;  %v1898_v34 = vpop.f32.mrb[116].mxu1  ;;  %v2373_v35 = vpop.f32.mrb[134].mxu0  ;;  %3108 = vmatprep.mubr.bf16.mxu1 %v2807_v24  ;;  %v2112_v36 = vpack.c.bf16 %v2042_v27, %v2040_v26 }
 0x2d1   : > { %v1899_v37 = vadd.f32 %v1898_v34, %v12165_v40  ;;  %v2374_v38 = vadd.f32 %v2373_v35, %v12302_v54  ;;  %v1900_v39 = vpop.f32.mrb[117].mxu1  ;;  %v2375_v41 = vpop.f32.mrb[135].mxu0  ;;  %3109 = vmatmul.mubr.bf16.vlgmr.msra.gmra.mrb[128].mxu1 %v2806_v19  ;;  %v2682_v48 = vmax.f32 %v2370_v30, 0.0 }
 0x2d2   : > { %v1901_v44 = vadd.f32 %v1900_v39, %v12169_v42  ;;  %v2376_v45 = vadd.f32 %v2375_v41, %v12306_v55  ;;  %v1902_v46 = vpop.f32.mrb[118].mxu1  ;;  %2637 = vmatprep.mubr.bf16.mxu0 %v2112_v36  ;;  %v2683_v52 = vmax.f32 %v2372_v33, 0.0 }
 0x2d3   : > { %v2684_v49 = vmax.f32 %v2374_v38, 0.0  ;;  %v1903_v50 = vadd.f32 %v1902_v46, %v12165_v40  ;;  %v1904_v51 = vpop.f32.mrb[119].mxu1  ;;  %2638 = vmatmul.mubr.bf16.gmra.mrb[240].mxu0 %v2111_v32  ;;  %v2043_v56 = vmax.f32 %v1899_v37, 0.0 }
 0x2d4   : > { %v2685_v28 = vmax.f32 %v2376_v45, 0.0  ;;  %v1905_v53 = vadd.f32 %v1904_v51, %v12169_v42  ;;  %v2044_v60 = vmax.f32 %v1901_v44, 0.0  ;;  %v11449_v44 = vld [vmem:[#allocation2 + $0x3b0] ss:$8 sps:$4 sm:$0xff]  }
 0x2d5   : > { %v2808_v29 = vpack.c.bf16 %v2684_v49, %v2682_v48  ;;  %v2045_v57 = vmax.f32 %v1903_v50, 0.0  ;;  %v11451_v48 = vld [vmem:[#allocation2 + $0x3b4] ss:$8 sps:$4 sm:$0xff]  }
 0x2d6   : > { %v2379_v58 = vpop.f32.mrb[136].mxu0  ;;  %v2809_v59 = vpack.c.bf16 %v2685_v28, %v2683_v52  ;;  %v2046_v61 = vmax.f32 %v1905_v53, 0.0  ;;  %3849 = vmatprep.subr.bf16.mxu0 %v11451_v48 }
 0x2d7   : > { %v2380_v62 = vadd.f32 %v2379_v58, %v12302_v54  ;;  %v2381_v63 = vpop.f32.mrb[137].mxu0  ;;  %v2113_v1 = vpack.c.bf16 %v2045_v57, %v2043_v56  ;;  %3850 = vmatpush1.bf16.msra.mxu0 %v11449_v44 }
 0x2d8   : > { %v2382_v2 = vadd.f32 %v2381_v63, %v12306_v55  ;;  %v1908_v3 = vpop.f32.mrb[120].mxu1  ;;  %v2383_v4 = vpop.f32.mrb[138].mxu0  ;;  %3118 = vmatprep.mubr.bf16.mxu1 %v2809_v59  ;;  %v2114_v5 = vpack.c.bf16 %v2046_v61, %v2044_v60 }
 0x2d9   : > { %v1909_v6 = vadd.f32 %v1908_v3, %v12165_v40  ;;  %v2384_v7 = vadd.f32 %v2383_v4, %v12302_v54  ;;  %v1910_v8 = vpop.f32.mrb[121].mxu1  ;;  %v2385_v9 = vpop.f32.mrb[139].mxu0  ;;  %3119 = vmatmul.mubr.bf16.gmra.mrb[132].mxu1 %v2808_v29  ;;  %v2686_v13 = vmax.f32 %v2380_v62, 0.0 }
 0x2da   : > { %v1911_v10 = vadd.f32 %v1910_v8, %v12169_v42  ;;  %v2386_v11 = vadd.f32 %v2385_v9, %v12306_v55  ;;  %v1912_v12 = vpop.f32.mrb[122].mxu1  ;;  %2647 = vmatprep.mubr.bf16.mxu0 %v2114_v5  ;;  %v2687_v17 = vmax.f32 %v2382_v2, 0.0 }
 0x2db   : > { %v2688_v14 = vmax.f32 %v2384_v7, 0.0  ;;  %v1913_v15 = vadd.f32 %v1912_v12, %v12165_v40  ;;  %v1914_v16 = vpop.f32.mrb[123].mxu1  ;;  %2648 = vmatmul.mubr.bf16.gmra.mrb[244].mxu0 %v2113_v1  ;;  %v2047_v21 = vmax.f32 %v1909_v6, 0.0 }
 0x2dc   : > { %v2689_v18 = vmax.f32 %v2386_v11, 0.0  ;;  %v1915_v19 = vadd.f32 %v1914_v16, %v12169_v42  ;;  %v2048_v27 = vmax.f32 %v1911_v10, 0.0 }
 0x2dd   : > { %v2810_v20 = vpack.c.bf16 %v2688_v14, %v2686_v13  ;;  %v2049_v22 = vmax.f32 %v1913_v15, 0.0 }
 0x2de   : > { %v2389_v24 = vpop.f32.mrb[140].mxu0  ;;  %v2811_v26 = vpack.c.bf16 %v2689_v18, %v2687_v17  ;;  %v2050_v30 = vmax.f32 %v1915_v19, 0.0 }
 0x2df   : > { %v2390_v31 = vadd.f32 %v2389_v24, %v12302_v54  ;;  %v2391_v32 = vpop.f32.mrb[141].mxu0  ;;  %v2115_v33 = vpack.c.bf16 %v2049_v22, %v2047_v21  ;;  %v11454_v21 = vld [vmem:[#allocation2 + $0x3c4] ss:$8 sps:$4 sm:$0xff]  }
 0x2e0   : > { %v2392_v34 = vadd.f32 %v2391_v32, %v12306_v55  ;;  %v1918_v35 = vpop.f32.mrb[124].mxu1  ;;  %v2393_v36 = vpop.f32.mrb[142].mxu0  ;;  %3128 = vmatprep.mubr.bf16.mxu1 %v2811_v26  ;;  %v2116_v37 = vpack.c.bf16 %v2050_v30, %v2048_v27  ;;  %3851 = vmatprep.subr.bf16.mxu0 %v11454_v21 }
 0x2e1   : > { %v1919_v38 = vadd.f32 %v1918_v35, %v12165_v40  ;;  %v2394_v39 = vadd.f32 %v2393_v36, %v12302_v54  ;;  %v1920_v41 = vpop.f32.mrb[125].mxu1  ;;  %v2395_v43 = vpop.f32.mrb[143].mxu0  ;;  %3129 = vmatmul.mubr.bf16.gmra.mrb[136].mxu1 %v2810_v20  ;;  %v2690_v49 = vmax.f32 %v2390_v31, 0.0  ;;  %v11452_v20 = vld [vmem:[#allocation2 + $0x3c0] ss:$8 sps:$4 sm:$0xff]  }
 0x2e2   : > { %v1921_v45 = vadd.f32 %v1920_v41, %v12169_v42  ;;  %v2396_v46 = vadd.f32 %v2395_v43, %v12306_v55  ;;  %v1922_v47 = vpop.f32.mrb[126].mxu1  ;;  %2657 = vmatprep.mubr.bf16.mxu0 %v2116_v37  ;;  %v2691_v28 = vmax.f32 %v2392_v34, 0.0  ;;  %3852 = vmatpush1.bf16.msra.mxu0 %v11452_v20 }
 0x2e3   : > { %v2692_v50 = vmax.f32 %v2394_v39, 0.0  ;;  %v1923_v51 = vadd.f32 %v1922_v47, %v12165_v40  ;;  %v1924_v52 = vpop.f32.mrb[127].mxu1  ;;  %2658 = vmatmul.mubr.bf16.gmra.mrb[248].mxu0 %v2115_v33  ;;  %v2051_v57 = vmax.f32 %v1919_v38, 0.0 }
 0x2e4   : > { %v2693_v53 = vmax.f32 %v2396_v46, 0.0  ;;  %v1925_v29 = vadd.f32 %v1924_v52, %v12169_v42  ;;  %v2052_v61 = vmax.f32 %v1921_v45, 0.0 }
 0x2e5   : > { %v2812_v56 = vpack.c.bf16 %v2692_v50, %v2690_v49  ;;  %v2053_v58 = vmax.f32 %v1923_v51, 0.0 }
 0x2e6   : > { %v2399_v59 = vpop.f32.mrb[144].mxu0  ;;  %v2813_v60 = vpack.c.bf16 %v2693_v53, %v2691_v28  ;;  %v2054_v62 = vmax.f32 %v1925_v29, 0.0 }
 0x2e7   : > { %v2400_v63 = vadd.f32 %v2399_v59, %v12302_v54  ;;  %v2401_v1 = vpop.f32.mrb[145].mxu0  ;;  %v2117_v2 = vpack.c.bf16 %v2053_v58, %v2051_v57  ;;  %v11457_v57 = vld [vmem:[#allocation2 + $0x3d4] ss:$8 sps:$4 sm:$0xff]  }
 0x2e8   : > { %v2402_v40 = vadd.f32 %v2401_v1, %v12306_v55  ;;  %v2403_v3 = vpop.f32.mrb[146].mxu0  ;;  %3138 = vmatprep.mubr.bf16.mxu1 %v2813_v60  ;;  %v2118_v4 = vpack.c.bf16 %v2054_v62, %v2052_v61  ;;  %3853 = vmatprep.subr.bf16.mxu0 %v11457_v57 }
 0x2e9   : > { %v2404_v42 = vadd.f32 %v2403_v3, %v12302_v54  ;;  %v2405_v5 = vpop.f32.mrb[147].mxu0  ;;  %3139 = vmatmul.mubr.bf16.gmra.mrb[140].mxu1 %v2812_v56  ;;  %v2694_v7 = vmax.f32 %v2400_v63, 0.0  ;;  %v11455_v56 = vld [vmem:[#allocation2 + $0x3d0] ss:$8 sps:$4 sm:$0xff]  }
 0x2ea   : > { %v2406_v6 = vadd.f32 %v2405_v5, %v12306_v55  ;;  %2667 = vmatprep.mubr.bf16.mxu0 %v2118_v4  ;;  %v2695_v9 = vmax.f32 %v2402_v40, 0.0  ;;  %3854 = vmatpush1.bf16.msra.mxu0 %v11455_v56 }
 0x2eb   : > { %v2696_v8 = vmax.f32 %v2404_v42, 0.0  ;;  %2668 = vmatmul.mubr.bf16.gmra.mrb[252].mxu0 %v2117_v2 }
 0x2ec   : > { %v2697_v10 = vmax.f32 %v2406_v6, 0.0 }
 0x2ed   : > { %v2814_v11 = vpack.c.bf16 %v2696_v8, %v2694_v7 }
 0x2ee   : > { %v2409_v12 = vpop.f32.mrb[148].mxu0  ;;  %v2815_v13 = vpack.c.bf16 %v2697_v10, %v2695_v9 }
 0x2ef   : > { %v2410_v14 = vadd.f32 %v2409_v12, %v12302_v54  ;;  %v2411_v15 = vpop.f32.mrb[149].mxu0  ;;  %v11458_v12 = vld [vmem:[#allocation2 + $0x400] ss:$8 sps:$4 sm:$0xff]  }
 0x2f0   : > { %v2412_v16 = vadd.f32 %v2411_v15, %v12306_v55  ;;  %v2413_v17 = vpop.f32.mrb[150].mxu0  ;;  %3148 = vmatprep.mubr.bf16.mxu1 %v2815_v13  ;;  %v11460_v13 = vld [vmem:[#allocation2 + $0x404] ss:$8 sps:$4 sm:$0xff]  }
 0x2f1   : > { %v2414_v18 = vadd.f32 %v2413_v17, %v12302_v54  ;;  %v2415_v19 = vpop.f32.mrb[151].mxu0  ;;  %3149 = vmatmul.mubr.bf16.gmra.mrb[144].mxu1 %v2814_v11  ;;  %v2698_v24 = vmax.f32 %v2410_v14, 0.0  ;;  %4574 = vmatprep.subr.bf16.mxu1 %v11460_v13 }
 0x2f2   : > { %v2416_v22 = vadd.f32 %v2415_v19, %v12306_v55  ;;  %v2699_v27 = vmax.f32 %v2412_v16, 0.0  ;;  %4575 = vmatpush1.bf16.msra.mxu1 %v11458_v12 }
 0x2f3   : > { %v2700_v26 = vmax.f32 %v2414_v18, 0.0 }
 0x2f4   : > { %v2701_v30 = vmax.f32 %v2416_v22, 0.0 }
 0x2f5   : > { %v2816_v31 = vpack.c.bf16 %v2700_v26, %v2698_v24  ;;  %v11461_v24 = vld [vmem:[#allocation2 + $0x3e0] ss:$8 sps:$4 sm:$0xff]   ;;  %v11463_v26 = vld [vmem:[#allocation2 + $0x3e4] ss:$8 sps:$4 sm:$0xff]  }
 0x2f6   : > { %v2419_v32 = vpop.f32.mrb[152].mxu0  ;;  %v2817_v33 = vpack.c.bf16 %v2701_v30, %v2699_v27  ;;  %3855 = vmatprep.subr.bf16.mxu0 %v11463_v26 }
 0x2f7   : > { %v2420_v34 = vadd.f32 %v2419_v32, %v12302_v54  ;;  %v2421_v35 = vpop.f32.mrb[153].mxu0  ;;  %3856 = vmatpush1.bf16.msra.mxu0 %v11461_v24  ;;  %v11472_v24 = vld [vmem:[#allocation2 + $0x424] ss:$8 sps:$4 sm:$0xff]  }
 0x2f8   : > { %v2422_v36 = vadd.f32 %v2421_v35, %v12306_v55  ;;  %v2423_v37 = vpop.f32.mrb[154].mxu0  ;;  %3158 = vmatprep.mubr.bf16.mxu1 %v2817_v33 }
 0x2f9   : > { %v2424_v38 = vadd.f32 %v2423_v37, %v12302_v54  ;;  %v2425_v39 = vpop.f32.mrb[155].mxu0  ;;  %3159 = vmatmul.mubr.bf16.gmra.mrb[148].mxu1 %v2816_v31  ;;  %v2702_v43 = vmax.f32 %v2420_v34, 0.0 }
 0x2fa   : > { %v2426_v41 = vadd.f32 %v2425_v39, %v12306_v55  ;;  %v2703_v45 = vmax.f32 %v2422_v36, 0.0 }
 0x2fb   : > { %v2704_v44 = vmax.f32 %v2424_v38, 0.0 }
 0x2fc   : > { %v2705_v46 = vmax.f32 %v2426_v41, 0.0 }
 0x2fd   : > { %v2818_v47 = vpack.c.bf16 %v2704_v44, %v2702_v43 }
 0x2fe   : > { %v2429_v48 = vpop.f32.mrb[156].mxu0  ;;  %v2819_v49 = vpack.c.bf16 %v2705_v46, %v2703_v45 }
 0x2ff   : > { %v2430_v50 = vadd.f32 %v2429_v48, %v12302_v54  ;;  %v2431_v51 = vpop.f32.mrb[157].mxu0 }
 0x300   : > { %v2432_v52 = vadd.f32 %v2431_v51, %v12306_v55  ;;  %v2433_v28 = vpop.f32.mrb[158].mxu0  ;;  %3168 = vmatprep.mubr.bf16.mxu1 %v2819_v49  ;;  %v11466_v51 = vld [vmem:[#allocation2 + $0x414] ss:$8 sps:$4 sm:$0xff]  }
 0x301   : > { %v2434_v53 = vadd.f32 %v2433_v28, %v12302_v54  ;;  %v2435_v29 = vpop.f32.mrb[159].mxu0  ;;  %3169 = vmatmul.mubr.bf16.gmra.mrb[152].mxu1 %v2818_v47  ;;  %v2706_v59 = vmax.f32 %v2430_v50, 0.0  ;;  %v11464_v50 = vld [vmem:[#allocation2 + $0x410] ss:$8 sps:$4 sm:$0xff]   ;;  %4576 = vmatprep.subr.bf16.mxu1 %v11466_v51 }
 0x302   : > { %v2436_v58 = vadd.f32 %v2435_v29, %v12306_v55  ;;  %v2707_v61 = vmax.f32 %v2432_v52, 0.0  ;;  %4577 = vmatpush1.bf16.msra.mxu1 %v11464_v50 }
 0x303   : > { %v2708_v60 = vmax.f32 %v2434_v53, 0.0  ;;  %4578 = vmatprep.subr.bf16.mxu1 %v11472_v24  ;;  %v11476_v24 = vld [vmem:[#allocation2 + $0x440] ss:$8 sps:$4 sm:$0xff]  }
 0x304   : > { %v2709_v62 = vmax.f32 %v2436_v58, 0.0 }
 0x305   : > { %v2820_v63 = vpack.c.bf16 %v2708_v60, %v2706_v59 }
 0x306   : > { %v2439_v1 = vpop.f32.mrb[160].mxu0  ;;  %v2821_v2 = vpack.c.bf16 %v2709_v62, %v2707_v61  ;;  %v11467_v61 = vld [vmem:[#allocation2 + $0x3f0] ss:$8 sps:$4 sm:$0xff]   ;;  %v11469_v62 = vld [vmem:[#allocation2 + $0x3f4] ss:$8 sps:$4 sm:$0xff]  }
 0x307   : > { %v2440_v40 = vadd.f32 %v2439_v1, %v12302_v54  ;;  %v2441_v3 = vpop.f32.mrb[161].mxu0  ;;  %3857 = vmatprep.subr.bf16.mxu0 %v11469_v62 }
 0x308   : > { %v2442_v4 = vadd.f32 %v2441_v3, %v12306_v55  ;;  %v2443_v42 = vpop.f32.mrb[162].mxu0  ;;  %3178 = vmatprep.mubr.bf16.mxu1 %v2821_v2  ;;  %3858 = vmatpush1.bf16.msra.mxu0 %v11467_v61 }
 0x309   : > { %v2444_v5 = vadd.f32 %v2443_v42, %v12302_v54  ;;  %v2445_v6 = vpop.f32.mrb[163].mxu0  ;;  %3179 = vmatmul.mubr.bf16.gmra.mrb[156].mxu1 %v2820_v63  ;;  %v2710_v8 = vmax.f32 %v2440_v40, 0.0 }
 0x30a   : > { %v2446_v7 = vadd.f32 %v2445_v6, %v12306_v55  ;;  %v2711_v10 = vmax.f32 %v2442_v4, 0.0 }
 0x30b   : > { %v2712_v9 = vmax.f32 %v2444_v5, 0.0 }
 0x30c   : > { %v2713_v11 = vmax.f32 %v2446_v7, 0.0 }
 0x30d   : > { %v2822_v14 = vpack.c.bf16 %v2712_v9, %v2710_v8 }
 0x30e   : > { %v2449_v15 = vpop.f32.mrb[164].mxu0  ;;  %v2823_v16 = vpack.c.bf16 %v2713_v11, %v2711_v10 }
 0x30f   : > { %v2450_v17 = vadd.f32 %v2449_v15, %v12302_v54  ;;  %v2451_v18 = vpop.f32.mrb[165].mxu0 }
 0x310   : > { %v2452_v19 = vadd.f32 %v2451_v18, %v12306_v55  ;;  %v2453_v20 = vpop.f32.mrb[166].mxu0  ;;  %3188 = vmatprep.mubr.bf16.mxu1 %v2823_v16 }
 0x311   : > { %v2454_v21 = vadd.f32 %v2453_v20, %v12302_v54  ;;  %v2455_v22 = vpop.f32.mrb[167].mxu0  ;;  %3189 = vmatmul.mubr.bf16.gmra.mrb[160].mxu1 %v2822_v14  ;;  %v2714_v30 = vmax.f32 %v2450_v17, 0.0 }
 0x312   : > { %v2456_v27 = vadd.f32 %v2455_v22, %v12306_v55  ;;  %v2715_v32 = vmax.f32 %v2452_v19, 0.0  ;;  %v11470_v22 = vld [vmem:[#allocation2 + $0x420] ss:$8 sps:$4 sm:$0xff]  }
 0x313   : > { %v2716_v31 = vmax.f32 %v2454_v21, 0.0  ;;  %4579 = vmatpush1.bf16.msra.mxu1 %v11470_v22 }
 0x314   : > { %v2717_v33 = vmax.f32 %v2456_v27, 0.0 }
 0x315   : > { %v2824_v34 = vpack.c.bf16 %v2716_v31, %v2714_v30 }
 0x316   : > { %v2459_v35 = vpop.f32.mrb[168].mxu0  ;;  %v2825_v36 = vpack.c.bf16 %v2717_v33, %v2715_v32 }
 0x317   : > { %v2460_v37 = vadd.f32 %v2459_v35, %v12302_v54  ;;  %v2461_v38 = vpop.f32.mrb[169].mxu0 }
 0x318   : > { %v2462_v39 = vadd.f32 %v2461_v38, %v12306_v55  ;;  %v2463_v41 = vpop.f32.mrb[170].mxu0  ;;  %3198 = vmatprep.mubr.bf16.mxu1 %v2825_v36 }
 0x319   : > { %v2464_v43 = vadd.f32 %v2463_v41, %v12302_v54  ;;  %v2465_v44 = vpop.f32.mrb[171].mxu0  ;;  %3199 = vmatmul.mubr.bf16.gmra.mrb[164].mxu1 %v2824_v34  ;;  %v2718_v46 = vmax.f32 %v2460_v37, 0.0 }
 0x31a   : > { %v2466_v45 = vadd.f32 %v2465_v44, %v12306_v55  ;;  %v2719_v48 = vmax.f32 %v2462_v39, 0.0 }
 0x31b   : > { %v2720_v47 = vmax.f32 %v2464_v43, 0.0 }
 0x31c   : > { %v2721_v49 = vmax.f32 %v2466_v45, 0.0 }
 0x31d   : > { %v2826_v52 = vpack.c.bf16 %v2720_v47, %v2718_v46 }
 0x31e   : > { %v2469_v28 = vpop.f32.mrb[172].mxu0  ;;  %v2827_v53 = vpack.c.bf16 %v2721_v49, %v2719_v48 }
 0x31f   : > { %v2470_v29 = vadd.f32 %v2469_v28, %v12302_v54  ;;  %v2471_v56 = vpop.f32.mrb[173].mxu0 }
 0x320   : > { %v2472_v57 = vadd.f32 %v2471_v56, %v12306_v55  ;;  %v2473_v58 = vpop.f32.mrb[174].mxu0  ;;  %3208 = vmatprep.mubr.bf16.mxu1 %v2827_v53 }
 0x321   : > { %v2474_v59 = vadd.f32 %v2473_v58, %v12302_v54  ;;  %v2475_v60 = vpop.f32.mrb[175].mxu0  ;;  %3209 = vmatmul.mubr.bf16.gmra.mrb[168].mxu1 %v2826_v52  ;;  %v2722_v1 = vmax.f32 %v2470_v29, 0.0  ;;  %v11473_v58 = vld [vmem:[#allocation2 + $0x430] ss:$8 sps:$4 sm:$0xff]  }
 0x322   : > { %v2476_v63 = vadd.f32 %v2475_v60, %v12306_v55  ;;  %v2723_v40 = vmax.f32 %v2472_v57, 0.0 }
 0x323   : > { %v2724_v2 = vmax.f32 %v2474_v59, 0.0  ;;  %v11475_v59 = vld [vmem:[#allocation2 + $0x434] ss:$8 sps:$4 sm:$0xff]  }
 0x324   : > { %v2725_v3 = vmax.f32 %v2476_v63, 0.0  ;;  %4580 = vmatprep.subr.bf16.mxu1 %v11475_v59  ;;  %v11479_v59 = vld [vmem:[#allocation2 + $0x450] ss:$8 sps:$4 sm:$0xff]  }
 0x325   : > { %v2828_v4 = vpack.c.bf16 %v2724_v2, %v2722_v1  ;;  %4581 = vmatpush1.bf16.msra.mxu1 %v11473_v58 }
 0x326   : > { %v2479_v42 = vpop.f32.mrb[176].mxu0  ;;  %v2829_v5 = vpack.c.bf16 %v2725_v3, %v2723_v40 }
 0x327   : > { %v2480_v6 = vadd.f32 %v2479_v42, %v12302_v54  ;;  %v2481_v7 = vpop.f32.mrb[177].mxu0 }
 0x328   : > { %v2482_v8 = vadd.f32 %v2481_v7, %v12306_v55  ;;  %v2483_v9 = vpop.f32.mrb[178].mxu0  ;;  %3218 = vmatprep.mubr.bf16.mxu1 %v2829_v5 }
 0x329   : > { %v2484_v10 = vadd.f32 %v2483_v9, %v12302_v54  ;;  %v2485_v11 = vpop.f32.mrb[179].mxu0  ;;  %3219 = vmatmul.mubr.bf16.gmra.mrb[172].mxu1 %v2828_v4  ;;  %v2726_v13 = vmax.f32 %v2480_v6, 0.0 }
 0x32a   : > { %v2486_v12 = vadd.f32 %v2485_v11, %v12306_v55  ;;  %v2727_v15 = vmax.f32 %v2482_v8, 0.0 }
 0x32b   : > { %v2728_v14 = vmax.f32 %v2484_v10, 0.0 }
 0x32c   : > { %v2729_v16 = vmax.f32 %v2486_v12, 0.0 }
 0x32d   : > { %v2830_v17 = vpack.c.bf16 %v2728_v14, %v2726_v13 }
 0x32e   : > { %v2489_v18 = vpop.f32.mrb[180].mxu0  ;;  %v2831_v19 = vpack.c.bf16 %v2729_v16, %v2727_v15 }
 0x32f   : > { %v2490_v20 = vadd.f32 %v2489_v18, %v12302_v54  ;;  %v2491_v21 = vpop.f32.mrb[181].mxu0 }
 0x330   : > { %v2492_v26 = vadd.f32 %v2491_v21, %v12306_v55  ;;  %v2493_v27 = vpop.f32.mrb[182].mxu0  ;;  %3228 = vmatprep.mubr.bf16.mxu1 %v2831_v19 }
 0x331   : > { %v2494_v30 = vadd.f32 %v2493_v27, %v12302_v54  ;;  %v2495_v31 = vpop.f32.mrb[183].mxu0  ;;  %3229 = vmatmul.mubr.bf16.gmra.mrb[176].mxu1 %v2830_v17  ;;  %v2730_v33 = vmax.f32 %v2490_v20, 0.0 }
 0x332   : > { %v2496_v32 = vadd.f32 %v2495_v31, %v12306_v55  ;;  %v2731_v35 = vmax.f32 %v2492_v26, 0.0  ;;  %v11478_v26 = vld [vmem:[#allocation2 + $0x444] ss:$8 sps:$4 sm:$0xff]  }
 0x333   : > { %v2732_v34 = vmax.f32 %v2494_v30, 0.0  ;;  %4582 = vmatprep.subr.bf16.mxu1 %v11478_v26  ;;  %v11482_v26 = vld [vmem:[#allocation2 + $0x460] ss:$8 sps:$4 sm:$0xff]  }
 0x334   : > { %v2733_v36 = vmax.f32 %v2496_v32, 0.0  ;;  %4583 = vmatpush1.bf16.msra.mxu1 %v11476_v24 }
 0x335   : > { %v2832_v37 = vpack.c.bf16 %v2732_v34, %v2730_v33 }
 0x336   : > { %v2499_v38 = vpop.f32.mrb[184].mxu0  ;;  %v2833_v39 = vpack.c.bf16 %v2733_v36, %v2731_v35 }
 0x337   : > { %v2500_v41 = vadd.f32 %v2499_v38, %v12302_v54  ;;  %v2501_v43 = vpop.f32.mrb[185].mxu0 }
 0x338   : > { %v2502_v44 = vadd.f32 %v2501_v43, %v12306_v55  ;;  %v2503_v45 = vpop.f32.mrb[186].mxu0  ;;  %3238 = vmatprep.mubr.bf16.mxu1 %v2833_v39 }
 0x339   : > { %v2504_v46 = vadd.f32 %v2503_v45, %v12302_v54  ;;  %v2505_v47 = vpop.f32.mrb[187].mxu0  ;;  %3239 = vmatmul.mubr.bf16.gmra.mrb[180].mxu1 %v2832_v37  ;;  %v2734_v49 = vmax.f32 %v2500_v41, 0.0 }
 0x33a   : > { %v2506_v48 = vadd.f32 %v2505_v47, %v12306_v55  ;;  %v2735_v51 = vmax.f32 %v2502_v44, 0.0 }
 0x33b   : > { %v2736_v50 = vmax.f32 %v2504_v46, 0.0 }
 0x33c   : > { %v2737_v52 = vmax.f32 %v2506_v48, 0.0 }
 0x33d   : > { %v2834_v28 = vpack.c.bf16 %v2736_v50, %v2734_v49 }
 0x33e   : > { %v2509_v53 = vpop.f32.mrb[188].mxu0  ;;  %v2835_v29 = vpack.c.bf16 %v2737_v52, %v2735_v51 }
 0x33f   : > { %v2510_v56 = vadd.f32 %v2509_v53, %v12302_v54  ;;  %v2511_v57 = vpop.f32.mrb[189].mxu0 }
 0x340   : > { %v2512_v60 = vadd.f32 %v2511_v57, %v12306_v55  ;;  %v2513_v61 = vpop.f32.mrb[190].mxu0  ;;  %3248 = vmatprep.mubr.bf16.mxu1 %v2835_v29 }
 0x341   : > { %v2514_v62 = vadd.f32 %v2513_v61, %v12302_v54  ;;  %v2515_v63 = vpop.f32.mrb[191].mxu0  ;;  %3249 = vmatmul.mubr.bf16.gmra.mrb[184].mxu1 %v2834_v28  ;;  %v2738_v2 = vmax.f32 %v2510_v56, 0.0 }
 0x342   : > { %v2516_v1 = vadd.f32 %v2515_v63, %v12306_v55  ;;  %v2739_v3 = vmax.f32 %v2512_v60, 0.0  ;;  %v11481_v60 = vld [vmem:[#allocation2 + $0x454] ss:$8 sps:$4 sm:$0xff]  }
 0x343   : > { %v2740_v40 = vmax.f32 %v2514_v62, 0.0  ;;  %4584 = vmatprep.subr.bf16.mxu1 %v11481_v60  ;;  %v11485_v60 = vld [vmem:[#allocation2 + $0x470] ss:$8 sps:$4 sm:$0xff]  }
 0x344   : > { %v2741_v4 = vmax.f32 %v2516_v1, 0.0  ;;  %4585 = vmatpush1.bf16.msra.mxu1 %v11479_v59 }
 0x345   : > { %v2836_v42 = vpack.c.bf16 %v2740_v40, %v2738_v2 }
 0x346   : > { %v2519_v5 = vpop.f32.mrb[192].mxu0  ;;  %v2837_v6 = vpack.c.bf16 %v2741_v4, %v2739_v3 }
 0x347   : > { %v2520_v7 = vadd.f32 %v2519_v5, %v12302_v54  ;;  %v2521_v8 = vpop.f32.mrb[193].mxu0 }
 0x348   : > { %v2522_v9 = vadd.f32 %v2521_v8, %v12306_v55  ;;  %v2523_v10 = vpop.f32.mrb[194].mxu0  ;;  %3258 = vmatprep.mubr.bf16.mxu1 %v2837_v6 }
 0x349   : > { %v2524_v11 = vadd.f32 %v2523_v10, %v12302_v54  ;;  %v2525_v12 = vpop.f32.mrb[195].mxu0  ;;  %3259 = vmatmul.mubr.bf16.gmra.mrb[188].mxu1 %v2836_v42  ;;  %v2742_v14 = vmax.f32 %v2520_v7, 0.0 }
 0x34a   : > { %v2526_v13 = vadd.f32 %v2525_v12, %v12306_v55  ;;  %v2743_v16 = vmax.f32 %v2522_v9, 0.0 }
 0x34b   : > { %v2744_v15 = vmax.f32 %v2524_v11, 0.0 }
 0x34c   : > { %v2745_v17 = vmax.f32 %v2526_v13, 0.0 }
 0x34d   : > { %v2838_v18 = vpack.c.bf16 %v2744_v15, %v2742_v14 }
 0x34e   : > { %v2529_v19 = vpop.f32.mrb[196].mxu0  ;;  %v2839_v20 = vpack.c.bf16 %v2745_v17, %v2743_v16 }
 0x34f   : > { %v2530_v21 = vadd.f32 %v2529_v19, %v12302_v54  ;;  %v2531_v22 = vpop.f32.mrb[197].mxu0 }
 0x350   : > { %v2532_v27 = vadd.f32 %v2531_v22, %v12306_v55  ;;  %v2533_v30 = vpop.f32.mrb[198].mxu0  ;;  %3268 = vmatprep.mubr.bf16.mxu1 %v2839_v20 }
 0x351   : > { %v2534_v31 = vadd.f32 %v2533_v30, %v12302_v54  ;;  %v2535_v32 = vpop.f32.mrb[199].mxu0  ;;  %3269 = vmatmul.mubr.bf16.gmra.mrb[192].mxu1 %v2838_v18  ;;  %v2746_v34 = vmax.f32 %v2530_v21, 0.0 }
 0x352   : > { %v2536_v33 = vadd.f32 %v2535_v32, %v12306_v55  ;;  %v2747_v36 = vmax.f32 %v2532_v27, 0.0  ;;  %v11484_v27 = vld [vmem:[#allocation2 + $0x464] ss:$8 sps:$4 sm:$0xff]  }
 0x353   : > { %v2748_v35 = vmax.f32 %v2534_v31, 0.0  ;;  %4586 = vmatprep.subr.bf16.mxu1 %v11484_v27  ;;  %v11488_v27 = vld [vmem:[#allocation2 + $0x480] ss:$8 sps:$4 sm:$0xff]  }
 0x354   : > { %v2749_v37 = vmax.f32 %v2536_v33, 0.0  ;;  %4587 = vmatpush1.bf16.msra.mxu1 %v11482_v26 }
 0x355   : > { %v2840_v38 = vpack.c.bf16 %v2748_v35, %v2746_v34 }
 0x356   : > { %v2539_v39 = vpop.f32.mrb[200].mxu0  ;;  %v2841_v41 = vpack.c.bf16 %v2749_v37, %v2747_v36 }
 0x357   : > { %v2540_v43 = vadd.f32 %v2539_v39, %v12302_v54  ;;  %v2541_v44 = vpop.f32.mrb[201].mxu0 }
 0x358   : > { %v2542_v45 = vadd.f32 %v2541_v44, %v12306_v55  ;;  %v2543_v46 = vpop.f32.mrb[202].mxu0  ;;  %3278 = vmatprep.mubr.bf16.mxu1 %v2841_v41 }
 0x359   : > { %v2544_v47 = vadd.f32 %v2543_v46, %v12302_v54  ;;  %v2545_v48 = vpop.f32.mrb[203].mxu0  ;;  %3279 = vmatmul.mubr.bf16.gmra.mrb[196].mxu1 %v2840_v38  ;;  %v2750_v50 = vmax.f32 %v2540_v43, 0.0 }
 0x35a   : > { %v2546_v49 = vadd.f32 %v2545_v48, %v12306_v55  ;;  %v2751_v52 = vmax.f32 %v2542_v45, 0.0 }
 0x35b   : > { %v2752_v51 = vmax.f32 %v2544_v47, 0.0 }
 0x35c   : > { %v2753_v28 = vmax.f32 %v2546_v49, 0.0 }
 0x35d   : > { %v2842_v53 = vpack.c.bf16 %v2752_v51, %v2750_v50 }
 0x35e   : > { %v2549_v29 = vpop.f32.mrb[204].mxu0  ;;  %v2843_v56 = vpack.c.bf16 %v2753_v28, %v2751_v52 }
 0x35f   : > { %v2550_v57 = vadd.f32 %v2549_v29, %v12302_v54  ;;  %v2551_v58 = vpop.f32.mrb[205].mxu0 }
 0x360   : > { %v2552_v61 = vadd.f32 %v2551_v58, %v12306_v55  ;;  %v2553_v62 = vpop.f32.mrb[206].mxu0  ;;  %3288 = vmatprep.mubr.bf16.mxu1 %v2843_v56 }
 0x361   : > { %v2554_v63 = vadd.f32 %v2553_v62, %v12302_v54  ;;  %v2555_v1 = vpop.f32.mrb[207].mxu0  ;;  %3289 = vmatmul.mubr.bf16.gmra.mrb[200].mxu1 %v2842_v53  ;;  %v2754_v40 = vmax.f32 %v2550_v57, 0.0 }
 0x362   : > { %v2556_v2 = vadd.f32 %v2555_v1, %v12306_v55  ;;  %v2755_v4 = vmax.f32 %v2552_v61, 0.0  ;;  %v11487_v61 = vld [vmem:[#allocation2 + $0x474] ss:$8 sps:$4 sm:$0xff]  }
 0x363   : > { %v2756_v3 = vmax.f32 %v2554_v63, 0.0  ;;  %4588 = vmatprep.subr.bf16.mxu1 %v11487_v61 }
 0x364   : > { %v2757_v42 = vmax.f32 %v2556_v2, 0.0  ;;  %4589 = vmatpush1.bf16.msra.mxu1 %v11485_v60 }
 0x365   : > { %v2844_v5 = vpack.c.bf16 %v2756_v3, %v2754_v40 }
 0x366   : > { %v2559_v6 = vpop.f32.mrb[208].mxu0  ;;  %v2845_v7 = vpack.c.bf16 %v2757_v42, %v2755_v4 }
 0x367   : > { %v2560_v8 = vadd.f32 %v2559_v6, %v12302_v54  ;;  %v2561_v9 = vpop.f32.mrb[209].mxu0 }
 0x368   : > { %v2562_v10 = vadd.f32 %v2561_v9, %v12306_v55  ;;  %v2563_v11 = vpop.f32.mrb[210].mxu0  ;;  %3298 = vmatprep.mubr.bf16.mxu1 %v2845_v7 }
 0x369   : > { %v2564_v12 = vadd.f32 %v2563_v11, %v12302_v54  ;;  %v2565_v13 = vpop.f32.mrb[211].mxu0  ;;  %3299 = vmatmul.mubr.bf16.gmra.mrb[204].mxu1 %v2844_v5  ;;  %v2758_v15 = vmax.f32 %v2560_v8, 0.0 }
 0x36a   : > { %v2566_v14 = vadd.f32 %v2565_v13, %v12306_v55  ;;  %v2759_v17 = vmax.f32 %v2562_v10, 0.0 }
 0x36b   : > { %v2760_v16 = vmax.f32 %v2564_v12, 0.0 }
 0x36c   : > { %v2761_v18 = vmax.f32 %v2566_v14, 0.0 }
 0x36d   : > { %v2846_v19 = vpack.c.bf16 %v2760_v16, %v2758_v15 }
 0x36e   : > { %v2569_v20 = vpop.f32.mrb[212].mxu0  ;;  %v2847_v21 = vpack.c.bf16 %v2761_v18, %v2759_v17 }
 0x36f   : > { %v2570_v22 = vadd.f32 %v2569_v20, %v12302_v54  ;;  %v2571_v24 = vpop.f32.mrb[213].mxu0 }
 0x370   : > { %v2572_v30 = vadd.f32 %v2571_v24, %v12306_v55  ;;  %v2573_v31 = vpop.f32.mrb[214].mxu0  ;;  %3308 = vmatprep.mubr.bf16.mxu1 %v2847_v21 }
 0x371   : > { %v2574_v32 = vadd.f32 %v2573_v31, %v12302_v54  ;;  %v2575_v33 = vpop.f32.mrb[215].mxu0  ;;  %3309 = vmatmul.mubr.bf16.gmra.mrb[208].mxu1 %v2846_v19  ;;  %v2762_v35 = vmax.f32 %v2570_v22, 0.0 }
 0x372   : > { %v2576_v34 = vadd.f32 %v2575_v33, %v12306_v55  ;;  %v2763_v37 = vmax.f32 %v2572_v30, 0.0  ;;  %v11490_v30 = vld [vmem:[#allocation2 + $0x484] ss:$8 sps:$4 sm:$0xff]  }
 0x373   : > { %v2764_v36 = vmax.f32 %v2574_v32, 0.0  ;;  %4590 = vmatprep.subr.bf16.mxu1 %v11490_v30 }
 0x374   : > { %v2765_v38 = vmax.f32 %v2576_v34, 0.0  ;;  %4591 = vmatpush1.bf16.msra.mxu1 %v11488_v27 }
 0x375   : > { %v2848_v39 = vpack.c.bf16 %v2764_v36, %v2762_v35 }
 0x376   : > { %v2579_v41 = vpop.f32.mrb[216].mxu0  ;;  %v2849_v43 = vpack.c.bf16 %v2765_v38, %v2763_v37 }
 0x377   : > { %v2580_v44 = vadd.f32 %v2579_v41, %v12302_v54  ;;  %v2581_v45 = vpop.f32.mrb[217].mxu0 }
 0x378   : > { %v2582_v46 = vadd.f32 %v2581_v45, %v12306_v55  ;;  %v2583_v47 = vpop.f32.mrb[218].mxu0  ;;  %3318 = vmatprep.mubr.bf16.mxu1 %v2849_v43 }
 0x379   : > { %v2584_v48 = vadd.f32 %v2583_v47, %v12302_v54  ;;  %v2585_v49 = vpop.f32.mrb[219].mxu0  ;;  %3319 = vmatmul.mubr.bf16.gmra.mrb[212].mxu1 %v2848_v39  ;;  %v2766_v51 = vmax.f32 %v2580_v44, 0.0 }
 0x37a   : > { %v2586_v50 = vadd.f32 %v2585_v49, %v12306_v55  ;;  %v2767_v28 = vmax.f32 %v2582_v46, 0.0 }
 0x37b   : > { %v2768_v52 = vmax.f32 %v2584_v48, 0.0 }
 0x37c   : > { %v2769_v53 = vmax.f32 %v2586_v50, 0.0 }
 0x37d   : > { %v2850_v29 = vpack.c.bf16 %v2768_v52, %v2766_v51 }
 0x37e   : > { %v2589_v56 = vpop.f32.mrb[220].mxu0  ;;  %v2851_v57 = vpack.c.bf16 %v2769_v53, %v2767_v28 }
 0x37f   : > { %v2590_v58 = vadd.f32 %v2589_v56, %v12302_v54  ;;  %v2591_v59 = vpop.f32.mrb[221].mxu0 }
 0x380   : > { %v2592_v62 = vadd.f32 %v2591_v59, %v12306_v55  ;;  %v2593_v63 = vpop.f32.mrb[222].mxu0  ;;  %3328 = vmatprep.mubr.bf16.mxu1 %v2851_v57  ;;  %v10238_v59 = vld [vmem:[%s14561_s4 + $0x6] sm:$0x3] }
 0x381   : > { %v2594_v1 = vadd.f32 %v2593_v63, %v12302_v54  ;;  %v2595_v2 = vpop.f32.mrb[223].mxu0  ;;  %3329 = vmatmul.mubr.bf16.gmra.mrb[216].mxu1 %v2850_v29  ;;  %v2770_v3 = vmax.f32 %v2590_v58, 0.0  ;;  %v11493_v63 = vld [vmem:[#allocation2 + $0x494] ss:$8 sps:$4 sm:$0xff]  }
 0x382   : > { %v2596_v40 = vadd.f32 %v2595_v2, %v12306_v55  ;;  %v2771_v42 = vmax.f32 %v2592_v62, 0.0  ;;  %v11491_v62 = vld [vmem:[#allocation2 + $0x490] ss:$8 sps:$4 sm:$0xff]   ;;  %4592 = vmatprep.subr.bf16.mxu1 %v11493_v63 }
 0x383   : > { %v2772_v4 = vmax.f32 %v2594_v1, 0.0  ;;  %4593 = vmatpush1.bf16.msra.mxu1 %v11491_v62 }
 0x384   : > { %v2773_v5 = vmax.f32 %v2596_v40, 0.0 }
 0x385   : > { %v2852_v6 = vpack.c.bf16 %v2772_v4, %v2770_v3  ;;  %v12439_v4 = vrot.slane %v10238_v59, %v12021_v23 }
 0x386   : > { %v2599_v7 = vpop.f32.mrb[224].mxu0  ;;  %v2853_v8 = vpack.c.bf16 %v2773_v5, %v2771_v42  ;;  %v12443_v5 = vrot.slane %v10238_v59, %v12026_v25 }
 0x387   : > { %v2600_v9 = vadd.f32 %v2599_v7, %v12302_v54  ;;  %v2601_v10 = vpop.f32.mrb[225].mxu0 }
 0x388   : > { %v2602_v11 = vadd.f32 %v2601_v10, %v12306_v55  ;;  %v2603_v12 = vpop.f32.mrb[226].mxu0  ;;  %3338 = vmatprep.mubr.bf16.mxu1 %v2853_v8 }
 0x389   : > { %v2604_v13 = vadd.f32 %v2603_v12, %v12302_v54  ;;  %v2605_v14 = vpop.f32.mrb[227].mxu0  ;;  %3339 = vmatmul.mubr.bf16.gmra.mrb[220].mxu1 %v2852_v6  ;;  %v2774_v16 = vmax.f32 %v2600_v9, 0.0 }
 0x38a   : > { %v2606_v15 = vadd.f32 %v2605_v14, %v12306_v55  ;;  %v2775_v18 = vmax.f32 %v2602_v11, 0.0 }
 0x38b   : > { %v2776_v17 = vmax.f32 %v2604_v13, 0.0 }
 0x38c   : > { %v2777_v19 = vmax.f32 %v2606_v15, 0.0 }
 0x38d   : > { %v2854_v20 = vpack.c.bf16 %v2776_v17, %v2774_v16 }
 0x38e   : > { %v2609_v21 = vpop.f32.mrb[228].mxu0  ;;  %v2855_v22 = vpack.c.bf16 %v2777_v19, %v2775_v18 }
 0x38f   : > { %v2610_v24 = vadd.f32 %v2609_v21, %v12302_v54  ;;  %v2611_v26 = vpop.f32.mrb[229].mxu0 }
 0x390   : > { %v2612_v31 = vadd.f32 %v2611_v26, %v12306_v55  ;;  %v2613_v32 = vpop.f32.mrb[230].mxu0  ;;  %3348 = vmatprep.mubr.bf16.mxu1 %v2855_v22 }
 0x391   : > { %v2614_v33 = vadd.f32 %v2613_v32, %v12302_v54  ;;  %v2615_v34 = vpop.f32.mrb[231].mxu0  ;;  %3349 = vmatmul.mubr.bf16.gmra.mrb[224].mxu1 %v2854_v20  ;;  %v2778_v36 = vmax.f32 %v2610_v24, 0.0 }
 0x392   : > { %v2616_v35 = vadd.f32 %v2615_v34, %v12306_v55  ;;  %v2779_v38 = vmax.f32 %v2612_v31, 0.0 }
 0x393   : > { %v2780_v37 = vmax.f32 %v2614_v33, 0.0 }
 0x394   : > { %v2781_v39 = vmax.f32 %v2616_v35, 0.0 }
 0x395   : > { %v2856_v41 = vpack.c.bf16 %v2780_v37, %v2778_v36 }
 0x396   : > { %v2619_v43 = vpop.f32.mrb[232].mxu0  ;;  %v2857_v44 = vpack.c.bf16 %v2781_v39, %v2779_v38 }
 0x397   : > { %v2620_v45 = vadd.f32 %v2619_v43, %v12302_v54  ;;  %v2621_v46 = vpop.f32.mrb[233].mxu0 }
 0x398   : > { %v2622_v47 = vadd.f32 %v2621_v46, %v12306_v55  ;;  %v2623_v48 = vpop.f32.mrb[234].mxu0  ;;  %3358 = vmatprep.mubr.bf16.mxu1 %v2857_v44 }
 0x399   : > { %v2624_v49 = vadd.f32 %v2623_v48, %v12302_v54  ;;  %v2625_v50 = vpop.f32.mrb[235].mxu0  ;;  %3359 = vmatmul.mubr.bf16.gmra.mrb[228].mxu1 %v2856_v41  ;;  %v2782_v52 = vmax.f32 %v2620_v45, 0.0 }
 0x39a   : > { %v2626_v51 = vadd.f32 %v2625_v50, %v12306_v55  ;;  %v2783_v53 = vmax.f32 %v2622_v47, 0.0 }
 0x39b   : > { %v2784_v28 = vmax.f32 %v2624_v49, 0.0 }
 0x39c   : > { %v2785_v29 = vmax.f32 %v2626_v51, 0.0 }
 0x39d   : > { %v2858_v56 = vpack.c.bf16 %v2784_v28, %v2782_v52 }
 0x39e   : > { %v2629_v57 = vpop.f32.mrb[236].mxu0  ;;  %v2859_v58 = vpack.c.bf16 %v2785_v29, %v2783_v53 }
 0x39f   : > { %v2630_v60 = vadd.f32 %v2629_v57, %v12302_v54  ;;  %v2631_v61 = vpop.f32.mrb[237].mxu0 }
 0x3a0   : > { %v2632_v1 = vadd.f32 %v2631_v61, %v12306_v55  ;;  %v2633_v2 = vpop.f32.mrb[238].mxu0  ;;  %3368 = vmatprep.mubr.bf16.mxu1 %v2859_v58 }
 0x3a1   : > { %v2634_v40 = vadd.f32 %v2633_v2, %v12302_v54  ;;  %v2635_v3 = vpop.f32.mrb[239].mxu0  ;;  %3369 = vmatmul.mubr.bf16.gmra.mrb[232].mxu1 %v2858_v56  ;;  %v2786_v6 = vmax.f32 %v2630_v60, 0.0  ;;  %v11494_v56 = vld [vmem:[#allocation2 + $0x4a0] ss:$8 sps:$4 sm:$0xff]   ;;  %v11496_v60 = vld [vmem:[#allocation2 + $0x4a4] ss:$8 sps:$4 sm:$0xff]  }
 0x3a2   : > { %v2636_v42 = vadd.f32 %v2635_v3, %v12306_v55  ;;  %v2787_v8 = vmax.f32 %v2632_v1, 0.0  ;;  %4594 = vmatprep.subr.bf16.mxu1 %v11496_v60 }
 0x3a3   : > { %v2788_v7 = vmax.f32 %v2634_v40, 0.0  ;;  %4595 = vmatpush1.bf16.msra.mxu1 %v11494_v56 }
 0x3a4   : > { %v2789_v9 = vmax.f32 %v2636_v42, 0.0  ;;  %v3110_v10 = vpop.f32.mrb[128].mxu1 }
 0x3a5   : > { %v3111_v11 = vadd.f32 %v3110_v10, %v12439_v4  ;;  %v3112_v12 = vpop.f32.mrb[129].mxu1  ;;  %v2860_v13 = vpack.c.bf16 %v2788_v7, %v2786_v6 }
 0x3a6   : > { %v3113_v14 = vadd.f32 %v3112_v12, %v12443_v5  ;;  %v2639_v15 = vpop.f32.mrb[240].mxu0  ;;  %v3114_v16 = vpop.f32.mrb[130].mxu1  ;;  %v2861_v17 = vpack.c.bf16 %v2789_v9, %v2787_v8 }
 0x3a7   : > { %v2640_v18 = vadd.f32 %v2639_v15, %v12302_v54  ;;  %v3115_v19 = vadd.f32 %v3114_v16, %v12439_v4  ;;  %v2641_v20 = vpop.f32.mrb[241].mxu0  ;;  %v3116_v21 = vpop.f32.mrb[131].mxu1  ;;  %v3429_v27 = vmax.f32 %v3111_v11, 0.0 }
 0x3a8   : > { %v2642_v22 = vadd.f32 %v2641_v20, %v12306_v55  ;;  %v3117_v24 = vadd.f32 %v3116_v21, %v12443_v5  ;;  %v2643_v26 = vpop.f32.mrb[242].mxu0  ;;  %3378 = vmatprep.mubr.bf16.mxu1 %v2861_v17  ;;  %v3430_v33 = vmax.f32 %v3113_v14, 0.0 }
 0x3a9   : > { %v3431_v30 = vmax.f32 %v3115_v19, 0.0  ;;  %v2644_v31 = vadd.f32 %v2643_v26, %v12302_v54  ;;  %v2645_v32 = vpop.f32.mrb[243].mxu0  ;;  %3379 = vmatmul.mubr.bf16.gmra.mrb[236].mxu1 %v2860_v13  ;;  %v2790_v36 = vmax.f32 %v2640_v18, 0.0 }
 0x3aa   : > { %v3432_v34 = vmax.f32 %v3117_v24, 0.0  ;;  %v2646_v35 = vadd.f32 %v2645_v32, %v12306_v55  ;;  %v2791_v39 = vmax.f32 %v2642_v22, 0.0 }
 0x3ab   : > { %v3557_v37 = vpack.c.bf16 %v3431_v30, %v3429_v27  ;;  %v2792_v38 = vmax.f32 %v2644_v31, 0.0 }
 0x3ac   : > { %v2793_v41 = vmax.f32 %v2646_v35, 0.0  ;;  %v3120_v43 = vpop.f32.mrb[132].mxu1  ;;  %v3558_v44 = vpack.c.bf16 %v3432_v34, %v3430_v33 }
 0x3ad   : > { %v3121_v45 = vadd.f32 %v3120_v43, %v12439_v4  ;;  %v3122_v46 = vpop.f32.mrb[133].mxu1  ;;  %v2862_v47 = vpack.c.bf16 %v2792_v38, %v2790_v36 }
 0x3ae   : > { %v3123_v48 = vadd.f32 %v3122_v46, %v12443_v5  ;;  %v2649_v49 = vpop.f32.mrb[244].mxu0  ;;  %v3124_v50 = vpop.f32.mrb[134].mxu1  ;;  %3859 = vmatprep.mubr.bf16.mxu0 %v3558_v44  ;;  %v2863_v51 = vpack.c.bf16 %v2793_v41, %v2791_v39 }
 0x3af   : > { %v2650_v52 = vadd.f32 %v2649_v49, %v12302_v54  ;;  %v3125_v28 = vadd.f32 %v3124_v50, %v12439_v4  ;;  %v2651_v53 = vpop.f32.mrb[245].mxu0  ;;  %v3126_v29 = vpop.f32.mrb[135].mxu1  ;;  %3860 = vmatmul.mubr.bf16.vlgmr.msra.gmra.mrb[0].mxu0 %v3557_v37  ;;  %v3433_v61 = vmax.f32 %v3121_v45, 0.0 }
 0x3b0   : > { %v2652_v57 = vadd.f32 %v2651_v53, %v12306_v55  ;;  %v3127_v58 = vadd.f32 %v3126_v29, %v12443_v5  ;;  %v2653_v59 = vpop.f32.mrb[246].mxu0  ;;  %3388 = vmatprep.mubr.bf16.mxu1 %v2863_v51  ;;  %v3434_v2 = vmax.f32 %v3123_v48, 0.0 }
 0x3b1   : > { %v3435_v62 = vmax.f32 %v3125_v28, 0.0  ;;  %v2654_v63 = vadd.f32 %v2653_v59, %v12302_v54  ;;  %v2655_v1 = vpop.f32.mrb[247].mxu0  ;;  %3389 = vmatmul.mubr.bf16.gmra.mrb[240].mxu1 %v2862_v47  ;;  %v2794_v42 = vmax.f32 %v2650_v52, 0.0 }
 0x3b2   : > { %v3436_v40 = vmax.f32 %v3127_v58, 0.0  ;;  %v2656_v3 = vadd.f32 %v2655_v1, %v12306_v55  ;;  %v2795_v8 = vmax.f32 %v2652_v57, 0.0  ;;  %v11497_v57 = vld [vmem:[#allocation2 + $0x4b0] ss:$8 sps:$4 sm:$0xff]  }
 0x3b3   : > { %v3559_v6 = vpack.c.bf16 %v3435_v62, %v3433_v61  ;;  %v2796_v7 = vmax.f32 %v2654_v63, 0.0  ;;  %v11499_v61 = vld [vmem:[#allocation2 + $0x4b4] ss:$8 sps:$4 sm:$0xff]  }
 0x3b4   : > { %v2797_v9 = vmax.f32 %v2656_v3, 0.0  ;;  %v3130_v10 = vpop.f32.mrb[136].mxu1  ;;  %v3560_v11 = vpack.c.bf16 %v3436_v40, %v3434_v2  ;;  %4596 = vmatprep.subr.bf16.mxu1 %v11499_v61 }
 0x3b5   : > { %v3131_v12 = vadd.f32 %v3130_v10, %v12439_v4  ;;  %v3132_v13 = vpop.f32.mrb[137].mxu1  ;;  %v2864_v14 = vpack.c.bf16 %v2796_v7, %v2794_v42  ;;  %4597 = vmatpush1.bf16.msra.mxu1 %v11497_v57 }
 0x3b6   : > { %v3133_v15 = vadd.f32 %v3132_v13, %v12443_v5  ;;  %v2659_v16 = vpop.f32.mrb[248].mxu0  ;;  %v3134_v17 = vpop.f32.mrb[138].mxu1  ;;  %3869 = vmatprep.mubr.bf16.mxu0 %v3560_v11  ;;  %v2865_v18 = vpack.c.bf16 %v2797_v9, %v2795_v8 }
 0x3b7   : > { %v2660_v19 = vadd.f32 %v2659_v16, %v12302_v54  ;;  %v3135_v20 = vadd.f32 %v3134_v17, %v12439_v4  ;;  %v2661_v21 = vpop.f32.mrb[249].mxu0  ;;  %v3136_v22 = vpop.f32.mrb[139].mxu1  ;;  %3870 = vmatmul.mubr.bf16.gmra.mrb[4].mxu0 %v3559_v6  ;;  %v3437_v30 = vmax.f32 %v3131_v12, 0.0 }
 0x3b8   : > { %v2662_v24 = vadd.f32 %v2661_v21, %v12306_v55  ;;  %v3137_v26 = vadd.f32 %v3136_v22, %v12443_v5  ;;  %v2663_v27 = vpop.f32.mrb[250].mxu0  ;;  %3398 = vmatprep.mubr.bf16.mxu1 %v2865_v18  ;;  %v3438_v34 = vmax.f32 %v3133_v15, 0.0 }
 0x3b9   : > { %v3439_v31 = vmax.f32 %v3135_v20, 0.0  ;;  %v2664_v32 = vadd.f32 %v2663_v27, %v12302_v54  ;;  %v2665_v33 = vpop.f32.mrb[251].mxu0  ;;  %3399 = vmatmul.mubr.bf16.gmra.mrb[244].mxu1 %v2864_v14  ;;  %v2798_v37 = vmax.f32 %v2660_v19, 0.0 }
 0x3ba   : > { %v3440_v35 = vmax.f32 %v3137_v26, 0.0  ;;  %v2666_v36 = vadd.f32 %v2665_v33, %v12306_v55  ;;  %v2799_v41 = vmax.f32 %v2662_v24, 0.0 }
 0x3bb   : > { %v3561_v38 = vpack.c.bf16 %v3439_v31, %v3437_v30  ;;  %v2800_v39 = vmax.f32 %v2664_v32, 0.0 }
 0x3bc   : > { %v2801_v43 = vmax.f32 %v2666_v36, 0.0  ;;  %v3140_v44 = vpop.f32.mrb[140].mxu1  ;;  %v3562_v45 = vpack.c.bf16 %v3440_v35, %v3438_v34 }
 0x3bd   : > { %v3141_v46 = vadd.f32 %v3140_v44, %v12439_v4  ;;  %v3142_v47 = vpop.f32.mrb[141].mxu1  ;;  %v2866_v48 = vpack.c.bf16 %v2800_v39, %v2798_v37  ;;  %v11500_v37 = vld [vmem:[#allocation2 + $0x4c0] ss:$8 sps:$4 sm:$0xff]  }
 0x3be   : > { %v3143_v49 = vadd.f32 %v3142_v47, %v12443_v5  ;;  %v2669_v50 = vpop.f32.mrb[252].mxu0  ;;  %v3144_v51 = vpop.f32.mrb[142].mxu1  ;;  %3879 = vmatprep.mubr.bf16.mxu0 %v3562_v45  ;;  %v2867_v52 = vpack.c.bf16 %v2801_v43, %v2799_v41 }
 0x3bf   : > { %v2670_v28 = vadd.f32 %v2669_v50, %v12302_v54  ;;  %v3145_v53 = vadd.f32 %v3144_v51, %v12439_v4  ;;  %v2671_v29 = vpop.f32.mrb[253].mxu0  ;;  %v3146_v56 = vpop.f32.mrb[143].mxu1  ;;  %3880 = vmatmul.mubr.bf16.gmra.mrb[8].mxu0 %v3561_v38  ;;  %v3441_v62 = vmax.f32 %v3141_v46, 0.0  ;;  %v11502_v38 = vld [vmem:[#allocation2 + $0x4c4] ss:$8 sps:$4 sm:$0xff]  }
 0x3c0   : > { %v2672_v58 = vadd.f32 %v2671_v29, %v12306_v55  ;;  %v3147_v59 = vadd.f32 %v3146_v56, %v12443_v5  ;;  %v2673_v60 = vpop.f32.mrb[254].mxu0  ;;  %3408 = vmatprep.mubr.bf16.mxu1 %v2867_v52  ;;  %v3442_v40 = vmax.f32 %v3143_v49, 0.0  ;;  %4598 = vmatprep.subr.bf16.mxu1 %v11502_v38  ;;  %v11506_v38 = vld [vmem:[#allocation2 + $0x4e0] ss:$8 sps:$4 sm:$0xff]  }
 0x3c1   : > { %v3443_v63 = vmax.f32 %v3145_v53, 0.0  ;;  %v2674_v1 = vadd.f32 %v2673_v60, %v12302_v54  ;;  %v2675_v2 = vpop.f32.mrb[255].mxu0  ;;  %3409 = vmatmul.mubr.bf16.gmra.mrb[248].mxu1 %v2866_v48  ;;  %v2802_v6 = vmax.f32 %v2670_v28, 0.0 }
 0x3c2   : > { %v3444_v3 = vmax.f32 %v3147_v59, 0.0  ;;  %v2676_v42 = vadd.f32 %v2675_v2, %v12306_v55  ;;  %v2803_v9 = vmax.f32 %v2672_v58, 0.0  ;;  %4599 = vmatpush1.bf16.msra.mxu1 %v11500_v37 }
 0x3c3   : > { %v3563_v7 = vpack.c.bf16 %v3443_v63, %v3441_v62  ;;  %v2804_v8 = vmax.f32 %v2674_v1, 0.0 }
 0x3c4   : > { %v2805_v10 = vmax.f32 %v2676_v42, 0.0  ;;  %v3150_v11 = vpop.f32.mrb[144].mxu1  ;;  %v3564_v12 = vpack.c.bf16 %v3444_v3, %v3442_v40 }
 0x3c5   : > { %v3151_v13 = vadd.f32 %v3150_v11, %v12439_v4  ;;  %v3152_v14 = vpop.f32.mrb[145].mxu1  ;;  %v2868_v15 = vpack.c.bf16 %v2804_v8, %v2802_v6  ;;  %v11503_v6 = vld [vmem:[#allocation2 + $0x4d0] ss:$8 sps:$4 sm:$0xff]  }
 0x3c6   : > { %v3153_v54 = vadd.f32 %v3152_v14, %v12443_v5  ;;  %v3154_v16 = vpop.f32.mrb[146].mxu1  ;;  %3889 = vmatprep.mubr.bf16.mxu0 %v3564_v12  ;;  %v2869_v17 = vpack.c.bf16 %v2805_v10, %v2803_v9 }
 0x3c7   : > { %v3155_v55 = vadd.f32 %v3154_v16, %v12439_v4  ;;  %v3156_v18 = vpop.f32.mrb[147].mxu1  ;;  %3890 = vmatmul.mubr.bf16.gmra.mrb[12].mxu0 %v3563_v7  ;;  %v3445_v20 = vmax.f32 %v3151_v13, 0.0  ;;  %v11505_v7 = vld [vmem:[#allocation2 + $0x4d4] ss:$8 sps:$4 sm:$0xff]  }
 0x3c8   : > { %v3157_v19 = vadd.f32 %v3156_v18, %v12443_v5  ;;  %3418 = vmatprep.mubr.bf16.mxu1 %v2869_v17  ;;  %v3446_v22 = vmax.f32 %v3153_v54, 0.0  ;;  %4600 = vmatprep.subr.bf16.mxu1 %v11505_v7  ;;  %v11509_v7 = vld [vmem:[#allocation2 + $0x4f0] ss:$8 sps:$4 sm:$0xff]  }
 0x3c9   : > { %v3447_v21 = vmax.f32 %v3155_v55, 0.0  ;;  %3419 = vmatmul.mubr.bf16.gmra.mrb[252].mxu1 %v2868_v15 }
 0x3ca   : > { %v3448_v24 = vmax.f32 %v3157_v19, 0.0  ;;  %4601 = vmatpush1.bf16.msra.mxu1 %v11503_v6 }
 0x3cb   : > { %v3565_v26 = vpack.c.bf16 %v3447_v21, %v3445_v20 }
 0x3cc   : > { %v3160_v27 = vpop.f32.mrb[148].mxu1  ;;  %v3566_v30 = vpack.c.bf16 %v3448_v24, %v3446_v22 }
 0x3cd   : > { %v3161_v31 = vadd.f32 %v3160_v27, %v12439_v4  ;;  %v3162_v32 = vpop.f32.mrb[149].mxu1 }
 0x3ce   : > { %v3163_v33 = vadd.f32 %v3162_v32, %v12443_v5  ;;  %v3164_v34 = vpop.f32.mrb[150].mxu1  ;;  %3899 = vmatprep.mubr.bf16.mxu0 %v3566_v30 }
 0x3cf   : > { %v3165_v35 = vadd.f32 %v3164_v34, %v12439_v4  ;;  %v3166_v36 = vpop.f32.mrb[151].mxu1  ;;  %3900 = vmatmul.mubr.bf16.gmra.mrb[16].mxu0 %v3565_v26  ;;  %v3449_v41 = vmax.f32 %v3161_v31, 0.0 }
 0x3d0   : > { %v3167_v39 = vadd.f32 %v3166_v36, %v12443_v5  ;;  %v3450_v44 = vmax.f32 %v3163_v33, 0.0 }
 0x3d1   : > { %v3451_v43 = vmax.f32 %v3165_v35, 0.0 }
 0x3d2   : > { %v3452_v45 = vmax.f32 %v3167_v39, 0.0  ;;  %v11508_v39 = vld [vmem:[#allocation2 + $0x4e4] ss:$8 sps:$4 sm:$0xff]  }
 0x3d3   : > { %v3567_v46 = vpack.c.bf16 %v3451_v43, %v3449_v41  ;;  %4602 = vmatprep.subr.bf16.mxu1 %v11508_v39 }
 0x3d4   : > { %v3170_v47 = vpop.f32.mrb[152].mxu1  ;;  %v3568_v48 = vpack.c.bf16 %v3452_v45, %v3450_v44  ;;  %4603 = vmatpush1.bf16.msra.mxu1 %v11506_v38 }
 0x3d5   : > { %v3171_v49 = vadd.f32 %v3170_v47, %v12439_v4  ;;  %v3172_v50 = vpop.f32.mrb[153].mxu1 }
 0x3d6   : > { %v3173_v51 = vadd.f32 %v3172_v50, %v12443_v5  ;;  %v3174_v52 = vpop.f32.mrb[154].mxu1  ;;  %3909 = vmatprep.mubr.bf16.mxu0 %v3568_v48 }
 0x3d7   : > { %v3175_v28 = vadd.f32 %v3174_v52, %v12439_v4  ;;  %v3176_v53 = vpop.f32.mrb[155].mxu1  ;;  %3910 = vmatmul.mubr.bf16.gmra.mrb[20].mxu0 %v3567_v46  ;;  %v3453_v56 = vmax.f32 %v3171_v49, 0.0 }
 0x3d8   : > { %v3177_v29 = vadd.f32 %v3176_v53, %v12443_v5  ;;  %v3454_v58 = vmax.f32 %v3173_v51, 0.0 }
 0x3d9   : > { %v3455_v57 = vmax.f32 %v3175_v28, 0.0 }
 0x3da   : > { %v3456_v59 = vmax.f32 %v3177_v29, 0.0 }
 0x3db   : > { %v3569_v60 = vpack.c.bf16 %v3455_v57, %v3453_v56 }
 0x3dc   : > { %v3180_v61 = vpop.f32.mrb[156].mxu1  ;;  %v3570_v62 = vpack.c.bf16 %v3456_v59, %v3454_v58 }
 0x3dd   : > { %v3181_v63 = vadd.f32 %v3180_v61, %v12439_v4  ;;  %v3182_v1 = vpop.f32.mrb[157].mxu1 }
 0x3de   : > { %v3183_v2 = vadd.f32 %v3182_v1, %v12443_v5  ;;  %v3184_v40 = vpop.f32.mrb[158].mxu1  ;;  %3919 = vmatprep.mubr.bf16.mxu0 %v3570_v62 }
 0x3df   : > { %v3185_v3 = vadd.f32 %v3184_v40, %v12439_v4  ;;  %v3186_v42 = vpop.f32.mrb[159].mxu1  ;;  %3920 = vmatmul.mubr.bf16.gmra.mrb[24].mxu0 %v3569_v60  ;;  %v3457_v9 = vmax.f32 %v3181_v63, 0.0 }
 0x3e0   : > { %v3187_v8 = vadd.f32 %v3186_v42, %v12443_v5  ;;  %v3458_v11 = vmax.f32 %v3183_v2, 0.0 }
 0x3e1   : > { %v3459_v10 = vmax.f32 %v3185_v3, 0.0 }
 0x3e2   : > { %v3460_v12 = vmax.f32 %v3187_v8, 0.0  ;;  %v11511_v8 = vld [vmem:[#allocation2 + $0x4f4] ss:$8 sps:$4 sm:$0xff]  }
 0x3e3   : > { %v3571_v13 = vpack.c.bf16 %v3459_v10, %v3457_v9  ;;  %4604 = vmatprep.subr.bf16.mxu1 %v11511_v8 }
 0x3e4   : > { %v3190_v14 = vpop.f32.mrb[160].mxu1  ;;  %v3572_v15 = vpack.c.bf16 %v3460_v12, %v3458_v11  ;;  %4605 = vmatpush1.bf16.msra.mxu1 %v11509_v7 }
 0x3e5   : > { %v3191_v54 = vadd.f32 %v3190_v14, %v12439_v4  ;;  %v3192_v16 = vpop.f32.mrb[161].mxu1 }
 0x3e6   : > { %v3193_v17 = vadd.f32 %v3192_v16, %v12443_v5  ;;  %v3194_v55 = vpop.f32.mrb[162].mxu1  ;;  %3929 = vmatprep.mubr.bf16.mxu0 %v3572_v15 }
 0x3e7   : > { %v3195_v18 = vadd.f32 %v3194_v55, %v12439_v4  ;;  %v3196_v19 = vpop.f32.mrb[163].mxu1  ;;  %3930 = vmatmul.mubr.bf16.gmra.mrb[28].mxu0 %v3571_v13  ;;  %v3461_v21 = vmax.f32 %v3191_v54, 0.0 }
 0x3e8   : > { %v3197_v20 = vadd.f32 %v3196_v19, %v12443_v5  ;;  %v3462_v24 = vmax.f32 %v3193_v17, 0.0 }
 0x3e9   : > { %v3463_v22 = vmax.f32 %v3195_v18, 0.0 }
 0x3ea   : > { %v3464_v26 = vmax.f32 %v3197_v20, 0.0 }
 0x3eb   : > { %v3573_v27 = vpack.c.bf16 %v3463_v22, %v3461_v21 }
 0x3ec   : > { %v3200_v30 = vpop.f32.mrb[164].mxu1  ;;  %v3574_v31 = vpack.c.bf16 %v3464_v26, %v3462_v24 }
 0x3ed   : > { %v3201_v32 = vadd.f32 %v3200_v30, %v12439_v4  ;;  %v3202_v33 = vpop.f32.mrb[165].mxu1 }
 0x3ee   : > { %v3203_v34 = vadd.f32 %v3202_v33, %v12443_v5  ;;  %v3204_v35 = vpop.f32.mrb[166].mxu1  ;;  %3939 = vmatprep.mubr.bf16.mxu0 %v3574_v31 }
 0x3ef   : > { %v3205_v36 = vadd.f32 %v3204_v35, %v12439_v4  ;;  %v3206_v37 = vpop.f32.mrb[167].mxu1  ;;  %3940 = vmatmul.mubr.bf16.gmra.mrb[32].mxu0 %v3573_v27  ;;  %v3465_v43 = vmax.f32 %v3201_v32, 0.0 }
 0x3f0   : > { %v3207_v41 = vadd.f32 %v3206_v37, %v12443_v5  ;;  %v3466_v45 = vmax.f32 %v3203_v34, 0.0 }
 0x3f1   : > { %v3467_v44 = vmax.f32 %v3205_v36, 0.0 }
 0x3f2   : > { %v3468_v46 = vmax.f32 %v3207_v41, 0.0 }
 0x3f3   : > { %v3575_v47 = vpack.c.bf16 %v3467_v44, %v3465_v43  ;;  %v11514_v44 = vld [vmem:[%s14559_s2 + $0x34] ss:$8 sps:$4 sm:$0xff]  }
 0x3f4   : > { %v3210_v48 = vpop.f32.mrb[168].mxu1  ;;  %v3576_v49 = vpack.c.bf16 %v3468_v46, %v3466_v45  ;;  %4957 = vmatprep.subr.bf16.mxu1 %v11514_v44 }
 0x3f5   : > { %v3211_v50 = vadd.f32 %v3210_v48, %v12439_v4  ;;  %v3212_v51 = vpop.f32.mrb[169].mxu1 }
 0x3f6   : > { %v3213_v52 = vadd.f32 %v3212_v51, %v12443_v5  ;;  %v3214_v28 = vpop.f32.mrb[170].mxu1  ;;  %3949 = vmatprep.mubr.bf16.mxu0 %v3576_v49 }
 0x3f7   : > { %v3215_v53 = vadd.f32 %v3214_v28, %v12439_v4  ;;  %v3216_v29 = vpop.f32.mrb[171].mxu1  ;;  %3950 = vmatmul.mubr.bf16.gmra.mrb[36].mxu0 %v3575_v47  ;;  %v3469_v57 = vmax.f32 %v3211_v50, 0.0 }
 0x3f8   : > { %v3217_v56 = vadd.f32 %v3216_v29, %v12443_v5  ;;  %v3470_v59 = vmax.f32 %v3213_v52, 0.0 }
 0x3f9   : > { %v3471_v58 = vmax.f32 %v3215_v53, 0.0 }
 0x3fa   : > { %v3472_v60 = vmax.f32 %v3217_v56, 0.0 }
 0x3fb   : > { %v3577_v61 = vpack.c.bf16 %v3471_v58, %v3469_v57 }
 0x3fc   : > { %v3220_v62 = vpop.f32.mrb[172].mxu1  ;;  %v3578_v63 = vpack.c.bf16 %v3472_v60, %v3470_v59 }
 0x3fd   : > { %v3221_v1 = vadd.f32 %v3220_v62, %v12439_v4  ;;  %v3222_v2 = vpop.f32.mrb[173].mxu1 }
 0x3fe   : > { %v3223_v40 = vadd.f32 %v3222_v2, %v12443_v5  ;;  %v3224_v3 = vpop.f32.mrb[174].mxu1  ;;  %3959 = vmatprep.mubr.bf16.mxu0 %v3578_v63 }
 0x3ff   : > { %v3225_v42 = vadd.f32 %v3224_v3, %v12439_v4  ;;  %v3226_v6 = vpop.f32.mrb[175].mxu1  ;;  %3960 = vmatmul.mubr.bf16.gmra.mrb[40].mxu0 %v3577_v61  ;;  %v3473_v10 = vmax.f32 %v3221_v1, 0.0 }
 0x400   : > { %v3227_v9 = vadd.f32 %v3226_v6, %v12443_v5  ;;  %v3474_v12 = vmax.f32 %v3223_v40, 0.0 }
 0x401   : > { %v3475_v11 = vmax.f32 %v3225_v42, 0.0 }
 0x402   : > { %v3476_v13 = vmax.f32 %v3227_v9, 0.0 }
 0x403   : > { %v3579_v14 = vpack.c.bf16 %v3475_v11, %v3473_v10 }
 0x404   : > { %v3230_v15 = vpop.f32.mrb[176].mxu1  ;;  %v3580_v54 = vpack.c.bf16 %v3476_v13, %v3474_v12 }
 0x405   : > { %v3231_v16 = vadd.f32 %v3230_v15, %v12439_v4  ;;  %v3232_v17 = vpop.f32.mrb[177].mxu1 }
 0x406   : > { %v3233_v55 = vadd.f32 %v3232_v17, %v12443_v5  ;;  %v3234_v18 = vpop.f32.mrb[178].mxu1  ;;  %3969 = vmatprep.mubr.bf16.mxu0 %v3580_v54 }
 0x407   : > { %v3235_v19 = vadd.f32 %v3234_v18, %v12439_v4  ;;  %v3236_v20 = vpop.f32.mrb[179].mxu1  ;;  %3970 = vmatmul.mubr.bf16.gmra.mrb[44].mxu0 %v3579_v14  ;;  %v3477_v22 = vmax.f32 %v3231_v16, 0.0 }
 0x408   : > { %v3237_v21 = vadd.f32 %v3236_v20, %v12443_v5  ;;  %v3478_v26 = vmax.f32 %v3233_v55, 0.0 }
 0x409   : > { %v3479_v24 = vmax.f32 %v3235_v19, 0.0 }
 0x40a   : > { %v3480_v27 = vmax.f32 %v3237_v21, 0.0 }
 0x40b   : > { %v3581_v30 = vpack.c.bf16 %v3479_v24, %v3477_v22 }
 0x40c   : > { %v3240_v31 = vpop.f32.mrb[180].mxu1  ;;  %v3582_v32 = vpack.c.bf16 %v3480_v27, %v3478_v26 }
 0x40d   : > { %v3241_v33 = vadd.f32 %v3240_v31, %v12439_v4  ;;  %v3242_v34 = vpop.f32.mrb[181].mxu1 }
 0x40e   : > { %v3243_v35 = vadd.f32 %v3242_v34, %v12443_v5  ;;  %v3244_v36 = vpop.f32.mrb[182].mxu1  ;;  %3979 = vmatprep.mubr.bf16.mxu0 %v3582_v32 }
 0x40f   : > { %v3245_v37 = vadd.f32 %v3244_v36, %v12439_v4  ;;  %v3246_v38 = vpop.f32.mrb[183].mxu1  ;;  %3980 = vmatmul.mubr.bf16.gmra.mrb[48].mxu0 %v3581_v30  ;;  %v3481_v41 = vmax.f32 %v3241_v33, 0.0 }
 0x410   : > { %v3247_v39 = vadd.f32 %v3246_v38, %v12443_v5  ;;  %v3482_v45 = vmax.f32 %v3243_v35, 0.0 }
 0x411   : > { %v3483_v43 = vmax.f32 %v3245_v37, 0.0 }
 0x412   : > { %v3484_v46 = vmax.f32 %v3247_v39, 0.0 }
 0x413   : > { %v3583_v47 = vpack.c.bf16 %v3483_v43, %v3481_v41 }
 0x414   : > { %v3250_v48 = vpop.f32.mrb[184].mxu1  ;;  %v3584_v49 = vpack.c.bf16 %v3484_v46, %v3482_v45 }
 0x415   : > { %v3251_v50 = vadd.f32 %v3250_v48, %v12439_v4  ;;  %v3252_v51 = vpop.f32.mrb[185].mxu1 }
 0x416   : > { %v3253_v52 = vadd.f32 %v3252_v51, %v12443_v5  ;;  %v3254_v28 = vpop.f32.mrb[186].mxu1  ;;  %3989 = vmatprep.mubr.bf16.mxu0 %v3584_v49 }
 0x417   : > { %v3255_v53 = vadd.f32 %v3254_v28, %v12439_v4  ;;  %v3256_v29 = vpop.f32.mrb[187].mxu1  ;;  %3990 = vmatmul.mubr.bf16.gmra.mrb[52].mxu0 %v3583_v47  ;;  %v3485_v57 = vmax.f32 %v3251_v50, 0.0 }
 0x418   : > { %v3257_v56 = vadd.f32 %v3256_v29, %v12443_v5  ;;  %v3486_v59 = vmax.f32 %v3253_v52, 0.0 }
 0x419   : > { %v3487_v58 = vmax.f32 %v3255_v53, 0.0 }
 0x41a   : > { %v3488_v60 = vmax.f32 %v3257_v56, 0.0 }
 0x41b   : > { %v3585_v61 = vpack.c.bf16 %v3487_v58, %v3485_v57 }
 0x41c   : > { %v3260_v62 = vpop.f32.mrb[188].mxu1  ;;  %v3586_v63 = vpack.c.bf16 %v3488_v60, %v3486_v59 }
 0x41d   : > { %v3261_v1 = vadd.f32 %v3260_v62, %v12439_v4  ;;  %v3262_v2 = vpop.f32.mrb[189].mxu1 }
 0x41e   : > { %v3263_v40 = vadd.f32 %v3262_v2, %v12443_v5  ;;  %v3264_v3 = vpop.f32.mrb[190].mxu1  ;;  %3999 = vmatprep.mubr.bf16.mxu0 %v3586_v63 }
 0x41f   : > { %v3265_v42 = vadd.f32 %v3264_v3, %v12439_v4  ;;  %v3266_v6 = vpop.f32.mrb[191].mxu1  ;;  %4000 = vmatmul.mubr.bf16.gmra.mrb[56].mxu0 %v3585_v61  ;;  %v3489_v8 = vmax.f32 %v3261_v1, 0.0 }
 0x420   : > { %v3267_v7 = vadd.f32 %v3266_v6, %v12443_v5  ;;  %v3490_v10 = vmax.f32 %v3263_v40, 0.0 }
 0x421   : > { %v3491_v9 = vmax.f32 %v3265_v42, 0.0 }
 0x422   : > { %v3492_v11 = vmax.f32 %v3267_v7, 0.0 }
 0x423   : > { %v3587_v12 = vpack.c.bf16 %v3491_v9, %v3489_v8 }
 0x424   : > { %v3270_v13 = vpop.f32.mrb[192].mxu1  ;;  %v3588_v14 = vpack.c.bf16 %v3492_v11, %v3490_v10 }
 0x425   : > { %v3271_v15 = vadd.f32 %v3270_v13, %v12439_v4  ;;  %v3272_v54 = vpop.f32.mrb[193].mxu1 }
 0x426   : > { %v3273_v16 = vadd.f32 %v3272_v54, %v12443_v5  ;;  %v3274_v17 = vpop.f32.mrb[194].mxu1  ;;  %4009 = vmatprep.mubr.bf16.mxu0 %v3588_v14 }
 0x427   : > { %v3275_v55 = vadd.f32 %v3274_v17, %v12439_v4  ;;  %v3276_v18 = vpop.f32.mrb[195].mxu1  ;;  %4010 = vmatmul.mubr.bf16.gmra.mrb[60].mxu0 %v3587_v12  ;;  %v3493_v20 = vmax.f32 %v3271_v15, 0.0 }
 0x428   : > { %v3277_v19 = vadd.f32 %v3276_v18, %v12443_v5  ;;  %v3494_v22 = vmax.f32 %v3273_v16, 0.0 }
 0x429   : > { %v3495_v21 = vmax.f32 %v3275_v55, 0.0 }
 0x42a   : > { %v3496_v24 = vmax.f32 %v3277_v19, 0.0 }
 0x42b   : > { %v3589_v26 = vpack.c.bf16 %v3495_v21, %v3493_v20 }
 0x42c   : > { %v3280_v27 = vpop.f32.mrb[196].mxu1  ;;  %v3590_v30 = vpack.c.bf16 %v3496_v24, %v3494_v22 }
 0x42d   : > { %v3281_v31 = vadd.f32 %v3280_v27, %v12439_v4  ;;  %v3282_v32 = vpop.f32.mrb[197].mxu1 }
 0x42e   : > { %v3283_v33 = vadd.f32 %v3282_v32, %v12443_v5  ;;  %v3284_v34 = vpop.f32.mrb[198].mxu1  ;;  %4019 = vmatprep.mubr.bf16.mxu0 %v3590_v30 }
 0x42f   : > { %v3285_v35 = vadd.f32 %v3284_v34, %v12439_v4  ;;  %v3286_v36 = vpop.f32.mrb[199].mxu1  ;;  %4020 = vmatmul.mubr.bf16.gmra.mrb[64].mxu0 %v3589_v26  ;;  %v3497_v38 = vmax.f32 %v3281_v31, 0.0 }
 0x430   : > { %v3287_v37 = vadd.f32 %v3286_v36, %v12443_v5  ;;  %v3498_v41 = vmax.f32 %v3283_v33, 0.0 }
 0x431   : > { %v3499_v39 = vmax.f32 %v3285_v35, 0.0 }
 0x432   : > { %v3500_v43 = vmax.f32 %v3287_v37, 0.0 }
 0x433   : > { %v3591_v44 = vpack.c.bf16 %v3499_v39, %v3497_v38 }
 0x434   : > { %v3290_v45 = vpop.f32.mrb[200].mxu1  ;;  %v3592_v46 = vpack.c.bf16 %v3500_v43, %v3498_v41 }
 0x435   : > { %v3291_v47 = vadd.f32 %v3290_v45, %v12439_v4  ;;  %v3292_v48 = vpop.f32.mrb[201].mxu1 }
 0x436   : > { %v3293_v49 = vadd.f32 %v3292_v48, %v12443_v5  ;;  %v3294_v50 = vpop.f32.mrb[202].mxu1  ;;  %4029 = vmatprep.mubr.bf16.mxu0 %v3592_v46 }
 0x437   : > { %v3295_v51 = vadd.f32 %v3294_v50, %v12439_v4  ;;  %v3296_v52 = vpop.f32.mrb[203].mxu1  ;;  %4030 = vmatmul.mubr.bf16.gmra.mrb[68].mxu0 %v3591_v44  ;;  %v3501_v53 = vmax.f32 %v3291_v47, 0.0 }
 0x438   : > { %v3297_v28 = vadd.f32 %v3296_v52, %v12443_v5  ;;  %v3502_v56 = vmax.f32 %v3293_v49, 0.0 }
 0x439   : > { %v3503_v29 = vmax.f32 %v3295_v51, 0.0 }
 0x43a   : > { %v3504_v57 = vmax.f32 %v3297_v28, 0.0 }
 0x43b   : > { %v3593_v58 = vpack.c.bf16 %v3503_v29, %v3501_v53 }
 0x43c   : > { %v3300_v59 = vpop.f32.mrb[204].mxu1  ;;  %v3594_v60 = vpack.c.bf16 %v3504_v57, %v3502_v56 }
 0x43d   : > { %v3301_v61 = vadd.f32 %v3300_v59, %v12439_v4  ;;  %v3302_v62 = vpop.f32.mrb[205].mxu1 }
 0x43e   : > { %v3303_v63 = vadd.f32 %v3302_v62, %v12443_v5  ;;  %v3304_v1 = vpop.f32.mrb[206].mxu1  ;;  %4039 = vmatprep.mubr.bf16.mxu0 %v3594_v60 }
 0x43f   : > { %v3305_v2 = vadd.f32 %v3304_v1, %v12439_v4  ;;  %v3306_v40 = vpop.f32.mrb[207].mxu1  ;;  %4040 = vmatmul.mubr.bf16.gmra.mrb[72].mxu0 %v3593_v58  ;;  %v3505_v42 = vmax.f32 %v3301_v61, 0.0 }
 0x440   : > { %v3307_v3 = vadd.f32 %v3306_v40, %v12443_v5  ;;  %v3506_v7 = vmax.f32 %v3303_v63, 0.0 }
 0x441   : > { %v3507_v6 = vmax.f32 %v3305_v2, 0.0 }
 0x442   : > { %v3508_v8 = vmax.f32 %v3307_v3, 0.0 }
 0x443   : > { %v3595_v9 = vpack.c.bf16 %v3507_v6, %v3505_v42 }
 0x444   : > { %v3310_v10 = vpop.f32.mrb[208].mxu1  ;;  %v3596_v11 = vpack.c.bf16 %v3508_v8, %v3506_v7 }
 0x445   : > { %v3311_v12 = vadd.f32 %v3310_v10, %v12439_v4  ;;  %v3312_v13 = vpop.f32.mrb[209].mxu1 }
 0x446   : > { %v3313_v14 = vadd.f32 %v3312_v13, %v12443_v5  ;;  %v3314_v15 = vpop.f32.mrb[210].mxu1  ;;  %4049 = vmatprep.mubr.bf16.mxu0 %v3596_v11 }
 0x447   : > { %v3315_v54 = vadd.f32 %v3314_v15, %v12439_v4  ;;  %v3316_v16 = vpop.f32.mrb[211].mxu1  ;;  %4050 = vmatmul.mubr.bf16.gmra.mrb[76].mxu0 %v3595_v9  ;;  %v3509_v55 = vmax.f32 %v3311_v12, 0.0 }
 0x448   : > { %v3317_v17 = vadd.f32 %v3316_v16, %v12443_v5  ;;  %v3510_v19 = vmax.f32 %v3313_v14, 0.0 }
 0x449   : > { %v3511_v18 = vmax.f32 %v3315_v54, 0.0 }
 0x44a   : > { %v3512_v20 = vmax.f32 %v3317_v17, 0.0 }
 0x44b   : > { %v3597_v21 = vpack.c.bf16 %v3511_v18, %v3509_v55 }
 0x44c   : > { %v3320_v22 = vpop.f32.mrb[212].mxu1  ;;  %v3598_v24 = vpack.c.bf16 %v3512_v20, %v3510_v19 }
 0x44d   : > { %v3321_v26 = vadd.f32 %v3320_v22, %v12439_v4  ;;  %v3322_v27 = vpop.f32.mrb[213].mxu1 }
 0x44e   : > { %v3323_v30 = vadd.f32 %v3322_v27, %v12443_v5  ;;  %v3324_v31 = vpop.f32.mrb[214].mxu1  ;;  %4059 = vmatprep.mubr.bf16.mxu0 %v3598_v24 }
 0x44f   : > { %v3325_v32 = vadd.f32 %v3324_v31, %v12439_v4  ;;  %v3326_v33 = vpop.f32.mrb[215].mxu1  ;;  %4060 = vmatmul.mubr.bf16.gmra.mrb[80].mxu0 %v3597_v21  ;;  %v3513_v35 = vmax.f32 %v3321_v26, 0.0 }
 0x450   : > { %v3327_v34 = vadd.f32 %v3326_v33, %v12443_v5  ;;  %v3514_v37 = vmax.f32 %v3323_v30, 0.0 }
 0x451   : > { %v3515_v36 = vmax.f32 %v3325_v32, 0.0 }
 0x452   : > { %v3516_v38 = vmax.f32 %v3327_v34, 0.0 }
 0x453   : > { %v3599_v39 = vpack.c.bf16 %v3515_v36, %v3513_v35 }
 0x454   : > { %v3330_v41 = vpop.f32.mrb[216].mxu1  ;;  %v3600_v43 = vpack.c.bf16 %v3516_v38, %v3514_v37 }
 0x455   : > { %v3331_v44 = vadd.f32 %v3330_v41, %v12439_v4  ;;  %v3332_v45 = vpop.f32.mrb[217].mxu1 }
 0x456   : > { %v3333_v46 = vadd.f32 %v3332_v45, %v12443_v5  ;;  %v3334_v47 = vpop.f32.mrb[218].mxu1  ;;  %4069 = vmatprep.mubr.bf16.mxu0 %v3600_v43 }
 0x457   : > { %v3335_v48 = vadd.f32 %v3334_v47, %v12439_v4  ;;  %v3336_v49 = vpop.f32.mrb[219].mxu1  ;;  %4070 = vmatmul.mubr.bf16.gmra.mrb[84].mxu0 %v3599_v39  ;;  %v3517_v51 = vmax.f32 %v3331_v44, 0.0 }
 0x458   : > { %v3337_v50 = vadd.f32 %v3336_v49, %v12443_v5  ;;  %v3518_v28 = vmax.f32 %v3333_v46, 0.0 }
 0x459   : > { %v3519_v52 = vmax.f32 %v3335_v48, 0.0 }
 0x45a   : > { %v3520_v53 = vmax.f32 %v3337_v50, 0.0 }
 0x45b   : > { %v3601_v29 = vpack.c.bf16 %v3519_v52, %v3517_v51 }
 0x45c   : > { %v3340_v56 = vpop.f32.mrb[220].mxu1  ;;  %v3602_v57 = vpack.c.bf16 %v3520_v53, %v3518_v28 }
 0x45d   : > { %v3341_v58 = vadd.f32 %v3340_v56, %v12439_v4  ;;  %v3342_v59 = vpop.f32.mrb[221].mxu1 }
 0x45e   : > { %v3343_v60 = vadd.f32 %v3342_v59, %v12443_v5  ;;  %v3344_v61 = vpop.f32.mrb[222].mxu1  ;;  %4079 = vmatprep.mubr.bf16.mxu0 %v3602_v57 }
 0x45f   : > { %v3345_v62 = vadd.f32 %v3344_v61, %v12439_v4  ;;  %v3346_v63 = vpop.f32.mrb[223].mxu1  ;;  %4080 = vmatmul.mubr.bf16.gmra.mrb[88].mxu0 %v3601_v29  ;;  %v3521_v2 = vmax.f32 %v3341_v58, 0.0  ;;  %v10271_v29 = vld [vmem:[%s14561_s4 + $0x8] sm:$0x3] }
 0x460   : > { %v3347_v1 = vadd.f32 %v3346_v63, %v12443_v5  ;;  %v3522_v3 = vmax.f32 %v3343_v60, 0.0 }
 0x461   : > { %v3523_v40 = vmax.f32 %v3345_v62, 0.0  ;;  %v12579_v62 = vrot.slane %v10271_v29, %v12021_v23 }
 0x462   : > { %v3524_v42 = vmax.f32 %v3347_v1, 0.0  ;;  %v12583_v1 = vrot.slane %v10271_v29, %v12026_v25  ;;  %v11515_v29 = vld [vmem:[%s14559_s2 + $0x40] ss:$8 sps:$4 sm:$0xff]  }
 0x463   : > { %v3603_v6 = vpack.c.bf16 %v3523_v40, %v3521_v2 }
 0x464   : > { %v3350_v7 = vpop.f32.mrb[224].mxu1  ;;  %v3604_v8 = vpack.c.bf16 %v3524_v42, %v3522_v3 }
 0x465   : > { %v3351_v9 = vadd.f32 %v3350_v7, %v12439_v4  ;;  %v3352_v10 = vpop.f32.mrb[225].mxu1 }
 0x466   : > { %v3353_v11 = vadd.f32 %v3352_v10, %v12443_v5  ;;  %v3354_v12 = vpop.f32.mrb[226].mxu1  ;;  %4089 = vmatprep.mubr.bf16.mxu0 %v3604_v8 }
 0x467   : > { %v3355_v13 = vadd.f32 %v3354_v12, %v12439_v4  ;;  %v3356_v14 = vpop.f32.mrb[227].mxu1  ;;  %4090 = vmatmul.mubr.bf16.gmra.mrb[92].mxu0 %v3603_v6  ;;  %v3525_v54 = vmax.f32 %v3351_v9, 0.0 }
 0x468   : > { %v3357_v15 = vadd.f32 %v3356_v14, %v12443_v5  ;;  %v3526_v17 = vmax.f32 %v3353_v11, 0.0 }
 0x469   : > { %v3527_v16 = vmax.f32 %v3355_v13, 0.0 }
 0x46a   : > { %v3528_v55 = vmax.f32 %v3357_v15, 0.0 }
 0x46b   : > { %v3605_v18 = vpack.c.bf16 %v3527_v16, %v3525_v54 }
 0x46c   : > { %v3360_v19 = vpop.f32.mrb[228].mxu1  ;;  %v3606_v20 = vpack.c.bf16 %v3528_v55, %v3526_v17 }
 0x46d   : > { %v3361_v21 = vadd.f32 %v3360_v19, %v12439_v4  ;;  %v3362_v22 = vpop.f32.mrb[229].mxu1 }
 0x46e   : > { %v3363_v24 = vadd.f32 %v3362_v22, %v12443_v5  ;;  %v3364_v26 = vpop.f32.mrb[230].mxu1  ;;  %4099 = vmatprep.mubr.bf16.mxu0 %v3606_v20 }
 0x46f   : > { %v3365_v27 = vadd.f32 %v3364_v26, %v12439_v4  ;;  %v3366_v30 = vpop.f32.mrb[231].mxu1  ;;  %4100 = vmatmul.mubr.bf16.gmra.mrb[96].mxu0 %v3605_v18  ;;  %v3529_v32 = vmax.f32 %v3361_v21, 0.0 }
 0x470   : > { %v3367_v31 = vadd.f32 %v3366_v30, %v12443_v5  ;;  %v3530_v34 = vmax.f32 %v3363_v24, 0.0 }
 0x471   : > { %v3531_v33 = vmax.f32 %v3365_v27, 0.0 }
 0x472   : > { %v3532_v35 = vmax.f32 %v3367_v31, 0.0 }
 0x473   : > { %v3607_v36 = vpack.c.bf16 %v3531_v33, %v3529_v32 }
 0x474   : > { %v3370_v37 = vpop.f32.mrb[232].mxu1  ;;  %v3608_v38 = vpack.c.bf16 %v3532_v35, %v3530_v34 }
 0x475   : > { %v3371_v39 = vadd.f32 %v3370_v37, %v12439_v4  ;;  %v3372_v41 = vpop.f32.mrb[233].mxu1  ;;  %v11512_v37 = vld [vmem:[%s14559_s2 + $0x30] ss:$8 sps:$4 sm:$0xff]  }
 0x476   : > { %v3373_v43 = vadd.f32 %v3372_v41, %v12443_v5  ;;  %v3374_v44 = vpop.f32.mrb[234].mxu1  ;;  %4109 = vmatprep.mubr.bf16.mxu0 %v3608_v38 }
 0x477   : > { %v3375_v45 = vadd.f32 %v3374_v44, %v12439_v4  ;;  %v3376_v46 = vpop.f32.mrb[235].mxu1  ;;  %4110 = vmatmul.mubr.bf16.gmra.mrb[100].mxu0 %v3607_v36  ;;  %v3533_v48 = vmax.f32 %v3371_v39, 0.0 }
 0x478   : > { %v3377_v47 = vadd.f32 %v3376_v46, %v12443_v5  ;;  %v3534_v50 = vmax.f32 %v3373_v43, 0.0  ;;  %v11517_v43 = vld [vmem:[%s14559_s2 + $0x44] ss:$8 sps:$4 sm:$0xff]  }
 0x479   : > { %v3535_v49 = vmax.f32 %v3375_v45, 0.0 }
 0x47a   : > { %v3536_v51 = vmax.f32 %v3377_v47, 0.0 }
 0x47b   : > { %v3609_v52 = vpack.c.bf16 %v3535_v49, %v3533_v48 }
 0x47c   : > { %v3380_v28 = vpop.f32.mrb[236].mxu1  ;;  %v3610_v53 = vpack.c.bf16 %v3536_v51, %v3534_v50 }
 0x47d   : > { %v3381_v56 = vadd.f32 %v3380_v28, %v12439_v4  ;;  %v3382_v57 = vpop.f32.mrb[237].mxu1 }
 0x47e   : > { %v3383_v58 = vadd.f32 %v3382_v57, %v12443_v5  ;;  %v3384_v59 = vpop.f32.mrb[238].mxu1  ;;  %4119 = vmatprep.mubr.bf16.mxu0 %v3610_v53 }
 0x47f   : > { %v3385_v60 = vadd.f32 %v3384_v59, %v12439_v4  ;;  %v3386_v61 = vpop.f32.mrb[239].mxu1  ;;  %4120 = vmatmul.mubr.bf16.gmra.mrb[104].mxu0 %v3609_v52  ;;  %v3537_v2 = vmax.f32 %v3381_v56, 0.0 }
 0x480   : > { %v3387_v63 = vadd.f32 %v3386_v61, %v12443_v5  ;;  %v3538_v3 = vmax.f32 %v3383_v58, 0.0 }
 0x481   : > { %v3539_v40 = vmax.f32 %v3385_v60, 0.0 }
 0x482   : > { %v3540_v42 = vmax.f32 %v3387_v63, 0.0  ;;  %v3861_v6 = vpop.f32.mrb[0].mxu0 }
 0x483   : > { %v3611_v7 = vpack.c.bf16 %v3539_v40, %v3537_v2  ;;  %v3862_v8 = vadd.f32 %v3861_v6, %v12579_v62  ;;  %v3863_v9 = vpop.f32.mrb[1].mxu0 }
 0x484   : > { %v3864_v10 = vadd.f32 %v3863_v9, %v12583_v1  ;;  %v3390_v11 = vpop.f32.mrb[240].mxu1  ;;  %v3865_v12 = vpop.f32.mrb[2].mxu0  ;;  %v3612_v13 = vpack.c.bf16 %v3540_v42, %v3538_v3 }
 0x485   : > { %v3391_v14 = vadd.f32 %v3390_v11, %v12439_v4  ;;  %v3866_v15 = vadd.f32 %v3865_v12, %v12579_v62  ;;  %v3392_v54 = vpop.f32.mrb[241].mxu1  ;;  %v3867_v16 = vpop.f32.mrb[3].mxu0  ;;  %v4180_v19 = vmax.f32 %v3862_v8, 0.0 }
 0x486   : > { %v3393_v17 = vadd.f32 %v3392_v54, %v12443_v5  ;;  %v3868_v55 = vadd.f32 %v3867_v16, %v12583_v1  ;;  %v3394_v18 = vpop.f32.mrb[242].mxu1  ;;  %4129 = vmatprep.mubr.bf16.mxu0 %v3612_v13  ;;  %v4181_v24 = vmax.f32 %v3864_v10, 0.0 }
 0x487   : > { %v4182_v20 = vmax.f32 %v3866_v15, 0.0  ;;  %v3395_v21 = vadd.f32 %v3394_v18, %v12439_v4  ;;  %v3396_v22 = vpop.f32.mrb[243].mxu1  ;;  %4130 = vmatmul.mubr.bf16.gmra.mrb[108].mxu0 %v3611_v7  ;;  %v3541_v30 = vmax.f32 %v3391_v14, 0.0 }
 0x488   : > { %v4183_v26 = vmax.f32 %v3868_v55, 0.0  ;;  %v3397_v27 = vadd.f32 %v3396_v22, %v12443_v5  ;;  %v3542_v33 = vmax.f32 %v3393_v17, 0.0 }
 0x489   : > { %v4308_v31 = vpack.c.bf16 %v4182_v20, %v4180_v19  ;;  %v3543_v32 = vmax.f32 %v3395_v21, 0.0 }
 0x48a   : > { %v3544_v34 = vmax.f32 %v3397_v27, 0.0  ;;  %v3871_v35 = vpop.f32.mrb[4].mxu0  ;;  %v4309_v36 = vpack.c.bf16 %v4183_v26, %v4181_v24 }
 0x48b   : > { %v3613_v38 = vpack.c.bf16 %v3543_v32, %v3541_v30  ;;  %v3872_v39 = vadd.f32 %v3871_v35, %v12579_v62  ;;  %v3873_v41 = vpop.f32.mrb[5].mxu0 }
 0x48c   : > { %v3874_v44 = vadd.f32 %v3873_v41, %v12583_v1  ;;  %v3400_v45 = vpop.f32.mrb[244].mxu1  ;;  %v3875_v46 = vpop.f32.mrb[6].mxu0  ;;  %4606 = vmatprep.mubr.bf16.mxu1 %v4309_v36  ;;  %v3614_v47 = vpack.c.bf16 %v3544_v34, %v3542_v33 }
 0x48d   : > { %v3401_v48 = vadd.f32 %v3400_v45, %v12439_v4  ;;  %v3876_v49 = vadd.f32 %v3875_v46, %v12579_v62  ;;  %v3402_v50 = vpop.f32.mrb[245].mxu1  ;;  %v3877_v51 = vpop.f32.mrb[7].mxu0  ;;  %4607 = vmatmul.mubr.bf16.vlgmr.msra.gmra.mrb[0].mxu1 %v4308_v31  ;;  %v4184_v56 = vmax.f32 %v3872_v39, 0.0 }
 0x48e   : > { %v3403_v52 = vadd.f32 %v3402_v50, %v12443_v5  ;;  %v3878_v28 = vadd.f32 %v3877_v51, %v12583_v1  ;;  %4958 = vmatpush1.bf16.msra.mxu1 %v11512_v37  ;;  %v3404_v53 = vpop.f32.mrb[246].mxu1  ;;  %4139 = vmatprep.mubr.bf16.mxu0 %v3614_v47  ;;  %v4185_v60 = vmax.f32 %v3874_v44, 0.0 }
 0x48f   : > { %v4186_v57 = vmax.f32 %v3876_v49, 0.0  ;;  %v3405_v58 = vadd.f32 %v3404_v53, %v12439_v4  ;;  %v3406_v59 = vpop.f32.mrb[247].mxu1  ;;  %4140 = vmatmul.mubr.bf16.gmra.mrb[112].mxu0 %v3613_v38  ;;  %4959 = vmatprep.subr.bf16.mxu1 %v11517_v43  ;;  %v3545_v2 = vmax.f32 %v3401_v48, 0.0 }
 0x490   : > { %v4187_v61 = vmax.f32 %v3878_v28, 0.0  ;;  %v3407_v63 = vadd.f32 %v3406_v59, %v12443_v5  ;;  %v3546_v42 = vmax.f32 %v3403_v52, 0.0 }
 0x491   : > { %v4310_v40 = vpack.c.bf16 %v4186_v57, %v4184_v56  ;;  %v3547_v3 = vmax.f32 %v3405_v58, 0.0 }
 0x492   : > { %v3548_v6 = vmax.f32 %v3407_v63, 0.0  ;;  %v3881_v7 = vpop.f32.mrb[8].mxu0  ;;  %v4311_v8 = vpack.c.bf16 %v4187_v61, %v4185_v60  ;;  %4960 = vmatpush1.bf16.msra.mxu1 %v11515_v29 }
 0x493   : > { %v3615_v9 = vpack.c.bf16 %v3547_v3, %v3545_v2  ;;  %v3882_v10 = vadd.f32 %v3881_v7, %v12579_v62  ;;  %v3883_v11 = vpop.f32.mrb[9].mxu0 }
 0x494   : > { %v3884_v12 = vadd.f32 %v3883_v11, %v12583_v1  ;;  %v3410_v13 = vpop.f32.mrb[248].mxu1  ;;  %v3885_v14 = vpop.f32.mrb[10].mxu0  ;;  %4616 = vmatprep.mubr.bf16.mxu1 %v4311_v8  ;;  %v3616_v15 = vpack.c.bf16 %v3548_v6, %v3546_v42 }
 0x495   : > { %v3411_v54 = vadd.f32 %v3410_v13, %v12439_v4  ;;  %v3886_v16 = vadd.f32 %v3885_v14, %v12579_v62  ;;  %v3412_v17 = vpop.f32.mrb[249].mxu1  ;;  %v3887_v55 = vpop.f32.mrb[11].mxu0  ;;  %4617 = vmatmul.mubr.bf16.gmra.mrb[4].mxu1 %v4310_v40  ;;  %v4188_v21 = vmax.f32 %v3882_v10, 0.0 }
 0x496   : > { %v3413_v18 = vadd.f32 %v3412_v17, %v12443_v5  ;;  %v3888_v19 = vadd.f32 %v3887_v55, %v12583_v1  ;;  %v3414_v20 = vpop.f32.mrb[250].mxu1  ;;  %4149 = vmatprep.mubr.bf16.mxu0 %v3616_v15  ;;  %v4189_v27 = vmax.f32 %v3884_v12, 0.0 }
 0x497   : > { %v4190_v22 = vmax.f32 %v3886_v16, 0.0  ;;  %v3415_v24 = vadd.f32 %v3414_v20, %v12439_v4  ;;  %v3416_v26 = vpop.f32.mrb[251].mxu1  ;;  %4150 = vmatmul.mubr.bf16.gmra.mrb[116].mxu0 %v3615_v9  ;;  %v3549_v32 = vmax.f32 %v3411_v54, 0.0 }
 0x498   : > { %v4191_v30 = vmax.f32 %v3888_v19, 0.0  ;;  %v3417_v31 = vadd.f32 %v3416_v26, %v12443_v5  ;;  %v3550_v35 = vmax.f32 %v3413_v18, 0.0 }
 0x499   : > { %v4312_v33 = vpack.c.bf16 %v4190_v22, %v4188_v21  ;;  %v3551_v34 = vmax.f32 %v3415_v24, 0.0 }
 0x49a   : > { %v3552_v36 = vmax.f32 %v3417_v31, 0.0  ;;  %v3891_v37 = vpop.f32.mrb[12].mxu0  ;;  %v4313_v38 = vpack.c.bf16 %v4191_v30, %v4189_v27 }
 0x49b   : > { %v3617_v39 = vpack.c.bf16 %v3551_v34, %v3549_v32  ;;  %v3892_v41 = vadd.f32 %v3891_v37, %v12579_v62  ;;  %v3893_v43 = vpop.f32.mrb[13].mxu0 }
 0x49c   : > { %v3894_v44 = vadd.f32 %v3893_v43, %v12583_v1  ;;  %v3420_v45 = vpop.f32.mrb[252].mxu1  ;;  %v3895_v46 = vpop.f32.mrb[14].mxu0  ;;  %4626 = vmatprep.mubr.bf16.mxu1 %v4313_v38  ;;  %v3618_v47 = vpack.c.bf16 %v3552_v36, %v3550_v35 }
 0x49d   : > { %v3421_v48 = vadd.f32 %v3420_v45, %v12439_v4  ;;  %v3896_v49 = vadd.f32 %v3895_v46, %v12579_v62  ;;  %v3422_v50 = vpop.f32.mrb[253].mxu1  ;;  %v3897_v51 = vpop.f32.mrb[15].mxu0  ;;  %4627 = vmatmul.mubr.bf16.gmra.mrb[8].mxu1 %v4312_v33  ;;  %v4192_v29 = vmax.f32 %v3892_v41, 0.0 }
 0x49e   : > { %v3423_v52 = vadd.f32 %v3422_v50, %v12443_v5  ;;  %v3898_v28 = vadd.f32 %v3897_v51, %v12583_v1  ;;  %v3424_v53 = vpop.f32.mrb[254].mxu1  ;;  %4159 = vmatprep.mubr.bf16.mxu0 %v3618_v47  ;;  %v4193_v59 = vmax.f32 %v3894_v44, 0.0 }
 0x49f   : > { %v4194_v56 = vmax.f32 %v3896_v49, 0.0  ;;  %v3425_v57 = vadd.f32 %v3424_v53, %v12439_v4  ;;  %v3426_v58 = vpop.f32.mrb[255].mxu1  ;;  %4160 = vmatmul.mubr.bf16.gmra.mrb[120].mxu0 %v3617_v39  ;;  %v3553_v63 = vmax.f32 %v3421_v48, 0.0 }
 0x4a0   : > { %v4195_v60 = vmax.f32 %v3898_v28, 0.0  ;;  %v3427_v61 = vadd.f32 %v3426_v58, %v12443_v5  ;;  %v3554_v3 = vmax.f32 %v3423_v52, 0.0  ;;  %v11518_v52 = vld [vmem:[%s14559_s2 + $0x50] ss:$8 sps:$4 sm:$0xff]   ;;  %v11520_v28 = vld [vmem:[%s14559_s2 + $0x54] ss:$8 sps:$4 sm:$0xff]  }
 0x4a1   : > { %v4314_v2 = vpack.c.bf16 %v4194_v56, %v4192_v29  ;;  %v3555_v40 = vmax.f32 %v3425_v57, 0.0  ;;  %4961 = vmatprep.subr.bf16.mxu1 %v11520_v28 }
 0x4a2   : > { %v3556_v42 = vmax.f32 %v3427_v61, 0.0  ;;  %v3901_v6 = vpop.f32.mrb[16].mxu0  ;;  %v4315_v7 = vpack.c.bf16 %v4195_v60, %v4193_v59  ;;  %4962 = vmatpush1.bf16.msra.mxu1 %v11518_v52 }
 0x4a3   : > { %v3619_v8 = vpack.c.bf16 %v3555_v40, %v3553_v63  ;;  %v3902_v9 = vadd.f32 %v3901_v6, %v12579_v62  ;;  %v3903_v10 = vpop.f32.mrb[17].mxu0 }
 0x4a4   : > { %v3904_v11 = vadd.f32 %v3903_v10, %v12583_v1  ;;  %v3905_v4 = vpop.f32.mrb[18].mxu0  ;;  %4636 = vmatprep.mubr.bf16.mxu1 %v4315_v7  ;;  %v3620_v12 = vpack.c.bf16 %v3556_v42, %v3554_v3 }
 0x4a5   : > { %v3906_v13 = vadd.f32 %v3905_v4, %v12579_v62  ;;  %v3907_v14 = vpop.f32.mrb[19].mxu0  ;;  %4637 = vmatmul.mubr.bf16.gmra.mrb[12].mxu1 %v4314_v2  ;;  %v4196_v15 = vmax.f32 %v3902_v9, 0.0 }
 0x4a6   : > { %v3908_v5 = vadd.f32 %v3907_v14, %v12583_v1  ;;  %4169 = vmatprep.mubr.bf16.mxu0 %v3620_v12  ;;  %v4197_v16 = vmax.f32 %v3904_v11, 0.0 }
 0x4a7   : > { %v4198_v54 = vmax.f32 %v3906_v13, 0.0  ;;  %4170 = vmatmul.mubr.bf16.gmra.mrb[124].mxu0 %v3619_v8 }
 0x4a8   : > { %v4199_v17 = vmax.f32 %v3908_v5, 0.0 }
 0x4a9   : > { %v4316_v55 = vpack.c.bf16 %v4198_v54, %v4196_v15 }
 0x4aa   : > { %v3911_v18 = vpop.f32.mrb[20].mxu0  ;;  %v4317_v19 = vpack.c.bf16 %v4199_v17, %v4197_v16 }
 0x4ab   : > { %v3912_v20 = vadd.f32 %v3911_v18, %v12579_v62  ;;  %v3913_v21 = vpop.f32.mrb[21].mxu0 }
 0x4ac   : > { %v3914_v22 = vadd.f32 %v3913_v21, %v12583_v1  ;;  %v3915_v24 = vpop.f32.mrb[22].mxu0  ;;  %4646 = vmatprep.mubr.bf16.mxu1 %v4317_v19 }
 0x4ad   : > { %v3916_v26 = vadd.f32 %v3915_v24, %v12579_v62  ;;  %v3917_v27 = vpop.f32.mrb[23].mxu0  ;;  %4647 = vmatmul.mubr.bf16.gmra.mrb[16].mxu1 %v4316_v55  ;;  %v4200_v31 = vmax.f32 %v3912_v20, 0.0 }
 0x4ae   : > { %v3918_v30 = vadd.f32 %v3917_v27, %v12583_v1  ;;  %v4201_v33 = vmax.f32 %v3914_v22, 0.0 }
 0x4af   : > { %v4202_v32 = vmax.f32 %v3916_v26, 0.0 }
 0x4b0   : > { %v4203_v34 = vmax.f32 %v3918_v30, 0.0 }
 0x4b1   : > { %v4318_v35 = vpack.c.bf16 %v4202_v32, %v4200_v31 }
 0x4b2   : > { %v3921_v36 = vpop.f32.mrb[24].mxu0  ;;  %v4319_v37 = vpack.c.bf16 %v4203_v34, %v4201_v33 }
 0x4b3   : > { %v3922_v38 = vadd.f32 %v3921_v36, %v12579_v62  ;;  %v3923_v39 = vpop.f32.mrb[25].mxu0 }
 0x4b4   : > { %v3924_v41 = vadd.f32 %v3923_v39, %v12583_v1  ;;  %v3925_v43 = vpop.f32.mrb[26].mxu0  ;;  %4656 = vmatprep.mubr.bf16.mxu1 %v4319_v37 }
 0x4b5   : > { %v3926_v44 = vadd.f32 %v3925_v43, %v12579_v62  ;;  %v3927_v45 = vpop.f32.mrb[27].mxu0  ;;  %4657 = vmatmul.mubr.bf16.gmra.mrb[20].mxu1 %v4318_v35  ;;  %v4204_v47 = vmax.f32 %v3922_v38, 0.0 }
 0x4b6   : > { %v3928_v46 = vadd.f32 %v3927_v45, %v12583_v1  ;;  %v4205_v49 = vmax.f32 %v3924_v41, 0.0 }
 0x4b7   : > { %v4206_v48 = vmax.f32 %v3926_v44, 0.0 }
 0x4b8   : > { %v4207_v50 = vmax.f32 %v3928_v46, 0.0 }
 0x4b9   : > { %v4320_v51 = vpack.c.bf16 %v4206_v48, %v4204_v47 }
 0x4ba   : > { %v3931_v53 = vpop.f32.mrb[28].mxu0  ;;  %v4321_v29 = vpack.c.bf16 %v4207_v50, %v4205_v49 }
 0x4bb   : > { %v3932_v56 = vadd.f32 %v3931_v53, %v12579_v62  ;;  %v3933_v57 = vpop.f32.mrb[29].mxu0 }
 0x4bc   : > { %v3934_v58 = vadd.f32 %v3933_v57, %v12583_v1  ;;  %v3935_v59 = vpop.f32.mrb[30].mxu0  ;;  %4666 = vmatprep.mubr.bf16.mxu1 %v4321_v29 }
 0x4bd   : > { %v3936_v60 = vadd.f32 %v3935_v59, %v12579_v62  ;;  %v3937_v61 = vpop.f32.mrb[31].mxu0  ;;  %4667 = vmatmul.mubr.bf16.gmra.mrb[24].mxu1 %v4320_v51  ;;  %v4208_v2 = vmax.f32 %v3932_v56, 0.0 }
 0x4be   : > { %v3938_v63 = vadd.f32 %v3937_v61, %v12583_v1  ;;  %v4209_v3 = vmax.f32 %v3934_v58, 0.0 }
 0x4bf   : > { %v4210_v40 = vmax.f32 %v3936_v60, 0.0 }
 0x4c0   : > { %v4211_v42 = vmax.f32 %v3938_v63, 0.0 }
 0x4c1   : > { %v4322_v6 = vpack.c.bf16 %v4210_v40, %v4208_v2 }
 0x4c2   : > { %v3941_v7 = vpop.f32.mrb[32].mxu0  ;;  %v4323_v8 = vpack.c.bf16 %v4211_v42, %v4209_v3 }
 0x4c3   : > { %v3942_v9 = vadd.f32 %v3941_v7, %v12579_v62  ;;  %v3943_v10 = vpop.f32.mrb[33].mxu0 }
 0x4c4   : > { %v3944_v11 = vadd.f32 %v3943_v10, %v12583_v1  ;;  %v3945_v4 = vpop.f32.mrb[34].mxu0  ;;  %4676 = vmatprep.mubr.bf16.mxu1 %v4323_v8 }
 0x4c5   : > { %v3946_v12 = vadd.f32 %v3945_v4, %v12579_v62  ;;  %v3947_v13 = vpop.f32.mrb[35].mxu0  ;;  %4677 = vmatmul.mubr.bf16.gmra.mrb[28].mxu1 %v4322_v6  ;;  %v4212_v5 = vmax.f32 %v3942_v9, 0.0 }
 0x4c6   : > { %v3948_v14 = vadd.f32 %v3947_v13, %v12583_v1  ;;  %v4213_v54 = vmax.f32 %v3944_v11, 0.0 }
 0x4c7   : > { %v4214_v15 = vmax.f32 %v3946_v12, 0.0 }
 0x4c8   : > { %v4215_v16 = vmax.f32 %v3948_v14, 0.0 }
 0x4c9   : > { %v4324_v17 = vpack.c.bf16 %v4214_v15, %v4212_v5 }
 0x4ca   : > { %v3951_v55 = vpop.f32.mrb[36].mxu0  ;;  %v4325_v18 = vpack.c.bf16 %v4215_v16, %v4213_v54 }
 0x4cb   : > { %v3952_v19 = vadd.f32 %v3951_v55, %v12579_v62  ;;  %v3953_v20 = vpop.f32.mrb[37].mxu0 }
 0x4cc   : > { %v3954_v21 = vadd.f32 %v3953_v20, %v12583_v1  ;;  %v3955_v22 = vpop.f32.mrb[38].mxu0  ;;  %4686 = vmatprep.mubr.bf16.mxu1 %v4325_v18 }
 0x4cd   : > { %v3956_v24 = vadd.f32 %v3955_v22, %v12579_v62  ;;  %v3957_v26 = vpop.f32.mrb[39].mxu0  ;;  %4687 = vmatmul.mubr.bf16.gmra.mrb[32].mxu1 %v4324_v17  ;;  %v4216_v30 = vmax.f32 %v3952_v19, 0.0  ;;  %v11521_v22 = vld [vmem:[#allocation2 + $0x500] ss:$8 sps:$4 sm:$0xff]  }
 0x4ce   : > { %v3958_v27 = vadd.f32 %v3957_v26, %v12583_v1  ;;  %v4217_v32 = vmax.f32 %v3954_v21, 0.0 }
 0x4cf   : > { %v4218_v31 = vmax.f32 %v3956_v24, 0.0  ;;  %v11523_v24 = vld [vmem:[#allocation2 + $0x504] ss:$8 sps:$4 sm:$0xff]  }
 0x4d0   : > { %v4219_v33 = vmax.f32 %v3958_v27, 0.0  ;;  %5847 = vmatprep.subr.bf16.mxu0 %v11523_v24 }
 0x4d1   : > { %v4326_v34 = vpack.c.bf16 %v4218_v31, %v4216_v30  ;;  %5848 = vmatpush1.bf16.msra.mxu0 %v11521_v22 }
 0x4d2   : > { %v3961_v35 = vpop.f32.mrb[40].mxu0  ;;  %v4327_v36 = vpack.c.bf16 %v4219_v33, %v4217_v32 }
 0x4d3   : > { %v3962_v37 = vadd.f32 %v3961_v35, %v12579_v62  ;;  %v3963_v38 = vpop.f32.mrb[41].mxu0 }
 0x4d4   : > { %v3964_v39 = vadd.f32 %v3963_v38, %v12583_v1  ;;  %v3965_v41 = vpop.f32.mrb[42].mxu0  ;;  %4696 = vmatprep.mubr.bf16.mxu1 %v4327_v36 }
 0x4d5   : > { %v3966_v43 = vadd.f32 %v3965_v41, %v12579_v62  ;;  %v3967_v44 = vpop.f32.mrb[43].mxu0  ;;  %4697 = vmatmul.mubr.bf16.gmra.mrb[36].mxu1 %v4326_v34  ;;  %v4220_v46 = vmax.f32 %v3962_v37, 0.0 }
 0x4d6   : > { %v3968_v45 = vadd.f32 %v3967_v44, %v12583_v1  ;;  %v4221_v48 = vmax.f32 %v3964_v39, 0.0 }
 0x4d7   : > { %v4222_v47 = vmax.f32 %v3966_v43, 0.0 }
 0x4d8   : > { %v4223_v49 = vmax.f32 %v3968_v45, 0.0 }
 0x4d9   : > { %v4328_v50 = vpack.c.bf16 %v4222_v47, %v4220_v46 }
 0x4da   : > { %v3971_v51 = vpop.f32.mrb[44].mxu0  ;;  %v4329_v52 = vpack.c.bf16 %v4223_v49, %v4221_v48 }
 0x4db   : > { %v3972_v28 = vadd.f32 %v3971_v51, %v12579_v62  ;;  %v3973_v53 = vpop.f32.mrb[45].mxu0 }
 0x4dc   : > { %v3974_v29 = vadd.f32 %v3973_v53, %v12583_v1  ;;  %v3975_v56 = vpop.f32.mrb[46].mxu0  ;;  %4706 = vmatprep.mubr.bf16.mxu1 %v4329_v52 }
 0x4dd   : > { %v3976_v57 = vadd.f32 %v3975_v56, %v12579_v62  ;;  %v3977_v58 = vpop.f32.mrb[47].mxu0  ;;  %4707 = vmatmul.mubr.bf16.gmra.mrb[40].mxu1 %v4328_v50  ;;  %v4224_v60 = vmax.f32 %v3972_v28, 0.0 }
 0x4de   : > { %v3978_v59 = vadd.f32 %v3977_v58, %v12583_v1  ;;  %v4225_v63 = vmax.f32 %v3974_v29, 0.0  ;;  %v11524_v58 = vld [vmem:[#allocation2 + $0x510] ss:$8 sps:$4 sm:$0xff]  }
 0x4df   : > { %v4226_v61 = vmax.f32 %v3976_v57, 0.0 }
 0x4e0   : > { %v4227_v2 = vmax.f32 %v3978_v59, 0.0  ;;  %v11526_v59 = vld [vmem:[#allocation2 + $0x514] ss:$8 sps:$4 sm:$0xff]  }
 0x4e1   : > { %v4330_v40 = vpack.c.bf16 %v4226_v61, %v4224_v60  ;;  %5849 = vmatprep.subr.bf16.mxu0 %v11526_v59 }
 0x4e2   : > { %v3981_v3 = vpop.f32.mrb[48].mxu0  ;;  %v4331_v42 = vpack.c.bf16 %v4227_v2, %v4225_v63  ;;  %5850 = vmatpush1.bf16.msra.mxu0 %v11524_v58 }
 0x4e3   : > { %v3982_v6 = vadd.f32 %v3981_v3, %v12579_v62  ;;  %v3983_v7 = vpop.f32.mrb[49].mxu0 }
 0x4e4   : > { %v3984_v8 = vadd.f32 %v3983_v7, %v12583_v1  ;;  %v3985_v9 = vpop.f32.mrb[50].mxu0  ;;  %4716 = vmatprep.mubr.bf16.mxu1 %v4331_v42 }
 0x4e5   : > { %v3986_v10 = vadd.f32 %v3985_v9, %v12579_v62  ;;  %v3987_v11 = vpop.f32.mrb[51].mxu0  ;;  %4717 = vmatmul.mubr.bf16.gmra.mrb[44].mxu1 %v4330_v40  ;;  %v4228_v12 = vmax.f32 %v3982_v6, 0.0 }
 0x4e6   : > { %v3988_v4 = vadd.f32 %v3987_v11, %v12583_v1  ;;  %v4229_v14 = vmax.f32 %v3984_v8, 0.0 }
 0x4e7   : > { %v4230_v13 = vmax.f32 %v3986_v10, 0.0 }
 0x4e8   : > { %v4231_v5 = vmax.f32 %v3988_v4, 0.0 }
 0x4e9   : > { %v4332_v15 = vpack.c.bf16 %v4230_v13, %v4228_v12  ;;  %v11527_v12 = vld [vmem:[#allocation2 + $0x520] ss:$8 sps:$4 sm:$0xff]   ;;  %v11529_v13 = vld [vmem:[#allocation2 + $0x524] ss:$8 sps:$4 sm:$0xff]  }
 0x4ea   : > { %v3991_v54 = vpop.f32.mrb[52].mxu0  ;;  %v4333_v16 = vpack.c.bf16 %v4231_v5, %v4229_v14  ;;  %5851 = vmatprep.subr.bf16.mxu0 %v11529_v13  ;;  %v11533_v13 = vld [vmem:[#allocation2 + $0x540] ss:$8 sps:$4 sm:$0xff]  }
 0x4eb   : > { %v3992_v17 = vadd.f32 %v3991_v54, %v12579_v62  ;;  %v3993_v55 = vpop.f32.mrb[53].mxu0  ;;  %5852 = vmatpush1.bf16.msra.mxu0 %v11527_v12 }
 0x4ec   : > { %v3994_v18 = vadd.f32 %v3993_v55, %v12583_v1  ;;  %v3995_v19 = vpop.f32.mrb[54].mxu0  ;;  %4726 = vmatprep.mubr.bf16.mxu1 %v4333_v16 }
 0x4ed   : > { %v3996_v20 = vadd.f32 %v3995_v19, %v12579_v62  ;;  %v3997_v21 = vpop.f32.mrb[55].mxu0  ;;  %4727 = vmatmul.mubr.bf16.gmra.mrb[48].mxu1 %v4332_v15  ;;  %v4232_v27 = vmax.f32 %v3992_v17, 0.0 }
 0x4ee   : > { %v3998_v26 = vadd.f32 %v3997_v21, %v12583_v1  ;;  %v4233_v31 = vmax.f32 %v3994_v18, 0.0 }
 0x4ef   : > { %v4234_v30 = vmax.f32 %v3996_v20, 0.0 }
 0x4f0   : > { %v4235_v32 = vmax.f32 %v3998_v26, 0.0 }
 0x4f1   : > { %v4334_v33 = vpack.c.bf16 %v4234_v30, %v4232_v27 }
 0x4f2   : > { %v4001_v34 = vpop.f32.mrb[56].mxu0  ;;  %v4335_v35 = vpack.c.bf16 %v4235_v32, %v4233_v31 }
 0x4f3   : > { %v4002_v36 = vadd.f32 %v4001_v34, %v12579_v62  ;;  %v4003_v37 = vpop.f32.mrb[57].mxu0 }
 0x4f4   : > { %v4004_v38 = vadd.f32 %v4003_v37, %v12583_v1  ;;  %v4005_v39 = vpop.f32.mrb[58].mxu0  ;;  %4736 = vmatprep.mubr.bf16.mxu1 %v4335_v35 }
 0x4f5   : > { %v4006_v41 = vadd.f32 %v4005_v39, %v12579_v62  ;;  %v4007_v43 = vpop.f32.mrb[59].mxu0  ;;  %4737 = vmatmul.mubr.bf16.gmra.mrb[52].mxu1 %v4334_v33  ;;  %v4236_v45 = vmax.f32 %v4002_v36, 0.0 }
 0x4f6   : > { %v4008_v44 = vadd.f32 %v4007_v43, %v12583_v1  ;;  %v4237_v47 = vmax.f32 %v4004_v38, 0.0 }
 0x4f7   : > { %v4238_v46 = vmax.f32 %v4006_v41, 0.0 }
 0x4f8   : > { %v4239_v48 = vmax.f32 %v4008_v44, 0.0 }
 0x4f9   : > { %v4336_v49 = vpack.c.bf16 %v4238_v46, %v4236_v45  ;;  %v11530_v45 = vld [vmem:[#allocation2 + $0x530] ss:$8 sps:$4 sm:$0xff]   ;;  %v11532_v46 = vld [vmem:[#allocation2 + $0x534] ss:$8 sps:$4 sm:$0xff]  }
 0x4fa   : > { %v4011_v50 = vpop.f32.mrb[60].mxu0  ;;  %v4337_v51 = vpack.c.bf16 %v4239_v48, %v4237_v47  ;;  %5853 = vmatprep.subr.bf16.mxu0 %v11532_v46  ;;  %v11536_v46 = vld [vmem:[#allocation2 + $0x550] ss:$8 sps:$4 sm:$0xff]  }
 0x4fb   : > { %v4012_v52 = vadd.f32 %v4011_v50, %v12579_v62  ;;  %v4013_v28 = vpop.f32.mrb[61].mxu0  ;;  %5854 = vmatpush1.bf16.msra.mxu0 %v11530_v45 }
 0x4fc   : > { %v4014_v53 = vadd.f32 %v4013_v28, %v12583_v1  ;;  %v4015_v29 = vpop.f32.mrb[62].mxu0  ;;  %4746 = vmatprep.mubr.bf16.mxu1 %v4337_v51 }
 0x4fd   : > { %v4016_v56 = vadd.f32 %v4015_v29, %v12579_v62  ;;  %v4017_v57 = vpop.f32.mrb[63].mxu0  ;;  %4747 = vmatmul.mubr.bf16.gmra.mrb[56].mxu1 %v4336_v49  ;;  %v4240_v61 = vmax.f32 %v4012_v52, 0.0 }
 0x4fe   : > { %v4018_v60 = vadd.f32 %v4017_v57, %v12583_v1  ;;  %v4241_v2 = vmax.f32 %v4014_v53, 0.0 }
 0x4ff   : > { %v4242_v63 = vmax.f32 %v4016_v56, 0.0 }
 0x500   : > { %v4243_v40 = vmax.f32 %v4018_v60, 0.0 }
 0x501   : > { %v4338_v3 = vpack.c.bf16 %v4242_v63, %v4240_v61 }
 0x502   : > { %v4021_v42 = vpop.f32.mrb[64].mxu0  ;;  %v4339_v6 = vpack.c.bf16 %v4243_v40, %v4241_v2 }
 0x503   : > { %v4022_v7 = vadd.f32 %v4021_v42, %v12579_v62  ;;  %v4023_v8 = vpop.f32.mrb[65].mxu0 }
 0x504   : > { %v4024_v9 = vadd.f32 %v4023_v8, %v12583_v1  ;;  %v4025_v10 = vpop.f32.mrb[66].mxu0  ;;  %4756 = vmatprep.mubr.bf16.mxu1 %v4339_v6 }
 0x505   : > { %v4026_v11 = vadd.f32 %v4025_v10, %v12579_v62  ;;  %v4027_v4 = vpop.f32.mrb[67].mxu0  ;;  %4757 = vmatmul.mubr.bf16.gmra.mrb[60].mxu1 %v4338_v3  ;;  %v4244_v5 = vmax.f32 %v4022_v7, 0.0 }
 0x506   : > { %v4028_v14 = vadd.f32 %v4027_v4, %v12583_v1  ;;  %v4245_v54 = vmax.f32 %v4024_v9, 0.0 }
 0x507   : > { %v4246_v15 = vmax.f32 %v4026_v11, 0.0 }
 0x508   : > { %v4247_v16 = vmax.f32 %v4028_v14, 0.0  ;;  %v11535_v14 = vld [vmem:[#allocation2 + $0x544] ss:$8 sps:$4 sm:$0xff]  }
 0x509   : > { %v4340_v17 = vpack.c.bf16 %v4246_v15, %v4244_v5  ;;  %5855 = vmatprep.subr.bf16.mxu0 %v11535_v14  ;;  %v11539_v14 = vld [vmem:[#allocation2 + $0x560] ss:$8 sps:$4 sm:$0xff]  }
 0x50a   : > { %v4031_v55 = vpop.f32.mrb[68].mxu0  ;;  %v4341_v18 = vpack.c.bf16 %v4247_v16, %v4245_v54  ;;  %5856 = vmatpush1.bf16.msra.mxu0 %v11533_v13 }
 0x50b   : > { %v4032_v19 = vadd.f32 %v4031_v55, %v12579_v62  ;;  %v4033_v20 = vpop.f32.mrb[69].mxu0 }
 0x50c   : > { %v4034_v21 = vadd.f32 %v4033_v20, %v12583_v1  ;;  %v4035_v22 = vpop.f32.mrb[70].mxu0  ;;  %4766 = vmatprep.mubr.bf16.mxu1 %v4341_v18 }
 0x50d   : > { %v4036_v24 = vadd.f32 %v4035_v22, %v12579_v62  ;;  %v4037_v26 = vpop.f32.mrb[71].mxu0  ;;  %4767 = vmatmul.mubr.bf16.gmra.mrb[64].mxu1 %v4340_v17  ;;  %v4248_v30 = vmax.f32 %v4032_v19, 0.0 }
 0x50e   : > { %v4038_v27 = vadd.f32 %v4037_v26, %v12583_v1  ;;  %v4249_v32 = vmax.f32 %v4034_v21, 0.0 }
 0x50f   : > { %v4250_v31 = vmax.f32 %v4036_v24, 0.0 }
 0x510   : > { %v4251_v33 = vmax.f32 %v4038_v27, 0.0 }
 0x511   : > { %v4342_v34 = vpack.c.bf16 %v4250_v31, %v4248_v30 }
 0x512   : > { %v4041_v35 = vpop.f32.mrb[72].mxu0  ;;  %v4343_v36 = vpack.c.bf16 %v4251_v33, %v4249_v32 }
 0x513   : > { %v4042_v37 = vadd.f32 %v4041_v35, %v12579_v62  ;;  %v4043_v38 = vpop.f32.mrb[73].mxu0 }
 0x514   : > { %v4044_v39 = vadd.f32 %v4043_v38, %v12583_v1  ;;  %v4045_v41 = vpop.f32.mrb[74].mxu0  ;;  %4776 = vmatprep.mubr.bf16.mxu1 %v4343_v36 }
 0x515   : > { %v4046_v43 = vadd.f32 %v4045_v41, %v12579_v62  ;;  %v4047_v44 = vpop.f32.mrb[75].mxu0  ;;  %4777 = vmatmul.mubr.bf16.gmra.mrb[68].mxu1 %v4342_v34  ;;  %v4252_v48 = vmax.f32 %v4042_v37, 0.0 }
 0x516   : > { %v4048_v47 = vadd.f32 %v4047_v44, %v12583_v1  ;;  %v4253_v50 = vmax.f32 %v4044_v39, 0.0 }
 0x517   : > { %v4254_v49 = vmax.f32 %v4046_v43, 0.0 }
 0x518   : > { %v4255_v51 = vmax.f32 %v4048_v47, 0.0  ;;  %v11538_v47 = vld [vmem:[#allocation2 + $0x554] ss:$8 sps:$4 sm:$0xff]  }
 0x519   : > { %v4344_v52 = vpack.c.bf16 %v4254_v49, %v4252_v48  ;;  %5857 = vmatprep.subr.bf16.mxu0 %v11538_v47  ;;  %v11542_v47 = vld [vmem:[#allocation2 + $0x570] ss:$8 sps:$4 sm:$0xff]  }
 0x51a   : > { %v4051_v28 = vpop.f32.mrb[76].mxu0  ;;  %v4345_v53 = vpack.c.bf16 %v4255_v51, %v4253_v50  ;;  %5858 = vmatpush1.bf16.msra.mxu0 %v11536_v46 }
 0x51b   : > { %v4052_v29 = vadd.f32 %v4051_v28, %v12579_v62  ;;  %v4053_v56 = vpop.f32.mrb[77].mxu0 }
 0x51c   : > { %v4054_v57 = vadd.f32 %v4053_v56, %v12583_v1  ;;  %v4055_v58 = vpop.f32.mrb[78].mxu0  ;;  %4786 = vmatprep.mubr.bf16.mxu1 %v4345_v53 }
 0x51d   : > { %v4056_v59 = vadd.f32 %v4055_v58, %v12579_v62  ;;  %v4057_v60 = vpop.f32.mrb[79].mxu0  ;;  %4787 = vmatmul.mubr.bf16.gmra.mrb[72].mxu1 %v4344_v52  ;;  %v4256_v63 = vmax.f32 %v4052_v29, 0.0 }
 0x51e   : > { %v4058_v61 = vadd.f32 %v4057_v60, %v12583_v1  ;;  %v4257_v40 = vmax.f32 %v4054_v57, 0.0 }
 0x51f   : > { %v4258_v2 = vmax.f32 %v4056_v59, 0.0 }
 0x520   : > { %v4259_v3 = vmax.f32 %v4058_v61, 0.0 }
 0x521   : > { %v4346_v42 = vpack.c.bf16 %v4258_v2, %v4256_v63 }
 0x522   : > { %v4061_v6 = vpop.f32.mrb[80].mxu0  ;;  %v4347_v7 = vpack.c.bf16 %v4259_v3, %v4257_v40 }
 0x523   : > { %v4062_v8 = vadd.f32 %v4061_v6, %v12579_v62  ;;  %v4063_v9 = vpop.f32.mrb[81].mxu0 }
 0x524   : > { %v4064_v10 = vadd.f32 %v4063_v9, %v12583_v1  ;;  %v4065_v11 = vpop.f32.mrb[82].mxu0  ;;  %4796 = vmatprep.mubr.bf16.mxu1 %v4347_v7 }
 0x525   : > { %v4066_v4 = vadd.f32 %v4065_v11, %v12579_v62  ;;  %v4067_v12 = vpop.f32.mrb[83].mxu0  ;;  %4797 = vmatmul.mubr.bf16.gmra.mrb[76].mxu1 %v4346_v42  ;;  %v4260_v15 = vmax.f32 %v4062_v8, 0.0 }
 0x526   : > { %v4068_v5 = vadd.f32 %v4067_v12, %v12583_v1  ;;  %v4261_v16 = vmax.f32 %v4064_v10, 0.0 }
 0x527   : > { %v4262_v54 = vmax.f32 %v4066_v4, 0.0 }
 0x528   : > { %v4263_v17 = vmax.f32 %v4068_v5, 0.0  ;;  %v11541_v5 = vld [vmem:[#allocation2 + $0x564] ss:$8 sps:$4 sm:$0xff]  }
 0x529   : > { %v4348_v55 = vpack.c.bf16 %v4262_v54, %v4260_v15  ;;  %5859 = vmatprep.subr.bf16.mxu0 %v11541_v5  ;;  %v11545_v5 = vld [vmem:[#allocation2 + $0x580] ss:$8 sps:$4 sm:$0xff]  }
 0x52a   : > { %v4071_v18 = vpop.f32.mrb[84].mxu0  ;;  %v4349_v19 = vpack.c.bf16 %v4263_v17, %v4261_v16  ;;  %5860 = vmatpush1.bf16.msra.mxu0 %v11539_v14 }
 0x52b   : > { %v4072_v20 = vadd.f32 %v4071_v18, %v12579_v62  ;;  %v4073_v21 = vpop.f32.mrb[85].mxu0 }
 0x52c   : > { %v4074_v22 = vadd.f32 %v4073_v21, %v12583_v1  ;;  %v4075_v24 = vpop.f32.mrb[86].mxu0  ;;  %4806 = vmatprep.mubr.bf16.mxu1 %v4349_v19 }
 0x52d   : > { %v4076_v26 = vadd.f32 %v4075_v24, %v12579_v62  ;;  %v4077_v27 = vpop.f32.mrb[87].mxu0  ;;  %4807 = vmatmul.mubr.bf16.gmra.mrb[80].mxu1 %v4348_v55  ;;  %v4264_v31 = vmax.f32 %v4072_v20, 0.0 }
 0x52e   : > { %v4078_v30 = vadd.f32 %v4077_v27, %v12583_v1  ;;  %v4265_v33 = vmax.f32 %v4074_v22, 0.0 }
 0x52f   : > { %v4266_v32 = vmax.f32 %v4076_v26, 0.0 }
 0x530   : > { %v4267_v34 = vmax.f32 %v4078_v30, 0.0 }
 0x531   : > { %v4350_v35 = vpack.c.bf16 %v4266_v32, %v4264_v31 }
 0x532   : > { %v4081_v36 = vpop.f32.mrb[88].mxu0  ;;  %v4351_v37 = vpack.c.bf16 %v4267_v34, %v4265_v33 }
 0x533   : > { %v4082_v38 = vadd.f32 %v4081_v36, %v12579_v62  ;;  %v4083_v39 = vpop.f32.mrb[89].mxu0 }
 0x534   : > { %v4084_v41 = vadd.f32 %v4083_v39, %v12583_v1  ;;  %v4085_v43 = vpop.f32.mrb[90].mxu0  ;;  %4816 = vmatprep.mubr.bf16.mxu1 %v4351_v37 }
 0x535   : > { %v4086_v44 = vadd.f32 %v4085_v43, %v12579_v62  ;;  %v4087_v45 = vpop.f32.mrb[91].mxu0  ;;  %4817 = vmatmul.mubr.bf16.gmra.mrb[84].mxu1 %v4350_v35  ;;  %v4268_v49 = vmax.f32 %v4082_v38, 0.0 }
 0x536   : > { %v4088_v48 = vadd.f32 %v4087_v45, %v12583_v1  ;;  %v4269_v51 = vmax.f32 %v4084_v41, 0.0 }
 0x537   : > { %v4270_v50 = vmax.f32 %v4086_v44, 0.0 }
 0x538   : > { %v4271_v52 = vmax.f32 %v4088_v48, 0.0  ;;  %v11544_v48 = vld [vmem:[#allocation2 + $0x574] ss:$8 sps:$4 sm:$0xff]  }
 0x539   : > { %v4352_v28 = vpack.c.bf16 %v4270_v50, %v4268_v49  ;;  %5861 = vmatprep.subr.bf16.mxu0 %v11544_v48  ;;  %v11548_v48 = vld [vmem:[#allocation2 + $0x590] ss:$8 sps:$4 sm:$0xff]  }
 0x53a   : > { %v4091_v53 = vpop.f32.mrb[92].mxu0  ;;  %v4353_v29 = vpack.c.bf16 %v4271_v52, %v4269_v51  ;;  %5862 = vmatpush1.bf16.msra.mxu0 %v11542_v47 }
 0x53b   : > { %v4092_v56 = vadd.f32 %v4091_v53, %v12579_v62  ;;  %v4093_v57 = vpop.f32.mrb[93].mxu0 }
 0x53c   : > { %v4094_v58 = vadd.f32 %v4093_v57, %v12583_v1  ;;  %v4095_v59 = vpop.f32.mrb[94].mxu0  ;;  %4826 = vmatprep.mubr.bf16.mxu1 %v4353_v29 }
 0x53d   : > { %v4096_v60 = vadd.f32 %v4095_v59, %v12579_v62  ;;  %v4097_v61 = vpop.f32.mrb[95].mxu0  ;;  %4827 = vmatmul.mubr.bf16.gmra.mrb[88].mxu1 %v4352_v28  ;;  %v4272_v2 = vmax.f32 %v4092_v56, 0.0 }
 0x53e   : > { %v4098_v63 = vadd.f32 %v4097_v61, %v12583_v1  ;;  %v4273_v3 = vmax.f32 %v4094_v58, 0.0 }
 0x53f   : > { %v4274_v40 = vmax.f32 %v4096_v60, 0.0 }
 0x540   : > { %v4275_v42 = vmax.f32 %v4098_v63, 0.0 }
 0x541   : > { %v4354_v6 = vpack.c.bf16 %v4274_v40, %v4272_v2 }
 0x542   : > { %v4101_v7 = vpop.f32.mrb[96].mxu0  ;;  %v4355_v8 = vpack.c.bf16 %v4275_v42, %v4273_v3 }
 0x543   : > { %v4102_v9 = vadd.f32 %v4101_v7, %v12579_v62  ;;  %v4103_v10 = vpop.f32.mrb[97].mxu0 }
 0x544   : > { %v4104_v11 = vadd.f32 %v4103_v10, %v12583_v1  ;;  %v4105_v4 = vpop.f32.mrb[98].mxu0  ;;  %4836 = vmatprep.mubr.bf16.mxu1 %v4355_v8 }
 0x545   : > { %v4106_v12 = vadd.f32 %v4105_v4, %v12579_v62  ;;  %v4107_v13 = vpop.f32.mrb[99].mxu0  ;;  %4837 = vmatmul.mubr.bf16.gmra.mrb[92].mxu1 %v4354_v6  ;;  %v4276_v54 = vmax.f32 %v4102_v9, 0.0 }
 0x546   : > { %v4108_v15 = vadd.f32 %v4107_v13, %v12583_v1  ;;  %v4277_v17 = vmax.f32 %v4104_v11, 0.0 }
 0x547   : > { %v4278_v16 = vmax.f32 %v4106_v12, 0.0 }
 0x548   : > { %v4279_v55 = vmax.f32 %v4108_v15, 0.0  ;;  %v11547_v15 = vld [vmem:[#allocation2 + $0x584] ss:$8 sps:$4 sm:$0xff]  }
 0x549   : > { %v4356_v18 = vpack.c.bf16 %v4278_v16, %v4276_v54  ;;  %5863 = vmatprep.subr.bf16.mxu0 %v11547_v15  ;;  %v11559_v15 = vld [vmem:[#allocation2 + $0x5c4] ss:$8 sps:$4 sm:$0xff]  }
 0x54a   : > { %v4111_v19 = vpop.f32.mrb[100].mxu0  ;;  %v4357_v20 = vpack.c.bf16 %v4279_v55, %v4277_v17  ;;  %5864 = vmatpush1.bf16.msra.mxu0 %v11545_v5  ;;  %v11557_v5 = vld [vmem:[#allocation2 + $0x5c0] ss:$8 sps:$4 sm:$0xff]  }
 0x54b   : > { %v4112_v21 = vadd.f32 %v4111_v19, %v12579_v62  ;;  %v4113_v22 = vpop.f32.mrb[101].mxu0 }
 0x54c   : > { %v4114_v24 = vadd.f32 %v4113_v22, %v12583_v1  ;;  %v4115_v26 = vpop.f32.mrb[102].mxu0  ;;  %4846 = vmatprep.mubr.bf16.mxu1 %v4357_v20 }
 0x54d   : > { %v4116_v27 = vadd.f32 %v4115_v26, %v12579_v62  ;;  %v4117_v30 = vpop.f32.mrb[103].mxu0  ;;  %4847 = vmatmul.mubr.bf16.gmra.mrb[96].mxu1 %v4356_v18  ;;  %v4280_v32 = vmax.f32 %v4112_v21, 0.0 }
 0x54e   : > { %v4118_v31 = vadd.f32 %v4117_v30, %v12583_v1  ;;  %v4281_v34 = vmax.f32 %v4114_v24, 0.0 }
 0x54f   : > { %v4282_v33 = vmax.f32 %v4116_v27, 0.0 }
 0x550   : > { %v4283_v35 = vmax.f32 %v4118_v31, 0.0 }
 0x551   : > { %v4358_v36 = vpack.c.bf16 %v4282_v33, %v4280_v32 }
 0x552   : > { %v4121_v37 = vpop.f32.mrb[104].mxu0  ;;  %v4359_v38 = vpack.c.bf16 %v4283_v35, %v4281_v34 }
 0x553   : > { %v4122_v39 = vadd.f32 %v4121_v37, %v12579_v62  ;;  %v4123_v41 = vpop.f32.mrb[105].mxu0 }
 0x554   : > { %v4124_v43 = vadd.f32 %v4123_v41, %v12583_v1  ;;  %v4125_v44 = vpop.f32.mrb[106].mxu0  ;;  %4856 = vmatprep.mubr.bf16.mxu1 %v4359_v38 }
 0x555   : > { %v4126_v45 = vadd.f32 %v4125_v44, %v12579_v62  ;;  %v4127_v46 = vpop.f32.mrb[107].mxu0  ;;  %4857 = vmatmul.mubr.bf16.gmra.mrb[100].mxu1 %v4358_v36  ;;  %v4284_v50 = vmax.f32 %v4122_v39, 0.0 }
 0x556   : > { %v4128_v49 = vadd.f32 %v4127_v46, %v12583_v1  ;;  %v4285_v52 = vmax.f32 %v4124_v43, 0.0 }
 0x557   : > { %v4286_v51 = vmax.f32 %v4126_v45, 0.0 }
 0x558   : > { %v4287_v28 = vmax.f32 %v4128_v49, 0.0  ;;  %v11550_v49 = vld [vmem:[#allocation2 + $0x594] ss:$8 sps:$4 sm:$0xff]  }
 0x559   : > { %v4360_v53 = vpack.c.bf16 %v4286_v51, %v4284_v50  ;;  %5865 = vmatprep.subr.bf16.mxu0 %v11550_v49  ;;  %v10304_v49 = vld [vmem:[%s14561_s4 + $0xa] sm:$0x3] }
 0x55a   : > { %v4131_v29 = vpop.f32.mrb[108].mxu0  ;;  %v4361_v56 = vpack.c.bf16 %v4287_v28, %v4285_v52  ;;  %5866 = vmatpush1.bf16.msra.mxu0 %v11548_v48  ;;  %v11747_v48 = vld [vmem:[%s11934_s17 + $0xc8] sm:$0xff]  }
 0x55b   : > { %v4132_v57 = vadd.f32 %v4131_v29, %v12579_v62  ;;  %v4133_v58 = vpop.f32.mrb[109].mxu0 }
 0x55c   : > { %v4134_v59 = vadd.f32 %v4133_v58, %v12583_v1  ;;  %v4135_v60 = vpop.f32.mrb[110].mxu0  ;;  %4866 = vmatprep.mubr.bf16.mxu1 %v4361_v56 }
 0x55d   : > { %v4136_v61 = vadd.f32 %v4135_v60, %v12579_v62  ;;  %v4137_v63 = vpop.f32.mrb[111].mxu0  ;;  %4867 = vmatmul.mubr.bf16.gmra.mrb[104].mxu1 %v4360_v53  ;;  %v4288_v40 = vmax.f32 %v4132_v57, 0.0 }
 0x55e   : > { %v4138_v2 = vadd.f32 %v4137_v63, %v12583_v1  ;;  %v4289_v42 = vmax.f32 %v4134_v59, 0.0 }
 0x55f   : > { %v4290_v3 = vmax.f32 %v4136_v61, 0.0 }
 0x560   : > { %v4291_v6 = vmax.f32 %v4138_v2, 0.0 }
 0x561   : > { %v4362_v7 = vpack.c.bf16 %v4290_v3, %v4288_v40 }
 0x562   : > { %v4141_v8 = vpop.f32.mrb[112].mxu0  ;;  %v4363_v9 = vpack.c.bf16 %v4291_v6, %v4289_v42 }
 0x563   : > { %v4142_v10 = vadd.f32 %v4141_v8, %v12579_v62  ;;  %v4143_v11 = vpop.f32.mrb[113].mxu0 }
 0x564   : > { %v4144_v4 = vadd.f32 %v4143_v11, %v12583_v1  ;;  %v4145_v12 = vpop.f32.mrb[114].mxu0  ;;  %4876 = vmatprep.mubr.bf16.mxu1 %v4363_v9  ;;  %v11553_v11 = vld [vmem:[#allocation2 + $0x5a4] ss:$8 sps:$4 sm:$0xff]  }
 0x565   : > { %v4146_v13 = vadd.f32 %v4145_v12, %v12579_v62  ;;  %v4147_v14 = vpop.f32.mrb[115].mxu0  ;;  %4877 = vmatmul.mubr.bf16.gmra.mrb[108].mxu1 %v4362_v7  ;;  %v4292_v16 = vmax.f32 %v4142_v10, 0.0  ;;  %v11551_v10 = vld [vmem:[#allocation2 + $0x5a0] ss:$8 sps:$4 sm:$0xff]   ;;  %5867 = vmatprep.subr.bf16.mxu0 %v11553_v11  ;;  %v11556_v12 = vld [vmem:[#allocation2 + $0x5b4] ss:$8 sps:$4 sm:$0xff]  }
 0x566   : > { %v4148_v54 = vadd.f32 %v4147_v14, %v12583_v1  ;;  %v4293_v55 = vmax.f32 %v4144_v4, 0.0  ;;  %5868 = vmatpush1.bf16.msra.mxu0 %v11551_v10  ;;  %v11554_v4 = vld [vmem:[#allocation2 + $0x5b0] ss:$8 sps:$4 sm:$0xff]   ;;  %v11574_v11 = vld [vmem:[#allocation2 + $0x614] ss:$8 sps:$4 sm:$0xff]  }
 0x567   : > { %v4294_v17 = vmax.f32 %v4146_v13, 0.0  ;;  %5869 = vmatprep.subr.bf16.mxu0 %v11556_v12  ;;  %v11724_v13 = vld [vmem:[%s11934_s17 + $0x10] sm:$0xff]   ;;  %v11725_v14 = vld [vmem:[%s11934_s17 + $0x18] sm:$0xff]  }
 0x568   : > { %v4295_v18 = vmax.f32 %v4148_v54, 0.0  ;;  %v11726_v54 = vld [vmem:[%s11934_s17 + $0x20] sm:$0xff]  }
 0x569   : > { %v4364_v19 = vpack.c.bf16 %v4294_v17, %v4292_v16  ;;  %v11727_v16 = vld [vmem:[%s11934_s17 + $0x28] sm:$0xff]   ;;  %v11560_v17 = vld [vmem:[#allocation2 + $0x5d0] ss:$8 sps:$4 sm:$0xff]  }
 0x56a   : > { %v4151_v20 = vpop.f32.mrb[116].mxu0  ;;  %v4365_v21 = vpack.c.bf16 %v4295_v18, %v4293_v55  ;;  %5870 = vmatpush1.bf16.msra.mxu0 %v11554_v4  ;;  %v11562_v55 = vld [vmem:[#allocation2 + $0x5d4] ss:$8 sps:$4 sm:$0xff]  }
 0x56b   : > { %v4152_v22 = vadd.f32 %v4151_v20, %v12579_v62  ;;  %v4153_v24 = vpop.f32.mrb[117].mxu0  ;;  %5871 = vmatprep.subr.bf16.mxu0 %v11559_v15  ;;  %v11728_v18 = vld [vmem:[%s11934_s17 + $0x30] sm:$0xff]   ;;  %v11563_v20 = vld [vmem:[#allocation2 + $0x5e0] ss:$8 sps:$4 sm:$0xff]  }
 0x56c   : > { %v4154_v26 = vadd.f32 %v4153_v24, %v12583_v1  ;;  %v4155_v27 = vpop.f32.mrb[118].mxu0  ;;  %4886 = vmatprep.mubr.bf16.mxu1 %v4365_v21  ;;  %v11565_v21 = vld [vmem:[#allocation2 + $0x5e4] ss:$8 sps:$4 sm:$0xff]  }
 0x56d   : > { %v4156_v30 = vadd.f32 %v4155_v27, %v12579_v62  ;;  %v4157_v31 = vpop.f32.mrb[119].mxu0  ;;  %4887 = vmatmul.mubr.bf16.gmra.mrb[112].mxu1 %v4364_v19  ;;  %v4296_v33 = vmax.f32 %v4152_v22, 0.0  ;;  %v11729_v19 = vld [vmem:[%s11934_s17 + $0x38] sm:$0xff]   ;;  %v11730_v22 = vld [vmem:[%s11934_s17 + $0x40] sm:$0xff]   ;;  %v11731_v24 = vld [vmem:[%s11934_s17 + $0x48] sm:$0xff]  }
 0x56e   : > { %v4158_v32 = vadd.f32 %v4157_v31, %v12583_v1  ;;  %v4297_v35 = vmax.f32 %v4154_v26, 0.0  ;;  %5872 = vmatpush1.bf16.msra.mxu0 %v11557_v5  ;;  %v11566_v26 = vld [vmem:[#allocation2 + $0x5f0] ss:$8 sps:$4 sm:$0xff]   ;;  %v11568_v27 = vld [vmem:[#allocation2 + $0x5f4] ss:$8 sps:$4 sm:$0xff]  }
 0x56f   : > { %v4298_v34 = vmax.f32 %v4156_v30, 0.0  ;;  %5873 = vmatprep.subr.bf16.mxu0 %v11562_v55  ;;  %v11732_v30 = vld [vmem:[%s11934_s17 + $0x50] sm:$0xff]   ;;  %v11733_v31 = vld [vmem:[%s11934_s17 + $0x58] sm:$0xff]  }
 0x570   : > { %v4299_v36 = vmax.f32 %v4158_v32, 0.0  ;;  %v11734_v32 = vld [vmem:[%s11934_s17 + $0x60] sm:$0xff]  }
 0x571   : > { %v4366_v37 = vpack.c.bf16 %v4298_v34, %v4296_v33  ;;  %v11571_v33 = vld [vmem:[#allocation2 + $0x604] ss:$8 sps:$4 sm:$0xff]  }
 0x572   : > { %v4161_v38 = vpop.f32.mrb[120].mxu0  ;;  %v4367_v39 = vpack.c.bf16 %v4299_v36, %v4297_v35  ;;  %5874 = vmatpush1.bf16.msra.mxu0 %v11560_v17  ;;  %v11735_v34 = vld [vmem:[%s11934_s17 + $0x68] sm:$0xff]   ;;  %v11736_v35 = vld [vmem:[%s11934_s17 + $0x70] sm:$0xff]   ;;  %v11737_v36 = vld [vmem:[%s11934_s17 + $0x78] sm:$0xff]  }
 0x573   : > { %v4162_v41 = vadd.f32 %v4161_v38, %v12579_v62  ;;  %v4163_v43 = vpop.f32.mrb[121].mxu0  ;;  %5875 = vmatprep.subr.bf16.mxu0 %v11565_v21  ;;  %v11739_v38 = vld [vmem:[%s11934_s17 + $0x88] sm:$0xff]  }
 0x574   : > { %v4164_v44 = vadd.f32 %v4163_v43, %v12583_v1  ;;  %v4165_v45 = vpop.f32.mrb[122].mxu0  ;;  %4896 = vmatprep.mubr.bf16.mxu1 %v4367_v39  ;;  %v11740_v39 = vld [vmem:[%s11934_s17 + $0x90] sm:$0xff]   ;;  %v11742_v43 = vld [vmem:[%s11934_s17 + $0xa0] sm:$0xff]  }
 0x575   : > { %v4166_v46 = vadd.f32 %v4165_v45, %v12579_v62  ;;  %v4167_v47 = vpop.f32.mrb[123].mxu0  ;;  %4897 = vmatmul.mubr.bf16.gmra.mrb[116].mxu1 %v4366_v37  ;;  %v4300_v51 = vmax.f32 %v4162_v41, 0.0  ;;  %v11738_v37 = vld [vmem:[%s11934_s17 + $0x80] sm:$0xff]   ;;  %v11741_v41 = vld [vmem:[%s11934_s17 + $0x98] sm:$0xff]   ;;  %v11744_v45 = vld [vmem:[%s11934_s17 + $0xb0] sm:$0xff]  }
 0x576   : > { %v4168_v50 = vadd.f32 %v4167_v47, %v12583_v1  ;;  %v4301_v28 = vmax.f32 %v4164_v44, 0.0  ;;  %5876 = vmatpush1.bf16.msra.mxu0 %v11563_v20  ;;  %v11743_v44 = vld [vmem:[%s11934_s17 + $0xa8] sm:$0xff]   ;;  %v11746_v47 = vld [vmem:[%s11934_s17 + $0xc0] sm:$0xff]  }
 0x577   : > { %v4302_v52 = vmax.f32 %v4166_v46, 0.0  ;;  %5877 = vmatprep.subr.bf16.mxu0 %v11568_v27  ;;  %v11745_v46 = vld [vmem:[%s11934_s17 + $0xb8] sm:$0xff]   ;;  %v11575_v21 = vld [vmem:[#allocation2 + $0x620] ss:$8 sps:$4 sm:$0xff]  }
 0x578   : > { %v4303_v53 = vmax.f32 %v4168_v50, 0.0  ;;  %v11748_v50 = vld [vmem:[%s11934_s17 + $0xd0] sm:$0xff]  }
 0x579   : > { %v4368_v29 = vpack.c.bf16 %v4302_v52, %v4300_v51  ;;  %v12829_v51 = vrot.slane %v10304_v49, %v12021_v23  ;;  %v12832_v52 = vrot.slane %v10304_v49, %v12026_v25  ;;  %v11586_v49 = vld [vmem:[#allocation2 + $0x654] ss:$8 sps:$4 sm:$0xff]  }
 0x57a   : > { %v4171_v56 = vpop.f32.mrb[124].mxu0  ;;  %v4369_v57 = vpack.c.bf16 %v4303_v53, %v4301_v28  ;;  %5878 = vmatpush1.bf16.msra.mxu0 %v11566_v26  ;;  %v11580_v26 = vld [vmem:[#allocation2 + $0x634] ss:$8 sps:$4 sm:$0xff]  }
 0x57b   : > { %v4172_v58 = vadd.f32 %v4171_v56, %v12579_v62  ;;  %v4173_v59 = vpop.f32.mrb[125].mxu0  ;;  %6598 = vmatprep.subr.bf16.mxu0 %v11571_v33 }
 0x57c   : > { %v4174_v60 = vadd.f32 %v4173_v59, %v12583_v1  ;;  %v4175_v61 = vpop.f32.mrb[126].mxu0  ;;  %4906 = vmatprep.mubr.bf16.mxu1 %v4369_v57 }
 0x57d   : > { %v4176_v63 = vadd.f32 %v4175_v61, %v12579_v62  ;;  %v4177_v2 = vpop.f32.mrb[127].mxu0  ;;  %4907 = vmatmul.mubr.bf16.gmra.mrb[120].mxu1 %v4368_v29  ;;  %v4304_v3 = vmax.f32 %v4172_v58, 0.0  ;;  %v11722_v62 = vld [vmem:[%s11934_s17] sm:$0xff]  }
 0x57e   : > { %v4178_v40 = vadd.f32 %v4177_v2, %v12583_v1  ;;  %v4305_v6 = vmax.f32 %v4174_v60, 0.0  ;;  %v11723_v1 = vld [vmem:[%s11934_s17 + $0x8] sm:$0xff]   ;;  %v11749_v2 = vld [vmem:[%s11934_s17 + $0xd8] sm:$0xff]  }
 0x57f   : > { %v4306_v42 = vmax.f32 %v4176_v63, 0.0 }
 0x580   : > { %v4307_v7 = vmax.f32 %v4178_v40, 0.0 }
 0x581   : > { %v4370_v8 = vpack.c.bf16 %v4306_v42, %v4304_v3 }
 0x582   : > { %v4371_v9 = vpack.c.bf16 %v4307_v7, %v4305_v6 }
 0x584   : > { %4916 = vmatprep.mubr.bf16.mxu1 %v4371_v9 }
 0x585   : > { %4917 = vmatmul.mubr.bf16.gmra.mrb[124].mxu1 %v4370_v8  ;;  %v11569_v8 = vld [vmem:[#allocation2 + $0x600] ss:$8 sps:$4 sm:$0xff]  }
 0x586   : > { %4989 = vmatprep.mubr.bf16.mxu1 %v11797_v0 }
 0x58d   : > { %10349 = vmatmul.mubr.msk.bf16.vlgmr.msra.gmra.mrb[0].mxu1 %vm727_vm0, %v11722_v62 }
 0x58e   : > { %4999 = vmatprep.mubr.bf16.mxu1 %v11797_v0 }
 0x595   : > { %10350 = vmatmul.mubr.msk.bf16.gmra.mrb[4].mxu1 %vm727_vm0, %v11723_v1 }
 0x596   : > { %5009 = vmatprep.mubr.bf16.mxu1 %v11797_v0 }
 0x59d   : > { %10351 = vmatmul.mubr.msk.bf16.gmra.mrb[8].mxu1 %vm727_vm0, %v11724_v13 }
 0x59e   : > { %5019 = vmatprep.mubr.bf16.mxu1 %v11797_v0 }
 0x5a5   : > { %10352 = vmatmul.mubr.msk.bf16.gmra.mrb[12].mxu1 %vm727_vm0, %v11725_v14  ;;  %v11572_v14 = vld [vmem:[#allocation2 + $0x610] ss:$8 sps:$4 sm:$0xff]  }
 0x5a6   : > { %5029 = vmatprep.mubr.bf16.mxu1 %v11797_v0 }
 0x5ad   : > { %10353 = vmatmul.mubr.msk.bf16.gmra.mrb[16].mxu1 %vm727_vm0, %v11726_v54  ;;  %v11750_v54 = vld [vmem:[%s11934_s17 + $0xe0] sm:$0xff]  }
 0x5ae   : > { %5039 = vmatprep.mubr.bf16.mxu1 %v11797_v0 }
 0x5b5   : > { %10354 = vmatmul.mubr.msk.bf16.gmra.mrb[20].mxu1 %vm727_vm0, %v11727_v16  ;;  %v11577_v16 = vld [vmem:[#allocation2 + $0x624] ss:$8 sps:$4 sm:$0xff]  }
 0x5b6   : > { %5049 = vmatprep.mubr.bf16.mxu1 %v11797_v0 }
 0x5bd   : > { %10355 = vmatmul.mubr.msk.bf16.gmra.mrb[24].mxu1 %vm727_vm0, %v11728_v18 }
 0x5be   : > { %5059 = vmatprep.mubr.bf16.mxu1 %v11797_v0 }
 0x5c5   : > { %10356 = vmatmul.mubr.msk.bf16.gmra.mrb[28].mxu1 %vm727_vm0, %v11729_v19 }
 0x5c6   : > { %5069 = vmatprep.mubr.bf16.mxu1 %v11797_v0 }
 0x5cd   : > { %10357 = vmatmul.mubr.msk.bf16.gmra.mrb[32].mxu1 %vm727_vm0, %v11730_v22 }
 0x5ce   : > { %5079 = vmatprep.mubr.bf16.mxu1 %v11797_v0 }
 0x5d5   : > { %10358 = vmatmul.mubr.msk.bf16.gmra.mrb[36].mxu1 %vm727_vm0, %v11731_v24 }
 0x5d6   : > { %5089 = vmatprep.mubr.bf16.mxu1 %v11797_v0 }
 0x5dd   : > { %10359 = vmatmul.mubr.msk.bf16.gmra.mrb[40].mxu1 %vm727_vm0, %v11732_v30 }
 0x5de   : > { %5099 = vmatprep.mubr.bf16.mxu1 %v11797_v0 }
 0x5e5   : > { %10360 = vmatmul.mubr.msk.bf16.gmra.mrb[44].mxu1 %vm727_vm0, %v11733_v31 }
 0x5e6   : > { %5109 = vmatprep.mubr.bf16.mxu1 %v11797_v0 }
 0x5ed   : > { %10361 = vmatmul.mubr.msk.bf16.gmra.mrb[48].mxu1 %vm727_vm0, %v11734_v32 }
 0x5ee   : > { %5119 = vmatprep.mubr.bf16.mxu1 %v11797_v0 }
 0x5f5   : > { %10362 = vmatmul.mubr.msk.bf16.gmra.mrb[52].mxu1 %vm727_vm0, %v11735_v34  ;;  %v11578_v34 = vld [vmem:[#allocation2 + $0x630] ss:$8 sps:$4 sm:$0xff]  }
 0x5f6   : > { %5129 = vmatprep.mubr.bf16.mxu1 %v11797_v0 }
 0x5fd   : > { %10363 = vmatmul.mubr.msk.bf16.gmra.mrb[56].mxu1 %vm727_vm0, %v11736_v35 }
 0x5fe   : > { %5139 = vmatprep.mubr.bf16.mxu1 %v11797_v0 }
 0x605   : > { %10364 = vmatmul.mubr.msk.bf16.gmra.mrb[60].mxu1 %vm727_vm0, %v11737_v36 }
 0x606   : > { %5149 = vmatprep.mubr.bf16.mxu1 %v11797_v0 }
 0x60d   : > { %10365 = vmatmul.mubr.msk.bf16.gmra.mrb[64].mxu1 %vm727_vm0, %v11738_v37  ;;  %v11751_v37 = vld [vmem:[%s11934_s17 + $0xe8] sm:$0xff]  }
 0x60e   : > { %5159 = vmatprep.mubr.bf16.mxu1 %v11797_v0 }
 0x615   : > { %10366 = vmatmul.mubr.msk.bf16.gmra.mrb[68].mxu1 %vm727_vm0, %v11739_v38  ;;  %v11583_v38 = vld [vmem:[#allocation2 + $0x644] ss:$8 sps:$4 sm:$0xff]  }
 0x616   : > { %5169 = vmatprep.mubr.bf16.mxu1 %v11797_v0 }
 0x61d   : > { %10367 = vmatmul.mubr.msk.bf16.gmra.mrb[72].mxu1 %vm727_vm0, %v11740_v39 }
 0x61e   : > { %5179 = vmatprep.mubr.bf16.mxu1 %v11797_v0 }
 0x625   : > { %10368 = vmatmul.mubr.msk.bf16.gmra.mrb[76].mxu1 %vm727_vm0, %v11741_v41 }
 0x626   : > { %5189 = vmatprep.mubr.bf16.mxu1 %v11797_v0 }
 0x62d   : > { %10369 = vmatmul.mubr.msk.bf16.gmra.mrb[80].mxu1 %vm727_vm0, %v11742_v43 }
 0x62e   : > { %5199 = vmatprep.mubr.bf16.mxu1 %v11797_v0 }
 0x635   : > { %10370 = vmatmul.mubr.msk.bf16.gmra.mrb[84].mxu1 %vm727_vm0, %v11743_v44 }
 0x636   : > { %5209 = vmatprep.mubr.bf16.mxu1 %v11797_v0 }
 0x63d   : > { %10371 = vmatmul.mubr.msk.bf16.gmra.mrb[88].mxu1 %vm727_vm0, %v11744_v45 }
 0x63e   : > { %5219 = vmatprep.mubr.bf16.mxu1 %v11797_v0 }
 0x645   : > { %10372 = vmatmul.mubr.msk.bf16.gmra.mrb[92].mxu1 %vm727_vm0, %v11745_v46  ;;  %v11581_v46 = vld [vmem:[#allocation2 + $0x640] ss:$8 sps:$4 sm:$0xff]  }
 0x646   : > { %5229 = vmatprep.mubr.bf16.mxu1 %v11797_v0 }
 0x64d   : > { %10373 = vmatmul.mubr.msk.bf16.gmra.mrb[96].mxu1 %vm727_vm0, %v11746_v47 }
 0x64e   : > { %5239 = vmatprep.mubr.bf16.mxu1 %v11797_v0 }
 0x655   : > { %10374 = vmatmul.mubr.msk.bf16.gmra.mrb[100].mxu1 %vm727_vm0, %v11747_v48 }
 0x656   : > { %5249 = vmatprep.mubr.bf16.mxu1 %v11797_v0 }
 0x65d   : > { %10375 = vmatmul.mubr.msk.bf16.gmra.mrb[104].mxu1 %vm727_vm0, %v11748_v50 }
 0x65e   : > { %5259 = vmatprep.mubr.bf16.mxu1 %v11797_v0 }
 0x660   : > { %v4991_v28 = vpop.f32.mrb[0].mxu1 }
 0x661   : > { %v5321_v53 = vadd.f32 %v12829_v51, %v4991_v28  ;;  %v4993_v29 = vpop.f32.mrb[1].mxu1 }
 0x662   : > { %v5322_v56 = vadd.f32 %v12832_v52, %v4993_v29  ;;  %v4995_v57 = vpop.f32.mrb[2].mxu1 }
 0x663   : > { %v5323_v58 = vadd.f32 %v12829_v51, %v4995_v57  ;;  %v4997_v59 = vpop.f32.mrb[3].mxu1  ;;  %v5449_v61 = vmax.f32 %v5321_v53, 0.0  ;;  %v11584_v57 = vld [vmem:[#allocation2 + $0x650] ss:$8 sps:$4 sm:$0xff]  }
 0x664   : > { %v5324_v60 = vadd.f32 %v12832_v52, %v4997_v59  ;;  %v5450_v40 = vmax.f32 %v5322_v56, 0.0 }
 0x665   : > { %v5451_v63 = vmax.f32 %v5323_v58, 0.0  ;;  %10376 = vmatmul.mubr.msk.bf16.gmra.mrb[108].mxu1 %vm727_vm0, %v11749_v2 }
 0x666   : > { %v5452_v3 = vmax.f32 %v5324_v60, 0.0  ;;  %5269 = vmatprep.mubr.bf16.mxu1 %v11797_v0  ;;  %v11752_v60 = vld [vmem:[%s11934_s17 + $0xf0] sm:$0xff]  }
 0x667   : > { %v5577_v42 = vpack.c.bf16 %v5451_v63, %v5449_v61  ;;  %v11589_v61 = vld [vmem:[#allocation2 + $0x664] ss:$8 sps:$4 sm:$0xff]  }
 0x668   : > { %v5001_v6 = vpop.f32.mrb[4].mxu1  ;;  %v5578_v7 = vpack.c.bf16 %v5452_v3, %v5450_v40 }
 0x669   : > { %v5325_v9 = vadd.f32 %v12829_v51, %v5001_v6  ;;  %v5003_v10 = vpop.f32.mrb[5].mxu1  ;;  %v11587_v6 = vld [vmem:[#allocation2 + $0x660] ss:$8 sps:$4 sm:$0xff]  }
 0x66a   : > { %v5326_v62 = vadd.f32 %v12832_v52, %v5003_v10  ;;  %v5005_v1 = vpop.f32.mrb[6].mxu1  ;;  %5879 = vmatprep.mubr.bf16.mxu0 %v5578_v7 }
 0x66b   : > { %v5327_v4 = vadd.f32 %v12829_v51, %v5005_v1  ;;  %v5007_v12 = vpop.f32.mrb[7].mxu1  ;;  %5880 = vmatmul.mubr.bf16.vlgmr.msra.gmra.mrb[128].mxu0 %v5577_v42  ;;  %v5453_v5 = vmax.f32 %v5325_v9, 0.0  ;;  %v11592_v9 = vld [vmem:[#allocation2 + $0x674] ss:$8 sps:$4 sm:$0xff]  }
 0x66c   : > { %v5328_v13 = vadd.f32 %v12832_v52, %v5007_v12  ;;  %6599 = vmatpush1.bf16.msra.mxu0 %v11569_v8  ;;  %v5454_v17 = vmax.f32 %v5326_v62, 0.0 }
 0x66d   : > { %v5455_v15 = vmax.f32 %v5327_v4, 0.0  ;;  %10377 = vmatmul.mubr.msk.bf16.gmra.mrb[112].mxu1 %vm727_vm0, %v11750_v54  ;;  %6600 = vmatprep.subr.bf16.mxu0 %v11574_v11  ;;  %v11590_v4 = vld [vmem:[#allocation2 + $0x670] ss:$8 sps:$4 sm:$0xff]  }
 0x66e   : > { %v5456_v55 = vmax.f32 %v5328_v13, 0.0  ;;  %5279 = vmatprep.mubr.bf16.mxu1 %v11797_v0 }
 0x66f   : > { %v5579_v18 = vpack.c.bf16 %v5455_v15, %v5453_v5  ;;  %v11595_v5 = vld [vmem:[#allocation2 + $0x684] ss:$8 sps:$4 sm:$0xff]  }
 0x670   : > { %v5011_v19 = vpop.f32.mrb[8].mxu1  ;;  %v5580_v20 = vpack.c.bf16 %v5456_v55, %v5454_v17  ;;  %6601 = vmatpush1.bf16.msra.mxu0 %v11572_v14  ;;  %v11753_v14 = vld [vmem:[%s11934_s17 + $0xf8] sm:$0xff]  }
 0x671   : > { %v5329_v22 = vadd.f32 %v12829_v51, %v5011_v19  ;;  %v5013_v24 = vpop.f32.mrb[9].mxu1  ;;  %6602 = vmatprep.subr.bf16.mxu0 %v11577_v16 }
 0x672   : > { %v5330_v27 = vadd.f32 %v12832_v52, %v5013_v24  ;;  %v5015_v30 = vpop.f32.mrb[10].mxu1  ;;  %5889 = vmatprep.mubr.bf16.mxu0 %v5580_v20 }
 0x673   : > { %v5331_v31 = vadd.f32 %v12829_v51, %v5015_v30  ;;  %v5017_v32 = vpop.f32.mrb[11].mxu1  ;;  %5890 = vmatmul.mubr.bf16.gmra.mrb[132].mxu0 %v5579_v18  ;;  %v5457_v35 = vmax.f32 %v5329_v22, 0.0  ;;  %v11593_v18 = vld [vmem:[#allocation2 + $0x680] ss:$8 sps:$4 sm:$0xff]  }
 0x674   : > { %v5332_v33 = vadd.f32 %v12832_v52, %v5017_v32  ;;  %6603 = vmatpush1.bf16.msra.mxu0 %v11575_v21  ;;  %v5458_v39 = vmax.f32 %v5330_v27, 0.0  ;;  %v11598_v21 = vld [vmem:[#allocation2 + $0x694] ss:$8 sps:$4 sm:$0xff]  }
 0x675   : > { %v5459_v36 = vmax.f32 %v5331_v31, 0.0  ;;  %10378 = vmatmul.mubr.msk.bf16.gmra.mrb[116].mxu1 %vm727_vm0, %v11751_v37  ;;  %6604 = vmatprep.subr.bf16.mxu0 %v11580_v26  ;;  %v11596_v31 = vld [vmem:[#allocation2 + $0x690] ss:$8 sps:$4 sm:$0xff]   ;;  %v11601_v37 = vld [vmem:[#allocation2 + $0x6a4] ss:$8 sps:$4 sm:$0xff]  }
 0x676   : > { %v5460_v41 = vmax.f32 %v5332_v33, 0.0  ;;  %5289 = vmatprep.mubr.bf16.mxu1 %v11797_v0 }
 0x677   : > { %v5581_v43 = vpack.c.bf16 %v5459_v36, %v5457_v35 }
 0x678   : > { %v5021_v44 = vpop.f32.mrb[12].mxu1  ;;  %v5582_v45 = vpack.c.bf16 %v5460_v41, %v5458_v39  ;;  %6605 = vmatpush1.bf16.msra.mxu0 %v11578_v34  ;;  %v11599_v41 = vld [vmem:[#allocation2 + $0x6a0] ss:$8 sps:$4 sm:$0xff]  }
 0x679   : > { %v5333_v47 = vadd.f32 %v12829_v51, %v5021_v44  ;;  %v5023_v48 = vpop.f32.mrb[13].mxu1  ;;  %6606 = vmatprep.subr.bf16.mxu0 %v11583_v38 }
 0x67a   : > { %v5334_v50 = vadd.f32 %v12832_v52, %v5023_v48  ;;  %v5025_v28 = vpop.f32.mrb[14].mxu1  ;;  %5899 = vmatprep.mubr.bf16.mxu0 %v5582_v45 }
 0x67b   : > { %v5335_v53 = vadd.f32 %v12829_v51, %v5025_v28  ;;  %v5027_v29 = vpop.f32.mrb[15].mxu1  ;;  %5900 = vmatmul.mubr.bf16.gmra.mrb[136].mxu0 %v5581_v43  ;;  %v5461_v58 = vmax.f32 %v5333_v47, 0.0 }
 0x67c   : > { %v5336_v56 = vadd.f32 %v12832_v52, %v5027_v29  ;;  %6607 = vmatpush1.bf16.msra.mxu0 %v11581_v46  ;;  %v5462_v63 = vmax.f32 %v5334_v50, 0.0 }
 0x67d   : > { %v5463_v59 = vmax.f32 %v5335_v53, 0.0  ;;  %10379 = vmatmul.mubr.msk.bf16.gmra.mrb[120].mxu1 %vm727_vm0, %v11752_v60  ;;  %6608 = vmatprep.subr.bf16.mxu0 %v11586_v49 }
 0x67e   : > { %v5464_v2 = vmax.f32 %v5336_v56, 0.0  ;;  %5299 = vmatprep.mubr.bf16.mxu1 %v11797_v0 }
 0x67f   : > { %v5583_v40 = vpack.c.bf16 %v5463_v59, %v5461_v58 }
 0x680   : > { %v5031_v3 = vpop.f32.mrb[16].mxu1  ;;  %v5584_v42 = vpack.c.bf16 %v5464_v2, %v5462_v63  ;;  %6609 = vmatpush1.bf16.msra.mxu0 %v11584_v57 }
 0x681   : > { %v5337_v7 = vadd.f32 %v12829_v51, %v5031_v3  ;;  %v5033_v8 = vpop.f32.mrb[17].mxu1  ;;  %6610 = vmatprep.subr.bf16.mxu0 %v11589_v61 }
 0x682   : > { %v5338_v10 = vadd.f32 %v12832_v52, %v5033_v8  ;;  %v5035_v11 = vpop.f32.mrb[18].mxu1  ;;  %5909 = vmatprep.mubr.bf16.mxu0 %v5584_v42 }
 0x683   : > { %v5339_v62 = vadd.f32 %v12829_v51, %v5035_v11  ;;  %v5037_v1 = vpop.f32.mrb[19].mxu1  ;;  %5910 = vmatmul.mubr.bf16.gmra.mrb[140].mxu0 %v5583_v40  ;;  %v5465_v12 = vmax.f32 %v5337_v7, 0.0  ;;  %v11604_v11 = vld [vmem:[#allocation2 + $0x6b4] ss:$8 sps:$4 sm:$0xff]  }
 0x684   : > { %v5340_v0 = vadd.f32 %v12832_v52, %v5037_v1  ;;  %6611 = vmatpush1.bf16.msra.mxu0 %v11587_v6  ;;  %v5466_v15 = vmax.f32 %v5338_v10, 0.0  ;;  %v11602_v10 = vld [vmem:[#allocation2 + $0x6b0] ss:$8 sps:$4 sm:$0xff]  }
 0x685   : > { %v5467_v13 = vmax.f32 %v5339_v62, 0.0  ;;  %10380 = vmatmul.mubr.msk.bf16.gmra.mrb[124].mxu1 %vm727_vm0, %v11753_v14  ;;  %6612 = vmatprep.subr.bf16.mxu0 %v11592_v9 }
 0x686   : > { %v5468_v54 = vmax.f32 %v5340_v0, 0.0 }
 0x687   : > { %v5585_v16 = vpack.c.bf16 %v5467_v13, %v5465_v12 }
 0x688   : > { %v5041_v17 = vpop.f32.mrb[20].mxu1  ;;  %v5586_v55 = vpack.c.bf16 %v5468_v54, %v5466_v15  ;;  %6613 = vmatpush1.bf16.msra.mxu0 %v11590_v4 }
 0x689   : > { %v5341_v19 = vadd.f32 %v12829_v51, %v5041_v17  ;;  %v5043_v20 = vpop.f32.mrb[21].mxu1  ;;  %6614 = vmatprep.subr.bf16.mxu0 %v11595_v5 }
 0x68a   : > { %v5342_v22 = vadd.f32 %v12832_v52, %v5043_v20  ;;  %v5045_v24 = vpop.f32.mrb[22].mxu1  ;;  %5919 = vmatprep.mubr.bf16.mxu0 %v5586_v55 }
 0x68b   : > { %v5343_v26 = vadd.f32 %v12829_v51, %v5045_v24  ;;  %v5047_v27 = vpop.f32.mrb[23].mxu1  ;;  %5920 = vmatmul.mubr.bf16.gmra.mrb[144].mxu0 %v5585_v16  ;;  %v5469_v32 = vmax.f32 %v5341_v19, 0.0 }
 0x68c   : > { %v5344_v30 = vadd.f32 %v12832_v52, %v5047_v27  ;;  %6615 = vmatpush1.bf16.msra.mxu0 %v11593_v18  ;;  %v5470_v34 = vmax.f32 %v5342_v22, 0.0 }
 0x68d   : > { %v5471_v33 = vmax.f32 %v5343_v26, 0.0  ;;  %6616 = vmatprep.subr.bf16.mxu0 %v11598_v21 }
 0x68e   : > { %v5472_v35 = vmax.f32 %v5344_v30, 0.0 }
 0x68f   : > { %v5587_v36 = vpack.c.bf16 %v5471_v33, %v5469_v32 }
 0x690   : > { %v5051_v38 = vpop.f32.mrb[24].mxu1  ;;  %v5588_v39 = vpack.c.bf16 %v5472_v35, %v5470_v34  ;;  %6617 = vmatpush1.bf16.msra.mxu0 %v11596_v31 }
 0x691   : > { %v5345_v43 = vadd.f32 %v12829_v51, %v5051_v38  ;;  %v5053_v44 = vpop.f32.mrb[25].mxu1  ;;  %6618 = vmatprep.subr.bf16.mxu0 %v11601_v37  ;;  %v11605_v37 = vld [vmem:[#allocation2 + $0x6c0] ss:$8 sps:$4 sm:$0xff]   ;;  %v11607_v38 = vld [vmem:[#allocation2 + $0x6c4] ss:$8 sps:$4 sm:$0xff]  }
 0x692   : > { %v5346_v45 = vadd.f32 %v12832_v52, %v5053_v44  ;;  %v5055_v46 = vpop.f32.mrb[26].mxu1  ;;  %5929 = vmatprep.mubr.bf16.mxu0 %v5588_v39 }
 0x693   : > { %v5347_v47 = vadd.f32 %v12829_v51, %v5055_v46  ;;  %v5057_v48 = vpop.f32.mrb[27].mxu1  ;;  %5930 = vmatmul.mubr.bf16.gmra.mrb[148].mxu0 %v5587_v36  ;;  %v5473_v50 = vmax.f32 %v5345_v43, 0.0 }
 0x694   : > { %v5348_v49 = vadd.f32 %v12832_v52, %v5057_v48  ;;  %6619 = vmatpush1.bf16.msra.mxu0 %v11599_v41  ;;  %v5474_v53 = vmax.f32 %v5346_v45, 0.0 }
 0x695   : > { %v5475_v28 = vmax.f32 %v5347_v47, 0.0  ;;  %6620 = vmatprep.subr.bf16.mxu0 %v11604_v11  ;;  %v11610_v11 = vld [vmem:[#allocation2 + $0x6d4] ss:$8 sps:$4 sm:$0xff]  }
 0x696   : > { %v5476_v29 = vmax.f32 %v5348_v49, 0.0 }
 0x697   : > { %v5589_v56 = vpack.c.bf16 %v5475_v28, %v5473_v50 }
 0x698   : > { %v5061_v57 = vpop.f32.mrb[28].mxu1  ;;  %v5590_v58 = vpack.c.bf16 %v5476_v29, %v5474_v53  ;;  %6621 = vmatpush1.bf16.msra.mxu0 %v11602_v10  ;;  %v11608_v10 = vld [vmem:[#allocation2 + $0x6d0] ss:$8 sps:$4 sm:$0xff]  }
 0x699   : > { %v5349_v59 = vadd.f32 %v12829_v51, %v5061_v57  ;;  %v5063_v60 = vpop.f32.mrb[29].mxu1  ;;  %6622 = vmatprep.subr.bf16.mxu0 %v11607_v38  ;;  %v11613_v38 = vld [vmem:[#allocation2 + $0x6e4] ss:$8 sps:$4 sm:$0xff]  }
 0x69a   : > { %v5350_v61 = vadd.f32 %v12832_v52, %v5063_v60  ;;  %v5065_v63 = vpop.f32.mrb[30].mxu1  ;;  %5939 = vmatprep.mubr.bf16.mxu0 %v5590_v58 }
 0x69b   : > { %v5351_v2 = vadd.f32 %v12829_v51, %v5065_v63  ;;  %v5067_v40 = vpop.f32.mrb[31].mxu1  ;;  %5940 = vmatmul.mubr.bf16.gmra.mrb[152].mxu0 %v5589_v56  ;;  %v5477_v42 = vmax.f32 %v5349_v59, 0.0 }
 0x69c   : > { %v5352_v3 = vadd.f32 %v12832_v52, %v5067_v40  ;;  %v5478_v7 = vmax.f32 %v5350_v61, 0.0  ;;  %6623 = vmatpush1.bf16.msra.mxu0 %v11605_v37  ;;  %v11611_v37 = vld [vmem:[#allocation2 + $0x6e0] ss:$8 sps:$4 sm:$0xff]  }
 0x69d   : > { %v5479_v6 = vmax.f32 %v5351_v2, 0.0  ;;  %6624 = vmatprep.subr.bf16.mxu0 %v11610_v11  ;;  %v11616_v11 = vld [vmem:[#allocation2 + $0x6f4] ss:$8 sps:$4 sm:$0xff]  }
 0x69e   : > { %v5480_v8 = vmax.f32 %v5352_v3, 0.0 }
 0x69f   : > { %v5591_v9 = vpack.c.bf16 %v5479_v6, %v5477_v42 }
 0x6a0   : > { %v5071_v62 = vpop.f32.mrb[32].mxu1  ;;  %v5592_v1 = vpack.c.bf16 %v5480_v8, %v5478_v7  ;;  %6625 = vmatpush1.bf16.msra.mxu0 %v11608_v10  ;;  %v11614_v10 = vld [vmem:[#allocation2 + $0x6f0] ss:$8 sps:$4 sm:$0xff]  }
 0x6a1   : > { %v5353_v0 = vadd.f32 %v12829_v51, %v5071_v62  ;;  %v5073_v4 = vpop.f32.mrb[33].mxu1  ;;  %6626 = vmatprep.subr.bf16.mxu0 %v11613_v38 }
 0x6a2   : > { %v5354_v12 = vadd.f32 %v12832_v52, %v5073_v4  ;;  %v5075_v13 = vpop.f32.mrb[34].mxu1  ;;  %5949 = vmatprep.mubr.bf16.mxu0 %v5592_v1 }
 0x6a3   : > { %v5355_v14 = vadd.f32 %v12829_v51, %v5075_v13  ;;  %v5077_v5 = vpop.f32.mrb[35].mxu1  ;;  %5950 = vmatmul.mubr.bf16.gmra.mrb[156].mxu0 %v5591_v9  ;;  %v5481_v54 = vmax.f32 %v5353_v0, 0.0 }
 0x6a4   : > { %v5356_v15 = vadd.f32 %v12832_v52, %v5077_v5  ;;  %v5482_v17 = vmax.f32 %v5354_v12, 0.0  ;;  %6627 = vmatpush1.bf16.msra.mxu0 %v11611_v37 }
 0x6a5   : > { %v5483_v16 = vmax.f32 %v5355_v14, 0.0  ;;  %6628 = vmatprep.subr.bf16.mxu0 %v11616_v11 }
 0x6a6   : > { %v5484_v55 = vmax.f32 %v5356_v15, 0.0 }
 0x6a7   : > { %v5593_v18 = vpack.c.bf16 %v5483_v16, %v5481_v54 }
 0x6a8   : > { %v5081_v19 = vpop.f32.mrb[36].mxu1  ;;  %v5594_v20 = vpack.c.bf16 %v5484_v55, %v5482_v17  ;;  %6629 = vmatpush1.bf16.msra.mxu0 %v11614_v10 }
 0x6a9   : > { %v5357_v21 = vadd.f32 %v12829_v51, %v5081_v19  ;;  %v5083_v22 = vpop.f32.mrb[37].mxu1 }
 0x6aa   : > { %v5358_v24 = vadd.f32 %v12832_v52, %v5083_v22  ;;  %v5085_v26 = vpop.f32.mrb[38].mxu1  ;;  %5959 = vmatprep.mubr.bf16.mxu0 %v5594_v20 }
 0x6ab   : > { %v5359_v27 = vadd.f32 %v12829_v51, %v5085_v26  ;;  %v5087_v30 = vpop.f32.mrb[39].mxu1  ;;  %5960 = vmatmul.mubr.bf16.gmra.mrb[160].mxu0 %v5593_v18  ;;  %v5485_v32 = vmax.f32 %v5357_v21, 0.0 }
 0x6ac   : > { %v5360_v31 = vadd.f32 %v12832_v52, %v5087_v30  ;;  %v5486_v34 = vmax.f32 %v5358_v24, 0.0 }
 0x6ad   : > { %v5487_v33 = vmax.f32 %v5359_v27, 0.0 }
 0x6ae   : > { %v5488_v35 = vmax.f32 %v5360_v31, 0.0 }
 0x6af   : > { %v5595_v36 = vpack.c.bf16 %v5487_v33, %v5485_v32 }
 0x6b0   : > { %v5091_v39 = vpop.f32.mrb[40].mxu1  ;;  %v5596_v41 = vpack.c.bf16 %v5488_v35, %v5486_v34 }
 0x6b1   : > { %v5361_v43 = vadd.f32 %v12829_v51, %v5091_v39  ;;  %v5093_v44 = vpop.f32.mrb[41].mxu1 }
 0x6b2   : > { %v5362_v45 = vadd.f32 %v12832_v52, %v5093_v44  ;;  %v5095_v46 = vpop.f32.mrb[42].mxu1  ;;  %5969 = vmatprep.mubr.bf16.mxu0 %v5596_v41 }
 0x6b3   : > { %v5363_v47 = vadd.f32 %v12829_v51, %v5095_v46  ;;  %v5097_v48 = vpop.f32.mrb[43].mxu1  ;;  %5970 = vmatmul.mubr.bf16.gmra.mrb[164].mxu0 %v5595_v36  ;;  %v5489_v50 = vmax.f32 %v5361_v43, 0.0 }
 0x6b4   : > { %v5364_v49 = vadd.f32 %v12832_v52, %v5097_v48  ;;  %v5490_v53 = vmax.f32 %v5362_v45, 0.0 }
 0x6b5   : > { %v5491_v28 = vmax.f32 %v5363_v47, 0.0 }
 0x6b6   : > { %v5492_v29 = vmax.f32 %v5364_v49, 0.0 }
 0x6b7   : > { %v5597_v56 = vpack.c.bf16 %v5491_v28, %v5489_v50 }
 0x6b8   : > { %v5101_v57 = vpop.f32.mrb[44].mxu1  ;;  %v5598_v58 = vpack.c.bf16 %v5492_v29, %v5490_v53 }
 0x6b9   : > { %v5365_v59 = vadd.f32 %v12829_v51, %v5101_v57  ;;  %v5103_v60 = vpop.f32.mrb[45].mxu1 }
 0x6ba   : > { %v5366_v61 = vadd.f32 %v12832_v52, %v5103_v60  ;;  %v5105_v63 = vpop.f32.mrb[46].mxu1  ;;  %5979 = vmatprep.mubr.bf16.mxu0 %v5598_v58 }
 0x6bb   : > { %v5367_v2 = vadd.f32 %v12829_v51, %v5105_v63  ;;  %v5107_v40 = vpop.f32.mrb[47].mxu1  ;;  %5980 = vmatmul.mubr.bf16.gmra.mrb[168].mxu0 %v5597_v56  ;;  %v5493_v42 = vmax.f32 %v5365_v59, 0.0 }
 0x6bc   : > { %v5368_v3 = vadd.f32 %v12832_v52, %v5107_v40  ;;  %v5494_v7 = vmax.f32 %v5366_v61, 0.0 }
 0x6bd   : > { %v5495_v6 = vmax.f32 %v5367_v2, 0.0 }
 0x6be   : > { %v5496_v8 = vmax.f32 %v5368_v3, 0.0 }
 0x6bf   : > { %v5599_v9 = vpack.c.bf16 %v5495_v6, %v5493_v42 }
 0x6c0   : > { %v5111_v62 = vpop.f32.mrb[48].mxu1  ;;  %v5600_v1 = vpack.c.bf16 %v5496_v8, %v5494_v7 }
 0x6c1   : > { %v5369_v0 = vadd.f32 %v12829_v51, %v5111_v62  ;;  %v5113_v4 = vpop.f32.mrb[49].mxu1 }
 0x6c2   : > { %v5370_v12 = vadd.f32 %v12832_v52, %v5113_v4  ;;  %v5115_v13 = vpop.f32.mrb[50].mxu1  ;;  %5989 = vmatprep.mubr.bf16.mxu0 %v5600_v1 }
 0x6c3   : > { %v5371_v14 = vadd.f32 %v12829_v51, %v5115_v13  ;;  %v5117_v5 = vpop.f32.mrb[51].mxu1  ;;  %5990 = vmatmul.mubr.bf16.gmra.mrb[172].mxu0 %v5599_v9  ;;  %v5497_v54 = vmax.f32 %v5369_v0, 0.0 }
 0x6c4   : > { %v5372_v15 = vadd.f32 %v12832_v52, %v5117_v5  ;;  %v5498_v17 = vmax.f32 %v5370_v12, 0.0 }
 0x6c5   : > { %v5499_v16 = vmax.f32 %v5371_v14, 0.0 }
 0x6c6   : > { %v5500_v55 = vmax.f32 %v5372_v15, 0.0 }
 0x6c7   : > { %v5601_v18 = vpack.c.bf16 %v5499_v16, %v5497_v54 }
 0x6c8   : > { %v5121_v19 = vpop.f32.mrb[52].mxu1  ;;  %v5602_v20 = vpack.c.bf16 %v5500_v55, %v5498_v17  ;;  %v12920_v17 = vld [vmem:[%s14562_s5] ss:$8 sps:$4 sm:$0xff]   ;;  %v11619_v55 = vld [vmem:[%s14562_s5 + $0x4] ss:$8 sps:$4 sm:$0xff]  }
 0x6c9   : > { %v5373_v21 = vadd.f32 %v12829_v51, %v5121_v19  ;;  %v5123_v22 = vpop.f32.mrb[53].mxu1  ;;  %11049 = vmatprep.subr.bf16.mxu1 %v11619_v55  ;;  %7347 = vmatprep.subr.bf16.mxu0 %v11619_v55  ;;  %v12957_v55 = vld [vmem:[%s14562_s5 + $0x20] ss:$8 sps:$4 sm:$0xff]  }
 0x6ca   : > { %v5374_v24 = vadd.f32 %v12832_v52, %v5123_v22  ;;  %v5125_v26 = vpop.f32.mrb[54].mxu1  ;;  %5999 = vmatprep.mubr.bf16.mxu0 %v5602_v20  ;;  %11065 = vmatpush1.bf16.msra.mxu1 %v12920_v17 }
 0x6cb   : > { %v5375_v27 = vadd.f32 %v12829_v51, %v5125_v26  ;;  %v5127_v30 = vpop.f32.mrb[55].mxu1  ;;  %6000 = vmatmul.mubr.bf16.gmra.mrb[176].mxu0 %v5601_v18  ;;  %v5501_v32 = vmax.f32 %v5373_v21, 0.0 }
 0x6cc   : > { %v5376_v31 = vadd.f32 %v12832_v52, %v5127_v30  ;;  %v5502_v34 = vmax.f32 %v5374_v24, 0.0 }
 0x6cd   : > { %v5503_v33 = vmax.f32 %v5375_v27, 0.0 }
 0x6ce   : > { %v5504_v35 = vmax.f32 %v5376_v31, 0.0 }
 0x6cf   : > { %v5603_v36 = vpack.c.bf16 %v5503_v33, %v5501_v32 }
 0x6d0   : > { %v5131_v39 = vpop.f32.mrb[56].mxu1  ;;  %v5604_v41 = vpack.c.bf16 %v5504_v35, %v5502_v34 }
 0x6d1   : > { %v5377_v43 = vadd.f32 %v12829_v51, %v5131_v39  ;;  %v5133_v44 = vpop.f32.mrb[57].mxu1 }
 0x6d2   : > { %v5378_v45 = vadd.f32 %v12832_v52, %v5133_v44  ;;  %v5135_v46 = vpop.f32.mrb[58].mxu1  ;;  %6009 = vmatprep.mubr.bf16.mxu0 %v5604_v41 }
 0x6d3   : > { %v5379_v47 = vadd.f32 %v12829_v51, %v5135_v46  ;;  %v5137_v48 = vpop.f32.mrb[59].mxu1  ;;  %6010 = vmatmul.mubr.bf16.gmra.mrb[180].mxu0 %v5603_v36  ;;  %v5505_v50 = vmax.f32 %v5377_v43, 0.0 }
 0x6d4   : > { %v5380_v49 = vadd.f32 %v12832_v52, %v5137_v48  ;;  %v5506_v53 = vmax.f32 %v5378_v45, 0.0 }
 0x6d5   : > { %v5507_v28 = vmax.f32 %v5379_v47, 0.0 }
 0x6d6   : > { %v5508_v29 = vmax.f32 %v5380_v49, 0.0 }
 0x6d7   : > { %v5605_v56 = vpack.c.bf16 %v5507_v28, %v5505_v50 }
 0x6d8   : > { %v5141_v57 = vpop.f32.mrb[60].mxu1  ;;  %v5606_v58 = vpack.c.bf16 %v5508_v29, %v5506_v53  ;;  %v12937_v53 = vld [vmem:[%s14562_s5 + $0x10] ss:$8 sps:$4 sm:$0xff]   ;;  %v12942_v29 = vld [vmem:[%s14562_s5 + $0x14] ss:$8 sps:$4 sm:$0xff]  }
 0x6d9   : > { %v5381_v59 = vadd.f32 %v12829_v51, %v5141_v57  ;;  %v5143_v60 = vpop.f32.mrb[61].mxu1  ;;  %11050 = vmatprep.subr.bf16.mxu1 %v12942_v29 }
 0x6da   : > { %v5382_v61 = vadd.f32 %v12832_v52, %v5143_v60  ;;  %v5145_v63 = vpop.f32.mrb[62].mxu1  ;;  %6019 = vmatprep.mubr.bf16.mxu0 %v5606_v58  ;;  %11066 = vmatpush1.bf16.msra.mxu1 %v12937_v53 }
 0x6db   : > { %v5383_v2 = vadd.f32 %v12829_v51, %v5145_v63  ;;  %v5147_v40 = vpop.f32.mrb[63].mxu1  ;;  %6020 = vmatmul.mubr.bf16.gmra.mrb[184].mxu0 %v5605_v56  ;;  %v5509_v42 = vmax.f32 %v5381_v59, 0.0 }
 0x6dc   : > { %v5384_v3 = vadd.f32 %v12832_v52, %v5147_v40  ;;  %v5510_v7 = vmax.f32 %v5382_v61, 0.0 }
 0x6dd   : > { %v5511_v6 = vmax.f32 %v5383_v2, 0.0 }
 0x6de   : > { %v5512_v8 = vmax.f32 %v5384_v3, 0.0 }
 0x6df   : > { %v5607_v9 = vpack.c.bf16 %v5511_v6, %v5509_v42 }
 0x6e0   : > { %v5151_v62 = vpop.f32.mrb[64].mxu1  ;;  %v5608_v1 = vpack.c.bf16 %v5512_v8, %v5510_v7 }
 0x6e1   : > { %v5385_v0 = vadd.f32 %v12829_v51, %v5151_v62  ;;  %v5153_v4 = vpop.f32.mrb[65].mxu1 }
 0x6e2   : > { %v5386_v12 = vadd.f32 %v12832_v52, %v5153_v4  ;;  %v5155_v13 = vpop.f32.mrb[66].mxu1  ;;  %6029 = vmatprep.mubr.bf16.mxu0 %v5608_v1 }
 0x6e3   : > { %v5387_v14 = vadd.f32 %v12829_v51, %v5155_v13  ;;  %v5157_v5 = vpop.f32.mrb[67].mxu1  ;;  %6030 = vmatmul.mubr.bf16.gmra.mrb[188].mxu0 %v5607_v9  ;;  %v5513_v54 = vmax.f32 %v5385_v0, 0.0 }
 0x6e4   : > { %v5388_v15 = vadd.f32 %v12832_v52, %v5157_v5  ;;  %v5514_v18 = vmax.f32 %v5386_v12, 0.0 }
 0x6e5   : > { %v5515_v16 = vmax.f32 %v5387_v14, 0.0 }
 0x6e6   : > { %v5516_v19 = vmax.f32 %v5388_v15, 0.0 }
 0x6e7   : > { %v5609_v20 = vpack.c.bf16 %v5515_v16, %v5513_v54 }
 0x6e8   : > { %v5161_v21 = vpop.f32.mrb[68].mxu1  ;;  %v5610_v22 = vpack.c.bf16 %v5516_v19, %v5514_v18  ;;  %v12962_v18 = vld [vmem:[%s14562_s5 + $0x24] ss:$8 sps:$4 sm:$0xff]  }
 0x6e9   : > { %v5389_v24 = vadd.f32 %v12829_v51, %v5161_v21  ;;  %v5163_v26 = vpop.f32.mrb[69].mxu1  ;;  %11051 = vmatprep.subr.bf16.mxu1 %v12962_v18 }
 0x6ea   : > { %v5390_v27 = vadd.f32 %v12832_v52, %v5163_v26  ;;  %v5165_v30 = vpop.f32.mrb[70].mxu1  ;;  %6039 = vmatprep.mubr.bf16.mxu0 %v5610_v22  ;;  %11067 = vmatpush1.bf16.msra.mxu1 %v12957_v55 }
 0x6eb   : > { %v5391_v31 = vadd.f32 %v12829_v51, %v5165_v30  ;;  %v5167_v32 = vpop.f32.mrb[71].mxu1  ;;  %6040 = vmatmul.mubr.bf16.gmra.mrb[192].mxu0 %v5609_v20  ;;  %v5517_v34 = vmax.f32 %v5389_v24, 0.0 }
 0x6ec   : > { %v5392_v33 = vadd.f32 %v12832_v52, %v5167_v32  ;;  %v5518_v36 = vmax.f32 %v5390_v27, 0.0 }
 0x6ed   : > { %v5519_v35 = vmax.f32 %v5391_v31, 0.0 }
 0x6ee   : > { %v5520_v37 = vmax.f32 %v5392_v33, 0.0 }
 0x6ef   : > { %v5611_v38 = vpack.c.bf16 %v5519_v35, %v5517_v34 }
 0x6f0   : > { %v5171_v39 = vpop.f32.mrb[72].mxu1  ;;  %v5612_v41 = vpack.c.bf16 %v5520_v37, %v5518_v36 }
 0x6f1   : > { %v5393_v43 = vadd.f32 %v12829_v51, %v5171_v39  ;;  %v5173_v44 = vpop.f32.mrb[73].mxu1 }
 0x6f2   : > { %v5394_v45 = vadd.f32 %v12832_v52, %v5173_v44  ;;  %v5175_v46 = vpop.f32.mrb[74].mxu1  ;;  %6049 = vmatprep.mubr.bf16.mxu0 %v5612_v41 }
 0x6f3   : > { %v5395_v47 = vadd.f32 %v12829_v51, %v5175_v46  ;;  %v5177_v48 = vpop.f32.mrb[75].mxu1  ;;  %6050 = vmatmul.mubr.bf16.gmra.mrb[196].mxu0 %v5611_v38  ;;  %v5521_v50 = vmax.f32 %v5393_v43, 0.0 }
 0x6f4   : > { %v5396_v49 = vadd.f32 %v12832_v52, %v5177_v48  ;;  %v5522_v56 = vmax.f32 %v5394_v45, 0.0 }
 0x6f5   : > { %v5523_v28 = vmax.f32 %v5395_v47, 0.0 }
 0x6f6   : > { %v5524_v57 = vmax.f32 %v5396_v49, 0.0 }
 0x6f7   : > { %v5613_v58 = vpack.c.bf16 %v5523_v28, %v5521_v50 }
 0x6f8   : > { %v5181_v59 = vpop.f32.mrb[76].mxu1  ;;  %v5614_v60 = vpack.c.bf16 %v5524_v57, %v5522_v56  ;;  %v12977_v57 = vld [vmem:[%s14562_s5 + $0x30] ss:$8 sps:$4 sm:$0xff]  }
 0x6f9   : > { %v5397_v61 = vadd.f32 %v12829_v51, %v5181_v59  ;;  %v5183_v63 = vpop.f32.mrb[77].mxu1 }
 0x6fa   : > { %v5398_v2 = vadd.f32 %v12832_v52, %v5183_v63  ;;  %v5185_v40 = vpop.f32.mrb[78].mxu1  ;;  %6059 = vmatprep.mubr.bf16.mxu0 %v5614_v60 }
 0x6fb   : > { %v5399_v3 = vadd.f32 %v12829_v51, %v5185_v40  ;;  %v5187_v42 = vpop.f32.mrb[79].mxu1  ;;  %6060 = vmatmul.mubr.bf16.gmra.mrb[200].mxu0 %v5613_v58  ;;  %v5525_v7 = vmax.f32 %v5397_v61, 0.0  ;;  %v12982_v58 = vld [vmem:[%s14562_s5 + $0x34] ss:$8 sps:$4 sm:$0xff]  }
 0x6fc   : > { %v5400_v6 = vadd.f32 %v12832_v52, %v5187_v42  ;;  %v5526_v9 = vmax.f32 %v5398_v2, 0.0  ;;  %11052 = vmatprep.subr.bf16.mxu1 %v12982_v58 }
 0x6fd   : > { %v5527_v8 = vmax.f32 %v5399_v3, 0.0  ;;  %11068 = vmatpush1.bf16.msra.mxu1 %v12977_v57 }
 0x6fe   : > { %v5528_v10 = vmax.f32 %v5400_v6, 0.0 }
 0x6ff   : > { %v5615_v11 = vpack.c.bf16 %v5527_v8, %v5525_v7 }
 0x700   : > { %v5191_v62 = vpop.f32.mrb[80].mxu1  ;;  %v5616_v1 = vpack.c.bf16 %v5528_v10, %v5526_v9 }
 0x701   : > { %v5401_v0 = vadd.f32 %v12829_v51, %v5191_v62  ;;  %v5193_v4 = vpop.f32.mrb[81].mxu1 }
 0x702   : > { %v5402_v12 = vadd.f32 %v12832_v52, %v5193_v4  ;;  %v5195_v13 = vpop.f32.mrb[82].mxu1  ;;  %6069 = vmatprep.mubr.bf16.mxu0 %v5616_v1 }
 0x703   : > { %v5403_v14 = vadd.f32 %v12829_v51, %v5195_v13  ;;  %v5197_v5 = vpop.f32.mrb[83].mxu1  ;;  %6070 = vmatmul.mubr.bf16.gmra.mrb[204].mxu0 %v5615_v11  ;;  %v5529_v54 = vmax.f32 %v5401_v0, 0.0 }
 0x704   : > { %v5404_v15 = vadd.f32 %v12832_v52, %v5197_v5  ;;  %v5530_v19 = vmax.f32 %v5402_v12, 0.0 }
 0x705   : > { %v5531_v16 = vmax.f32 %v5403_v14, 0.0 }
 0x706   : > { %v5532_v20 = vmax.f32 %v5404_v15, 0.0 }
 0x707   : > { %v5617_v21 = vpack.c.bf16 %v5531_v16, %v5529_v54 }
 0x708   : > { %v5201_v22 = vpop.f32.mrb[84].mxu1  ;;  %v5618_v24 = vpack.c.bf16 %v5532_v20, %v5530_v19 }
 0x709   : > { %v5405_v26 = vadd.f32 %v12829_v51, %v5201_v22  ;;  %v5203_v27 = vpop.f32.mrb[85].mxu1  ;;  %v12997_v22 = vld [vmem:[%s14562_s5 + $0x40] ss:$8 sps:$4 sm:$0xff]  }
 0x70a   : > { %v5406_v30 = vadd.f32 %v12832_v52, %v5203_v27  ;;  %v5205_v31 = vpop.f32.mrb[86].mxu1  ;;  %6079 = vmatprep.mubr.bf16.mxu0 %v5618_v24  ;;  %v13002_v24 = vld [vmem:[%s14562_s5 + $0x44] ss:$8 sps:$4 sm:$0xff]  }
 0x70b   : > { %v5407_v32 = vadd.f32 %v12829_v51, %v5205_v31  ;;  %v5207_v33 = vpop.f32.mrb[87].mxu1  ;;  %6080 = vmatmul.mubr.bf16.gmra.mrb[208].mxu0 %v5617_v21  ;;  %v5533_v35 = vmax.f32 %v5405_v26, 0.0  ;;  %11053 = vmatprep.subr.bf16.mxu1 %v13002_v24 }
 0x70c   : > { %v5408_v34 = vadd.f32 %v12832_v52, %v5207_v33  ;;  %v5534_v37 = vmax.f32 %v5406_v30, 0.0  ;;  %11069 = vmatpush1.bf16.msra.mxu1 %v12997_v22 }
 0x70d   : > { %v5535_v36 = vmax.f32 %v5407_v32, 0.0 }
 0x70e   : > { %v5536_v38 = vmax.f32 %v5408_v34, 0.0 }
 0x70f   : > { %v5619_v39 = vpack.c.bf16 %v5535_v36, %v5533_v35 }
 0x710   : > { %v5211_v41 = vpop.f32.mrb[88].mxu1  ;;  %v5620_v43 = vpack.c.bf16 %v5536_v38, %v5534_v37 }
 0x711   : > { %v5409_v44 = vadd.f32 %v12829_v51, %v5211_v41  ;;  %v5213_v45 = vpop.f32.mrb[89].mxu1 }
 0x712   : > { %v5410_v46 = vadd.f32 %v12832_v52, %v5213_v45  ;;  %v5215_v47 = vpop.f32.mrb[90].mxu1  ;;  %6089 = vmatprep.mubr.bf16.mxu0 %v5620_v43 }
 0x713   : > { %v5411_v48 = vadd.f32 %v12829_v51, %v5215_v47  ;;  %v5217_v49 = vpop.f32.mrb[91].mxu1  ;;  %6090 = vmatmul.mubr.bf16.gmra.mrb[212].mxu0 %v5619_v39  ;;  %v5537_v28 = vmax.f32 %v5409_v44, 0.0 }
 0x714   : > { %v5412_v50 = vadd.f32 %v12832_v52, %v5217_v49  ;;  %v5538_v59 = vmax.f32 %v5410_v46, 0.0 }
 0x715   : > { %v5539_v56 = vmax.f32 %v5411_v48, 0.0 }
 0x716   : > { %v5540_v60 = vmax.f32 %v5412_v50, 0.0 }
 0x717   : > { %v5621_v61 = vpack.c.bf16 %v5539_v56, %v5537_v28 }
 0x718   : > { %v5221_v63 = vpop.f32.mrb[92].mxu1  ;;  %v5622_v2 = vpack.c.bf16 %v5540_v60, %v5538_v59 }
 0x719   : > { %v5413_v40 = vadd.f32 %v12829_v51, %v5221_v63  ;;  %v5223_v3 = vpop.f32.mrb[93].mxu1 }
 0x71a   : > { %v5414_v42 = vadd.f32 %v12832_v52, %v5223_v3  ;;  %v5225_v6 = vpop.f32.mrb[94].mxu1  ;;  %6099 = vmatprep.mubr.bf16.mxu0 %v5622_v2  ;;  %v13022_v3 = vld [vmem:[%s14562_s5 + $0x54] ss:$8 sps:$4 sm:$0xff]  }
 0x71b   : > { %v5415_v7 = vadd.f32 %v12829_v51, %v5225_v6  ;;  %v5227_v8 = vpop.f32.mrb[95].mxu1  ;;  %6100 = vmatmul.mubr.bf16.gmra.mrb[216].mxu0 %v5621_v61  ;;  %v5541_v10 = vmax.f32 %v5413_v40, 0.0  ;;  %v13017_v40 = vld [vmem:[%s14562_s5 + $0x50] ss:$8 sps:$4 sm:$0xff]   ;;  %11054 = vmatprep.subr.bf16.mxu1 %v13022_v3 }
 0x71c   : > { %v5416_v9 = vadd.f32 %v12832_v52, %v5227_v8  ;;  %v5542_v62 = vmax.f32 %v5414_v42, 0.0  ;;  %11070 = vmatpush1.bf16.msra.mxu1 %v13017_v40 }
 0x71d   : > { %v5543_v11 = vmax.f32 %v5415_v7, 0.0 }
 0x71e   : > { %v5544_v1 = vmax.f32 %v5416_v9, 0.0 }
 0x71f   : > { %v5623_v0 = vpack.c.bf16 %v5543_v11, %v5541_v10  ;;  %v10381_v10 = vld [vmem:[%s14561_s4 + $0xc] sm:$0x3] }
 0x720   : > { %v5231_v4 = vpop.f32.mrb[96].mxu1  ;;  %v5624_v12 = vpack.c.bf16 %v5544_v1, %v5542_v62 }
 0x721   : > { %v5417_v13 = vadd.f32 %v12829_v51, %v5231_v4  ;;  %v5233_v14 = vpop.f32.mrb[97].mxu1 }
 0x722   : > { %v5418_v5 = vadd.f32 %v12832_v52, %v5233_v14  ;;  %v5235_v15 = vpop.f32.mrb[98].mxu1  ;;  %6109 = vmatprep.mubr.bf16.mxu0 %v5624_v12 }
 0x723   : > { %v5419_v54 = vadd.f32 %v12829_v51, %v5235_v15  ;;  %v5237_v16 = vpop.f32.mrb[99].mxu1  ;;  %6110 = vmatmul.mubr.bf16.gmra.mrb[220].mxu0 %v5623_v0  ;;  %v5545_v20 = vmax.f32 %v5417_v13, 0.0  ;;  %v13033_v13 = vrot.slane %v10381_v10, %v12021_v23 }
 0x724   : > { %v5420_v19 = vadd.f32 %v12832_v52, %v5237_v16  ;;  %v5546_v26 = vmax.f32 %v5418_v5, 0.0  ;;  %v13037_v5 = vrot.slane %v10381_v10, %v12026_v25 }
 0x725   : > { %v5547_v21 = vmax.f32 %v5419_v54, 0.0 }
 0x726   : > { %v5548_v27 = vmax.f32 %v5420_v19, 0.0 }
 0x727   : > { %v5625_v30 = vpack.c.bf16 %v5547_v21, %v5545_v20 }
 0x728   : > { %v5241_v31 = vpop.f32.mrb[100].mxu1  ;;  %v5626_v32 = vpack.c.bf16 %v5548_v27, %v5546_v26 }
 0x729   : > { %v5421_v33 = vadd.f32 %v12829_v51, %v5241_v31  ;;  %v5243_v34 = vpop.f32.mrb[101].mxu1 }
 0x72a   : > { %v5422_v35 = vadd.f32 %v12832_v52, %v5243_v34  ;;  %v5245_v36 = vpop.f32.mrb[102].mxu1  ;;  %6119 = vmatprep.mubr.bf16.mxu0 %v5626_v32 }
 0x72b   : > { %v5423_v37 = vadd.f32 %v12829_v51, %v5245_v36  ;;  %v5247_v38 = vpop.f32.mrb[103].mxu1  ;;  %6120 = vmatmul.mubr.bf16.gmra.mrb[224].mxu0 %v5625_v30  ;;  %v5549_v41 = vmax.f32 %v5421_v33, 0.0 }
 0x72c   : > { %v5424_v39 = vadd.f32 %v12832_v52, %v5247_v38  ;;  %v5550_v44 = vmax.f32 %v5422_v35, 0.0 }
 0x72d   : > { %v5551_v43 = vmax.f32 %v5423_v37, 0.0 }
 0x72e   : > { %v5552_v45 = vmax.f32 %v5424_v39, 0.0 }
 0x72f   : > { %v5627_v46 = vpack.c.bf16 %v5551_v43, %v5549_v41 }
 0x730   : > { %v5251_v47 = vpop.f32.mrb[104].mxu1  ;;  %v5628_v48 = vpack.c.bf16 %v5552_v45, %v5550_v44 }
 0x731   : > { %v5425_v49 = vadd.f32 %v12829_v51, %v5251_v47  ;;  %v5253_v50 = vpop.f32.mrb[105].mxu1 }
 0x732   : > { %v5426_v28 = vadd.f32 %v12832_v52, %v5253_v50  ;;  %v5255_v56 = vpop.f32.mrb[106].mxu1  ;;  %6129 = vmatprep.mubr.bf16.mxu0 %v5628_v48 }
 0x733   : > { %v5427_v59 = vadd.f32 %v12829_v51, %v5255_v56  ;;  %v5257_v60 = vpop.f32.mrb[107].mxu1  ;;  %6130 = vmatmul.mubr.bf16.gmra.mrb[228].mxu0 %v5627_v46  ;;  %v5553_v63 = vmax.f32 %v5425_v49, 0.0 }
 0x734   : > { %v5428_v61 = vadd.f32 %v12832_v52, %v5257_v60  ;;  %v5554_v42 = vmax.f32 %v5426_v28, 0.0  ;;  %v13057_v60 = vld [vmem:[%s14562_s5 + $0x64] ss:$8 sps:$4 sm:$0xff]  }
 0x735   : > { %v5555_v2 = vmax.f32 %v5427_v59, 0.0  ;;  %v13052_v59 = vld [vmem:[%s14562_s5 + $0x60] ss:$8 sps:$4 sm:$0xff]   ;;  %11055 = vmatprep.subr.bf16.mxu1 %v13057_v60 }
 0x736   : > { %v5556_v6 = vmax.f32 %v5428_v61, 0.0  ;;  %11071 = vmatpush1.bf16.msra.mxu1 %v13052_v59 }
 0x737   : > { %v5629_v7 = vpack.c.bf16 %v5555_v2, %v5553_v63 }
 0x738   : > { %v5261_v8 = vpop.f32.mrb[108].mxu1  ;;  %v5630_v9 = vpack.c.bf16 %v5556_v6, %v5554_v42 }
 0x739   : > { %v5429_v11 = vadd.f32 %v12829_v51, %v5261_v8  ;;  %v5263_v62 = vpop.f32.mrb[109].mxu1 }
 0x73a   : > { %v5430_v1 = vadd.f32 %v12832_v52, %v5263_v62  ;;  %v5265_v0 = vpop.f32.mrb[110].mxu1  ;;  %6139 = vmatprep.mubr.bf16.mxu0 %v5630_v9 }
 0x73b   : > { %v5431_v4 = vadd.f32 %v12829_v51, %v5265_v0  ;;  %v5267_v12 = vpop.f32.mrb[111].mxu1  ;;  %6140 = vmatmul.mubr.bf16.gmra.mrb[232].mxu0 %v5629_v7  ;;  %v5557_v15 = vmax.f32 %v5429_v11, 0.0 }
 0x73c   : > { %v5432_v14 = vadd.f32 %v12832_v52, %v5267_v12  ;;  %v5558_v16 = vmax.f32 %v5430_v1, 0.0 }
 0x73d   : > { %v5559_v54 = vmax.f32 %v5431_v4, 0.0 }
 0x73e   : > { %v5560_v19 = vmax.f32 %v5432_v14, 0.0  ;;  %v5881_v20 = vpop.f32.mrb[128].mxu0 }
 0x73f   : > { %v5631_v21 = vpack.c.bf16 %v5559_v54, %v5557_v15  ;;  %v5882_v26 = vadd.f32 %v5881_v20, %v13033_v13  ;;  %v5883_v27 = vpop.f32.mrb[129].mxu0 }
 0x740   : > { %v5884_v30 = vadd.f32 %v5883_v27, %v13037_v5  ;;  %v5271_v31 = vpop.f32.mrb[112].mxu1  ;;  %v5885_v32 = vpop.f32.mrb[130].mxu0  ;;  %v5632_v33 = vpack.c.bf16 %v5560_v19, %v5558_v16 }
 0x741   : > { %v5433_v34 = vadd.f32 %v12829_v51, %v5271_v31  ;;  %v5886_v35 = vadd.f32 %v5885_v32, %v13033_v13  ;;  %v5273_v36 = vpop.f32.mrb[113].mxu1  ;;  %v5887_v37 = vpop.f32.mrb[131].mxu0  ;;  %v6200_v43 = vmax.f32 %v5882_v26, 0.0 }
 0x742   : > { %v5434_v38 = vadd.f32 %v12832_v52, %v5273_v36  ;;  %v5888_v39 = vadd.f32 %v5887_v37, %v13037_v5  ;;  %v5275_v41 = vpop.f32.mrb[114].mxu1  ;;  %6149 = vmatprep.mubr.bf16.mxu0 %v5632_v33  ;;  %v6201_v47 = vmax.f32 %v5884_v30, 0.0 }
 0x743   : > { %v6202_v44 = vmax.f32 %v5886_v35, 0.0  ;;  %v5435_v45 = vadd.f32 %v12829_v51, %v5275_v41  ;;  %v5277_v46 = vpop.f32.mrb[115].mxu1  ;;  %6150 = vmatmul.mubr.bf16.gmra.mrb[236].mxu0 %v5631_v21  ;;  %v5561_v50 = vmax.f32 %v5433_v34, 0.0 }
 0x744   : > { %v6203_v48 = vmax.f32 %v5888_v39, 0.0  ;;  %v5436_v49 = vadd.f32 %v12832_v52, %v5277_v46  ;;  %v5562_v61 = vmax.f32 %v5434_v38, 0.0 }
 0x745   : > { %v13047_v28 = vpack.c.bf16 %v6202_v44, %v6200_v43  ;;  %v5563_v56 = vmax.f32 %v5435_v45, 0.0 }
 0x746   : > { %v5564_v63 = vmax.f32 %v5436_v49, 0.0  ;;  %v5891_v2 = vpop.f32.mrb[132].mxu0  ;;  %v13059_v42 = vpack.c.bf16 %v6203_v48, %v6201_v47 }
 0x747   : > { %v5633_v6 = vpack.c.bf16 %v5563_v56, %v5561_v50  ;;  %v5892_v7 = vadd.f32 %v5891_v2, %v13033_v13  ;;  %v5893_v8 = vpop.f32.mrb[133].mxu0 }
 0x748   : > { %v5894_v9 = vadd.f32 %v5893_v8, %v13037_v5  ;;  %v5281_v10 = vpop.f32.mrb[116].mxu1  ;;  %v5895_v11 = vpop.f32.mrb[134].mxu0  ;;  %v5634_v62 = vpack.c.bf16 %v5564_v63, %v5562_v61 }
 0x749   : > { %v5437_v1 = vadd.f32 %v12829_v51, %v5281_v10  ;;  %v5896_v0 = vadd.f32 %v5895_v11, %v13033_v13  ;;  %v5283_v4 = vpop.f32.mrb[117].mxu1  ;;  %v5897_v12 = vpop.f32.mrb[135].mxu0  ;;  %v6204_v16 = vmax.f32 %v5892_v7, 0.0 }
 0x74a   : > { %v5438_v14 = vadd.f32 %v12832_v52, %v5283_v4  ;;  %v5898_v15 = vadd.f32 %v5897_v12, %v13037_v5  ;;  %v5285_v54 = vpop.f32.mrb[118].mxu1  ;;  %6159 = vmatprep.mubr.bf16.mxu0 %v5634_v62  ;;  %v6205_v26 = vmax.f32 %v5894_v9, 0.0  ;;  %v13088_v4 = vld [vmem:[%s14562_s5 + $0x70] ss:$8 sps:$4 sm:$0xff]   ;;  %v13093_v12 = vld [vmem:[%s14562_s5 + $0x74] ss:$8 sps:$4 sm:$0xff]  }
 0x74b   : > { %v6206_v19 = vmax.f32 %v5896_v0, 0.0  ;;  %v5439_v20 = vadd.f32 %v12829_v51, %v5285_v54  ;;  %v5287_v21 = vpop.f32.mrb[119].mxu1  ;;  %6160 = vmatmul.mubr.bf16.gmra.mrb[240].mxu0 %v5633_v6  ;;  %v5565_v31 = vmax.f32 %v5437_v1, 0.0  ;;  %11056 = vmatprep.subr.bf16.mxu1 %v13093_v12 }
 0x74c   : > { %v6207_v27 = vmax.f32 %v5898_v15, 0.0  ;;  %v5440_v30 = vadd.f32 %v12832_v52, %v5287_v21  ;;  %v5566_v34 = vmax.f32 %v5438_v14, 0.0  ;;  %11072 = vmatpush1.bf16.msra.mxu1 %v13088_v4 }
 0x74d   : > { %v13071_v32 = vpack.c.bf16 %v6206_v19, %v6204_v16  ;;  %v5567_v33 = vmax.f32 %v5439_v20, 0.0 }
 0x74e   : > { %v5568_v35 = vmax.f32 %v5440_v30, 0.0  ;;  %v5901_v36 = vpop.f32.mrb[136].mxu0  ;;  %v13073_v37 = vpack.c.bf16 %v6207_v27, %v6205_v26 }
 0x74f   : > { %v5635_v38 = vpack.c.bf16 %v5567_v33, %v5565_v31  ;;  %v5902_v39 = vadd.f32 %v5901_v36, %v13033_v13  ;;  %v5903_v41 = vpop.f32.mrb[137].mxu0 }
 0x750   : > { %v5636_v43 = vpack.c.bf16 %v5568_v35, %v5566_v34  ;;  %v5904_v44 = vadd.f32 %v5903_v41, %v13037_v5  ;;  %v5291_v45 = vpop.f32.mrb[120].mxu1  ;;  %v5905_v46 = vpop.f32.mrb[138].mxu0 }
 0x751   : > { %v5441_v47 = vadd.f32 %v12829_v51, %v5291_v45  ;;  %v5906_v48 = vadd.f32 %v5905_v46, %v13033_v13  ;;  %v5293_v49 = vpop.f32.mrb[121].mxu1  ;;  %v5907_v50 = vpop.f32.mrb[139].mxu0  ;;  %v6208_v2 = vmax.f32 %v5902_v39, 0.0 }
 0x752   : > { %v5442_v56 = vadd.f32 %v12832_v52, %v5293_v49  ;;  %v5908_v61 = vadd.f32 %v5907_v50, %v13037_v5  ;;  %v5295_v63 = vpop.f32.mrb[122].mxu1  ;;  %6169 = vmatprep.mubr.bf16.mxu0 %v5636_v43  ;;  %v6209_v9 = vmax.f32 %v5904_v44, 0.0 }
 0x753   : > { %v6210_v6 = vmax.f32 %v5906_v48, 0.0  ;;  %v5443_v7 = vadd.f32 %v12829_v51, %v5295_v63  ;;  %v5297_v8 = vpop.f32.mrb[123].mxu1  ;;  %6170 = vmatmul.mubr.bf16.gmra.mrb[244].mxu0 %v5635_v38  ;;  %v5569_v62 = vmax.f32 %v5441_v47, 0.0 }
 0x754   : > { %v6211_v10 = vmax.f32 %v5908_v61, 0.0  ;;  %v5444_v11 = vadd.f32 %v12832_v52, %v5297_v8  ;;  %v5570_v14 = vmax.f32 %v5442_v56, 0.0 }
 0x755   : > { %v13083_v1 = vpack.c.bf16 %v6210_v6, %v6208_v2  ;;  %v5571_v0 = vmax.f32 %v5443_v7, 0.0 }
 0x756   : > { %v5572_v15 = vmax.f32 %v5444_v11, 0.0  ;;  %v5911_v54 = vpop.f32.mrb[140].mxu0  ;;  %v13095_v16 = vpack.c.bf16 %v6211_v10, %v6209_v9 }
 0x757   : > { %v5637_v19 = vpack.c.bf16 %v5571_v0, %v5569_v62  ;;  %v5912_v20 = vadd.f32 %v5911_v54, %v13033_v13  ;;  %v5913_v21 = vpop.f32.mrb[141].mxu0 }
 0x758   : > { %v5638_v26 = vpack.c.bf16 %v5572_v15, %v5570_v14  ;;  %v5914_v27 = vadd.f32 %v5913_v21, %v13037_v5  ;;  %v5301_v30 = vpop.f32.mrb[124].mxu1  ;;  %v5915_v31 = vpop.f32.mrb[142].mxu0 }
 0x759   : > { %v5445_v33 = vadd.f32 %v12829_v51, %v5301_v30  ;;  %v5916_v34 = vadd.f32 %v5915_v31, %v13033_v13  ;;  %v5303_v35 = vpop.f32.mrb[125].mxu1  ;;  %v5917_v36 = vpop.f32.mrb[143].mxu0  ;;  %v6212_v43 = vmax.f32 %v5912_v20, 0.0 }
 0x75a   : > { %v5446_v38 = vadd.f32 %v12832_v52, %v5303_v35  ;;  %v5918_v39 = vadd.f32 %v5917_v36, %v13037_v5  ;;  %v5305_v41 = vpop.f32.mrb[126].mxu1  ;;  %6179 = vmatprep.mubr.bf16.mxu0 %v5638_v26  ;;  %v6213_v47 = vmax.f32 %v5914_v27, 0.0  ;;  %v13121_v26 = vld [vmem:[%s14562_s5 + $0x80] ss:$8 sps:$4 sm:$0xff]   ;;  %v13126_v27 = vld [vmem:[%s14562_s5 + $0x84] ss:$8 sps:$4 sm:$0xff]  }
 0x75b   : > { %v6214_v44 = vmax.f32 %v5916_v34, 0.0  ;;  %v5447_v45 = vadd.f32 %v12829_v51, %v5305_v41  ;;  %v5307_v46 = vpop.f32.mrb[127].mxu1  ;;  %6180 = vmatmul.mubr.bf16.gmra.mrb[248].mxu0 %v5637_v19  ;;  %v5573_v50 = vmax.f32 %v5445_v33, 0.0  ;;  %11057 = vmatprep.subr.bf16.mxu1 %v13126_v27 }
 0x75c   : > { %v6215_v48 = vmax.f32 %v5918_v39, 0.0  ;;  %v5448_v49 = vadd.f32 %v12832_v52, %v5307_v46  ;;  %v5574_v63 = vmax.f32 %v5446_v38, 0.0  ;;  %11073 = vmatpush1.bf16.msra.mxu1 %v13121_v26 }
 0x75d   : > { %v13107_v56 = vpack.c.bf16 %v6214_v44, %v6212_v43  ;;  %v5575_v61 = vmax.f32 %v5447_v45, 0.0 }
 0x75e   : > { %v5576_v2 = vmax.f32 %v5448_v49, 0.0  ;;  %v5921_v6 = vpop.f32.mrb[144].mxu0  ;;  %v13109_v7 = vpack.c.bf16 %v6215_v48, %v6213_v47 }
 0x75f   : > { %v5639_v8 = vpack.c.bf16 %v5575_v61, %v5573_v50  ;;  %v5922_v9 = vadd.f32 %v5921_v6, %v13033_v13  ;;  %v5923_v10 = vpop.f32.mrb[145].mxu0 }
 0x760   : > { %v5640_v51 = vpack.c.bf16 %v5576_v2, %v5574_v63  ;;  %v5924_v11 = vadd.f32 %v5923_v10, %v13037_v5  ;;  %v5925_v62 = vpop.f32.mrb[146].mxu0 }
 0x761   : > { %v5926_v0 = vadd.f32 %v5925_v62, %v13033_v13  ;;  %v5927_v52 = vpop.f32.mrb[147].mxu0  ;;  %v6216_v15 = vmax.f32 %v5922_v9, 0.0 }
 0x762   : > { %v5928_v14 = vadd.f32 %v5927_v52, %v13037_v5  ;;  %6189 = vmatprep.mubr.bf16.mxu0 %v5640_v51  ;;  %v6217_v19 = vmax.f32 %v5924_v11, 0.0 }
 0x763   : > { %v6218_v54 = vmax.f32 %v5926_v0, 0.0  ;;  %6190 = vmatmul.mubr.bf16.gmra.mrb[252].mxu0 %v5639_v8 }
 0x764   : > { %v6219_v20 = vmax.f32 %v5928_v14, 0.0  ;;  %6630 = vmatprep.mubr.bf16.mxu0 %v13059_v42 }
 0x765   : > { %v13116_v21 = vpack.c.bf16 %v6218_v54, %v6216_v15 }
 0x766   : > { %v5931_v30 = vpop.f32.mrb[148].mxu0  ;;  %v13128_v31 = vpack.c.bf16 %v6219_v20, %v6217_v19 }
 0x767   : > { %v5932_v33 = vadd.f32 %v5931_v30, %v13033_v13  ;;  %v5933_v34 = vpop.f32.mrb[149].mxu0 }
 0x768   : > { %v5934_v42 = vadd.f32 %v5933_v34, %v13037_v5  ;;  %v5935_v35 = vpop.f32.mrb[150].mxu0 }
 0x769   : > { %v5936_v36 = vadd.f32 %v5935_v35, %v13033_v13  ;;  %v5937_v38 = vpop.f32.mrb[151].mxu0  ;;  %v6220_v41 = vmax.f32 %v5932_v33, 0.0 }
 0x76a   : > { %v5938_v39 = vadd.f32 %v5937_v38, %v13037_v5  ;;  %v6221_v44 = vmax.f32 %v5934_v42, 0.0 }
 0x76b   : > { %v6222_v43 = vmax.f32 %v5936_v36, 0.0  ;;  %6631 = vmatmul.mubr.bf16.vlgmr.msra.gmra.mrb[0].mxu0 %v13047_v28 }
 0x76c   : > { %v6223_v45 = vmax.f32 %v5938_v39, 0.0  ;;  %6640 = vmatprep.mubr.bf16.mxu0 %v13073_v37  ;;  %7348 = vmatpush1.bf16.msra.mxu0 %v12920_v17 }
 0x76d   : > { %v13139_v46 = vpack.c.bf16 %v6222_v43, %v6220_v41  ;;  %7349 = vmatprep.subr.bf16.mxu0 %v12942_v29 }
 0x76e   : > { %v5941_v47 = vpop.f32.mrb[152].mxu0  ;;  %v13142_v48 = vpack.c.bf16 %v6223_v45, %v6221_v44 }
 0x76f   : > { %v5942_v49 = vadd.f32 %v5941_v47, %v13033_v13  ;;  %v5943_v50 = vpop.f32.mrb[153].mxu0 }
 0x770   : > { %v5944_v61 = vadd.f32 %v5943_v50, %v13037_v5  ;;  %v5945_v63 = vpop.f32.mrb[154].mxu0  ;;  %7350 = vmatpush1.bf16.msra.mxu0 %v12937_v53  ;;  %v13159_v53 = vld [vmem:[%s14562_s5 + $0x90] ss:$8 sps:$4 sm:$0xff]  }
 0x771   : > { %v5946_v28 = vadd.f32 %v5945_v63, %v13033_v13  ;;  %v5947_v37 = vpop.f32.mrb[155].mxu0  ;;  %7351 = vmatprep.subr.bf16.mxu0 %v12962_v18  ;;  %v6224_v2 = vmax.f32 %v5942_v49, 0.0  ;;  %v13164_v18 = vld [vmem:[%s14562_s5 + $0x94] ss:$8 sps:$4 sm:$0xff]  }
 0x772   : > { %v5948_v17 = vadd.f32 %v5947_v37, %v13037_v5  ;;  %v6225_v6 = vmax.f32 %v5944_v61, 0.0  ;;  %11058 = vmatprep.subr.bf16.mxu1 %v13164_v18 }
 0x773   : > { %v6226_v29 = vmax.f32 %v5946_v28, 0.0  ;;  %6641 = vmatmul.mubr.bf16.gmra.mrb[4].mxu0 %v13071_v32  ;;  %11074 = vmatpush1.bf16.msra.mxu1 %v13159_v53 }
 0x774   : > { %v6227_v8 = vmax.f32 %v5948_v17, 0.0  ;;  %6650 = vmatprep.mubr.bf16.mxu0 %v13095_v16  ;;  %7352 = vmatpush1.bf16.msra.mxu0 %v12957_v55 }
 0x775   : > { %v13153_v9 = vpack.c.bf16 %v6226_v29, %v6224_v2  ;;  %7353 = vmatprep.subr.bf16.mxu0 %v12982_v58 }
 0x776   : > { %v5951_v32 = vpop.f32.mrb[156].mxu0  ;;  %v13166_v10 = vpack.c.bf16 %v6227_v8, %v6225_v6 }
 0x777   : > { %v5952_v16 = vadd.f32 %v5951_v32, %v13033_v13  ;;  %v5953_v55 = vpop.f32.mrb[157].mxu0 }
 0x778   : > { %v5954_v58 = vadd.f32 %v5953_v55, %v13037_v5  ;;  %v5955_v51 = vpop.f32.mrb[158].mxu0  ;;  %7354 = vmatpush1.bf16.msra.mxu0 %v12977_v57 }
 0x779   : > { %v5956_v11 = vadd.f32 %v5955_v51, %v13033_v13  ;;  %v5957_v62 = vpop.f32.mrb[159].mxu0  ;;  %7355 = vmatprep.subr.bf16.mxu0 %v13002_v24  ;;  %v6228_v52 = vmax.f32 %v5952_v16, 0.0  ;;  %v11652_v16 = vld [vmem:[%s14562_s5 + $0xb4] ss:$8 sps:$4 sm:$0xff]  }
 0x77a   : > { %v5958_v0 = vadd.f32 %v5957_v62, %v13037_v5  ;;  %v6229_v15 = vmax.f32 %v5954_v58, 0.0 }
 0x77b   : > { %v6230_v14 = vmax.f32 %v5956_v11, 0.0  ;;  %6651 = vmatmul.mubr.bf16.gmra.mrb[8].mxu0 %v13083_v1 }
 0x77c   : > { %v6231_v54 = vmax.f32 %v5958_v0, 0.0  ;;  %6660 = vmatprep.mubr.bf16.mxu0 %v13109_v7  ;;  %7356 = vmatpush1.bf16.msra.mxu0 %v12997_v22 }
 0x77d   : > { %v13179_v57 = vpack.c.bf16 %v6230_v14, %v6228_v52  ;;  %7357 = vmatprep.subr.bf16.mxu0 %v13022_v3 }
 0x77e   : > { %v5961_v19 = vpop.f32.mrb[160].mxu0  ;;  %v13182_v20 = vpack.c.bf16 %v6231_v54, %v6229_v15 }
 0x77f   : > { %v5962_v24 = vadd.f32 %v5961_v19, %v13033_v13  ;;  %v5963_v30 = vpop.f32.mrb[161].mxu0 }
 0x780   : > { %v5964_v33 = vadd.f32 %v5963_v30, %v13037_v5  ;;  %v5965_v34 = vpop.f32.mrb[162].mxu0  ;;  %7358 = vmatpush1.bf16.msra.mxu0 %v13017_v40  ;;  %v11647_v40 = vld [vmem:[%s14562_s5 + $0xa0] ss:$8 sps:$4 sm:$0xff]  }
 0x781   : > { %v5966_v1 = vadd.f32 %v5965_v34, %v13033_v13  ;;  %v5967_v7 = vpop.f32.mrb[163].mxu0  ;;  %7359 = vmatprep.subr.bf16.mxu0 %v13057_v60  ;;  %v6232_v42 = vmax.f32 %v5962_v24, 0.0  ;;  %v11649_v60 = vld [vmem:[%s14562_s5 + $0xa4] ss:$8 sps:$4 sm:$0xff]  }
 0x782   : > { %v5968_v22 = vadd.f32 %v5967_v7, %v13037_v5  ;;  %v6233_v35 = vmax.f32 %v5964_v33, 0.0  ;;  %11059 = vmatprep.subr.bf16.mxu1 %v11649_v60 }
 0x783   : > { %v6234_v3 = vmax.f32 %v5966_v1, 0.0  ;;  %6661 = vmatmul.mubr.bf16.gmra.mrb[12].mxu0 %v13107_v56  ;;  %11075 = vmatpush1.bf16.msra.mxu1 %v11647_v40 }
 0x784   : > { %v6235_v36 = vmax.f32 %v5968_v22, 0.0  ;;  %6670 = vmatprep.mubr.bf16.mxu0 %v13128_v31  ;;  %7360 = vmatpush1.bf16.msra.mxu0 %v13052_v59 }
 0x785   : > { %v13193_v38 = vpack.c.bf16 %v6234_v3, %v6232_v42  ;;  %7361 = vmatprep.subr.bf16.mxu0 %v13093_v12  ;;  %11060 = vmatprep.subr.bf16.mxu1 %v11652_v16 }
 0x786   : > { %v5971_v39 = vpop.f32.mrb[164].mxu0  ;;  %v13202_v56 = vpack.c.bf16 %v6235_v36, %v6233_v35 }
 0x787   : > { %v5972_v41 = vadd.f32 %v5971_v39, %v13033_v13  ;;  %v5973_v31 = vpop.f32.mrb[165].mxu0  ;;  %v11653_v39 = vld [vmem:[%s14562_s5 + $0xc0] ss:$8 sps:$4 sm:$0xff]  }
 0x788   : > { %v5974_v59 = vadd.f32 %v5973_v31, %v13037_v5  ;;  %v5975_v43 = vpop.f32.mrb[166].mxu0  ;;  %7362 = vmatpush1.bf16.msra.mxu0 %v13088_v4 }
 0x789   : > { %v5976_v44 = vadd.f32 %v5975_v43, %v13033_v13  ;;  %v5977_v45 = vpop.f32.mrb[167].mxu0  ;;  %7363 = vmatprep.subr.bf16.mxu0 %v13126_v27  ;;  %v6236_v47 = vmax.f32 %v5972_v41, 0.0  ;;  %v11655_v41 = vld [vmem:[%s14562_s5 + $0xc4] ss:$8 sps:$4 sm:$0xff]  }
 0x78a   : > { %v5978_v12 = vadd.f32 %v5977_v45, %v13037_v5  ;;  %v6237_v50 = vmax.f32 %v5974_v59, 0.0 }
 0x78b   : > { %v6238_v49 = vmax.f32 %v5976_v44, 0.0  ;;  %6671 = vmatmul.mubr.bf16.gmra.mrb[16].mxu0 %v13116_v21 }
 0x78c   : > { %v6239_v61 = vmax.f32 %v5978_v12, 0.0  ;;  %6680 = vmatprep.mubr.bf16.mxu0 %v13142_v48  ;;  %7364 = vmatpush1.bf16.msra.mxu0 %v13121_v26 }
 0x78d   : > { %v13213_v63 = vpack.c.bf16 %v6238_v49, %v6236_v47  ;;  %7365 = vmatprep.subr.bf16.mxu0 %v13164_v18 }
 0x78e   : > { %v5981_v4 = vpop.f32.mrb[168].mxu0  ;;  %v13216_v28 = vpack.c.bf16 %v6239_v61, %v6237_v50 }
 0x78f   : > { %v5982_v27 = vadd.f32 %v5981_v4, %v13033_v13  ;;  %v5983_v37 = vpop.f32.mrb[169].mxu0 }
 0x790   : > { %v5984_v17 = vadd.f32 %v5983_v37, %v13037_v5  ;;  %v5985_v2 = vpop.f32.mrb[170].mxu0  ;;  %7366 = vmatpush1.bf16.msra.mxu0 %v13159_v53  ;;  %v11650_v53 = vld [vmem:[%s14562_s5 + $0xb0] ss:$8 sps:$4 sm:$0xff]  }
 0x791   : > { %v5986_v21 = vadd.f32 %v5985_v2, %v13033_v13  ;;  %v5987_v48 = vpop.f32.mrb[171].mxu0  ;;  %7367 = vmatprep.subr.bf16.mxu0 %v11649_v60  ;;  %v6240_v29 = vmax.f32 %v5982_v27, 0.0  ;;  %11076 = vmatpush1.bf16.msra.mxu1 %v11650_v53 }
 0x792   : > { %v5988_v26 = vadd.f32 %v5987_v48, %v13037_v5  ;;  %v6241_v8 = vmax.f32 %v5984_v17, 0.0  ;;  %11061 = vmatprep.subr.bf16.mxu1 %v11655_v41 }
 0x793   : > { %v6242_v6 = vmax.f32 %v5986_v21, 0.0  ;;  %6681 = vmatmul.mubr.bf16.gmra.mrb[20].mxu0 %v13139_v46 }
 0x794   : > { %v6243_v18 = vmax.f32 %v5988_v26, 0.0  ;;  %6690 = vmatprep.mubr.bf16.mxu0 %v13166_v10  ;;  %7368 = vmatpush1.bf16.msra.mxu0 %v11647_v40 }
 0x795   : > { %v13225_v32 = vpack.c.bf16 %v6242_v6, %v6240_v29  ;;  %7369 = vmatprep.subr.bf16.mxu0 %v11652_v16  ;;  %11077 = vmatpush1.bf16.msra.mxu1 %v11653_v39 }
 0x796   : > { %v5991_v55 = vpop.f32.mrb[172].mxu0  ;;  %v13233_v58 = vpack.c.bf16 %v6243_v18, %v6241_v8 }
 0x797   : > { %v5992_v46 = vadd.f32 %v5991_v55, %v13033_v13  ;;  %v5993_v51 = vpop.f32.mrb[173].mxu0  ;;  %v11656_v55 = vld [vmem:[%s14562_s5 + $0xd0] ss:$8 sps:$4 sm:$0xff]  }
 0x798   : > { %v5994_v10 = vadd.f32 %v5993_v51, %v13037_v5  ;;  %v5995_v11 = vpop.f32.mrb[174].mxu0  ;;  %7370 = vmatpush1.bf16.msra.mxu0 %v11650_v53 }
 0x799   : > { %v5996_v62 = vadd.f32 %v5995_v11, %v13033_v13  ;;  %v5997_v0 = vpop.f32.mrb[175].mxu0  ;;  %v6244_v14 = vmax.f32 %v5992_v46, 0.0  ;;  %7371 = vmatprep.subr.bf16.mxu0 %v11655_v41  ;;  %v11658_v46 = vld [vmem:[%s14562_s5 + $0xd4] ss:$8 sps:$4 sm:$0xff]  }
 0x79a   : > { %v5998_v52 = vadd.f32 %v5997_v0, %v13037_v5  ;;  %v6245_v54 = vmax.f32 %v5994_v10, 0.0  ;;  %11062 = vmatprep.subr.bf16.mxu1 %v11658_v46 }
 0x79b   : > { %v6246_v15 = vmax.f32 %v5996_v62, 0.0  ;;  %6691 = vmatmul.mubr.bf16.gmra.mrb[24].mxu0 %v13153_v9  ;;  %11078 = vmatpush1.bf16.msra.mxu1 %v11656_v55 }
 0x79c   : > { %v6247_v19 = vmax.f32 %v5998_v52, 0.0  ;;  %6700 = vmatprep.mubr.bf16.mxu0 %v13182_v20  ;;  %7372 = vmatpush1.bf16.msra.mxu0 %v11653_v39 }
 0x79d   : > { %v13241_v24 = vpack.c.bf16 %v6246_v15, %v6244_v14  ;;  %7373 = vmatprep.subr.bf16.mxu0 %v11658_v46 }
 0x79e   : > { %v6001_v30 = vpop.f32.mrb[176].mxu0  ;;  %v13243_v33 = vpack.c.bf16 %v6247_v19, %v6245_v54 }
 0x79f   : > { %v6002_v34 = vadd.f32 %v6001_v30, %v13033_v13  ;;  %v6003_v1 = vpop.f32.mrb[177].mxu0 }
 0x7a0   : > { %v6004_v7 = vadd.f32 %v6003_v1, %v13037_v5  ;;  %v6005_v22 = vpop.f32.mrb[178].mxu0  ;;  %7374 = vmatpush1.bf16.msra.mxu0 %v11656_v55 }
 0x7a1   : > { %v6006_v42 = vadd.f32 %v6005_v22, %v13033_v13  ;;  %v6007_v3 = vpop.f32.mrb[179].mxu0  ;;  %v6248_v35 = vmax.f32 %v6002_v34, 0.0 }
 0x7a2   : > { %v6008_v9 = vadd.f32 %v6007_v3, %v13037_v5  ;;  %v6249_v20 = vmax.f32 %v6004_v7, 0.0 }
 0x7a3   : > { %v6250_v36 = vmax.f32 %v6006_v42, 0.0  ;;  %6701 = vmatmul.mubr.bf16.gmra.mrb[28].mxu0 %v13179_v57 }
 0x7a4   : > { %v6251_v40 = vmax.f32 %v6008_v9, 0.0  ;;  %6710 = vmatprep.mubr.bf16.mxu0 %v13202_v56 }
 0x7a5   : > { %v13251_v60 = vpack.c.bf16 %v6250_v36, %v6248_v35 }
 0x7a6   : > { %v6011_v31 = vpop.f32.mrb[180].mxu0  ;;  %v13259_v59 = vpack.c.bf16 %v6251_v40, %v6249_v20 }
 0x7a7   : > { %v6012_v43 = vadd.f32 %v6011_v31, %v13033_v13  ;;  %v6013_v57 = vpop.f32.mrb[181].mxu0  ;;  %v11659_v31 = vld [vmem:[%s14562_s5 + $0xe0] ss:$8 sps:$4 sm:$0xff]  }
 0x7a8   : > { %v6014_v56 = vadd.f32 %v6013_v57, %v13037_v5  ;;  %v6015_v44 = vpop.f32.mrb[182].mxu0 }
 0x7a9   : > { %v6016_v45 = vadd.f32 %v6015_v44, %v13033_v13  ;;  %v6017_v12 = vpop.f32.mrb[183].mxu0  ;;  %v6252_v49 = vmax.f32 %v6012_v43, 0.0  ;;  %v11661_v43 = vld [vmem:[%s14562_s5 + $0xe4] ss:$8 sps:$4 sm:$0xff]  }
 0x7aa   : > { %v6018_v47 = vadd.f32 %v6017_v12, %v13037_v5  ;;  %v6253_v61 = vmax.f32 %v6014_v56, 0.0  ;;  %11063 = vmatprep.subr.bf16.mxu1 %v11661_v43  ;;  %7375 = vmatprep.subr.bf16.mxu0 %v11661_v43 }
 0x7ab   : > { %v6254_v50 = vmax.f32 %v6016_v45, 0.0  ;;  %6711 = vmatmul.mubr.bf16.gmra.mrb[32].mxu0 %v13193_v38  ;;  %11079 = vmatpush1.bf16.msra.mxu1 %v11659_v31 }
 0x7ac   : > { %v6255_v4 = vmax.f32 %v6018_v47, 0.0  ;;  %6720 = vmatprep.mubr.bf16.mxu0 %v13216_v28  ;;  %7376 = vmatpush1.bf16.msra.mxu0 %v11659_v31 }
 0x7ad   : > { %v13267_v27 = vpack.c.bf16 %v6254_v50, %v6252_v49 }
 0x7ae   : > { %v6021_v37 = vpop.f32.mrb[184].mxu0  ;;  %v13269_v17 = vpack.c.bf16 %v6255_v4, %v6253_v61 }
 0x7af   : > { %v6022_v2 = vadd.f32 %v6021_v37, %v13033_v13  ;;  %v6023_v21 = vpop.f32.mrb[185].mxu0 }
 0x7b0   : > { %v6024_v48 = vadd.f32 %v6023_v21, %v13037_v5  ;;  %v6025_v26 = vpop.f32.mrb[186].mxu0 }
 0x7b1   : > { %v6026_v29 = vadd.f32 %v6025_v26, %v13033_v13  ;;  %v6027_v6 = vpop.f32.mrb[187].mxu0  ;;  %v6256_v8 = vmax.f32 %v6022_v2, 0.0 }
 0x7b2   : > { %v6028_v38 = vadd.f32 %v6027_v6, %v13037_v5  ;;  %v6257_v28 = vmax.f32 %v6024_v48, 0.0 }
 0x7b3   : > { %v6258_v18 = vmax.f32 %v6026_v29, 0.0  ;;  %6721 = vmatmul.mubr.bf16.gmra.mrb[36].mxu0 %v13213_v63 }
 0x7b4   : > { %v6259_v53 = vmax.f32 %v6028_v38, 0.0  ;;  %6730 = vmatprep.mubr.bf16.mxu0 %v13233_v58 }
 0x7b5   : > { %v13277_v16 = vpack.c.bf16 %v6258_v18, %v6256_v8 }
 0x7b6   : > { %v6031_v51 = vpop.f32.mrb[188].mxu0  ;;  %v13285_v10 = vpack.c.bf16 %v6259_v53, %v6257_v28 }
 0x7b7   : > { %v6032_v11 = vadd.f32 %v6031_v51, %v13033_v13  ;;  %v6033_v63 = vpop.f32.mrb[189].mxu0  ;;  %v11662_v51 = vld [vmem:[%s14562_s5 + $0xf0] ss:$8 sps:$4 sm:$0xff]  }
 0x7b8   : > { %v6034_v58 = vadd.f32 %v6033_v63, %v13037_v5  ;;  %v6035_v62 = vpop.f32.mrb[190].mxu0 }
 0x7b9   : > { %v6036_v0 = vadd.f32 %v6035_v62, %v13033_v13  ;;  %v6037_v52 = vpop.f32.mrb[191].mxu0  ;;  %v6260_v15 = vmax.f32 %v6032_v11, 0.0  ;;  %v11664_v11 = vld [vmem:[%s14562_s5 + $0xf4] ss:$8 sps:$4 sm:$0xff]  }
 0x7ba   : > { %v6038_v14 = vadd.f32 %v6037_v52, %v13037_v5  ;;  %v6261_v19 = vmax.f32 %v6034_v58, 0.0  ;;  %11064 = vmatprep.subr.bf16.mxu1 %v11664_v11  ;;  %7377 = vmatprep.subr.bf16.mxu0 %v11664_v11 }
 0x7bb   : > { %v6262_v54 = vmax.f32 %v6036_v0, 0.0  ;;  %6731 = vmatmul.mubr.bf16.gmra.mrb[40].mxu0 %v13225_v32  ;;  %11080 = vmatpush1.bf16.msra.mxu1 %v11662_v51 }
 0x7bc   : > { %v6263_v30 = vmax.f32 %v6038_v14, 0.0  ;;  %6740 = vmatprep.mubr.bf16.mxu0 %v13243_v33  ;;  %7378 = vmatpush1.bf16.msra.mxu0 %v11662_v51 }
 0x7bd   : > { %v13293_v34 = vpack.c.bf16 %v6262_v54, %v6260_v15 }
 0x7be   : > { %v6041_v1 = vpop.f32.mrb[192].mxu0  ;;  %v13295_v7 = vpack.c.bf16 %v6263_v30, %v6261_v19 }
 0x7bf   : > { %v6042_v22 = vadd.f32 %v6041_v1, %v13033_v13  ;;  %v6043_v42 = vpop.f32.mrb[193].mxu0 }
 0x7c0   : > { %v6044_v3 = vadd.f32 %v6043_v42, %v13037_v5  ;;  %v6045_v9 = vpop.f32.mrb[194].mxu0 }
 0x7c1   : > { %v6046_v35 = vadd.f32 %v6045_v9, %v13033_v13  ;;  %v6047_v36 = vpop.f32.mrb[195].mxu0  ;;  %v6264_v20 = vmax.f32 %v6042_v22, 0.0 }
 0x7c2   : > { %v6048_v32 = vadd.f32 %v6047_v36, %v13037_v5  ;;  %v6265_v33 = vmax.f32 %v6044_v3, 0.0 }
 0x7c3   : > { %v6266_v40 = vmax.f32 %v6046_v35, 0.0  ;;  %6741 = vmatmul.mubr.bf16.gmra.mrb[44].mxu0 %v13241_v24 }
 0x7c4   : > { %v6267_v39 = vmax.f32 %v6048_v32, 0.0  ;;  %6750 = vmatprep.mubr.bf16.mxu0 %v13259_v59 }
 0x7c5   : > { %v13303_v41 = vpack.c.bf16 %v6266_v40, %v6264_v20 }
 0x7c6   : > { %v6051_v57 = vpop.f32.mrb[196].mxu0  ;;  %v13311_v56 = vpack.c.bf16 %v6267_v39, %v6265_v33 }
 0x7c7   : > { %v6052_v44 = vadd.f32 %v6051_v57, %v13033_v13  ;;  %v6053_v24 = vpop.f32.mrb[197].mxu0 }
 0x7c8   : > { %v6054_v59 = vadd.f32 %v6053_v24, %v13037_v5  ;;  %v6055_v45 = vpop.f32.mrb[198].mxu0 }
 0x7c9   : > { %v6056_v12 = vadd.f32 %v6055_v45, %v13033_v13  ;;  %v6057_v47 = vpop.f32.mrb[199].mxu0  ;;  %v6268_v50 = vmax.f32 %v6052_v44, 0.0 }
 0x7ca   : > { %v6058_v49 = vadd.f32 %v6057_v47, %v13037_v5  ;;  %v6269_v4 = vmax.f32 %v6054_v59, 0.0 }
 0x7cb   : > { %v6270_v61 = vmax.f32 %v6056_v12, 0.0  ;;  %6751 = vmatmul.mubr.bf16.gmra.mrb[48].mxu0 %v13251_v60 }
 0x7cc   : > { %v6271_v37 = vmax.f32 %v6058_v49, 0.0  ;;  %6760 = vmatprep.mubr.bf16.mxu0 %v13269_v17 }
 0x7cd   : > { %v13319_v2 = vpack.c.bf16 %v6270_v61, %v6268_v50 }
 0x7ce   : > { %v6061_v21 = vpop.f32.mrb[200].mxu0  ;;  %v13321_v48 = vpack.c.bf16 %v6271_v37, %v6269_v4 }
 0x7cf   : > { %v6062_v26 = vadd.f32 %v6061_v21, %v13033_v13  ;;  %v6063_v29 = vpop.f32.mrb[201].mxu0 }
 0x7d0   : > { %v6064_v6 = vadd.f32 %v6063_v29, %v13037_v5  ;;  %v6065_v38 = vpop.f32.mrb[202].mxu0 }
 0x7d1   : > { %v6066_v8 = vadd.f32 %v6065_v38, %v13033_v13  ;;  %v6067_v18 = vpop.f32.mrb[203].mxu0  ;;  %v6272_v28 = vmax.f32 %v6062_v26, 0.0 }
 0x7d2   : > { %v6068_v60 = vadd.f32 %v6067_v18, %v13037_v5  ;;  %v6273_v17 = vmax.f32 %v6064_v6, 0.0 }
 0x7d3   : > { %v6274_v53 = vmax.f32 %v6066_v8, 0.0  ;;  %6761 = vmatmul.mubr.bf16.gmra.mrb[52].mxu0 %v13267_v27 }
 0x7d4   : > { %v6275_v55 = vmax.f32 %v6068_v60, 0.0  ;;  %6770 = vmatprep.mubr.bf16.mxu0 %v13285_v10 }
 0x7d5   : > { %v13329_v46 = vpack.c.bf16 %v6274_v53, %v6272_v28 }
 0x7d6   : > { %v6071_v63 = vpop.f32.mrb[204].mxu0  ;;  %v13337_v58 = vpack.c.bf16 %v6275_v55, %v6273_v17 }
 0x7d7   : > { %v6072_v62 = vadd.f32 %v6071_v63, %v13033_v13  ;;  %v6073_v27 = vpop.f32.mrb[205].mxu0 }
 0x7d8   : > { %v6074_v10 = vadd.f32 %v6073_v27, %v13037_v5  ;;  %v6075_v0 = vpop.f32.mrb[206].mxu0 }
 0x7d9   : > { %v6076_v52 = vadd.f32 %v6075_v0, %v13033_v13  ;;  %v6077_v14 = vpop.f32.mrb[207].mxu0  ;;  %v6276_v54 = vmax.f32 %v6072_v62, 0.0 }
 0x7da   : > { %v6078_v15 = vadd.f32 %v6077_v14, %v13037_v5  ;;  %v6277_v30 = vmax.f32 %v6074_v10, 0.0 }
 0x7db   : > { %v6278_v19 = vmax.f32 %v6076_v52, 0.0  ;;  %6771 = vmatmul.mubr.bf16.gmra.mrb[56].mxu0 %v13277_v16 }
 0x7dc   : > { %v6279_v1 = vmax.f32 %v6078_v15, 0.0  ;;  %6780 = vmatprep.mubr.bf16.mxu0 %v13295_v7 }
 0x7dd   : > { %v13345_v22 = vpack.c.bf16 %v6278_v19, %v6276_v54 }
 0x7de   : > { %v6081_v42 = vpop.f32.mrb[208].mxu0  ;;  %v6367_v3 = vpack.c.bf16 %v6279_v1, %v6277_v30  ;;  %v13387_v30 = vld [vmem:[%s14564_s7] sm:$0xff]  }
 0x7df   : > { %v6082_v9 = vadd.f32 %v6081_v42, %v13033_v13  ;;  %v6083_v35 = vpop.f32.mrb[209].mxu0  ;;  %10743 = vmatprep.subr.bf16.mxu0 %v13387_v30 }
 0x7e0   : > { %v6084_v36 = vadd.f32 %v6083_v35, %v13037_v5  ;;  %v6085_v32 = vpop.f32.mrb[210].mxu0 }
 0x7e1   : > { %v6086_v20 = vadd.f32 %v6085_v32, %v13033_v13  ;;  %v6087_v40 = vpop.f32.mrb[211].mxu0  ;;  %v6280_v16 = vmax.f32 %v6082_v9, 0.0 }
 0x7e2   : > { %v6088_v33 = vadd.f32 %v6087_v40, %v13037_v5  ;;  %v6281_v7 = vmax.f32 %v6084_v36, 0.0 }
 0x7e3   : > { %v6282_v39 = vmax.f32 %v6086_v20, 0.0  ;;  %6781 = vmatmul.mubr.bf16.gmra.mrb[60].mxu0 %v13293_v34 }
 0x7e4   : > { %v6283_v31 = vmax.f32 %v6088_v33, 0.0  ;;  %6790 = vmatprep.mubr.bf16.mxu0 %v13311_v56 }
 0x7e5   : > { %v13353_v43 = vpack.c.bf16 %v6282_v39, %v6280_v16 }
 0x7e6   : > { %v6091_v57 = vpop.f32.mrb[212].mxu0  ;;  %v13355_v44 = vpack.c.bf16 %v6283_v31, %v6281_v7 }
 0x7e7   : > { %v6092_v24 = vadd.f32 %v6091_v57, %v13033_v13  ;;  %v6093_v59 = vpop.f32.mrb[213].mxu0 }
 0x7e8   : > { %v6094_v45 = vadd.f32 %v6093_v59, %v13037_v5  ;;  %v6095_v12 = vpop.f32.mrb[214].mxu0 }
 0x7e9   : > { %v6096_v47 = vadd.f32 %v6095_v12, %v13033_v13  ;;  %v6097_v49 = vpop.f32.mrb[215].mxu0  ;;  %v6284_v50 = vmax.f32 %v6092_v24, 0.0 }
 0x7ea   : > { %v6098_v34 = vadd.f32 %v6097_v49, %v13037_v5  ;;  %v6285_v56 = vmax.f32 %v6094_v45, 0.0 }
 0x7eb   : > { %v6286_v61 = vmax.f32 %v6096_v47, 0.0  ;;  %6791 = vmatmul.mubr.bf16.gmra.mrb[64].mxu0 %v13303_v41 }
 0x7ec   : > { %v6287_v4 = vmax.f32 %v6098_v34, 0.0  ;;  %6800 = vmatprep.mubr.bf16.mxu0 %v13321_v48 }
 0x7ed   : > { %v13363_v37 = vpack.c.bf16 %v6286_v61, %v6284_v50 }
 0x7ee   : > { %v6101_v21 = vpop.f32.mrb[216].mxu0  ;;  %v13365_v26 = vpack.c.bf16 %v6287_v4, %v6285_v56 }
 0x7ef   : > { %v6102_v29 = vadd.f32 %v6101_v21, %v13033_v13  ;;  %v6103_v6 = vpop.f32.mrb[217].mxu0 }
 0x7f0   : > { %v6104_v38 = vadd.f32 %v6103_v6, %v13037_v5  ;;  %v6105_v8 = vpop.f32.mrb[218].mxu0 }
 0x7f1   : > { %v6106_v18 = vadd.f32 %v6105_v8, %v13033_v13  ;;  %v6107_v60 = vpop.f32.mrb[219].mxu0  ;;  %v6288_v28 = vmax.f32 %v6102_v29, 0.0 }
 0x7f2   : > { %v6108_v41 = vadd.f32 %v6107_v60, %v13037_v5  ;;  %v6289_v48 = vmax.f32 %v6104_v38, 0.0 }
 0x7f3   : > { %v6290_v53 = vmax.f32 %v6106_v18, 0.0  ;;  %6801 = vmatmul.mubr.bf16.gmra.mrb[68].mxu0 %v13319_v2 }
 0x7f4   : > { %v6291_v17 = vmax.f32 %v6108_v41, 0.0  ;;  %6810 = vmatprep.mubr.bf16.mxu0 %v13337_v58 }
 0x7f5   : > { %v13373_v55 = vpack.c.bf16 %v6290_v53, %v6288_v28 }
 0x7f6   : > { %v6111_v51 = vpop.f32.mrb[220].mxu0  ;;  %v13375_v11 = vpack.c.bf16 %v6291_v17, %v6289_v48 }
 0x7f7   : > { %v6112_v63 = vadd.f32 %v6111_v51, %v13033_v13  ;;  %v6113_v62 = vpop.f32.mrb[221].mxu0 }
 0x7f8   : > { %v6114_v27 = vadd.f32 %v6113_v62, %v13037_v5  ;;  %v6115_v10 = vpop.f32.mrb[222].mxu0 }
 0x7f9   : > { %v6116_v0 = vadd.f32 %v6115_v10, %v13033_v13  ;;  %v6117_v52 = vpop.f32.mrb[223].mxu0  ;;  %v6292_v14 = vmax.f32 %v6112_v63, 0.0 }
 0x7fa   : > { %v6118_v2 = vadd.f32 %v6117_v52, %v13037_v5  ;;  %v6293_v58 = vmax.f32 %v6114_v27, 0.0 }
 0x7fb   : > { %v6294_v15 = vmax.f32 %v6116_v0, 0.0  ;;  %6811 = vmatmul.mubr.bf16.gmra.mrb[72].mxu0 %v13329_v46 }
 0x7fc   : > { %v6295_v54 = vmax.f32 %v6118_v2, 0.0  ;;  %6820 = vmatprep.mubr.bf16.mxu0 %v6367_v3 }
 0x7fd   : > { %v13382_v19 = vpack.c.bf16 %v6294_v15, %v6292_v14 }
 0x7fe   : > { %v6121_v1 = vpop.f32.mrb[224].mxu0  ;;  %v6375_v42 = vpack.c.bf16 %v6295_v54, %v6293_v58 }
 0x7ff   : > { %v6122_v9 = vadd.f32 %v6121_v1, %v13033_v13  ;;  %v6123_v35 = vpop.f32.mrb[225].mxu0 }
 0x800   : > { %v6124_v46 = vadd.f32 %v6123_v35, %v13037_v5  ;;  %v6125_v3 = vpop.f32.mrb[226].mxu0 }
 0x801   : > { %v6126_v36 = vadd.f32 %v6125_v3, %v13033_v13  ;;  %v6127_v32 = vpop.f32.mrb[227].mxu0  ;;  %v6296_v40 = vmax.f32 %v6122_v9, 0.0 }
 0x802   : > { %v6128_v20 = vadd.f32 %v6127_v32, %v13037_v5  ;;  %v6297_v16 = vmax.f32 %v6124_v46, 0.0 }
 0x803   : > { %v6298_v33 = vmax.f32 %v6126_v36, 0.0  ;;  %6821 = vmatmul.mubr.bf16.gmra.mrb[76].mxu0 %v13345_v22 }
 0x804   : > { %v6299_v39 = vmax.f32 %v6128_v20, 0.0  ;;  %6830 = vmatprep.mubr.bf16.mxu0 %v13355_v44 }
 0x805   : > { %v13403_v7 = vpack.c.bf16 %v6298_v33, %v6296_v40 }
 0x806   : > { %v6131_v31 = vpop.f32.mrb[228].mxu0  ;;  %v6377_v57 = vpack.c.bf16 %v6299_v39, %v6297_v16 }
 0x807   : > { %v6132_v24 = vadd.f32 %v6131_v31, %v13033_v13  ;;  %v6133_v59 = vpop.f32.mrb[229].mxu0 }
 0x808   : > { %v6134_v45 = vadd.f32 %v6133_v59, %v13037_v5  ;;  %v6135_v12 = vpop.f32.mrb[230].mxu0 }
 0x809   : > { %v6136_v47 = vadd.f32 %v6135_v12, %v13033_v13  ;;  %v6137_v49 = vpop.f32.mrb[231].mxu0  ;;  %v6300_v22 = vmax.f32 %v6132_v24, 0.0 }
 0x80a   : > { %v6138_v34 = vadd.f32 %v6137_v49, %v13037_v5  ;;  %v6301_v44 = vmax.f32 %v6134_v45, 0.0 }
 0x80b   : > { %v6302_v50 = vmax.f32 %v6136_v47, 0.0  ;;  %6831 = vmatmul.mubr.bf16.gmra.mrb[80].mxu0 %v13353_v43 }
 0x80c   : > { %v6303_v61 = vmax.f32 %v6138_v34, 0.0  ;;  %6840 = vmatprep.mubr.bf16.mxu0 %v13365_v26 }
 0x80d   : > { %v13411_v56 = vpack.c.bf16 %v6302_v50, %v6300_v22 }
 0x80e   : > { %v6141_v4 = vpop.f32.mrb[232].mxu0  ;;  %v6379_v21 = vpack.c.bf16 %v6303_v61, %v6301_v44 }
 0x80f   : > { %v6142_v29 = vadd.f32 %v6141_v4, %v13033_v13  ;;  %v6143_v6 = vpop.f32.mrb[233].mxu0 }
 0x810   : > { %v6144_v38 = vadd.f32 %v6143_v6, %v13037_v5  ;;  %v6145_v8 = vpop.f32.mrb[234].mxu0 }
 0x811   : > { %v6146_v18 = vadd.f32 %v6145_v8, %v13033_v13  ;;  %v6147_v60 = vpop.f32.mrb[235].mxu0  ;;  %v6304_v43 = vmax.f32 %v6142_v29, 0.0 }
 0x812   : > { %v6148_v41 = vadd.f32 %v6147_v60, %v13037_v5  ;;  %v6305_v26 = vmax.f32 %v6144_v38, 0.0 }
 0x813   : > { %v6306_v28 = vmax.f32 %v6146_v18, 0.0  ;;  %6841 = vmatmul.mubr.bf16.gmra.mrb[84].mxu0 %v13363_v37 }
 0x814   : > { %v6307_v53 = vmax.f32 %v6148_v41, 0.0  ;;  %6850 = vmatprep.mubr.bf16.mxu0 %v13375_v11 }
 0x815   : > { %v13419_v48 = vpack.c.bf16 %v6306_v28, %v6304_v43 }
 0x816   : > { %v6151_v17 = vpop.f32.mrb[236].mxu0  ;;  %v6381_v51 = vpack.c.bf16 %v6307_v53, %v6305_v26 }
 0x817   : > { %v6152_v63 = vadd.f32 %v6151_v17, %v13033_v13  ;;  %v6153_v62 = vpop.f32.mrb[237].mxu0 }
 0x818   : > { %v6154_v27 = vadd.f32 %v6153_v62, %v13037_v5  ;;  %v6155_v10 = vpop.f32.mrb[238].mxu0 }
 0x819   : > { %v6156_v0 = vadd.f32 %v6155_v10, %v13033_v13  ;;  %v6157_v52 = vpop.f32.mrb[239].mxu0  ;;  %v6308_v37 = vmax.f32 %v6152_v63, 0.0 }
 0x81a   : > { %v6158_v2 = vadd.f32 %v6157_v52, %v13037_v5  ;;  %v6309_v11 = vmax.f32 %v6154_v27, 0.0 }
 0x81b   : > { %v6310_v14 = vmax.f32 %v6156_v0, 0.0  ;;  %6851 = vmatmul.mubr.bf16.gmra.mrb[88].mxu0 %v13373_v55  ;;  %v10414_v0 = vld [vmem:[%s14561_s4 + $0xe] sm:$0x3] }
 0x81c   : > { %v6311_v15 = vmax.f32 %v6158_v2, 0.0  ;;  %6860 = vmatprep.mubr.bf16.mxu0 %v6375_v42 }
 0x81d   : > { %v13426_v58 = vpack.c.bf16 %v6310_v14, %v6308_v37  ;;  %v13464_v14 = vrot.slane %v10414_v0, %v12021_v23 }
 0x81e   : > { %v6161_v54 = vpop.f32.mrb[240].mxu0  ;;  %v6383_v1 = vpack.c.bf16 %v6311_v15, %v6309_v11 }
 0x81f   : > { %v6162_v9 = vadd.f32 %v6161_v54, %v13033_v13  ;;  %v6163_v35 = vpop.f32.mrb[241].mxu0  ;;  %v13467_v54 = vrot.slane %v10414_v0, %v12026_v25 }
 0x820   : > { %v6164_v46 = vadd.f32 %v6163_v35, %v13037_v5  ;;  %v6165_v3 = vpop.f32.mrb[242].mxu0 }
 0x821   : > { %v6166_v36 = vadd.f32 %v6165_v3, %v13033_v13  ;;  %v6167_v32 = vpop.f32.mrb[243].mxu0  ;;  %v6312_v40 = vmax.f32 %v6162_v9, 0.0 }
 0x822   : > { %v6168_v20 = vadd.f32 %v6167_v32, %v13037_v5  ;;  %v6313_v42 = vmax.f32 %v6164_v46, 0.0 }
 0x823   : > { %v6314_v55 = vmax.f32 %v6166_v36, 0.0  ;;  %6861 = vmatmul.mubr.bf16.gmra.mrb[92].mxu0 %v13382_v19 }
 0x824   : > { %v6315_v33 = vmax.f32 %v6168_v20, 0.0  ;;  %6870 = vmatprep.mubr.bf16.mxu0 %v6377_v57 }
 0x825   : > { %v13433_v16 = vpack.c.bf16 %v6314_v55, %v6312_v40 }
 0x826   : > { %v6171_v39 = vpop.f32.mrb[244].mxu0  ;;  %v13435_v31 = vpack.c.bf16 %v6315_v33, %v6313_v42 }
 0x827   : > { %v6172_v24 = vadd.f32 %v6171_v39, %v13033_v13  ;;  %v6173_v59 = vpop.f32.mrb[245].mxu0 }
 0x828   : > { %v6174_v45 = vadd.f32 %v6173_v59, %v13037_v5  ;;  %v6175_v12 = vpop.f32.mrb[246].mxu0 }
 0x829   : > { %v6176_v47 = vadd.f32 %v6175_v12, %v13033_v13  ;;  %v6177_v49 = vpop.f32.mrb[247].mxu0  ;;  %v6316_v19 = vmax.f32 %v6172_v24, 0.0 }
 0x82a   : > { %v6178_v34 = vadd.f32 %v6177_v49, %v13037_v5  ;;  %v6317_v57 = vmax.f32 %v6174_v45, 0.0 }
 0x82b   : > { %v6318_v22 = vmax.f32 %v6176_v47, 0.0  ;;  %6871 = vmatmul.mubr.bf16.gmra.mrb[96].mxu0 %v13403_v7 }
 0x82c   : > { %v6319_v50 = vmax.f32 %v6178_v34, 0.0  ;;  %6880 = vmatprep.mubr.bf16.mxu0 %v6379_v21 }
 0x82d   : > { %v13442_v44 = vpack.c.bf16 %v6318_v22, %v6316_v19 }
 0x82e   : > { %v6181_v61 = vpop.f32.mrb[248].mxu0  ;;  %v13444_v4 = vpack.c.bf16 %v6319_v50, %v6317_v57 }
 0x82f   : > { %v6182_v29 = vadd.f32 %v6181_v61, %v13033_v13  ;;  %v6183_v6 = vpop.f32.mrb[249].mxu0 }
 0x830   : > { %v6184_v38 = vadd.f32 %v6183_v6, %v13037_v5  ;;  %v6185_v8 = vpop.f32.mrb[250].mxu0 }
 0x831   : > { %v6186_v18 = vadd.f32 %v6185_v8, %v13033_v13  ;;  %v6187_v60 = vpop.f32.mrb[251].mxu0  ;;  %v6320_v7 = vmax.f32 %v6182_v29, 0.0 }
 0x832   : > { %v6188_v41 = vadd.f32 %v6187_v60, %v13037_v5  ;;  %v6321_v21 = vmax.f32 %v6184_v38, 0.0 }
 0x833   : > { %v6322_v43 = vmax.f32 %v6186_v18, 0.0  ;;  %6881 = vmatmul.mubr.bf16.gmra.mrb[100].mxu0 %v13411_v56 }
 0x834   : > { %v6323_v28 = vmax.f32 %v6188_v41, 0.0  ;;  %6890 = vmatprep.mubr.bf16.mxu0 %v6381_v51 }
 0x835   : > { %v13451_v26 = vpack.c.bf16 %v6322_v43, %v6320_v7 }
 0x836   : > { %v6191_v53 = vpop.f32.mrb[252].mxu0  ;;  %v13453_v17 = vpack.c.bf16 %v6323_v28, %v6321_v21 }
 0x837   : > { %v6192_v63 = vadd.f32 %v6191_v53, %v13033_v13  ;;  %v6193_v62 = vpop.f32.mrb[253].mxu0 }
 0x838   : > { %v6194_v27 = vadd.f32 %v6193_v62, %v13037_v5  ;;  %v6195_v10 = vpop.f32.mrb[254].mxu0 }
 0x839   : > { %v6196_v56 = vadd.f32 %v6195_v10, %v13033_v13  ;;  %v6197_v52 = vpop.f32.mrb[255].mxu0  ;;  %v6324_v2 = vmax.f32 %v6192_v63, 0.0 }
 0x83a   : > { %v6198_v51 = vadd.f32 %v6197_v52, %v13037_v5  ;;  %v6325_v11 = vmax.f32 %v6194_v27, 0.0 }
 0x83b   : > { %v6326_v37 = vmax.f32 %v6196_v56, 0.0  ;;  %6891 = vmatmul.mubr.bf16.gmra.mrb[104].mxu0 %v13419_v48 }
 0x83c   : > { %v6327_v15 = vmax.f32 %v6198_v51, 0.0  ;;  %6900 = vmatprep.mubr.bf16.mxu0 %v6383_v1  ;;  %v13477_v1 = vld [vmem:[%s14565_s8] sm:$0xff]  }
 0x83d   : > { %v13469_v9 = vpack.c.bf16 %v6326_v37, %v6324_v2  ;;  %10809 = vmatprep.subr.bf16.mxu1 %v13477_v1 }
 0x83e   : > { %v6632_v35 = vpop.f32.mrb[0].mxu0  ;;  %v6391_v13 = vpack.c.bf16 %v6327_v15, %v6325_v11 }
 0x83f   : > { %v6633_v46 = vadd.f32 %v6632_v35, %v13464_v14  ;;  %v6634_v5 = vpop.f32.mrb[1].mxu0 }
 0x840   : > { %v6635_v3 = vadd.f32 %v6634_v5, %v13467_v54  ;;  %v6636_v36 = vpop.f32.mrb[2].mxu0 }
 0x841   : > { %v6637_v48 = vadd.f32 %v6636_v36, %v13464_v14  ;;  %v6638_v32 = vpop.f32.mrb[3].mxu0  ;;  %v6951_v40 = vmax.f32 %v6633_v46, 0.0  ;;  %v11687_v36 = vld [vmem:[%s14565_s8 + $0x8] sm:$0xff]  }
 0x842   : > { %v6639_v20 = vadd.f32 %v6638_v32, %v13467_v54  ;;  %v6952_v42 = vmax.f32 %v6635_v3, 0.0 }
 0x843   : > { %v6953_v55 = vmax.f32 %v6637_v48, 0.0  ;;  %6901 = vmatmul.mubr.bf16.gmra.mrb[108].mxu0 %v13426_v58 }
 0x844   : > { %v6954_v33 = vmax.f32 %v6639_v20, 0.0  ;;  %6910 = vmatprep.mubr.bf16.mxu0 %v13435_v31 }
 0x845   : > { %v13483_v39 = vpack.c.bf16 %v6953_v55, %v6951_v40 }
 0x846   : > { %v6642_v24 = vpop.f32.mrb[4].mxu0  ;;  %v13485_v59 = vpack.c.bf16 %v6954_v33, %v6952_v42 }
 0x847   : > { %v6643_v45 = vadd.f32 %v6642_v24, %v13464_v14  ;;  %v6644_v12 = vpop.f32.mrb[5].mxu0 }
 0x848   : > { %v6645_v47 = vadd.f32 %v6644_v12, %v13467_v54  ;;  %v6646_v49 = vpop.f32.mrb[6].mxu0 }
 0x849   : > { %v6647_v34 = vadd.f32 %v6646_v49, %v13464_v14  ;;  %v6648_v58 = vpop.f32.mrb[7].mxu0  ;;  %v6955_v22 = vmax.f32 %v6643_v45, 0.0 }
 0x84a   : > { %v6649_v19 = vadd.f32 %v6648_v58, %v13467_v54  ;;  %v6956_v31 = vmax.f32 %v6645_v47, 0.0 }
 0x84b   : > { %v6957_v57 = vmax.f32 %v6647_v34, 0.0  ;;  %6911 = vmatmul.mubr.bf16.gmra.mrb[112].mxu0 %v13433_v16 }
 0x84c   : > { %v6958_v50 = vmax.f32 %v6649_v19, 0.0  ;;  %6920 = vmatprep.mubr.bf16.mxu0 %v13444_v4 }
 0x84d   : > { %v13493_v61 = vpack.c.bf16 %v6957_v57, %v6955_v22 }
 0x84e   : > { %v6652_v29 = vpop.f32.mrb[8].mxu0  ;;  %v13495_v6 = vpack.c.bf16 %v6958_v50, %v6956_v31 }
 0x84f   : > { %v6653_v38 = vadd.f32 %v6652_v29, %v13464_v14  ;;  %v6654_v8 = vpop.f32.mrb[9].mxu0 }
 0x850   : > { %v6655_v18 = vadd.f32 %v6654_v8, %v13467_v54  ;;  %v6656_v60 = vpop.f32.mrb[10].mxu0 }
 0x851   : > { %v6657_v41 = vadd.f32 %v6656_v60, %v13464_v14  ;;  %v6658_v7 = vpop.f32.mrb[11].mxu0  ;;  %v6959_v43 = vmax.f32 %v6653_v38, 0.0 }
 0x852   : > { %v6659_v16 = vadd.f32 %v6658_v7, %v13467_v54  ;;  %v6960_v4 = vmax.f32 %v6655_v18, 0.0 }
 0x853   : > { %v6961_v21 = vmax.f32 %v6657_v41, 0.0  ;;  %6921 = vmatmul.mubr.bf16.gmra.mrb[116].mxu0 %v13442_v44 }
 0x854   : > { %v6962_v28 = vmax.f32 %v6659_v16, 0.0  ;;  %6930 = vmatprep.mubr.bf16.mxu0 %v13453_v17 }
 0x855   : > { %v13503_v53 = vpack.c.bf16 %v6961_v21, %v6959_v43 }
 0x856   : > { %v6662_v63 = vpop.f32.mrb[12].mxu0  ;;  %v13505_v62 = vpack.c.bf16 %v6962_v28, %v6960_v4 }
 0x857   : > { %v6663_v27 = vadd.f32 %v6662_v63, %v13464_v14  ;;  %v6664_v10 = vpop.f32.mrb[13].mxu0 }
 0x858   : > { %v6665_v0 = vadd.f32 %v6664_v10, %v13467_v54  ;;  %v6666_v56 = vpop.f32.mrb[14].mxu0 }
 0x859   : > { %v6667_v52 = vadd.f32 %v6666_v56, %v13464_v14  ;;  %v6668_v51 = vpop.f32.mrb[15].mxu0  ;;  %v6963_v2 = vmax.f32 %v6663_v27, 0.0 }
 0x85a   : > { %v6669_v44 = vadd.f32 %v6668_v51, %v13467_v54  ;;  %v6964_v17 = vmax.f32 %v6665_v0, 0.0 }
 0x85b   : > { %v6965_v37 = vmax.f32 %v6667_v52, 0.0  ;;  %6931 = vmatmul.mubr.bf16.gmra.mrb[120].mxu0 %v13451_v26  ;;  %v11666_v52 = vld [vmem:[%s13396_s22] sm:$0xff]  }
 0x85c   : > { %v6966_v11 = vmax.f32 %v6669_v44, 0.0  ;;  %6940 = vmatprep.mubr.bf16.mxu0 %v6391_v13 }
 0x85d   : > { %v7085_v15 = vpack.c.bf16 %v6965_v37, %v6963_v2 }
 0x85e   : > { %v7086_v35 = vpack.c.bf16 %v6966_v11, %v6964_v17  ;;  %v6672_v46 = vpop.f32.mrb[16].mxu0 }
 0x85f   : > { %v6673_v5 = vadd.f32 %v6672_v46, %v13464_v14  ;;  %v6674_v3 = vpop.f32.mrb[17].mxu0 }
 0x860   : > { %v6675_v48 = vadd.f32 %v6674_v3, %v13467_v54  ;;  %v6676_v32 = vpop.f32.mrb[18].mxu0  ;;  %7409 = vmatprep.mubr.bf16.mxu1 %v7086_v35 }
 0x861   : > { %v6677_v20 = vadd.f32 %v6676_v32, %v13464_v14  ;;  %v6678_v26 = vpop.f32.mrb[19].mxu0  ;;  %7410 = vmatmul.mubr.bf16.vlgmr.msra.gmra.mrb[128].mxu1 %v7085_v15  ;;  %v6967_v40 = vmax.f32 %v6673_v5, 0.0  ;;  %v11690_v15 = vld [vmem:[%s14565_s8 + $0x10] sm:$0xff]  }
 0x862   : > { %v6679_v13 = vadd.f32 %v6678_v26, %v13467_v54  ;;  %10810 = vmatpush3.bf16.msra.mxu1 %v13477_v1  ;;  %v6968_v42 = vmax.f32 %v6675_v48, 0.0 }
 0x863   : > { %v6969_v55 = vmax.f32 %v6677_v20, 0.0  ;;  %6941 = vmatmul.mubr.bf16.gmra.mrb[124].mxu0 %v13469_v9  ;;  %10811 = vmatprep.subr.bf16.mxu1 %v11687_v36 }
 0x864   : > { %v6970_v33 = vmax.f32 %v6679_v13, 0.0  ;;  %7379 = vmatprep.mubr.bf16.mxu0 %v13485_v59 }
 0x865   : > { %v7087_v24 = vpack.c.bf16 %v6969_v55, %v6967_v40 }
 0x866   : > { %v7088_v45 = vpack.c.bf16 %v6970_v33, %v6968_v42  ;;  %v6682_v12 = vpop.f32.mrb[20].mxu0  ;;  %10812 = vmatpush3.bf16.msra.mxu1 %v11687_v36  ;;  %v11667_v36 = vld [vmem:[%s13396_s22 + $0x8] sm:$0xff]  }
 0x867   : > { %v6683_v47 = vadd.f32 %v6682_v12, %v13464_v14  ;;  %v6684_v49 = vpop.f32.mrb[21].mxu0  ;;  %10813 = vmatprep.subr.bf16.mxu1 %v11690_v15 }
 0x868   : > { %v6685_v34 = vadd.f32 %v6684_v49, %v13467_v54  ;;  %v6686_v58 = vpop.f32.mrb[22].mxu0  ;;  %7419 = vmatprep.mubr.bf16.mxu1 %v7088_v45 }
 0x869   : > { %v6687_v1 = vadd.f32 %v6686_v58, %v13464_v14  ;;  %v6688_v19 = vpop.f32.mrb[23].mxu0  ;;  %7420 = vmatmul.mubr.bf16.gmra.mrb[132].mxu1 %v7087_v24  ;;  %v6971_v22 = vmax.f32 %v6683_v47, 0.0 }
 0x86a   : > { %v6689_v9 = vadd.f32 %v6688_v19, %v13467_v54  ;;  %v6972_v59 = vmax.f32 %v6685_v34, 0.0  ;;  %10814 = vmatpush3.bf16.msra.mxu1 %v11690_v15  ;;  %v11669_v34 = vld [vmem:[%s13396_s22 + $0x18] sm:$0xff]   ;;  %v11670_v19 = vld [vmem:[%s13396_s22 + $0x20] sm:$0xff]  }
 0x86b   : > { %v6973_v57 = vmax.f32 %v6687_v1, 0.0  ;;  %7380 = vmatmul.mubr.bf16.vlgmr.msra.gmra.mrb[128].mxu0 %v13483_v39 }
 0x86c   : > { %v6974_v31 = vmax.f32 %v6689_v9, 0.0  ;;  %7389 = vmatprep.mubr.bf16.mxu0 %v13495_v6  ;;  %10744 = vmatpush3.bf16.msra.mxu0 %v13387_v30 }
 0x86d   : > { %v7089_v50 = vpack.c.bf16 %v6973_v57, %v6971_v22 }
 0x86e   : > { %v7090_v29 = vpack.c.bf16 %v6974_v31, %v6972_v59  ;;  %v6692_v38 = vpop.f32.mrb[24].mxu0 }
 0x86f   : > { %v6693_v8 = vadd.f32 %v6692_v38, %v13464_v14  ;;  %v6694_v18 = vpop.f32.mrb[25].mxu0 }
 0x870   : > { %v6695_v60 = vadd.f32 %v6694_v18, %v13467_v54  ;;  %v6696_v41 = vpop.f32.mrb[26].mxu0  ;;  %7429 = vmatprep.mubr.bf16.mxu1 %v7090_v29 }
 0x871   : > { %v6697_v7 = vadd.f32 %v6696_v41, %v13464_v14  ;;  %v6698_v16 = vpop.f32.mrb[27].mxu0  ;;  %7430 = vmatmul.mubr.bf16.gmra.mrb[136].mxu1 %v7089_v50  ;;  %v6975_v6 = vmax.f32 %v6693_v8, 0.0 }
 0x872   : > { %v6699_v39 = vadd.f32 %v6698_v16, %v13467_v54  ;;  %v6976_v30 = vmax.f32 %v6695_v60, 0.0 }
 0x873   : > { %v6977_v43 = vmax.f32 %v6697_v7, 0.0  ;;  %7390 = vmatmul.mubr.bf16.gmra.mrb[132].mxu0 %v13493_v61  ;;  %v11671_v7 = vld [vmem:[%s13396_s22 + $0x28] sm:$0xff]  }
 0x874   : > { %v6978_v21 = vmax.f32 %v6699_v39, 0.0  ;;  %7399 = vmatprep.mubr.bf16.mxu0 %v13505_v62 }
 0x875   : > { %v7091_v4 = vpack.c.bf16 %v6977_v43, %v6975_v6  ;;  %v11672_v6 = vld [vmem:[%s13396_s22 + $0x30] sm:$0xff]  }
 0x876   : > { %v7092_v28 = vpack.c.bf16 %v6978_v21, %v6976_v30  ;;  %v6702_v63 = vpop.f32.mrb[28].mxu0 }
 0x877   : > { %v6703_v27 = vadd.f32 %v6702_v63, %v13464_v14  ;;  %v6704_v10 = vpop.f32.mrb[29].mxu0 }
 0x878   : > { %v6705_v0 = vadd.f32 %v6704_v10, %v13467_v54  ;;  %v6706_v56 = vpop.f32.mrb[30].mxu0  ;;  %7439 = vmatprep.mubr.bf16.mxu1 %v7092_v28 }
 0x879   : > { %v6707_v51 = vadd.f32 %v6706_v56, %v13464_v14  ;;  %v6708_v44 = vpop.f32.mrb[31].mxu0  ;;  %7440 = vmatmul.mubr.bf16.gmra.mrb[140].mxu1 %v7091_v4  ;;  %v6979_v62 = vmax.f32 %v6703_v27, 0.0 }
 0x87a   : > { %v6709_v61 = vadd.f32 %v6708_v44, %v13467_v54  ;;  %v6980_v37 = vmax.f32 %v6705_v0, 0.0 }
 0x87b   : > { %v6981_v2 = vmax.f32 %v6707_v51, 0.0  ;;  %7400 = vmatmul.mubr.bf16.gmra.mrb[136].mxu0 %v13503_v53  ;;  %v11668_v53 = vld [vmem:[%s13396_s22 + $0x10] sm:$0xff]  }
 0x87c   : > { %v6982_v17 = vmax.f32 %v6709_v61, 0.0  ;;  %10745 = vmatprep.mubr.msk.bf16.mxu0 %vm7997_vm1, %v11666_v52  ;;  %v11695_v52 = vld [vmem:[%s14565_s8 + $0x18] sm:$0xff]  }
 0x87d   : > { %v7093_v11 = vpack.c.bf16 %v6981_v2, %v6979_v62  ;;  %v11673_v61 = vld [vmem:[%s13396_s22 + $0x38] sm:$0xff]   ;;  %10815 = vmatprep.subr.bf16.mxu1 %v11695_v52 }
 0x87e   : > { %v7094_v35 = vpack.c.bf16 %v6982_v17, %v6980_v37  ;;  %v6712_v46 = vpop.f32.mrb[32].mxu0  ;;  %v11674_v37 = vld [vmem:[%s13396_s22 + $0x40] sm:$0xff]   ;;  %10816 = vmatpush3.bf16.msra.mxu1 %v11695_v52 }
 0x87f   : > { %v6713_v5 = vadd.f32 %v6712_v46, %v13464_v14  ;;  %v6714_v3 = vpop.f32.mrb[33].mxu0 }
 0x880   : > { %v6715_v48 = vadd.f32 %v6714_v3, %v13467_v54  ;;  %v6716_v32 = vpop.f32.mrb[34].mxu0  ;;  %7449 = vmatprep.mubr.bf16.mxu1 %v7094_v35 }
 0x881   : > { %v6717_v20 = vadd.f32 %v6716_v32, %v13464_v14  ;;  %v6718_v26 = vpop.f32.mrb[35].mxu0  ;;  %7450 = vmatmul.mubr.bf16.gmra.mrb[144].mxu1 %v7093_v11  ;;  %v6983_v40 = vmax.f32 %v6713_v5, 0.0 }
 0x882   : > { %v6719_v13 = vadd.f32 %v6718_v26, %v13467_v54  ;;  %v6984_v42 = vmax.f32 %v6715_v48, 0.0  ;;  %v11675_v26 = vld [vmem:[%s13396_s22 + $0x48] sm:$0xff]  }
 0x883   : > { %v6985_v55 = vmax.f32 %v6717_v20, 0.0  ;;  %10746 = vmatmul.mubr.msk.bf16.vlgmr.msra.gmra.mrb[140].mxu0 %vm7997_vm1, %v11667_v36 }
 0x884   : > { %v6986_v33 = vmax.f32 %v6719_v13, 0.0  ;;  %10749 = vmatprep.mubr.msk.bf16.mxu0 %vm7997_vm1, %v11668_v53 }
 0x885   : > { %v7095_v24 = vpack.c.bf16 %v6985_v55, %v6983_v40  ;;  %v11676_v55 = vld [vmem:[%s13396_s22 + $0x50] sm:$0xff]  }
 0x886   : > { %v7096_v45 = vpack.c.bf16 %v6986_v33, %v6984_v42  ;;  %v6722_v12 = vpop.f32.mrb[36].mxu0 }
 0x887   : > { %v6723_v47 = vadd.f32 %v6722_v12, %v13464_v14  ;;  %v6724_v49 = vpop.f32.mrb[37].mxu0 }
 0x888   : > { %v6725_v58 = vadd.f32 %v6724_v49, %v13467_v54  ;;  %v6726_v1 = vpop.f32.mrb[38].mxu0  ;;  %7459 = vmatprep.mubr.bf16.mxu1 %v7096_v45 }
 0x889   : > { %v6727_v9 = vadd.f32 %v6726_v1, %v13464_v14  ;;  %v6728_v22 = vpop.f32.mrb[39].mxu0  ;;  %7460 = vmatmul.mubr.bf16.gmra.mrb[148].mxu1 %v7095_v24  ;;  %v6987_v59 = vmax.f32 %v6723_v47, 0.0 }
 0x88a   : > { %v6729_v57 = vadd.f32 %v6728_v22, %v13467_v54  ;;  %v6988_v50 = vmax.f32 %v6725_v58, 0.0  ;;  %v11677_v22 = vld [vmem:[%s13396_s22 + $0x58] sm:$0xff]  }
 0x88b   : > { %v6989_v31 = vmax.f32 %v6727_v9, 0.0  ;;  %10750 = vmatmul.mubr.msk.bf16.gmra.mrb[144].mxu0 %vm7997_vm1, %v11669_v34 }
 0x88c   : > { %v6990_v29 = vmax.f32 %v6729_v57, 0.0  ;;  %10753 = vmatprep.mubr.msk.bf16.mxu0 %vm7997_vm1, %v11670_v19 }
 0x88d   : > { %v7097_v38 = vpack.c.bf16 %v6989_v31, %v6987_v59  ;;  %v11678_v31 = vld [vmem:[%s13396_s22 + $0x60] sm:$0xff]  }
 0x88e   : > { %v7098_v8 = vpack.c.bf16 %v6990_v29, %v6988_v50  ;;  %v6732_v18 = vpop.f32.mrb[40].mxu0 }
 0x88f   : > { %v6733_v60 = vadd.f32 %v6732_v18, %v13464_v14  ;;  %v6734_v41 = vpop.f32.mrb[41].mxu0 }
 0x890   : > { %v6735_v16 = vadd.f32 %v6734_v41, %v13467_v54  ;;  %v6736_v39 = vpop.f32.mrb[42].mxu0  ;;  %7469 = vmatprep.mubr.bf16.mxu1 %v7098_v8 }
 0x891   : > { %v6737_v43 = vadd.f32 %v6736_v39, %v13464_v14  ;;  %v6738_v30 = vpop.f32.mrb[43].mxu0  ;;  %7470 = vmatmul.mubr.bf16.gmra.mrb[152].mxu1 %v7097_v38  ;;  %v6991_v4 = vmax.f32 %v6733_v60, 0.0 }
 0x892   : > { %v6739_v21 = vadd.f32 %v6738_v30, %v13467_v54  ;;  %v6992_v63 = vmax.f32 %v6735_v16, 0.0  ;;  %v11679_v30 = vld [vmem:[%s13396_s22 + $0x68] sm:$0xff]  }
 0x893   : > { %v6993_v28 = vmax.f32 %v6737_v43, 0.0  ;;  %10754 = vmatmul.mubr.msk.bf16.gmra.mrb[148].mxu0 %vm7997_vm1, %v11671_v7 }
 0x894   : > { %v6994_v27 = vmax.f32 %v6739_v21, 0.0  ;;  %10757 = vmatprep.mubr.msk.bf16.mxu0 %vm7997_vm1, %v11672_v6 }
 0x895   : > { %v7099_v10 = vpack.c.bf16 %v6993_v28, %v6991_v4  ;;  %v11680_v28 = vld [vmem:[%s13396_s22 + $0x70] sm:$0xff]  }
 0x896   : > { %v7100_v0 = vpack.c.bf16 %v6994_v27, %v6992_v63  ;;  %v6742_v56 = vpop.f32.mrb[44].mxu0 }
 0x897   : > { %v6743_v51 = vadd.f32 %v6742_v56, %v13464_v14  ;;  %v6744_v44 = vpop.f32.mrb[45].mxu0 }
 0x898   : > { %v6745_v62 = vadd.f32 %v6744_v44, %v13467_v54  ;;  %v6746_v2 = vpop.f32.mrb[46].mxu0  ;;  %7479 = vmatprep.mubr.bf16.mxu1 %v7100_v0 }
 0x899   : > { %v6747_v17 = vadd.f32 %v6746_v2, %v13464_v14  ;;  %v6748_v11 = vpop.f32.mrb[47].mxu0  ;;  %7480 = vmatmul.mubr.bf16.gmra.mrb[156].mxu1 %v7099_v10  ;;  %v6995_v35 = vmax.f32 %v6743_v51, 0.0  ;;  %v11700_v2 = vld [vmem:[%s14565_s8 + $0x20] sm:$0xff]  }
 0x89a   : > { %v6749_v15 = vadd.f32 %v6748_v11, %v13467_v54  ;;  %v6996_v5 = vmax.f32 %v6745_v62, 0.0  ;;  %v11681_v11 = vld [vmem:[%s13396_s22 + $0x78] sm:$0xff]   ;;  %10817 = vmatprep.subr.bf16.mxu1 %v11700_v2 }
 0x89b   : > { %v6997_v46 = vmax.f32 %v6747_v17, 0.0  ;;  %10758 = vmatmul.mubr.msk.bf16.gmra.mrb[152].mxu0 %vm7997_vm1, %v11673_v61  ;;  %10818 = vmatpush3.bf16.msra.mxu1 %v11700_v2 }
 0x89c   : > { %v6998_v3 = vmax.f32 %v6749_v15, 0.0  ;;  %10761 = vmatprep.mubr.msk.bf16.mxu0 %vm7997_vm1, %v11674_v37 }
 0x89d   : > { %v7101_v36 = vpack.c.bf16 %v6997_v46, %v6995_v35  ;;  %v11683_v46 = vld [vmem:[%s13396_s22 + $0x80] sm:$0xff]  }
 0x89e   : > { %v7102_v48 = vpack.c.bf16 %v6998_v3, %v6996_v5  ;;  %v6752_v32 = vpop.f32.mrb[48].mxu0 }
 0x89f   : > { %v6753_v53 = vadd.f32 %v6752_v32, %v13464_v14  ;;  %v6754_v20 = vpop.f32.mrb[49].mxu0 }
 0x8a0   : > { %v6755_v13 = vadd.f32 %v6754_v20, %v13467_v54  ;;  %v6756_v40 = vpop.f32.mrb[50].mxu0  ;;  %7489 = vmatprep.mubr.bf16.mxu1 %v7102_v48 }
 0x8a1   : > { %v6757_v42 = vadd.f32 %v6756_v40, %v13464_v14  ;;  %v6758_v33 = vpop.f32.mrb[51].mxu0  ;;  %7490 = vmatmul.mubr.bf16.gmra.mrb[160].mxu1 %v7101_v36  ;;  %v6999_v45 = vmax.f32 %v6753_v53, 0.0 }
 0x8a2   : > { %v6759_v24 = vadd.f32 %v6758_v33, %v13467_v54  ;;  %v7000_v47 = vmax.f32 %v6755_v13, 0.0  ;;  %v11684_v33 = vld [vmem:[%s13396_s22 + $0x88] sm:$0xff]  }
 0x8a3   : > { %v7001_v12 = vmax.f32 %v6757_v42, 0.0  ;;  %10762 = vmatmul.mubr.msk.bf16.gmra.mrb[156].mxu0 %vm7997_vm1, %v11675_v26 }
 0x8a4   : > { %v7002_v49 = vmax.f32 %v6759_v24, 0.0  ;;  %10765 = vmatprep.mubr.msk.bf16.mxu0 %vm7997_vm1, %v11676_v55 }
 0x8a5   : > { %v7103_v34 = vpack.c.bf16 %v7001_v12, %v6999_v45  ;;  %v11685_v12 = vld [vmem:[%s13396_s22 + $0x90] sm:$0xff]  }
 0x8a6   : > { %v7104_v58 = vpack.c.bf16 %v7002_v49, %v7000_v47  ;;  %v6762_v1 = vpop.f32.mrb[52].mxu0 }
 0x8a7   : > { %v6763_v19 = vadd.f32 %v6762_v1, %v13464_v14  ;;  %v6764_v9 = vpop.f32.mrb[53].mxu0 }
 0x8a8   : > { %v6765_v57 = vadd.f32 %v6764_v9, %v13467_v54  ;;  %v6766_v59 = vpop.f32.mrb[54].mxu0  ;;  %7499 = vmatprep.mubr.bf16.mxu1 %v7104_v58 }
 0x8a9   : > { %v6767_v50 = vadd.f32 %v6766_v59, %v13464_v14  ;;  %v6768_v29 = vpop.f32.mrb[55].mxu0  ;;  %7500 = vmatmul.mubr.bf16.gmra.mrb[164].mxu1 %v7103_v34  ;;  %v7003_v8 = vmax.f32 %v6763_v19, 0.0 }
 0x8aa   : > { %v6769_v38 = vadd.f32 %v6768_v29, %v13467_v54  ;;  %v7004_v60 = vmax.f32 %v6765_v57, 0.0  ;;  %v11686_v29 = vld [vmem:[%s13396_s22 + $0x98] sm:$0xff]  }
 0x8ab   : > { %v7005_v18 = vmax.f32 %v6767_v50, 0.0  ;;  %10766 = vmatmul.mubr.msk.bf16.gmra.mrb[160].mxu0 %vm7997_vm1, %v11677_v22 }
 0x8ac   : > { %v7006_v41 = vmax.f32 %v6769_v38, 0.0  ;;  %10769 = vmatprep.mubr.msk.bf16.mxu0 %vm7997_vm1, %v11678_v31 }
 0x8ad   : > { %v7105_v7 = vpack.c.bf16 %v7005_v18, %v7003_v8  ;;  %v11688_v18 = vld [vmem:[%s13396_s22 + $0xa0] sm:$0xff]  }
 0x8ae   : > { %v7106_v16 = vpack.c.bf16 %v7006_v41, %v7004_v60  ;;  %v6772_v39 = vpop.f32.mrb[56].mxu0 }
 0x8af   : > { %v6773_v6 = vadd.f32 %v6772_v39, %v13464_v14  ;;  %v6774_v43 = vpop.f32.mrb[57].mxu0 }
 0x8b0   : > { %v6775_v21 = vadd.f32 %v6774_v43, %v13467_v54  ;;  %v6776_v4 = vpop.f32.mrb[58].mxu0  ;;  %7509 = vmatprep.mubr.bf16.mxu1 %v7106_v16 }
 0x8b1   : > { %v6777_v63 = vadd.f32 %v6776_v4, %v13464_v14  ;;  %v6778_v27 = vpop.f32.mrb[59].mxu0  ;;  %7510 = vmatmul.mubr.bf16.gmra.mrb[168].mxu1 %v7105_v7  ;;  %v7007_v0 = vmax.f32 %v6773_v6, 0.0 }
 0x8b2   : > { %v6779_v10 = vadd.f32 %v6778_v27, %v13467_v54  ;;  %v7008_v52 = vmax.f32 %v6775_v21, 0.0  ;;  %v11689_v27 = vld [vmem:[%s13396_s22 + $0xa8] sm:$0xff]  }
 0x8b3   : > { %v7009_v56 = vmax.f32 %v6777_v63, 0.0  ;;  %10770 = vmatmul.mubr.msk.bf16.gmra.mrb[164].mxu0 %vm7997_vm1, %v11679_v30 }
 0x8b4   : > { %v7010_v51 = vmax.f32 %v6779_v10, 0.0  ;;  %10773 = vmatprep.mubr.msk.bf16.mxu0 %vm7997_vm1, %v11680_v28 }
 0x8b5   : > { %v7107_v44 = vpack.c.bf16 %v7009_v56, %v7007_v0  ;;  %v11691_v56 = vld [vmem:[%s13396_s22 + $0xb0] sm:$0xff]  }
 0x8b6   : > { %v7108_v61 = vpack.c.bf16 %v7010_v51, %v7008_v52  ;;  %v6782_v62 = vpop.f32.mrb[60].mxu0 }
 0x8b7   : > { %v6783_v37 = vadd.f32 %v6782_v62, %v13464_v14  ;;  %v6784_v17 = vpop.f32.mrb[61].mxu0 }
 0x8b8   : > { %v6785_v15 = vadd.f32 %v6784_v17, %v13467_v54  ;;  %v6786_v35 = vpop.f32.mrb[62].mxu0  ;;  %7519 = vmatprep.mubr.bf16.mxu1 %v7108_v61  ;;  %v11703_v61 = vld [vmem:[%s14565_s8 + $0x28] sm:$0xff]  }
 0x8b9   : > { %v6787_v5 = vadd.f32 %v6786_v35, %v13464_v14  ;;  %v6788_v3 = vpop.f32.mrb[63].mxu0  ;;  %7520 = vmatmul.mubr.bf16.gmra.mrb[172].mxu1 %v7107_v44  ;;  %v7011_v48 = vmax.f32 %v6783_v37, 0.0  ;;  %10819 = vmatprep.subr.bf16.mxu1 %v11703_v61 }
 0x8ba   : > { %v6789_v36 = vadd.f32 %v6788_v3, %v13467_v54  ;;  %v7012_v53 = vmax.f32 %v6785_v15, 0.0  ;;  %10820 = vmatpush3.bf16.msra.mxu1 %v11703_v61  ;;  %v11692_v3 = vld [vmem:[%s13396_s22 + $0xb8] sm:$0xff]   ;;  %v11699_v61 = vld [vmem:[%s13396_s22 + $0xe8] sm:$0xff]  }
 0x8bb   : > { %v7013_v32 = vmax.f32 %v6787_v5, 0.0  ;;  %10774 = vmatmul.mubr.msk.bf16.gmra.mrb[168].mxu0 %vm7997_vm1, %v11681_v11 }
 0x8bc   : > { %v7014_v20 = vmax.f32 %v6789_v36, 0.0  ;;  %10777 = vmatprep.mubr.msk.bf16.mxu0 %vm7997_vm1, %v11683_v46  ;;  %v11704_v36 = vld [vmem:[%s14565_s8 + $0x30] sm:$0xff]  }
 0x8bd   : > { %v7109_v26 = vpack.c.bf16 %v7013_v32, %v7011_v48  ;;  %10821 = vmatprep.subr.bf16.mxu1 %v11704_v36 }
 0x8be   : > { %v7110_v13 = vpack.c.bf16 %v7014_v20, %v7012_v53  ;;  %v6792_v40 = vpop.f32.mrb[64].mxu0  ;;  %v11693_v53 = vld [vmem:[%s13396_s22 + $0xc0] sm:$0xff]   ;;  %10822 = vmatpush3.bf16.msra.mxu1 %v11704_v36 }
 0x8bf   : > { %v6793_v55 = vadd.f32 %v6792_v40, %v13464_v14  ;;  %v6794_v42 = vpop.f32.mrb[65].mxu0 }
 0x8c0   : > { %v6795_v24 = vadd.f32 %v6794_v42, %v13467_v54  ;;  %v6796_v45 = vpop.f32.mrb[66].mxu0  ;;  %7529 = vmatprep.mubr.bf16.mxu1 %v7110_v13  ;;  %v11705_v42 = vld [vmem:[%s14565_s8 + $0x38] sm:$0xff]  }
 0x8c1   : > { %v6797_v47 = vadd.f32 %v6796_v45, %v13464_v14  ;;  %v6798_v49 = vpop.f32.mrb[67].mxu0  ;;  %7530 = vmatmul.mubr.bf16.gmra.mrb[176].mxu1 %v7109_v26  ;;  %v7015_v58 = vmax.f32 %v6793_v55, 0.0  ;;  %10823 = vmatprep.subr.bf16.mxu1 %v11705_v42 }
 0x8c2   : > { %v6799_v34 = vadd.f32 %v6798_v49, %v13467_v54  ;;  %v7016_v19 = vmax.f32 %v6795_v24, 0.0  ;;  %10824 = vmatpush3.bf16.msra.mxu1 %v11705_v42 }
 0x8c3   : > { %v7017_v1 = vmax.f32 %v6797_v47, 0.0  ;;  %10778 = vmatmul.mubr.msk.bf16.gmra.mrb[172].mxu0 %vm7997_vm1, %v11684_v33 }
 0x8c4   : > { %v7018_v9 = vmax.f32 %v6799_v34, 0.0  ;;  %10781 = vmatprep.mubr.msk.bf16.mxu0 %vm7997_vm1, %v11685_v12 }
 0x8c5   : > { %v7111_v22 = vpack.c.bf16 %v7017_v1, %v7015_v58  ;;  %v11694_v58 = vld [vmem:[%s13396_s22 + $0xc8] sm:$0xff]  }
 0x8c6   : > { %v7112_v57 = vpack.c.bf16 %v7018_v9, %v7016_v19  ;;  %v6802_v59 = vpop.f32.mrb[68].mxu0  ;;  %v11696_v9 = vld [vmem:[%s13396_s22 + $0xd0] sm:$0xff]  }
 0x8c7   : > { %v6803_v31 = vadd.f32 %v6802_v59, %v13464_v14  ;;  %v6804_v50 = vpop.f32.mrb[69].mxu0 }
 0x8c8   : > { %v6805_v38 = vadd.f32 %v6804_v50, %v13467_v54  ;;  %v6806_v8 = vpop.f32.mrb[70].mxu0  ;;  %7539 = vmatprep.mubr.bf16.mxu1 %v7112_v57 }
 0x8c9   : > { %v6807_v60 = vadd.f32 %v6806_v8, %v13464_v14  ;;  %v6808_v41 = vpop.f32.mrb[71].mxu0  ;;  %7540 = vmatmul.mubr.bf16.gmra.mrb[180].mxu1 %v7111_v22  ;;  %v7019_v16 = vmax.f32 %v6803_v31, 0.0 }
 0x8ca   : > { %v6809_v7 = vadd.f32 %v6808_v41, %v13467_v54  ;;  %v7020_v6 = vmax.f32 %v6805_v38, 0.0 }
 0x8cb   : > { %v7021_v39 = vmax.f32 %v6807_v60, 0.0  ;;  %10782 = vmatmul.mubr.msk.bf16.gmra.mrb[176].mxu0 %vm7997_vm1, %v11686_v29 }
 0x8cc   : > { %v7022_v43 = vmax.f32 %v6809_v7, 0.0  ;;  %10785 = vmatprep.mubr.msk.bf16.mxu0 %vm7997_vm1, %v11688_v18 }
 0x8cd   : > { %v7113_v30 = vpack.c.bf16 %v7021_v39, %v7019_v16  ;;  %v11697_v16 = vld [vmem:[%s13396_s22 + $0xd8] sm:$0xff]  }
 0x8ce   : > { %v7114_v21 = vpack.c.bf16 %v7022_v43, %v7020_v6  ;;  %v6812_v4 = vpop.f32.mrb[72].mxu0  ;;  %v11698_v43 = vld [vmem:[%s13396_s22 + $0xe0] sm:$0xff]  }
 0x8cf   : > { %v6813_v28 = vadd.f32 %v6812_v4, %v13464_v14  ;;  %v6814_v63 = vpop.f32.mrb[73].mxu0 }
 0x8d0   : > { %v6815_v10 = vadd.f32 %v6814_v63, %v13467_v54  ;;  %v6816_v0 = vpop.f32.mrb[74].mxu0  ;;  %7549 = vmatprep.mubr.bf16.mxu1 %v7114_v21 }
 0x8d1   : > { %v6817_v52 = vadd.f32 %v6816_v0, %v13464_v14  ;;  %v6818_v51 = vpop.f32.mrb[75].mxu0  ;;  %7550 = vmatmul.mubr.bf16.gmra.mrb[184].mxu1 %v7113_v30  ;;  %v7023_v62 = vmax.f32 %v6813_v28, 0.0 }
 0x8d2   : > { %v6819_v44 = vadd.f32 %v6818_v51, %v13467_v54  ;;  %v7024_v37 = vmax.f32 %v6815_v10, 0.0 }
 0x8d3   : > { %v7025_v2 = vmax.f32 %v6817_v52, 0.0  ;;  %10786 = vmatmul.mubr.msk.bf16.gmra.mrb[180].mxu0 %vm7997_vm1, %v11689_v27 }
 0x8d4   : > { %v7026_v17 = vmax.f32 %v6819_v44, 0.0  ;;  %10789 = vmatprep.mubr.msk.bf16.mxu0 %vm7997_vm1, %v11691_v56 }
 0x8d5   : > { %v7115_v11 = vpack.c.bf16 %v7025_v2, %v7023_v62 }
 0x8d6   : > { %v7116_v15 = vpack.c.bf16 %v7026_v17, %v7024_v37  ;;  %v6822_v35 = vpop.f32.mrb[76].mxu0  ;;  %v11701_v37 = vld [vmem:[%s13396_s22 + $0xf0] sm:$0xff]  }
 0x8d7   : > { %v6823_v46 = vadd.f32 %v6822_v35, %v13464_v14  ;;  %v6824_v5 = vpop.f32.mrb[77].mxu0 }
 0x8d8   : > { %v6825_v48 = vadd.f32 %v6824_v5, %v13467_v54  ;;  %v6826_v32 = vpop.f32.mrb[78].mxu0  ;;  %7559 = vmatprep.mubr.bf16.mxu1 %v7116_v15 }
 0x8d9   : > { %v6827_v20 = vadd.f32 %v6826_v32, %v13464_v14  ;;  %v6828_v26 = vpop.f32.mrb[79].mxu0  ;;  %7560 = vmatmul.mubr.bf16.gmra.mrb[188].mxu1 %v7115_v11  ;;  %v7027_v40 = vmax.f32 %v6823_v46, 0.0 }
 0x8da   : > { %v6829_v13 = vadd.f32 %v6828_v26, %v13467_v54  ;;  %v7028_v33 = vmax.f32 %v6825_v48, 0.0  ;;  %v11702_v26 = vld [vmem:[%s13396_s22 + $0xf8] sm:$0xff]  }
 0x8db   : > { %v7029_v55 = vmax.f32 %v6827_v20, 0.0  ;;  %10790 = vmatmul.mubr.msk.bf16.gmra.mrb[184].mxu0 %vm7997_vm1, %v11692_v3 }
 0x8dc   : > { %v7030_v24 = vmax.f32 %v6829_v13, 0.0  ;;  %10793 = vmatprep.mubr.msk.bf16.mxu0 %vm7997_vm1, %v11693_v53 }
 0x8dd   : > { %v7117_v45 = vpack.c.bf16 %v7029_v55, %v7027_v40 }
 0x8de   : > { %v7118_v12 = vpack.c.bf16 %v7030_v24, %v7028_v33  ;;  %v6832_v47 = vpop.f32.mrb[80].mxu0 }
 0x8df   : > { %v6833_v49 = vadd.f32 %v6832_v47, %v13464_v14  ;;  %v6834_v34 = vpop.f32.mrb[81].mxu0 }
 0x8e0   : > { %v6835_v1 = vadd.f32 %v6834_v34, %v13467_v54  ;;  %v6836_v19 = vpop.f32.mrb[82].mxu0  ;;  %7569 = vmatprep.mubr.bf16.mxu1 %v7118_v12 }
 0x8e1   : > { %v6837_v22 = vadd.f32 %v6836_v19, %v13464_v14  ;;  %v6838_v57 = vpop.f32.mrb[83].mxu0  ;;  %7570 = vmatmul.mubr.bf16.gmra.mrb[192].mxu1 %v7117_v45  ;;  %v7031_v31 = vmax.f32 %v6833_v49, 0.0 }
 0x8e2   : > { %v6839_v59 = vadd.f32 %v6838_v57, %v13467_v54  ;;  %v7032_v29 = vmax.f32 %v6835_v1, 0.0 }
 0x8e3   : > { %v7033_v50 = vmax.f32 %v6837_v22, 0.0  ;;  %10794 = vmatmul.mubr.msk.bf16.gmra.mrb[188].mxu0 %vm7997_vm1, %v11694_v58 }
 0x8e4   : > { %v7034_v38 = vmax.f32 %v6839_v59, 0.0  ;;  %10797 = vmatprep.mubr.msk.bf16.mxu0 %vm7997_vm1, %v11696_v9 }
 0x8e5   : > { %v7119_v8 = vpack.c.bf16 %v7033_v50, %v7031_v31 }
 0x8e6   : > { %v7120_v18 = vpack.c.bf16 %v7034_v38, %v7032_v29  ;;  %v6842_v60 = vpop.f32.mrb[84].mxu0 }
 0x8e7   : > { %v6843_v41 = vadd.f32 %v6842_v60, %v13464_v14  ;;  %v6844_v7 = vpop.f32.mrb[85].mxu0 }
 0x8e8   : > { %v6845_v39 = vadd.f32 %v6844_v7, %v13467_v54  ;;  %v6846_v6 = vpop.f32.mrb[86].mxu0  ;;  %7579 = vmatprep.mubr.bf16.mxu1 %v7120_v18 }
 0x8e9   : > { %v6847_v30 = vadd.f32 %v6846_v6, %v13464_v14  ;;  %v6848_v21 = vpop.f32.mrb[87].mxu0  ;;  %7580 = vmatmul.mubr.bf16.gmra.mrb[196].mxu1 %v7119_v8  ;;  %v7035_v28 = vmax.f32 %v6843_v41, 0.0 }
 0x8ea   : > { %v6849_v4 = vadd.f32 %v6848_v21, %v13467_v54  ;;  %v7036_v27 = vmax.f32 %v6845_v39, 0.0 }
 0x8eb   : > { %v7037_v63 = vmax.f32 %v6847_v30, 0.0  ;;  %10798 = vmatmul.mubr.msk.bf16.gmra.mrb[192].mxu0 %vm7997_vm1, %v11697_v16 }
 0x8ec   : > { %v7038_v10 = vmax.f32 %v6849_v4, 0.0  ;;  %10801 = vmatprep.mubr.msk.bf16.mxu0 %vm7997_vm1, %v11698_v43 }
 0x8ed   : > { %v7121_v0 = vpack.c.bf16 %v7037_v63, %v7035_v28 }
 0x8ee   : > { %v7122_v56 = vpack.c.bf16 %v7038_v10, %v7036_v27  ;;  %v6852_v52 = vpop.f32.mrb[88].mxu0 }
 0x8ef   : > { %v6853_v51 = vadd.f32 %v6852_v52, %v13464_v14  ;;  %v6854_v44 = vpop.f32.mrb[89].mxu0 }
 0x8f0   : > { %v6855_v62 = vadd.f32 %v6854_v44, %v13467_v54  ;;  %v6856_v2 = vpop.f32.mrb[90].mxu0  ;;  %7589 = vmatprep.mubr.bf16.mxu1 %v7122_v56 }
 0x8f1   : > { %v6857_v17 = vadd.f32 %v6856_v2, %v13464_v14  ;;  %v6858_v11 = vpop.f32.mrb[91].mxu0  ;;  %7590 = vmatmul.mubr.bf16.gmra.mrb[200].mxu1 %v7121_v0  ;;  %v7039_v35 = vmax.f32 %v6853_v51, 0.0 }
 0x8f2   : > { %v6859_v15 = vadd.f32 %v6858_v11, %v13467_v54  ;;  %v7040_v5 = vmax.f32 %v6855_v62, 0.0 }
 0x8f3   : > { %v7041_v46 = vmax.f32 %v6857_v17, 0.0  ;;  %10802 = vmatmul.mubr.msk.bf16.gmra.mrb[196].mxu0 %vm7997_vm1, %v11699_v61 }
 0x8f4   : > { %v7042_v3 = vmax.f32 %v6859_v15, 0.0  ;;  %10805 = vmatprep.mubr.msk.bf16.mxu0 %vm7997_vm1, %v11701_v37 }
 0x8f5   : > { %v7123_v36 = vpack.c.bf16 %v7041_v46, %v7039_v35 }
 0x8f6   : > { %v7124_v48 = vpack.c.bf16 %v7042_v3, %v7040_v5  ;;  %v6862_v32 = vpop.f32.mrb[92].mxu0 }
 0x8f7   : > { %v6863_v53 = vadd.f32 %v6862_v32, %v13464_v14  ;;  %v6864_v20 = vpop.f32.mrb[93].mxu0 }
 0x8f8   : > { %v6865_v13 = vadd.f32 %v6864_v20, %v13467_v54  ;;  %v6866_v40 = vpop.f32.mrb[94].mxu0  ;;  %7599 = vmatprep.mubr.bf16.mxu1 %v7124_v48 }
 0x8f9   : > { %v6867_v55 = vadd.f32 %v6866_v40, %v13464_v14  ;;  %v6868_v42 = vpop.f32.mrb[95].mxu0  ;;  %7600 = vmatmul.mubr.bf16.gmra.mrb[204].mxu1 %v7123_v36  ;;  %v7043_v24 = vmax.f32 %v6863_v53, 0.0 }
 0x8fa   : > { %v6869_v33 = vadd.f32 %v6868_v42, %v13467_v54  ;;  %v7044_v12 = vmax.f32 %v6865_v13, 0.0 }
 0x8fb   : > { %v7045_v45 = vmax.f32 %v6867_v55, 0.0  ;;  %10806 = vmatmul.mubr.msk.bf16.gmra.mrb[200].mxu0 %vm7997_vm1, %v11702_v26 }
 0x8fc   : > { %v7046_v47 = vmax.f32 %v6869_v33, 0.0 }
 0x8fd   : > { %v7125_v49 = vpack.c.bf16 %v7045_v45, %v7043_v24 }
 0x8fe   : > { %v7126_v34 = vpack.c.bf16 %v7046_v47, %v7044_v12  ;;  %v6872_v58 = vpop.f32.mrb[96].mxu0 }
 0x8ff   : > { %v6873_v1 = vadd.f32 %v6872_v58, %v13464_v14  ;;  %v6874_v19 = vpop.f32.mrb[97].mxu0 }
 0x900   : > { %v6875_v9 = vadd.f32 %v6874_v19, %v13467_v54  ;;  %v6876_v22 = vpop.f32.mrb[98].mxu0  ;;  %7609 = vmatprep.mubr.bf16.mxu1 %v7126_v34 }
 0x901   : > { %v6877_v57 = vadd.f32 %v6876_v22, %v13464_v14  ;;  %v6878_v59 = vpop.f32.mrb[99].mxu0  ;;  %7610 = vmatmul.mubr.bf16.gmra.mrb[208].mxu1 %v7125_v49  ;;  %v7047_v50 = vmax.f32 %v6873_v1, 0.0 }
 0x902   : > { %v6879_v31 = vadd.f32 %v6878_v59, %v13467_v54  ;;  %v7048_v38 = vmax.f32 %v6875_v9, 0.0 }
 0x903   : > { %v7049_v29 = vmax.f32 %v6877_v57, 0.0 }
 0x904   : > { %v7050_v8 = vmax.f32 %v6879_v31, 0.0 }
 0x905   : > { %v7127_v18 = vpack.c.bf16 %v7049_v29, %v7047_v50 }
 0x906   : > { %v7128_v60 = vpack.c.bf16 %v7050_v8, %v7048_v38  ;;  %v6882_v41 = vpop.f32.mrb[100].mxu0 }
 0x907   : > { %v6883_v7 = vadd.f32 %v6882_v41, %v13464_v14  ;;  %v6884_v16 = vpop.f32.mrb[101].mxu0 }
 0x908   : > { %v6885_v39 = vadd.f32 %v6884_v16, %v13467_v54  ;;  %v6886_v6 = vpop.f32.mrb[102].mxu0  ;;  %7619 = vmatprep.mubr.bf16.mxu1 %v7128_v60 }
 0x909   : > { %v6887_v43 = vadd.f32 %v6886_v6, %v13464_v14  ;;  %v6888_v30 = vpop.f32.mrb[103].mxu0  ;;  %7620 = vmatmul.mubr.bf16.gmra.mrb[212].mxu1 %v7127_v18  ;;  %v7051_v4 = vmax.f32 %v6883_v7, 0.0 }
 0x90a   : > { %v6889_v21 = vadd.f32 %v6888_v30, %v13467_v54  ;;  %v7052_v63 = vmax.f32 %v6885_v39, 0.0 }
 0x90b   : > { %v7053_v28 = vmax.f32 %v6887_v43, 0.0 }
 0x90c   : > { %v7054_v27 = vmax.f32 %v6889_v21, 0.0 }
 0x90d   : > { %v7129_v10 = vpack.c.bf16 %v7053_v28, %v7051_v4 }
 0x90e   : > { %v7130_v0 = vpack.c.bf16 %v7054_v27, %v7052_v63  ;;  %v6892_v56 = vpop.f32.mrb[104].mxu0 }
 0x90f   : > { %v6893_v52 = vadd.f32 %v6892_v56, %v13464_v14  ;;  %v6894_v51 = vpop.f32.mrb[105].mxu0 }
 0x910   : > { %v6895_v44 = vadd.f32 %v6894_v51, %v13467_v54  ;;  %v6896_v61 = vpop.f32.mrb[106].mxu0  ;;  %7629 = vmatprep.mubr.bf16.mxu1 %v7130_v0  ;;  %v13714_v0 = vld [vmem:[%s14563_s6] sm:$0x3] }
 0x911   : > { %v6897_v62 = vadd.f32 %v6896_v61, %v13464_v14  ;;  %v6898_v2 = vpop.f32.mrb[107].mxu0  ;;  %7630 = vmatmul.mubr.bf16.gmra.mrb[216].mxu1 %v7129_v10  ;;  %v7055_v17 = vmax.f32 %v6893_v52, 0.0 }
 0x912   : > { %v6899_v37 = vadd.f32 %v6898_v2, %v13467_v54  ;;  %v7056_v15 = vmax.f32 %v6895_v44, 0.0 }
 0x913   : > { %v7057_v11 = vmax.f32 %v6897_v62, 0.0  ;;  %v13722_v62 = vrot.slane %v13714_v0, %v12026_v25 }
 0x914   : > { %v7058_v35 = vmax.f32 %v6899_v37, 0.0 }
 0x915   : > { %v7131_v46 = vpack.c.bf16 %v7057_v11, %v7055_v17 }
 0x916   : > { %v7132_v5 = vpack.c.bf16 %v7058_v35, %v7056_v15  ;;  %v6902_v3 = vpop.f32.mrb[108].mxu0 }
 0x917   : > { %v6903_v36 = vadd.f32 %v6902_v3, %v13464_v14  ;;  %v6904_v48 = vpop.f32.mrb[109].mxu0 }
 0x918   : > { %v6905_v32 = vadd.f32 %v6904_v48, %v13467_v54  ;;  %v6906_v53 = vpop.f32.mrb[110].mxu0  ;;  %7639 = vmatprep.mubr.bf16.mxu1 %v7132_v5 }
 0x919   : > { %v6907_v20 = vadd.f32 %v6906_v53, %v13464_v14  ;;  %v6908_v26 = vpop.f32.mrb[111].mxu0  ;;  %7640 = vmatmul.mubr.bf16.gmra.mrb[220].mxu1 %v7131_v46  ;;  %v7059_v40 = vmax.f32 %v6903_v36, 0.0 }
 0x91a   : > { %v6909_v13 = vadd.f32 %v6908_v26, %v13467_v54  ;;  %v7060_v42 = vmax.f32 %v6905_v32, 0.0 }
 0x91b   : > { %v7061_v55 = vmax.f32 %v6907_v20, 0.0 }
 0x91c   : > { %v7062_v33 = vmax.f32 %v6909_v13, 0.0 }
 0x91d   : > { %v7133_v24 = vpack.c.bf16 %v7061_v55, %v7059_v40 }
 0x91e   : > { %v7134_v45 = vpack.c.bf16 %v7062_v33, %v7060_v42  ;;  %v6912_v12 = vpop.f32.mrb[112].mxu0 }
 0x91f   : > { %v6913_v47 = vadd.f32 %v6912_v12, %v13464_v14  ;;  %v6914_v49 = vpop.f32.mrb[113].mxu0 }
 0x920   : > { %v6915_v34 = vadd.f32 %v6914_v49, %v13467_v54  ;;  %v6916_v58 = vpop.f32.mrb[114].mxu0  ;;  %7649 = vmatprep.mubr.bf16.mxu1 %v7134_v45 }
 0x921   : > { %v6917_v1 = vadd.f32 %v6916_v58, %v13464_v14  ;;  %v6918_v19 = vpop.f32.mrb[115].mxu0  ;;  %7650 = vmatmul.mubr.bf16.gmra.mrb[224].mxu1 %v7133_v24  ;;  %v7063_v22 = vmax.f32 %v6913_v47, 0.0 }
 0x922   : > { %v6919_v9 = vadd.f32 %v6918_v19, %v13467_v54  ;;  %v7064_v59 = vmax.f32 %v6915_v34, 0.0 }
 0x923   : > { %v7065_v57 = vmax.f32 %v6917_v1, 0.0 }
 0x924   : > { %v7066_v31 = vmax.f32 %v6919_v9, 0.0 }
 0x925   : > { %v7135_v50 = vpack.c.bf16 %v7065_v57, %v7063_v22 }
 0x926   : > { %v7136_v29 = vpack.c.bf16 %v7066_v31, %v7064_v59  ;;  %v6922_v38 = vpop.f32.mrb[116].mxu0 }
 0x927   : > { %v6923_v8 = vadd.f32 %v6922_v38, %v13464_v14  ;;  %v6924_v18 = vpop.f32.mrb[117].mxu0 }
 0x928   : > { %v6925_v60 = vadd.f32 %v6924_v18, %v13467_v54  ;;  %v6926_v41 = vpop.f32.mrb[118].mxu0  ;;  %7659 = vmatprep.mubr.bf16.mxu1 %v7136_v29 }
 0x929   : > { %v6927_v7 = vadd.f32 %v6926_v41, %v13464_v14  ;;  %v6928_v16 = vpop.f32.mrb[119].mxu0  ;;  %7660 = vmatmul.mubr.bf16.gmra.mrb[228].mxu1 %v7135_v50  ;;  %v7067_v6 = vmax.f32 %v6923_v8, 0.0 }
 0x92a   : > { %v6929_v39 = vadd.f32 %v6928_v16, %v13467_v54  ;;  %v7068_v30 = vmax.f32 %v6925_v60, 0.0 }
 0x92b   : > { %v7069_v43 = vmax.f32 %v6927_v7, 0.0 }
 0x92c   : > { %v7070_v21 = vmax.f32 %v6929_v39, 0.0 }
 0x92d   : > { %v7137_v4 = vpack.c.bf16 %v7069_v43, %v7067_v6 }
 0x92e   : > { %v7138_v28 = vpack.c.bf16 %v7070_v21, %v7068_v30  ;;  %v6932_v63 = vpop.f32.mrb[120].mxu0 }
 0x92f   : > { %v6933_v27 = vadd.f32 %v6932_v63, %v13464_v14  ;;  %v6934_v10 = vpop.f32.mrb[121].mxu0 }
 0x930   : > { %v6935_v56 = vadd.f32 %v6934_v10, %v13467_v54  ;;  %v6936_v52 = vpop.f32.mrb[122].mxu0  ;;  %7669 = vmatprep.mubr.bf16.mxu1 %v7138_v28 }
 0x931   : > { %v6937_v51 = vadd.f32 %v6936_v52, %v13464_v14  ;;  %v6938_v44 = vpop.f32.mrb[123].mxu0  ;;  %7670 = vmatmul.mubr.bf16.gmra.mrb[232].mxu1 %v7137_v4  ;;  %v7071_v2 = vmax.f32 %v6933_v27, 0.0 }
 0x932   : > { %v6939_v61 = vadd.f32 %v6938_v44, %v13467_v54  ;;  %v7072_v17 = vmax.f32 %v6935_v56, 0.0 }
 0x933   : > { %v7073_v37 = vmax.f32 %v6937_v51, 0.0 }
 0x934   : > { %v7074_v11 = vmax.f32 %v6939_v61, 0.0  ;;  %v13724_v15 = vpop.f32.mrb[128].mxu1 }
 0x935   : > { %v7139_v35 = vpack.c.bf16 %v7073_v37, %v7071_v2  ;;  %v7413_v46 = vpop.f32.mrb[129].mxu1  ;;  %v13791_v37 = vrot.slane %v13714_v0, %v12021_v23 }
 0x936   : > { %v7140_v5 = vpack.c.bf16 %v7074_v11, %v7072_v17  ;;  %v7414_v25 = vadd.f32 %v7413_v46, %v13722_v62  ;;  %v6942_v3 = vpop.f32.mrb[124].mxu0  ;;  %v13732_v36 = vpop.f32.mrb[130].mxu1 }
 0x937   : > { %v6943_v48 = vadd.f32 %v6942_v3, %v13464_v14  ;;  %v6944_v32 = vpop.f32.mrb[125].mxu0  ;;  %v7417_v53 = vpop.f32.mrb[131].mxu1 }
 0x938   : > { %7707 = vst.msk [vmem:[%s13729_s19 + $0x30] sm:$0xff] %vm7700_vm2, %v7414_v25  ;;  %v6945_v20 = vadd.f32 %v6944_v32, %v13467_v54  ;;  %v7418_v26 = vadd.f32 %v7417_v53, %v13722_v62  ;;  %v6946_v13 = vpop.f32.mrb[126].mxu0  ;;  %7679 = vmatprep.mubr.bf16.mxu1 %v7140_v5 }
 0x939   : > { %v6947_v40 = vadd.f32 %v6946_v13, %v13464_v14  ;;  %v6948_v55 = vpop.f32.mrb[127].mxu0  ;;  %7680 = vmatmul.mubr.bf16.gmra.mrb[236].mxu1 %v7139_v35  ;;  %v7075_v33 = vmax.f32 %v6943_v48, 0.0 }
 0x93a   : > { %7708 = vst.msk [vmem:[%s13729_s19 + $0x38] sm:$0xff] %vm7700_vm2, %v7418_v26  ;;  %v6949_v42 = vadd.f32 %v6948_v55, %v13467_v54  ;;  %v7076_v45 = vmax.f32 %v6945_v20, 0.0 }
 0x93b   : > { %v7077_v24 = vmax.f32 %v6947_v40, 0.0 }
 0x93c   : > { %v7078_v12 = vmax.f32 %v6949_v42, 0.0  ;;  %v13743_v47 = vpop.f32.mrb[132].mxu1 }
 0x93d   : > { %v7141_v49 = vpack.c.bf16 %v7077_v24, %v7075_v33  ;;  %v7423_v34 = vpop.f32.mrb[133].mxu1 }
 0x93e   : > { %v7142_v58 = vpack.c.bf16 %v7078_v12, %v7076_v45  ;;  %v7424_v14 = vadd.f32 %v7423_v34, %v13722_v62  ;;  %v7381_v1 = vpop.f32.mrb[128].mxu0  ;;  %v13746_v19 = vpop.f32.mrb[134].mxu1  ;;  %v7412_v34 = vadd.f32 %v13724_v15, %v13791_v37 }
 0x93f   : > { %v7383_v9 = vpop.f32.mrb[129].mxu0  ;;  %v7427_v22 = vpop.f32.mrb[135].mxu1  ;;  %v7382_v46 = vadd.f32 %v7381_v1, %v13791_v37 }
 0x940   : > { %7709 = vst.msk [vmem:[%s13729_s19 + $0x40] sm:$0xff] %vm7700_vm2, %v7424_v14  ;;  %v7384_v54 = vadd.f32 %v7383_v9, %v13722_v62  ;;  %v7428_v57 = vadd.f32 %v7427_v22, %v13722_v62  ;;  %v7385_v59 = vpop.f32.mrb[130].mxu0  ;;  %7689 = vmatprep.mubr.bf16.mxu1 %v7142_v58 }
 0x941   : > { %v7387_v31 = vpop.f32.mrb[131].mxu0  ;;  %7690 = vmatmul.mubr.bf16.gmra.mrb[240].mxu1 %v7141_v49  ;;  %v7386_v53 = vadd.f32 %v7385_v59, %v13791_v37  ;;  %v7416_v59 = vadd.f32 %v13732_v36, %v13791_v37 }
 0x942   : > { %7701 = vst.msk [vmem:[%s13729_s19] sm:$0xff] %vm7700_vm2, %v7384_v54  ;;  %7710 = vst.msk [vmem:[%s13729_s19 + $0x48] sm:$0xff] %vm7700_vm2, %v7428_v57  ;;  %v7388_v50 = vadd.f32 %v7387_v31, %v13722_v62 }
 0x944   : > { %7702 = vst.msk [vmem:[%s13729_s19 + $0x8] sm:$0xff] %vm7700_vm2, %v7388_v50  ;;  %v13759_v29 = vpop.f32.mrb[136].mxu1 }
 0x945   : > { %v7433_v38 = vpop.f32.mrb[137].mxu1 }
 0x946   : > { %v7434_v8 = vadd.f32 %v7433_v38, %v13722_v62  ;;  %v7391_v18 = vpop.f32.mrb[132].mxu0  ;;  %v13762_v60 = vpop.f32.mrb[138].mxu1 }
 0x947   : > { %v7393_v41 = vpop.f32.mrb[133].mxu0  ;;  %v7437_v7 = vpop.f32.mrb[139].mxu1  ;;  %v7392_v11 = vadd.f32 %v7391_v18, %v13791_v37 }
 0x948   : > { %7711 = vst.msk [vmem:[%s13729_s19 + $0x50] sm:$0xff] %vm7700_vm2, %v7434_v8  ;;  %v7394_v16 = vadd.f32 %v7393_v41, %v13722_v62  ;;  %v7438_v39 = vadd.f32 %v7437_v7, %v13722_v62  ;;  %v7395_v6 = vpop.f32.mrb[134].mxu0 }
 0x949   : > { %v7397_v43 = vpop.f32.mrb[135].mxu0  ;;  %v7396_v48 = vadd.f32 %v7395_v6, %v13791_v37 }
 0x94a   : > { %7703 = vst.msk [vmem:[%s13729_s19 + $0x10] sm:$0xff] %vm7700_vm2, %v7394_v16  ;;  %7712 = vst.msk [vmem:[%s13729_s19 + $0x58] sm:$0xff] %vm7700_vm2, %v7438_v39  ;;  %v7398_v30 = vadd.f32 %v7397_v43, %v13722_v62 }
 0x94c   : > { %7704 = vst.msk [vmem:[%s13729_s19 + $0x18] sm:$0xff] %vm7700_vm2, %v7398_v30  ;;  %v13775_v21 = vpop.f32.mrb[140].mxu1 }
 0x94d   : > { %v7443_v4 = vpop.f32.mrb[141].mxu1 }
 0x94e   : > { %v7444_v28 = vadd.f32 %v7443_v4, %v13722_v62  ;;  %v7401_v63 = vpop.f32.mrb[136].mxu0  ;;  %v13778_v27 = vpop.f32.mrb[142].mxu1 }
 0x94f   : > { %v7403_v10 = vpop.f32.mrb[137].mxu0  ;;  %v7447_v56 = vpop.f32.mrb[143].mxu1  ;;  %v7402_v1 = vadd.f32 %v7401_v63, %v13791_v37 }
 0x950   : > { %7713 = vst.msk [vmem:[%s13729_s19 + $0x60] sm:$0xff] %vm7700_vm2, %v7444_v28  ;;  %v7404_v52 = vadd.f32 %v7403_v10, %v13722_v62  ;;  %v7448_v51 = vadd.f32 %v7447_v56, %v13722_v62  ;;  %v7405_v44 = vpop.f32.mrb[138].mxu0  ;;  %v7432_v28 = vadd.f32 %v13759_v29, %v13791_v37  ;;  %v7422_v56 = vadd.f32 %v13743_v47, %v13791_v37 }
 0x951   : > { %v7407_v61 = vpop.f32.mrb[139].mxu0  ;;  %v7406_v8 = vadd.f32 %v7405_v44, %v13791_v37  ;;  %v7426_v29 = vadd.f32 %v13746_v19, %v13791_v37 }
 0x952   : > { %7705 = vst.msk [vmem:[%s13729_s19 + $0x20] sm:$0xff] %vm7700_vm2, %v7404_v52  ;;  %7714 = vst.msk [vmem:[%s13729_s19 + $0x68] sm:$0xff] %vm7700_vm2, %v7448_v51  ;;  %v7408_v2 = vadd.f32 %v7407_v61, %v13722_v62 }
 0x954   : > { %7706 = vst.msk [vmem:[%s13729_s19 + $0x28] sm:$0xff] %vm7700_vm2, %v7408_v2  ;;  %v13795_v17 = vpop.f32.mrb[144].mxu1  ;;  %v7436_v2 = vadd.f32 %v13762_v60, %v13791_v37 }
 0x955   : > { %v7453_v35 = vpop.f32.mrb[145].mxu1  ;;  %v7452_v19 = vadd.f32 %v13795_v17, %v13791_v37  ;;  %v7446_v17 = vadd.f32 %v13778_v27, %v13791_v37 }
 0x956   : > { %v7454_v5 = vadd.f32 %v7453_v35, %v13722_v62  ;;  %v13800_v25 = vpop.f32.mrb[146].mxu1  ;;  %v10747_v3 = vpop.f32.mrb[140].mxu0 }
 0x957   : > { %v8385_v32 = vadd.f32 %v10747_v3, %v7392_v11  ;;  %v7457_v23 = vpop.f32.mrb[147].mxu1  ;;  %v8128_v0 = vpop.f32.mrb[141].mxu0 }
 0x958   : > { %7715 = vst.msk [vmem:[%s13729_s19 + $0x70] sm:$0xff] %vm7700_vm2, %v7454_v5  ;;  %v7458_v20 = vadd.f32 %v7457_v23, %v13722_v62  ;;  %v8383_v26 = vadd.f32 %v8128_v0, %v7382_v46  ;;  %v10748_v13 = vpop.f32.mrb[142].mxu0 }
 0x959   : > { %v8386_v40 = vadd.f32 %v10748_v13, %v7396_v48  ;;  %v8131_v55 = vpop.f32.mrb[143].mxu0  ;;  %v8449_v33 = vmax.f32 %v8385_v32, 0.0 }
 0x95a   : > { %7716 = vst.msk [vmem:[%s13729_s19 + $0x78] sm:$0xff] %vm7700_vm2, %v7458_v20  ;;  %v8384_v42 = vadd.f32 %v8131_v55, %v7386_v53  ;;  %v8447_v45 = vmax.f32 %v8383_v26, 0.0  ;;  %v7442_v55 = vadd.f32 %v13775_v21, %v13791_v37 }
 0x95b   : > { %v8450_v24 = vmax.f32 %v8386_v40, 0.0 }
 0x95c   : > { %v8448_v12 = vmax.f32 %v8384_v42, 0.0  ;;  %v13809_v49 = vpop.f32.mrb[148].mxu1 }
 0x95d   : > { %v8512_v58 = vpack.c.bf16 %v8450_v24, %v8449_v33  ;;  %v7463_v14 = vpop.f32.mrb[149].mxu1 }
 0x95e   : > { %v8511_v9 = vpack.c.bf16 %v8448_v12, %v8447_v45  ;;  %v7464_v22 = vadd.f32 %v7463_v14, %v13722_v62  ;;  %v13815_v54 = vpop.f32.mrb[150].mxu1  ;;  %v10751_v57 = vpop.f32.mrb[144].mxu0  ;;  %v7456_v12 = vadd.f32 %v13800_v25, %v13791_v37 }
 0x95f   : > { %v8389_v31 = vadd.f32 %v10751_v57, %v7412_v34  ;;  %v7467_v50 = vpop.f32.mrb[151].mxu1  ;;  %v8144_v38 = vpop.f32.mrb[145].mxu0 }
 0x960   : > { %7717 = vst.msk [vmem:[%s13729_s19 + $0x80] sm:$0xff] %vm7700_vm2, %v7464_v22  ;;  %v7468_v15 = vadd.f32 %v7467_v50, %v13722_v62  ;;  %v8387_v18 = vadd.f32 %v8144_v38, %v7402_v1  ;;  %v10752_v41 = vpop.f32.mrb[146].mxu0  ;;  %10825 = vmatprep.mubr.bf16.mxu1 %v8511_v9 }
 0x961   : > { %v8390_v7 = vadd.f32 %v10752_v41, %v7416_v59  ;;  %v8147_v16 = vpop.f32.mrb[147].mxu0  ;;  %10826 = vmatmul.mubr.bf16.vlgmr.msra.gmra.mrb[244].mxu1 %v8512_v58  ;;  %v8453_v6 = vmax.f32 %v8389_v31, 0.0  ;;  %v7462_v41 = vadd.f32 %v13809_v49, %v13791_v37 }
 0x962   : > { %7718 = vst.msk [vmem:[%s13729_s19 + $0x88] sm:$0xff] %vm7700_vm2, %v7468_v15  ;;  %v8388_v39 = vadd.f32 %v8147_v16, %v7406_v8  ;;  %v8451_v43 = vmax.f32 %v8387_v18, 0.0 }
 0x963   : > { %v8454_v36 = vmax.f32 %v8390_v7, 0.0 }
 0x964   : > { %v8452_v30 = vmax.f32 %v8388_v39, 0.0  ;;  %v7471_v4 = vpop.f32.mrb[152].mxu1 }
 0x965   : > { %v8514_v63 = vpack.c.bf16 %v8454_v36, %v8453_v6  ;;  %v7473_v10 = vpop.f32.mrb[153].mxu1  ;;  %v7472_v27 = vadd.f32 %v7471_v4, %v13791_v37 }
 0x966   : > { %v8513_v52 = vpack.c.bf16 %v8452_v30, %v8451_v43  ;;  %v7474_v51 = vadd.f32 %v7473_v10, %v13722_v62  ;;  %v7475_v44 = vpop.f32.mrb[154].mxu1  ;;  %v10755_v61 = vpop.f32.mrb[148].mxu0 }
 0x967   : > { %v8393_v11 = vadd.f32 %v10755_v61, %v7432_v28  ;;  %v7477_v35 = vpop.f32.mrb[155].mxu1  ;;  %v8160_v46 = vpop.f32.mrb[149].mxu0  ;;  %v7476_v36 = vadd.f32 %v7475_v44, %v13791_v37 }
 0x968   : > { %7719 = vst.msk [vmem:[%s13729_s19 + $0x90] sm:$0xff] %vm7700_vm2, %v7474_v51  ;;  %v7478_v5 = vadd.f32 %v7477_v35, %v13722_v62  ;;  %v8391_v47 = vadd.f32 %v8160_v46, %v7422_v56  ;;  %v10756_v3 = vpop.f32.mrb[150].mxu0  ;;  %10829 = vmatprep.mubr.bf16.mxu1 %v8513_v52 }
 0x969   : > { %v8394_v48 = vadd.f32 %v10756_v3, %v7436_v2  ;;  %v8163_v32 = vpop.f32.mrb[151].mxu0  ;;  %10830 = vmatmul.mubr.bf16.gmra.mrb[248].mxu1 %v8514_v63  ;;  %v8457_v60 = vmax.f32 %v8393_v11, 0.0  ;;  %v7466_v63 = vadd.f32 %v13815_v54, %v13791_v37 }
 0x96a   : > { %7720 = vst.msk [vmem:[%s13729_s19 + $0x98] sm:$0xff] %vm7700_vm2, %v7478_v5  ;;  %v8392_v23 = vadd.f32 %v8163_v32, %v7426_v29  ;;  %v8455_v53 = vmax.f32 %v8391_v47, 0.0 }
 0x96b   : > { %v8458_v0 = vmax.f32 %v8394_v48, 0.0 }
 0x96c   : > { %v8456_v20 = vmax.f32 %v8392_v23, 0.0  ;;  %v7481_v26 = vpop.f32.mrb[156].mxu1 }
 0x96d   : > { %v8516_v13 = vpack.c.bf16 %v8458_v0, %v8457_v60  ;;  %v7483_v40 = vpop.f32.mrb[157].mxu1  ;;  %v7482_v5 = vadd.f32 %v7481_v26, %v13791_v37 }
 0x96e   : > { %v8515_v42 = vpack.c.bf16 %v8456_v20, %v8455_v53  ;;  %v7484_v33 = vadd.f32 %v7483_v40, %v13722_v62  ;;  %v7485_v24 = vpop.f32.mrb[158].mxu1  ;;  %v10759_v45 = vpop.f32.mrb[152].mxu0 }
 0x96f   : > { %v8397_v34 = vadd.f32 %v10759_v45, %v7452_v19  ;;  %v7487_v58 = vpop.f32.mrb[159].mxu1  ;;  %v8176_v14 = vpop.f32.mrb[153].mxu0  ;;  %v7486_v20 = vadd.f32 %v7485_v24, %v13791_v37 }
 0x970   : > { %7721 = vst.msk [vmem:[%s13729_s19 + $0xa0] sm:$0xff] %vm7700_vm2, %v7484_v33  ;;  %v7488_v1 = vadd.f32 %v7487_v58, %v13722_v62  ;;  %v8395_v21 = vadd.f32 %v8176_v14, %v7442_v55  ;;  %v10760_v9 = vpop.f32.mrb[154].mxu0  ;;  %10833 = vmatprep.mubr.bf16.mxu1 %v8515_v42 }
 0x971   : > { %v8398_v22 = vadd.f32 %v10760_v9, %v7456_v12  ;;  %v8179_v57 = vpop.f32.mrb[155].mxu0  ;;  %10834 = vmatmul.mubr.bf16.gmra.mrb[252].mxu1 %v8516_v13  ;;  %v8461_v25 = vmax.f32 %v8397_v34, 0.0 }
 0x972   : > { %7722 = vst.msk [vmem:[%s13729_s19 + $0xa8] sm:$0xff] %vm7700_vm2, %v7488_v1  ;;  %v8396_v59 = vadd.f32 %v8179_v57, %v7446_v17  ;;  %v8459_v50 = vmax.f32 %v8395_v21, 0.0 }
 0x973   : > { %v8462_v31 = vmax.f32 %v8398_v22, 0.0 }
 0x974   : > { %v8460_v38 = vmax.f32 %v8396_v59, 0.0  ;;  %v7491_v8 = vpop.f32.mrb[160].mxu1 }
 0x975   : > { %v8518_v15 = vpack.c.bf16 %v8462_v31, %v8461_v25  ;;  %v7493_v18 = vpop.f32.mrb[161].mxu1  ;;  %v7492_v54 = vadd.f32 %v7491_v8, %v13791_v37 }
 0x976   : > { %v8517_v7 = vpack.c.bf16 %v8460_v38, %v8459_v50  ;;  %v7494_v16 = vadd.f32 %v7493_v18, %v13722_v62  ;;  %v7495_v39 = vpop.f32.mrb[162].mxu1  ;;  %v10763_v6 = vpop.f32.mrb[156].mxu0 }
 0x977   : > { %v8401_v43 = vadd.f32 %v10763_v6, %v7472_v27  ;;  %v7497_v30 = vpop.f32.mrb[163].mxu1  ;;  %v8192_v28 = vpop.f32.mrb[157].mxu0  ;;  %v7496_v23 = vadd.f32 %v7495_v39, %v13791_v37 }
 0x978   : > { %7723 = vst.msk [vmem:[%s13729_s19 + $0xb0] sm:$0xff] %vm7700_vm2, %v7494_v16  ;;  %v7498_v4 = vadd.f32 %v7497_v30, %v13722_v62  ;;  %v8399_v10 = vadd.f32 %v8192_v28, %v7462_v41  ;;  %v10764_v49 = vpop.f32.mrb[158].mxu0  ;;  %10837 = vmatprep.mubr.bf16.mxu1 %v8517_v7  ;;  %v11706_v7 = vld [vmem:[%s14565_s8 + $0x40] sm:$0xff]  }
 0x979   : > { %v8402_v56 = vadd.f32 %v10764_v49, %v7476_v36  ;;  %v8195_v52 = vpop.f32.mrb[159].mxu0  ;;  %10838 = vmatmul.mubr.bf16.gmra.mrb[0].mxu1 %v8518_v15  ;;  %v8465_v44 = vmax.f32 %v8401_v43, 0.0  ;;  %10889 = vmatprep.subr.bf16.mxu0 %v11706_v7 }
 0x97a   : > { %7724 = vst.msk [vmem:[%s13729_s19 + $0xb8] sm:$0xff] %vm7700_vm2, %v7498_v4  ;;  %v8400_v51 = vadd.f32 %v8195_v52, %v7466_v63  ;;  %v8463_v2 = vmax.f32 %v8399_v10, 0.0  ;;  %10890 = vmatpush3.bf16.msra.mxu0 %v11706_v7 }
 0x97b   : > { %v8466_v61 = vmax.f32 %v8402_v56, 0.0 }
 0x97c   : > { %v8464_v11 = vmax.f32 %v8400_v51, 0.0  ;;  %v7501_v35 = vpop.f32.mrb[164].mxu1 }
 0x97d   : > { %v8520_v46 = vpack.c.bf16 %v8466_v61, %v8465_v44  ;;  %v7503_v29 = vpop.f32.mrb[165].mxu1  ;;  %v7502_v1 = vadd.f32 %v7501_v35, %v13791_v37 }
 0x97e   : > { %v8519_v47 = vpack.c.bf16 %v8464_v11, %v8463_v2  ;;  %v7504_v3 = vadd.f32 %v7503_v29, %v13722_v62  ;;  %v7505_v48 = vpop.f32.mrb[166].mxu1  ;;  %v10767_v32 = vpop.f32.mrb[160].mxu0 }
 0x97f   : > { %v8405_v60 = vadd.f32 %v10767_v32, %v7492_v54  ;;  %v7507_v0 = vpop.f32.mrb[167].mxu1  ;;  %v8208_v53 = vpop.f32.mrb[161].mxu0  ;;  %v7506_v38 = vadd.f32 %v7505_v48, %v13791_v37 }
 0x980   : > { %7725 = vst.msk [vmem:[%s13729_s19 + $0xc0] sm:$0xff] %vm7700_vm2, %v7504_v3  ;;  %v7508_v19 = vadd.f32 %v7507_v0, %v13722_v62  ;;  %v8403_v13 = vadd.f32 %v8208_v53, %v7482_v5  ;;  %v10768_v40 = vpop.f32.mrb[162].mxu0  ;;  %10841 = vmatprep.mubr.bf16.mxu1 %v8519_v47 }
 0x981   : > { %v8406_v26 = vadd.f32 %v10768_v40, %v7496_v23  ;;  %v8211_v55 = vpop.f32.mrb[163].mxu0  ;;  %10842 = vmatmul.mubr.bf16.gmra.mrb[4].mxu1 %v8520_v46  ;;  %v8469_v33 = vmax.f32 %v8405_v60, 0.0 }
 0x982   : > { %7726 = vst.msk [vmem:[%s13729_s19 + $0xc8] sm:$0xff] %vm7700_vm2, %v7508_v19  ;;  %v8404_v42 = vadd.f32 %v8211_v55, %v7486_v20  ;;  %v8467_v12 = vmax.f32 %v8403_v13, 0.0 }
 0x983   : > { %v8470_v45 = vmax.f32 %v8406_v26, 0.0 }
 0x984   : > { %v8468_v34 = vmax.f32 %v8404_v42, 0.0  ;;  %v7511_v58 = vpop.f32.mrb[168].mxu1 }
 0x985   : > { %v8522_v24 = vpack.c.bf16 %v8470_v45, %v8469_v33  ;;  %v7512_v14 = vadd.f32 %v7511_v58, %v13791_v37  ;;  %v7513_v17 = vpop.f32.mrb[169].mxu1  ;;  %v11707_v33 = vld [vmem:[%s14565_s8 + $0x48] sm:$0xff]  }
 0x986   : > { %v8521_v21 = vpack.c.bf16 %v8468_v34, %v8467_v12  ;;  %v7514_v9 = vadd.f32 %v7513_v17, %v13722_v62  ;;  %v7515_v22 = vpop.f32.mrb[170].mxu1  ;;  %v10771_v57 = vpop.f32.mrb[164].mxu0  ;;  %10891 = vmatprep.subr.bf16.mxu0 %v11707_v33 }
 0x987   : > { %v7516_v59 = vadd.f32 %v7515_v22, %v13791_v37  ;;  %v8409_v25 = vadd.f32 %v10771_v57, %v7512_v14  ;;  %v7517_v31 = vpop.f32.mrb[171].mxu1  ;;  %v8224_v50 = vpop.f32.mrb[165].mxu0  ;;  %10892 = vmatpush3.bf16.msra.mxu0 %v11707_v33  ;;  %v11712_v33 = vld [vmem:[%s14565_s8 + $0x70] sm:$0xff]  }
 0x988   : > { %7727 = vst.msk [vmem:[%s13729_s19 + $0xd0] sm:$0xff] %vm7700_vm2, %v7514_v9  ;;  %v7518_v8 = vadd.f32 %v7517_v31, %v13722_v62  ;;  %v8407_v27 = vadd.f32 %v8224_v50, %v7502_v1  ;;  %v10772_v15 = vpop.f32.mrb[166].mxu0  ;;  %10845 = vmatprep.mubr.bf16.mxu1 %v8521_v21  ;;  %v11709_v31 = vld [vmem:[%s14565_s8 + $0x58] sm:$0xff]  }
 0x989   : > { %v8410_v18 = vadd.f32 %v10772_v15, %v7516_v59  ;;  %v8227_v41 = vpop.f32.mrb[167].mxu0  ;;  %10846 = vmatmul.mubr.bf16.gmra.mrb[8].mxu1 %v8522_v24  ;;  %v8473_v39 = vmax.f32 %v8409_v25, 0.0  ;;  %v11708_v25 = vld [vmem:[%s14565_s8 + $0x50] sm:$0xff]  }
 0x98a   : > { %7728 = vst.msk [vmem:[%s13729_s19 + $0xd8] sm:$0xff] %vm7700_vm2, %v7518_v8  ;;  %v8408_v16 = vadd.f32 %v8227_v41, %v7506_v38  ;;  %v8471_v36 = vmax.f32 %v8407_v27, 0.0  ;;  %10893 = vmatprep.subr.bf16.mxu0 %v11708_v25  ;;  %v11710_v41 = vld [vmem:[%s14565_s8 + $0x60] sm:$0xff]  }
 0x98b   : > { %v8474_v6 = vmax.f32 %v8410_v18, 0.0  ;;  %10894 = vmatpush3.bf16.msra.mxu0 %v11708_v25 }
 0x98c   : > { %v8472_v43 = vmax.f32 %v8408_v16, 0.0  ;;  %v7521_v30 = vpop.f32.mrb[172].mxu1  ;;  %10895 = vmatprep.subr.bf16.mxu0 %v11709_v31 }
 0x98d   : > { %v8524_v28 = vpack.c.bf16 %v8474_v6, %v8473_v39  ;;  %v7522_v63 = vadd.f32 %v7521_v30, %v13791_v37  ;;  %v7523_v4 = vpop.f32.mrb[173].mxu1 }
 0x98e   : > { %v8523_v10 = vpack.c.bf16 %v8472_v43, %v8471_v36  ;;  %v7524_v49 = vadd.f32 %v7523_v4, %v13722_v62  ;;  %v7525_v56 = vpop.f32.mrb[174].mxu1  ;;  %v10775_v52 = vpop.f32.mrb[168].mxu0 }
 0x98f   : > { %v7526_v51 = vadd.f32 %v7525_v56, %v13791_v37  ;;  %v7527_v44 = vpop.f32.mrb[175].mxu1  ;;  %v8240_v61 = vpop.f32.mrb[169].mxu0  ;;  %10896 = vmatpush3.bf16.msra.mxu0 %v11709_v31 }
 0x990   : > { %7729 = vst.msk [vmem:[%s13729_s19 + $0xe0] sm:$0xff] %vm7700_vm2, %v7524_v49  ;;  %v7528_v2 = vadd.f32 %v7527_v44, %v13722_v62  ;;  %v8411_v11 = vadd.f32 %v8240_v61, %v7522_v63  ;;  %v10776_v35 = vpop.f32.mrb[170].mxu0  ;;  %10849 = vmatprep.mubr.bf16.mxu1 %v8523_v10  ;;  %10897 = vmatprep.subr.bf16.mxu0 %v11710_v41  ;;  %v11711_v49 = vld [vmem:[%s14565_s8 + $0x68] sm:$0xff]  }
 0x991   : > { %v8243_v54 = vpop.f32.mrb[171].mxu0  ;;  %10850 = vmatmul.mubr.bf16.gmra.mrb[12].mxu1 %v8524_v28 }
 0x992   : > { %7730 = vst.msk [vmem:[%s13729_s19 + $0xe8] sm:$0xff] %vm7700_vm2, %v7528_v2  ;;  %v8412_v46 = vadd.f32 %v8243_v54, %v7526_v51  ;;  %v8475_v29 = vmax.f32 %v8411_v11, 0.0 }
 0x993   : > { %10898 = vmatpush3.bf16.msra.mxu0 %v11710_v41 }
 0x994   : > { %v8476_v5 = vmax.f32 %v8412_v46, 0.0  ;;  %v7531_v47 = vpop.f32.mrb[176].mxu1  ;;  %10899 = vmatprep.subr.bf16.mxu0 %v11711_v49 }
 0x995   : > { %v7532_v3 = vadd.f32 %v7531_v47, %v13791_v37  ;;  %v7533_v48 = vpop.f32.mrb[177].mxu1 }
 0x996   : > { %v8525_v32 = vpack.c.bf16 %v8476_v5, %v8475_v29  ;;  %v7534_v23 = vadd.f32 %v7533_v48, %v13722_v62  ;;  %v7535_v60 = vpop.f32.mrb[178].mxu1  ;;  %v10779_v0 = vpop.f32.mrb[172].mxu0 }
 0x997   : > { %v8413_v53 = vadd.f32 %v10775_v52, %v7532_v3  ;;  %v7536_v20 = vadd.f32 %v7535_v60, %v13791_v37  ;;  %v7537_v19 = vpop.f32.mrb[179].mxu1  ;;  %v8256_v13 = vpop.f32.mrb[173].mxu0  ;;  %10900 = vmatpush3.bf16.msra.mxu0 %v11711_v49 }
 0x998   : > { %7731 = vst.msk [vmem:[%s13729_s19 + $0xf0] sm:$0xff] %vm7700_vm2, %v7534_v23  ;;  %v7538_v40 = vadd.f32 %v7537_v19, %v13722_v62  ;;  %10853 = vmatprep.mubr.bf16.mxu1 %v8525_v32  ;;  %v10780_v26 = vpop.f32.mrb[174].mxu0  ;;  %10901 = vmatprep.subr.bf16.mxu0 %v11712_v33 }
 0x999   : > { %v8414_v55 = vadd.f32 %v10776_v35, %v7536_v20  ;;  %v8259_v42 = vpop.f32.mrb[175].mxu0  ;;  %v8477_v45 = vmax.f32 %v8413_v53, 0.0 }
 0x99a   : > { %7732 = vst.msk [vmem:[%s13729_s19 + $0xf8] sm:$0xff] %vm7700_vm2, %v7538_v40 }
 0x99b   : > { %v8478_v12 = vmax.f32 %v8414_v55, 0.0  ;;  %10902 = vmatpush3.bf16.msra.mxu0 %v11712_v33 }
 0x99c   : > { %v7541_v34 = vpop.f32.mrb[180].mxu1 }
 0x99d   : > { %v8526_v58 = vpack.c.bf16 %v8478_v12, %v8477_v45  ;;  %v7542_v24 = vadd.f32 %v7541_v34, %v13791_v37  ;;  %v7543_v14 = vpop.f32.mrb[181].mxu1 }
 0x99e   : > { %v7544_v17 = vadd.f32 %v7543_v14, %v13722_v62  ;;  %v7545_v1 = vpop.f32.mrb[182].mxu1  ;;  %v13909_v21 = vpop.f32.mrb[176].mxu0 }
 0x99f   : > { %v7546_v9 = vadd.f32 %v7545_v1, %v13791_v37  ;;  %v8415_v22 = vadd.f32 %v8256_v13, %v7542_v24  ;;  %v7547_v57 = vpop.f32.mrb[183].mxu1  ;;  %10854 = vmatmul.mubr.bf16.gmra.mrb[16].mxu1 %v8526_v58  ;;  %v8272_v59 = vpop.f32.mrb[177].mxu0 }
 0x9a0   : > { %7733 = vst.msk [vmem:[%s13729_s19 + $0x100] sm:$0xff] %vm7700_vm2, %v7544_v17  ;;  %v7548_v50 = vadd.f32 %v7547_v57, %v13722_v62  ;;  %v13921_v38 = vpop.f32.mrb[178].mxu0 }
 0x9a1   : > { %v8416_v8 = vadd.f32 %v8259_v42, %v7546_v9  ;;  %v8275_v27 = vpop.f32.mrb[179].mxu0  ;;  %v8479_v15 = vmax.f32 %v8415_v22, 0.0 }
 0x9a2   : > { %7734 = vst.msk [vmem:[%s13729_s19 + $0x108] sm:$0xff] %vm7700_vm2, %v7548_v50 }
 0x9a3   : > { %v8480_v18 = vmax.f32 %v8416_v8, 0.0 }
 0x9a4   : > { %v7551_v7 = vpop.f32.mrb[184].mxu1 }
 0x9a5   : > { %v8527_v16 = vpack.c.bf16 %v8480_v18, %v8479_v15  ;;  %v7552_v39 = vadd.f32 %v7551_v7, %v13791_v37  ;;  %v7553_v6 = vpop.f32.mrb[185].mxu1 }
 0x9a6   : > { %v7554_v36 = vadd.f32 %v7553_v6, %v13722_v62  ;;  %v7555_v43 = vpop.f32.mrb[186].mxu1  ;;  %v13930_v30 = vpop.f32.mrb[180].mxu0 }
 0x9a7   : > { %v8417_v28 = vadd.f32 %v10779_v0, %v7552_v39  ;;  %v7556_v63 = vadd.f32 %v7555_v43, %v13791_v37  ;;  %v7557_v4 = vpop.f32.mrb[187].mxu1  ;;  %10857 = vmatprep.mubr.bf16.mxu1 %v8527_v16  ;;  %v13933_v10 = vpop.f32.mrb[181].mxu0 }
 0x9a8   : > { %7735 = vst.msk [vmem:[%s13729_s19 + $0x110] sm:$0xff] %vm7700_vm2, %v7554_v36  ;;  %v7558_v56 = vadd.f32 %v7557_v4, %v13722_v62  ;;  %v13941_v52 = vpop.f32.mrb[182].mxu0 }
 0x9a9   : > { %v8418_v51 = vadd.f32 %v10780_v26, %v7556_v63  ;;  %v13943_v44 = vpop.f32.mrb[183].mxu0  ;;  %v8481_v61 = vmax.f32 %v8417_v28, 0.0 }
 0x9aa   : > { %7736 = vst.msk [vmem:[%s13729_s19 + $0x118] sm:$0xff] %vm7700_vm2, %v7558_v56 }
 0x9ab   : > { %v8482_v2 = vmax.f32 %v8418_v51, 0.0 }
 0x9ac   : > { %v7561_v11 = vpop.f32.mrb[188].mxu1 }
 0x9ad   : > { %v8528_v35 = vpack.c.bf16 %v8482_v2, %v8481_v61  ;;  %v7562_v54 = vadd.f32 %v7561_v11, %v13791_v37  ;;  %v7563_v46 = vpop.f32.mrb[189].mxu1 }
 0x9ae   : > { %v7564_v29 = vadd.f32 %v7563_v46, %v13722_v62  ;;  %v7565_v5 = vpop.f32.mrb[190].mxu1  ;;  %v13949_v47 = vpop.f32.mrb[184].mxu0 }
 0x9af   : > { %v7566_v3 = vadd.f32 %v7565_v5, %v13791_v37  ;;  %v8419_v48 = vadd.f32 %v8272_v59, %v7562_v54  ;;  %v7567_v32 = vpop.f32.mrb[191].mxu1  ;;  %10858 = vmatmul.mubr.bf16.gmra.mrb[20].mxu1 %v8528_v35  ;;  %v13952_v23 = vpop.f32.mrb[185].mxu0 }
 0x9b0   : > { %7737 = vst.msk [vmem:[%s13729_s19 + $0x120] sm:$0xff] %vm7700_vm2, %v7564_v29  ;;  %v7568_v60 = vadd.f32 %v7567_v32, %v13722_v62  ;;  %v13957_v0 = vpop.f32.mrb[186].mxu0 }
 0x9b1   : > { %v8420_v53 = vadd.f32 %v8275_v27, %v7566_v3  ;;  %v13959_v20 = vpop.f32.mrb[187].mxu0  ;;  %v8483_v19 = vmax.f32 %v8419_v48, 0.0 }
 0x9b2   : > { %7738 = vst.msk [vmem:[%s13729_s19 + $0x128] sm:$0xff] %vm7700_vm2, %v7568_v60 }
 0x9b3   : > { %v8484_v13 = vmax.f32 %v8420_v53, 0.0 }
 0x9b4   : > { %v7571_v40 = vpop.f32.mrb[192].mxu1 }
 0x9b5   : > { %v8529_v26 = vpack.c.bf16 %v8484_v13, %v8483_v19  ;;  %v7572_v55 = vadd.f32 %v7571_v40, %v13791_v37  ;;  %v7573_v42 = vpop.f32.mrb[193].mxu1 }
 0x9b6   : > { %v7574_v45 = vadd.f32 %v7573_v42, %v13722_v62  ;;  %v7575_v12 = vpop.f32.mrb[194].mxu1  ;;  %v13968_v34 = vpop.f32.mrb[188].mxu0 }
 0x9b7   : > { %v8421_v58 = vadd.f32 %v13909_v21, %v7572_v55  ;;  %v7576_v24 = vadd.f32 %v7575_v12, %v13791_v37  ;;  %v7577_v14 = vpop.f32.mrb[195].mxu1  ;;  %10861 = vmatprep.mubr.bf16.mxu1 %v8529_v26  ;;  %v13972_v17 = vpop.f32.mrb[189].mxu0  ;;  %v11713_v21 = vld [vmem:[%s14565_s8 + $0x78] sm:$0xff]  }
 0x9b8   : > { %7739 = vst.msk [vmem:[%s13729_s19 + $0x130] sm:$0xff] %vm7700_vm2, %v7574_v45  ;;  %v7578_v1 = vadd.f32 %v7577_v14, %v13722_v62  ;;  %v13977_v9 = vpop.f32.mrb[190].mxu0  ;;  %10903 = vmatprep.subr.bf16.mxu0 %v11713_v21 }
 0x9b9   : > { %v8422_v22 = vadd.f32 %v13921_v38, %v7576_v24  ;;  %v13980_v57 = vpop.f32.mrb[191].mxu0  ;;  %v8485_v59 = vmax.f32 %v8421_v58, 0.0  ;;  %10904 = vmatpush3.bf16.msra.mxu0 %v11713_v21 }
 0x9ba   : > { %7740 = vst.msk [vmem:[%s13729_s19 + $0x138] sm:$0xff] %vm7700_vm2, %v7578_v1 }
 0x9bb   : > { %v8486_v25 = vmax.f32 %v8422_v22, 0.0 }
 0x9bc   : > { %v7581_v31 = vpop.f32.mrb[196].mxu1 }
 0x9bd   : > { %v8530_v50 = vpack.c.bf16 %v8486_v25, %v8485_v59  ;;  %v7582_v8 = vadd.f32 %v7581_v31, %v13791_v37  ;;  %v7583_v27 = vpop.f32.mrb[197].mxu1 }
 0x9be   : > { %v7584_v38 = vadd.f32 %v7583_v27, %v13722_v62  ;;  %v7585_v15 = vpop.f32.mrb[198].mxu1  ;;  %v13989_v18 = vpop.f32.mrb[192].mxu0 }
 0x9bf   : > { %v7586_v41 = vadd.f32 %v7585_v15, %v13791_v37  ;;  %v8423_v7 = vadd.f32 %v13933_v10, %v7582_v8  ;;  %v7587_v16 = vpop.f32.mrb[199].mxu1  ;;  %10862 = vmatmul.mubr.bf16.gmra.mrb[24].mxu1 %v8530_v50  ;;  %v13993_v39 = vpop.f32.mrb[193].mxu0 }
 0x9c0   : > { %7741 = vst.msk [vmem:[%s13729_s19 + $0x140] sm:$0xff] %vm7700_vm2, %v7584_v38  ;;  %v7588_v6 = vadd.f32 %v7587_v16, %v13722_v62  ;;  %v13998_v36 = vpop.f32.mrb[194].mxu0 }
 0x9c1   : > { %v8424_v43 = vadd.f32 %v13943_v44, %v7586_v41  ;;  %v14001_v28 = vpop.f32.mrb[195].mxu0  ;;  %v8487_v63 = vmax.f32 %v8423_v7, 0.0 }
 0x9c2   : > { %7742 = vst.msk [vmem:[%s13729_s19 + $0x148] sm:$0xff] %vm7700_vm2, %v7588_v6 }
 0x9c3   : > { %v8488_v4 = vmax.f32 %v8424_v43, 0.0 }
 0x9c4   : > { %v7591_v10 = vpop.f32.mrb[200].mxu1 }
 0x9c5   : > { %v8531_v49 = vpack.c.bf16 %v8488_v4, %v8487_v63  ;;  %v7592_v56 = vadd.f32 %v7591_v10, %v13791_v37  ;;  %v7593_v51 = vpop.f32.mrb[201].mxu1 }
 0x9c6   : > { %v7594_v61 = vadd.f32 %v7593_v51, %v13722_v62  ;;  %v7595_v2 = vpop.f32.mrb[202].mxu1  ;;  %v14007_v11 = vpop.f32.mrb[196].mxu0 }
 0x9c7   : > { %v8425_v44 = vadd.f32 %v13930_v30, %v7592_v56  ;;  %v7596_v35 = vadd.f32 %v7595_v2, %v13791_v37  ;;  %v7597_v54 = vpop.f32.mrb[203].mxu1  ;;  %10865 = vmatprep.mubr.bf16.mxu1 %v8531_v49  ;;  %v14011_v46 = vpop.f32.mrb[197].mxu0 }
 0x9c8   : > { %7743 = vst.msk [vmem:[%s13729_s19 + $0x150] sm:$0xff] %vm7700_vm2, %v7594_v61  ;;  %v7598_v29 = vadd.f32 %v7597_v54, %v13722_v62  ;;  %v14016_v5 = vpop.f32.mrb[198].mxu0 }
 0x9c9   : > { %v8426_v3 = vadd.f32 %v13941_v52, %v7596_v35  ;;  %v14019_v48 = vpop.f32.mrb[199].mxu0  ;;  %v8489_v30 = vmax.f32 %v8425_v44, 0.0 }
 0x9ca   : > { %7744 = vst.msk [vmem:[%s13729_s19 + $0x158] sm:$0xff] %vm7700_vm2, %v7598_v29 }
 0x9cb   : > { %v8490_v32 = vmax.f32 %v8426_v3, 0.0 }
 0x9cc   : > { %v7601_v60 = vpop.f32.mrb[204].mxu1 }
 0x9cd   : > { %v8532_v53 = vpack.c.bf16 %v8490_v32, %v8489_v30  ;;  %v7602_v19 = vadd.f32 %v7601_v60, %v13791_v37  ;;  %v7603_v13 = vpop.f32.mrb[205].mxu1 }
 0x9ce   : > { %v7604_v40 = vadd.f32 %v7603_v13, %v13722_v62  ;;  %v7605_v26 = vpop.f32.mrb[206].mxu1  ;;  %v14025_v55 = vpop.f32.mrb[200].mxu0 }
 0x9cf   : > { %v7606_v52 = vadd.f32 %v7605_v26, %v13791_v37  ;;  %v8427_v42 = vadd.f32 %v13952_v23, %v7602_v19  ;;  %v7607_v33 = vpop.f32.mrb[207].mxu1  ;;  %10866 = vmatmul.mubr.bf16.gmra.mrb[28].mxu1 %v8532_v53  ;;  %v14029_v45 = vpop.f32.mrb[201].mxu0 }
 0x9d0   : > { %7745 = vst.msk [vmem:[%s13729_s19 + $0x160] sm:$0xff] %vm7700_vm2, %v7604_v40  ;;  %v7608_v12 = vadd.f32 %v7607_v33, %v13722_v62  ;;  %v14034_v58 = vpop.f32.mrb[202].mxu0 }
 0x9d1   : > { %v8428_v24 = vadd.f32 %v13959_v20, %v7606_v52  ;;  %v14037_v14 = vpop.f32.mrb[203].mxu0  ;;  %v8491_v1 = vmax.f32 %v8427_v42, 0.0 }
 0x9d2   : > { %7746 = vst.msk [vmem:[%s13729_s19 + $0x168] sm:$0xff] %vm7700_vm2, %v7608_v12 }
 0x9d3   : > { %v8492_v23 = vmax.f32 %v8428_v24, 0.0 }
 0x9d4   : > { %v7611_v22 = vpop.f32.mrb[208].mxu1 }
 0x9d5   : > { %v8533_v21 = vpack.c.bf16 %v8492_v23, %v8491_v1  ;;  %v7612_v59 = vadd.f32 %v7611_v22, %v13791_v37  ;;  %v7613_v25 = vpop.f32.mrb[209].mxu1 }
 0x9d6   : > { %v7614_v31 = vadd.f32 %v7613_v25, %v13722_v62  ;;  %v7615_v50 = vpop.f32.mrb[210].mxu1 }
 0x9d7   : > { %v8429_v8 = vadd.f32 %v13949_v47, %v7612_v59  ;;  %v7616_v27 = vadd.f32 %v7615_v50, %v13791_v37  ;;  %v7617_v20 = vpop.f32.mrb[211].mxu1  ;;  %10869 = vmatprep.mubr.bf16.mxu1 %v8533_v21 }
 0x9d8   : > { %7747 = vst.msk [vmem:[%s13729_s19 + $0x170] sm:$0xff] %vm7700_vm2, %v7614_v31  ;;  %v7618_v38 = vadd.f32 %v7617_v20, %v13722_v62 }
 0x9d9   : > { %v8430_v15 = vadd.f32 %v13957_v0, %v7616_v27  ;;  %v8493_v41 = vmax.f32 %v8429_v8, 0.0 }
 0x9da   : > { %7748 = vst.msk [vmem:[%s13729_s19 + $0x178] sm:$0xff] %vm7700_vm2, %v7618_v38 }
 0x9db   : > { %v8494_v7 = vmax.f32 %v8430_v15, 0.0 }
 0x9dc   : > { %v7621_v16 = vpop.f32.mrb[212].mxu1 }
 0x9dd   : > { %v8534_v6 = vpack.c.bf16 %v8494_v7, %v8493_v41  ;;  %v7622_v47 = vadd.f32 %v7621_v16, %v13791_v37  ;;  %v7623_v43 = vpop.f32.mrb[213].mxu1 }
 0x9de   : > { %v7624_v63 = vadd.f32 %v7623_v43, %v13722_v62  ;;  %v7625_v4 = vpop.f32.mrb[214].mxu1 }
 0x9df   : > { %v7626_v10 = vadd.f32 %v7625_v4, %v13791_v37  ;;  %v8431_v49 = vadd.f32 %v13972_v17, %v7622_v47  ;;  %v7627_v56 = vpop.f32.mrb[215].mxu1  ;;  %10870 = vmatmul.mubr.bf16.gmra.mrb[32].mxu1 %v8534_v6 }
 0x9e0   : > { %7749 = vst.msk [vmem:[%s13729_s19 + $0x180] sm:$0xff] %vm7700_vm2, %v7624_v63  ;;  %v7628_v0 = vadd.f32 %v7627_v56, %v13722_v62 }
 0x9e1   : > { %v8432_v51 = vadd.f32 %v13980_v57, %v7626_v10  ;;  %v8495_v61 = vmax.f32 %v8431_v49, 0.0 }
 0x9e2   : > { %7750 = vst.msk [vmem:[%s13729_s19 + $0x188] sm:$0xff] %vm7700_vm2, %v7628_v0 }
 0x9e3   : > { %v8496_v2 = vmax.f32 %v8432_v51, 0.0 }
 0x9e4   : > { %v7631_v44 = vpop.f32.mrb[216].mxu1 }
 0x9e5   : > { %v8535_v35 = vpack.c.bf16 %v8496_v2, %v8495_v61  ;;  %v7632_v54 = vadd.f32 %v7631_v44, %v13791_v37  ;;  %v7633_v29 = vpop.f32.mrb[217].mxu1 }
 0x9e6   : > { %v7634_v17 = vadd.f32 %v7633_v29, %v13722_v62  ;;  %v7635_v3 = vpop.f32.mrb[218].mxu1 }
 0x9e7   : > { %v8433_v30 = vadd.f32 %v13968_v34, %v7632_v54  ;;  %v7636_v32 = vadd.f32 %v7635_v3, %v13791_v37  ;;  %v7637_v60 = vpop.f32.mrb[219].mxu1  ;;  %10873 = vmatprep.mubr.bf16.mxu1 %v8535_v35 }
 0x9e8   : > { %7751 = vst.msk [vmem:[%s13729_s19 + $0x190] sm:$0xff] %vm7700_vm2, %v7634_v17  ;;  %v7638_v57 = vadd.f32 %v7637_v60, %v13722_v62 }
 0x9e9   : > { %v8434_v53 = vadd.f32 %v13977_v9, %v7636_v32  ;;  %v8497_v19 = vmax.f32 %v8433_v30, 0.0 }
 0x9ea   : > { %7752 = vst.msk [vmem:[%s13729_s19 + $0x198] sm:$0xff] %vm7700_vm2, %v7638_v57 }
 0x9eb   : > { %v8498_v13 = vmax.f32 %v8434_v53, 0.0 }
 0x9ec   : > { %v7641_v40 = vpop.f32.mrb[220].mxu1 }
 0x9ed   : > { %v8536_v26 = vpack.c.bf16 %v8498_v13, %v8497_v19  ;;  %v7642_v34 = vadd.f32 %v7641_v40, %v13791_v37  ;;  %v7643_v52 = vpop.f32.mrb[221].mxu1 }
 0x9ee   : > { %v7644_v42 = vadd.f32 %v7643_v52, %v13722_v62  ;;  %v7645_v33 = vpop.f32.mrb[222].mxu1 }
 0x9ef   : > { %v7646_v12 = vadd.f32 %v7645_v33, %v13791_v37  ;;  %v8435_v24 = vadd.f32 %v13993_v39, %v7642_v34  ;;  %v7647_v1 = vpop.f32.mrb[223].mxu1  ;;  %10874 = vmatmul.mubr.bf16.gmra.mrb[36].mxu1 %v8536_v26 }
 0x9f0   : > { %7753 = vst.msk [vmem:[%s13729_s19 + $0x1a0] sm:$0xff] %vm7700_vm2, %v7644_v42  ;;  %v7648_v9 = vadd.f32 %v7647_v1, %v13722_v62 }
 0x9f1   : > { %v8436_v23 = vadd.f32 %v14001_v28, %v7646_v12  ;;  %v8499_v22 = vmax.f32 %v8435_v24, 0.0 }
 0x9f2   : > { %7754 = vst.msk [vmem:[%s13729_s19 + $0x1a8] sm:$0xff] %vm7700_vm2, %v7648_v9 }
 0x9f3   : > { %v8500_v21 = vmax.f32 %v8436_v23, 0.0 }
 0x9f4   : > { %v7651_v59 = vpop.f32.mrb[224].mxu1 }
 0x9f5   : > { %v8537_v25 = vpack.c.bf16 %v8500_v21, %v8499_v22  ;;  %v7652_v31 = vadd.f32 %v7651_v59, %v13791_v37  ;;  %v7653_v50 = vpop.f32.mrb[225].mxu1 }
 0x9f6   : > { %v7654_v39 = vadd.f32 %v7653_v50, %v13722_v62  ;;  %v7655_v8 = vpop.f32.mrb[226].mxu1 }
 0x9f7   : > { %v8437_v27 = vadd.f32 %v13989_v18, %v7652_v31  ;;  %v7656_v20 = vadd.f32 %v7655_v8, %v13791_v37  ;;  %v7657_v38 = vpop.f32.mrb[227].mxu1  ;;  %10877 = vmatprep.mubr.bf16.mxu1 %v8537_v25 }
 0x9f8   : > { %7755 = vst.msk [vmem:[%s13729_s19 + $0x1b0] sm:$0xff] %vm7700_vm2, %v7654_v39  ;;  %v7658_v28 = vadd.f32 %v7657_v38, %v13722_v62 }
 0x9f9   : > { %v8438_v15 = vadd.f32 %v13998_v36, %v7656_v20  ;;  %v8501_v41 = vmax.f32 %v8437_v27, 0.0 }
 0x9fa   : > { %7756 = vst.msk [vmem:[%s13729_s19 + $0x1b8] sm:$0xff] %vm7700_vm2, %v7658_v28 }
 0x9fb   : > { %v8502_v7 = vmax.f32 %v8438_v15, 0.0 }
 0x9fc   : > { %v7661_v16 = vpop.f32.mrb[228].mxu1 }
 0x9fd   : > { %v8538_v6 = vpack.c.bf16 %v8502_v7, %v8501_v41  ;;  %v7662_v18 = vadd.f32 %v7661_v16, %v13791_v37  ;;  %v7663_v47 = vpop.f32.mrb[229].mxu1 }
 0x9fe   : > { %v7664_v43 = vadd.f32 %v7663_v47, %v13722_v62  ;;  %v7665_v63 = vpop.f32.mrb[230].mxu1 }
 0x9ff   : > { %v7666_v4 = vadd.f32 %v7665_v63, %v13791_v37  ;;  %v8439_v10 = vadd.f32 %v14011_v46, %v7662_v18  ;;  %v7667_v49 = vpop.f32.mrb[231].mxu1  ;;  %10878 = vmatmul.mubr.bf16.gmra.mrb[40].mxu1 %v8538_v6 }
 0xa00   : > { %7757 = vst.msk [vmem:[%s13729_s19 + $0x1c0] sm:$0xff] %vm7700_vm2, %v7664_v43  ;;  %v7668_v36 = vadd.f32 %v7667_v49, %v13722_v62 }
 0xa01   : > { %v8440_v56 = vadd.f32 %v14019_v48, %v7666_v4  ;;  %v8503_v0 = vmax.f32 %v8439_v10, 0.0 }
 0xa02   : > { %7758 = vst.msk [vmem:[%s13729_s19 + $0x1c8] sm:$0xff] %vm7700_vm2, %v7668_v36 }
 0xa03   : > { %v8504_v51 = vmax.f32 %v8440_v56, 0.0 }
 0xa04   : > { %v7671_v61 = vpop.f32.mrb[232].mxu1 }
 0xa05   : > { %v8539_v2 = vpack.c.bf16 %v8504_v51, %v8503_v0  ;;  %v7672_v44 = vadd.f32 %v7671_v61, %v13791_v37  ;;  %v7673_v35 = vpop.f32.mrb[233].mxu1 }
 0xa06   : > { %v7674_v46 = vadd.f32 %v7673_v35, %v13722_v62  ;;  %v7675_v54 = vpop.f32.mrb[234].mxu1 }
 0xa07   : > { %v8441_v29 = vadd.f32 %v14007_v11, %v7672_v44  ;;  %v7676_v17 = vadd.f32 %v7675_v54, %v13791_v37  ;;  %v7677_v3 = vpop.f32.mrb[235].mxu1  ;;  %10881 = vmatprep.mubr.bf16.mxu1 %v8539_v2 }
 0xa08   : > { %7759 = vst.msk [vmem:[%s13729_s19 + $0x1d0] sm:$0xff] %vm7700_vm2, %v7674_v46  ;;  %v7678_v48 = vadd.f32 %v7677_v3, %v13722_v62 }
 0xa09   : > { %v8442_v30 = vadd.f32 %v14016_v5, %v7676_v17  ;;  %v8505_v32 = vmax.f32 %v8441_v29, 0.0 }
 0xa0a   : > { %7760 = vst.msk [vmem:[%s13729_s19 + $0x1d8] sm:$0xff] %vm7700_vm2, %v7678_v48 }
 0xa0b   : > { %v8506_v60 = vmax.f32 %v8442_v30, 0.0 }
 0xa0c   : > { %v7681_v57 = vpop.f32.mrb[236].mxu1 }
 0xa0d   : > { %v8540_v53 = vpack.c.bf16 %v8506_v60, %v8505_v32  ;;  %v7682_v11 = vadd.f32 %v7681_v57, %v13791_v37  ;;  %v7683_v19 = vpop.f32.mrb[237].mxu1 }
 0xa0e   : > { %v7684_v13 = vadd.f32 %v7683_v19, %v13722_v62  ;;  %v7685_v40 = vpop.f32.mrb[238].mxu1 }
 0xa0f   : > { %v7686_v26 = vadd.f32 %v7685_v40, %v13791_v37  ;;  %v8443_v34 = vadd.f32 %v14029_v45, %v7682_v11  ;;  %v7687_v52 = vpop.f32.mrb[239].mxu1  ;;  %10882 = vmatmul.mubr.bf16.gmra.mrb[44].mxu1 %v8540_v53 }
 0xa10   : > { %7761 = vst.msk [vmem:[%s13729_s19 + $0x1e0] sm:$0xff] %vm7700_vm2, %v7684_v13  ;;  %v7688_v5 = vadd.f32 %v7687_v52, %v13722_v62 }
 0xa11   : > { %v8444_v42 = vadd.f32 %v14037_v14, %v7686_v26  ;;  %v8507_v33 = vmax.f32 %v8443_v34, 0.0 }
 0xa12   : > { %7762 = vst.msk [vmem:[%s13729_s19 + $0x1e8] sm:$0xff] %vm7700_vm2, %v7688_v5 }
 0xa13   : > { %v8508_v12 = vmax.f32 %v8444_v42, 0.0 }
 0xa14   : > { %v7691_v24 = vpop.f32.mrb[240].mxu1 }
 0xa15   : > { %v8541_v1 = vpack.c.bf16 %v8508_v12, %v8507_v33  ;;  %v7692_v9 = vadd.f32 %v7691_v24, %v13791_v37  ;;  %v7693_v23 = vpop.f32.mrb[241].mxu1 }
 0xa16   : > { %v7694_v45 = vadd.f32 %v7693_v23, %v13722_v62  ;;  %v7695_v22 = vpop.f32.mrb[242].mxu1 }
 0xa17   : > { %v8445_v21 = vadd.f32 %v14025_v55, %v7692_v9  ;;  %v7696_v59 = vadd.f32 %v7695_v22, %v13791_v37  ;;  %v7697_v25 = vpop.f32.mrb[243].mxu1  ;;  %10885 = vmatprep.mubr.bf16.mxu1 %v8541_v1  ;;  %v14134_v55 = vld [vmem:[%s14566_s9] ss:$0 sm:$0xff] }
 0xa18   : > { %7763 = vst.msk [vmem:[%s13729_s19 + $0x1f0] sm:$0xff] %vm7700_vm2, %v7694_v45  ;;  %v7698_v14 = vadd.f32 %v7697_v25, %v13722_v62 }
 0xa19   : > { %v8446_v31 = vadd.f32 %v14034_v58, %v7696_v59  ;;  %v8509_v50 = vmax.f32 %v8445_v21, 0.0 }
 0xa1a   : > { %7764 = vst.msk [vmem:[%s13729_s19 + $0x1f8] sm:$0xff] %vm7700_vm2, %v7698_v14 }
 0xa1b   : > { %v8510_v39 = vmax.f32 %v8446_v31, 0.0 }
 0xa1d   : > { %v8542_v8 = vpack.c.bf16 %v8510_v39, %v8509_v50 }
 0xa1f   : > { %10886 = vmatmul.mubr.bf16.gmra.mrb[48].mxu1 %v8542_v8 }
 0xa34   : > { %v10827_v37 = vpop.f32.mrb[244].mxu1 }
 0xa35   : > { %v8657_v27 = vadd.f32 %v10827_v37, %v14134_v55  ;;  %v8648_v20 = vpop.f32.mrb[245].mxu1 }
 0xa36   : > { %v8649_v38 = vadd.f32 %v14134_v55, %v8648_v20  ;;  %v10828_v62 = vpop.f32.mrb[246].mxu1 }
 0xa37   : > { %v8660_v58 = vadd.f32 %v10828_v62, %v14134_v55  ;;  %v8651_v28 = vpop.f32.mrb[247].mxu1  ;;  %v8905_v41 = vmax.f32 %v8657_v27, 0.0 }
 0xa38   : > { %v8652_v15 = vadd.f32 %v14134_v55, %v8651_v28  ;;  %v8903_v16 = vmax.f32 %v8649_v38, 0.0 }
 0xa39   : > { %v8906_v7 = vmax.f32 %v8660_v58, 0.0 }
 0xa3a   : > { %v8904_v6 = vmax.f32 %v8652_v15, 0.0 }
 0xa3b   : > { %v8968_v18 = vpack.c.bf16 %v8906_v7, %v8905_v41 }
 0xa3c   : > { %v8967_v47 = vpack.c.bf16 %v8904_v6, %v8903_v16  ;;  %v10831_v43 = vpop.f32.mrb[248].mxu1 }
 0xa3d   : > { %v8673_v63 = vadd.f32 %v10831_v43, %v14134_v55  ;;  %v8664_v4 = vpop.f32.mrb[249].mxu1 }
 0xa3e   : > { %v8665_v10 = vadd.f32 %v14134_v55, %v8664_v4  ;;  %v10832_v49 = vpop.f32.mrb[250].mxu1  ;;  %10905 = vmatprep.mubr.bf16.mxu0 %v8967_v47 }
 0xa3f   : > { %v8676_v36 = vadd.f32 %v10832_v49, %v14134_v55  ;;  %v8667_v56 = vpop.f32.mrb[251].mxu1  ;;  %10906 = vmatmul.mubr.bf16.vlgmr.msra.gmra.mrb[204].mxu0 %v8968_v18  ;;  %v8909_v51 = vmax.f32 %v8673_v63, 0.0 }
 0xa40   : > { %v8668_v0 = vadd.f32 %v14134_v55, %v8667_v56  ;;  %v8907_v2 = vmax.f32 %v8665_v10, 0.0 }
 0xa41   : > { %v8910_v61 = vmax.f32 %v8676_v36, 0.0 }
 0xa42   : > { %v8908_v44 = vmax.f32 %v8668_v0, 0.0 }
 0xa43   : > { %v8970_v35 = vpack.c.bf16 %v8910_v61, %v8909_v51 }
 0xa44   : > { %v8969_v46 = vpack.c.bf16 %v8908_v44, %v8907_v2  ;;  %v10835_v54 = vpop.f32.mrb[252].mxu1  ;;  %v11714_v2 = vld [vmem:[%s14567_s10] sm:$0xff]  }
 0xa45   : > { %v8689_v29 = vadd.f32 %v10835_v54, %v14134_v55  ;;  %v8680_v17 = vpop.f32.mrb[253].mxu1  ;;  %10969 = vmatprep.subr.bf16.mxu1 %v11714_v2 }
 0xa46   : > { %v8681_v3 = vadd.f32 %v14134_v55, %v8680_v17  ;;  %v10836_v48 = vpop.f32.mrb[254].mxu1  ;;  %10909 = vmatprep.mubr.bf16.mxu0 %v8969_v46  ;;  %10970 = vmatpush3.bf16.msra.mxu1 %v11714_v2 }
 0xa47   : > { %v8692_v30 = vadd.f32 %v10836_v48, %v14134_v55  ;;  %v8683_v32 = vpop.f32.mrb[255].mxu1  ;;  %10910 = vmatmul.mubr.bf16.gmra.mrb[208].mxu0 %v8970_v35  ;;  %v8913_v57 = vmax.f32 %v8689_v29, 0.0 }
 0xa48   : > { %v8684_v60 = vadd.f32 %v14134_v55, %v8683_v32  ;;  %v8911_v11 = vmax.f32 %v8681_v3, 0.0 }
 0xa49   : > { %v8914_v53 = vmax.f32 %v8692_v30, 0.0 }
 0xa4a   : > { %v8912_v19 = vmax.f32 %v8684_v60, 0.0 }
 0xa4b   : > { %v8972_v13 = vpack.c.bf16 %v8914_v53, %v8913_v57 }
 0xa4c   : > { %v8971_v40 = vpack.c.bf16 %v8912_v19, %v8911_v11  ;;  %v10839_v26 = vpop.f32.mrb[0].mxu1 }
 0xa4d   : > { %v8705_v34 = vadd.f32 %v10839_v26, %v14134_v55  ;;  %v8696_v52 = vpop.f32.mrb[1].mxu1 }
 0xa4e   : > { %v8697_v5 = vadd.f32 %v14134_v55, %v8696_v52  ;;  %v10840_v42 = vpop.f32.mrb[2].mxu1  ;;  %10913 = vmatprep.mubr.bf16.mxu0 %v8971_v40 }
 0xa4f   : > { %v8708_v33 = vadd.f32 %v10840_v42, %v14134_v55  ;;  %v8699_v12 = vpop.f32.mrb[3].mxu1  ;;  %10914 = vmatmul.mubr.bf16.gmra.mrb[212].mxu0 %v8972_v13  ;;  %v8917_v1 = vmax.f32 %v8705_v34, 0.0  ;;  %v11715_v34 = vld [vmem:[%s14567_s10 + $0x8] sm:$0xff]  }
 0xa50   : > { %v8700_v24 = vadd.f32 %v14134_v55, %v8699_v12  ;;  %v8915_v23 = vmax.f32 %v8697_v5, 0.0  ;;  %10971 = vmatprep.subr.bf16.mxu1 %v11715_v34 }
 0xa51   : > { %v8918_v9 = vmax.f32 %v8708_v33, 0.0  ;;  %10972 = vmatpush3.bf16.msra.mxu1 %v11715_v34 }
 0xa52   : > { %v8916_v45 = vmax.f32 %v8700_v24, 0.0 }
 0xa53   : > { %v8974_v22 = vpack.c.bf16 %v8918_v9, %v8917_v1  ;;  %v11716_v9 = vld [vmem:[%s14567_s10 + $0x10] sm:$0xff]  }
 0xa54   : > { %v8973_v21 = vpack.c.bf16 %v8916_v45, %v8915_v23  ;;  %v10843_v59 = vpop.f32.mrb[4].mxu1  ;;  %v11717_v23 = vld [vmem:[%s14567_s10 + $0x18] sm:$0xff]   ;;  %10973 = vmatprep.subr.bf16.mxu1 %v11716_v9  ;;  %v11718_v45 = vld [vmem:[%s14567_s10 + $0x20] sm:$0xff]  }
 0xa55   : > { %v8721_v25 = vadd.f32 %v10843_v59, %v14134_v55  ;;  %v8712_v14 = vpop.f32.mrb[5].mxu1  ;;  %10974 = vmatpush3.bf16.msra.mxu1 %v11716_v9 }
 0xa56   : > { %v8713_v31 = vadd.f32 %v14134_v55, %v8712_v14  ;;  %v10844_v50 = vpop.f32.mrb[6].mxu1  ;;  %10917 = vmatprep.mubr.bf16.mxu0 %v8973_v21  ;;  %10975 = vmatprep.subr.bf16.mxu1 %v11717_v23 }
 0xa57   : > { %v8724_v39 = vadd.f32 %v10844_v50, %v14134_v55  ;;  %v8715_v8 = vpop.f32.mrb[7].mxu1  ;;  %10918 = vmatmul.mubr.bf16.gmra.mrb[216].mxu0 %v8974_v22  ;;  %v8921_v27 = vmax.f32 %v8721_v25, 0.0 }
 0xa58   : > { %v8716_v37 = vadd.f32 %v14134_v55, %v8715_v8  ;;  %v8919_v38 = vmax.f32 %v8713_v31, 0.0 }
 0xa59   : > { %v8922_v20 = vmax.f32 %v8724_v39, 0.0  ;;  %10976 = vmatpush3.bf16.msra.mxu1 %v11717_v23  ;;  %v11719_v39 = vld [vmem:[%s14567_s10 + $0x28] sm:$0xff]  }
 0xa5a   : > { %v8920_v62 = vmax.f32 %v8716_v37, 0.0  ;;  %10977 = vmatprep.subr.bf16.mxu1 %v11718_v45 }
 0xa5b   : > { %v8976_v58 = vpack.c.bf16 %v8922_v20, %v8921_v27 }
 0xa5c   : > { %v8975_v28 = vpack.c.bf16 %v8920_v62, %v8919_v38  ;;  %v10847_v15 = vpop.f32.mrb[8].mxu1 }
 0xa5d   : > { %v8737_v41 = vadd.f32 %v10847_v15, %v14134_v55  ;;  %v8728_v7 = vpop.f32.mrb[9].mxu1  ;;  %10978 = vmatpush3.bf16.msra.mxu1 %v11718_v45 }
 0xa5e   : > { %v8729_v16 = vadd.f32 %v14134_v55, %v8728_v7  ;;  %v10848_v6 = vpop.f32.mrb[10].mxu1  ;;  %10921 = vmatprep.mubr.bf16.mxu0 %v8975_v28  ;;  %10979 = vmatprep.subr.bf16.mxu1 %v11719_v39  ;;  %v11720_v7 = vld [vmem:[%s14567_s10 + $0x30] sm:$0xff]  }
 0xa5f   : > { %v8740_v18 = vadd.f32 %v10848_v6, %v14134_v55  ;;  %v8731_v47 = vpop.f32.mrb[11].mxu1  ;;  %10922 = vmatmul.mubr.bf16.gmra.mrb[220].mxu0 %v8976_v58  ;;  %v8925_v63 = vmax.f32 %v8737_v41, 0.0 }
 0xa60   : > { %v8732_v43 = vadd.f32 %v14134_v55, %v8731_v47  ;;  %v8923_v10 = vmax.f32 %v8729_v16, 0.0 }
 0xa61   : > { %v8926_v4 = vmax.f32 %v8740_v18, 0.0  ;;  %10980 = vmatpush3.bf16.msra.mxu1 %v11719_v39 }
 0xa62   : > { %v8924_v49 = vmax.f32 %v8732_v43, 0.0  ;;  %10981 = vmatprep.subr.bf16.mxu1 %v11720_v7 }
 0xa63   : > { %v8978_v36 = vpack.c.bf16 %v8926_v4, %v8925_v63 }
 0xa64   : > { %v8977_v56 = vpack.c.bf16 %v8924_v49, %v8923_v10  ;;  %v10851_v0 = vpop.f32.mrb[12].mxu1  ;;  %v11721_v10 = vld [vmem:[%s14567_s10 + $0x38] sm:$0xff]  }
 0xa65   : > { %v8753_v51 = vadd.f32 %v10851_v0, %v14134_v55  ;;  %v8744_v61 = vpop.f32.mrb[13].mxu1  ;;  %10982 = vmatpush3.bf16.msra.mxu1 %v11720_v7 }
 0xa66   : > { %v8745_v44 = vadd.f32 %v14134_v55, %v8744_v61  ;;  %v10852_v35 = vpop.f32.mrb[14].mxu1  ;;  %10925 = vmatprep.mubr.bf16.mxu0 %v8977_v56  ;;  %10983 = vmatprep.subr.bf16.mxu1 %v11721_v10 }
 0xa67   : > { %v8756_v46 = vadd.f32 %v10852_v35, %v14134_v55  ;;  %v8747_v54 = vpop.f32.mrb[15].mxu1  ;;  %10926 = vmatmul.mubr.bf16.gmra.mrb[224].mxu0 %v8978_v36  ;;  %v8929_v17 = vmax.f32 %v8753_v51, 0.0 }
 0xa68   : > { %v8748_v29 = vadd.f32 %v14134_v55, %v8747_v54  ;;  %v8927_v48 = vmax.f32 %v8745_v44, 0.0 }
 0xa69   : > { %v8930_v3 = vmax.f32 %v8756_v46, 0.0  ;;  %10984 = vmatpush3.bf16.msra.mxu1 %v11721_v10 }
 0xa6a   : > { %v8928_v30 = vmax.f32 %v8748_v29, 0.0 }
 0xa6b   : > { %v8980_v32 = vpack.c.bf16 %v8930_v3, %v8929_v17 }
 0xa6c   : > { %v8979_v60 = vpack.c.bf16 %v8928_v30, %v8927_v48 }
 0xa6e   : > { %10929 = vmatprep.mubr.bf16.mxu0 %v8979_v60 }
 0xa6f   : > { %10930 = vmatmul.mubr.bf16.gmra.mrb[228].mxu0 %v8980_v32 }
 0xa72   : > { %v10855_v57 = vpop.f32.mrb[16].mxu1 }
 0xa73   : > { %v8769_v53 = vadd.f32 %v10855_v57, %v14134_v55  ;;  %v8760_v11 = vpop.f32.mrb[17].mxu1 }
 0xa74   : > { %v8761_v19 = vadd.f32 %v14134_v55, %v8760_v11  ;;  %v10856_v13 = vpop.f32.mrb[18].mxu1 }
 0xa75   : > { %v8772_v40 = vadd.f32 %v10856_v13, %v14134_v55  ;;  %v8763_v26 = vpop.f32.mrb[19].mxu1  ;;  %v8933_v5 = vmax.f32 %v8769_v53, 0.0 }
 0xa76   : > { %v8764_v52 = vadd.f32 %v14134_v55, %v8763_v26  ;;  %v8931_v33 = vmax.f32 %v8761_v19, 0.0 }
 0xa77   : > { %v8934_v42 = vmax.f32 %v8772_v40, 0.0 }
 0xa78   : > { %v8932_v12 = vmax.f32 %v8764_v52, 0.0 }
 0xa79   : > { %v8982_v24 = vpack.c.bf16 %v8934_v42, %v8933_v5 }
 0xa7a   : > { %v8981_v1 = vpack.c.bf16 %v8932_v12, %v8931_v33 }
 0xa7c   : > { %10933 = vmatprep.mubr.bf16.mxu0 %v8981_v1 }
 0xa7d   : > { %10934 = vmatmul.mubr.bf16.gmra.mrb[232].mxu0 %v8982_v24 }
 0xa82   : > { %v10859_v22 = vpop.f32.mrb[20].mxu1 }
 0xa83   : > { %v8785_v21 = vadd.f32 %v10859_v22, %v14134_v55  ;;  %v8776_v59 = vpop.f32.mrb[21].mxu1 }
 0xa84   : > { %v8777_v25 = vadd.f32 %v14134_v55, %v8776_v59  ;;  %v10860_v14 = vpop.f32.mrb[22].mxu1 }
 0xa85   : > { %v8788_v31 = vadd.f32 %v10860_v14, %v14134_v55  ;;  %v8779_v50 = vpop.f32.mrb[23].mxu1  ;;  %v8937_v37 = vmax.f32 %v8785_v21, 0.0 }
 0xa86   : > { %v8780_v8 = vadd.f32 %v14134_v55, %v8779_v50  ;;  %v8935_v20 = vmax.f32 %v8777_v25, 0.0 }
 0xa87   : > { %v8938_v27 = vmax.f32 %v8788_v31, 0.0 }
 0xa88   : > { %v8936_v38 = vmax.f32 %v8780_v8, 0.0 }
 0xa89   : > { %v8984_v62 = vpack.c.bf16 %v8938_v27, %v8937_v37 }
 0xa8a   : > { %v8983_v58 = vpack.c.bf16 %v8936_v38, %v8935_v20 }
 0xa8c   : > { %10937 = vmatprep.mubr.bf16.mxu0 %v8983_v58 }
 0xa8d   : > { %10938 = vmatmul.mubr.bf16.gmra.mrb[236].mxu0 %v8984_v62 }
 0xa92   : > { %v10863_v28 = vpop.f32.mrb[24].mxu1 }
 0xa93   : > { %v8801_v15 = vadd.f32 %v10863_v28, %v14134_v55  ;;  %v8792_v41 = vpop.f32.mrb[25].mxu1 }
 0xa94   : > { %v8793_v16 = vadd.f32 %v14134_v55, %v8792_v41  ;;  %v10864_v6 = vpop.f32.mrb[26].mxu1 }
 0xa95   : > { %v8804_v18 = vadd.f32 %v10864_v6, %v14134_v55  ;;  %v8795_v47 = vpop.f32.mrb[27].mxu1  ;;  %v8941_v63 = vmax.f32 %v8801_v15, 0.0 }
 0xa96   : > { %v8796_v43 = vadd.f32 %v14134_v55, %v8795_v47  ;;  %v8939_v49 = vmax.f32 %v8793_v16, 0.0 }
 0xa97   : > { %v8942_v4 = vmax.f32 %v8804_v18, 0.0 }
 0xa98   : > { %v8940_v36 = vmax.f32 %v8796_v43, 0.0 }
 0xa99   : > { %v8986_v56 = vpack.c.bf16 %v8942_v4, %v8941_v63 }
 0xa9a   : > { %v8985_v0 = vpack.c.bf16 %v8940_v36, %v8939_v49 }
 0xa9c   : > { %10941 = vmatprep.mubr.bf16.mxu0 %v8985_v0 }
 0xa9d   : > { %10942 = vmatmul.mubr.bf16.gmra.mrb[240].mxu0 %v8986_v56 }
 0xaa2   : > { %v10867_v51 = vpop.f32.mrb[28].mxu1 }
 0xaa3   : > { %v8817_v61 = vadd.f32 %v10867_v51, %v14134_v55  ;;  %v8808_v2 = vpop.f32.mrb[29].mxu1 }
 0xaa4   : > { %v8809_v44 = vadd.f32 %v14134_v55, %v8808_v2  ;;  %v10868_v35 = vpop.f32.mrb[30].mxu1 }
 0xaa5   : > { %v8820_v46 = vadd.f32 %v10868_v35, %v14134_v55  ;;  %v8811_v54 = vpop.f32.mrb[31].mxu1  ;;  %v8945_v17 = vmax.f32 %v8817_v61, 0.0 }
 0xaa6   : > { %v8812_v29 = vadd.f32 %v14134_v55, %v8811_v54  ;;  %v8943_v48 = vmax.f32 %v8809_v44, 0.0 }
 0xaa7   : > { %v8946_v3 = vmax.f32 %v8820_v46, 0.0 }
 0xaa8   : > { %v8944_v30 = vmax.f32 %v8812_v29, 0.0 }
 0xaa9   : > { %v8988_v32 = vpack.c.bf16 %v8946_v3, %v8945_v17 }
 0xaaa   : > { %v8987_v60 = vpack.c.bf16 %v8944_v30, %v8943_v48 }
 0xaac   : > { %10945 = vmatprep.mubr.bf16.mxu0 %v8987_v60 }
 0xaad   : > { %10946 = vmatmul.mubr.bf16.gmra.mrb[244].mxu0 %v8988_v32 }
 0xab2   : > { %v10871_v57 = vpop.f32.mrb[32].mxu1 }
 0xab3   : > { %v8833_v53 = vadd.f32 %v10871_v57, %v14134_v55  ;;  %v8824_v11 = vpop.f32.mrb[33].mxu1 }
 0xab4   : > { %v8825_v19 = vadd.f32 %v14134_v55, %v8824_v11  ;;  %v10872_v13 = vpop.f32.mrb[34].mxu1 }
 0xab5   : > { %v8836_v40 = vadd.f32 %v10872_v13, %v14134_v55  ;;  %v8827_v26 = vpop.f32.mrb[35].mxu1  ;;  %v8949_v52 = vmax.f32 %v8833_v53, 0.0 }
 0xab6   : > { %v8828_v34 = vadd.f32 %v14134_v55, %v8827_v26  ;;  %v8947_v42 = vmax.f32 %v8825_v19, 0.0 }
 0xab7   : > { %v8950_v5 = vmax.f32 %v8836_v40, 0.0 }
 0xab8   : > { %v8948_v33 = vmax.f32 %v8828_v34, 0.0  ;;  %v14227_v34 = vld [vmem:[%s14566_s9 + $0x1] ss:$0 sm:$0xff] }
 0xab9   : > { %v8990_v12 = vpack.c.bf16 %v8950_v5, %v8949_v52 }
 0xaba   : > { %v8989_v24 = vpack.c.bf16 %v8948_v33, %v8947_v42 }
 0xabc   : > { %10949 = vmatprep.mubr.bf16.mxu0 %v8989_v24 }
 0xabd   : > { %10950 = vmatmul.mubr.bf16.gmra.mrb[248].mxu0 %v8990_v12 }
 0xac2   : > { %v10875_v1 = vpop.f32.mrb[36].mxu1 }
 0xac3   : > { %v8849_v9 = vadd.f32 %v10875_v1, %v14134_v55  ;;  %v8840_v23 = vpop.f32.mrb[37].mxu1 }
 0xac4   : > { %v8841_v45 = vadd.f32 %v14134_v55, %v8840_v23  ;;  %v10876_v22 = vpop.f32.mrb[38].mxu1 }
 0xac5   : > { %v8852_v21 = vadd.f32 %v10876_v22, %v14134_v55  ;;  %v8843_v59 = vpop.f32.mrb[39].mxu1  ;;  %v8953_v14 = vmax.f32 %v8849_v9, 0.0 }
 0xac6   : > { %v8844_v25 = vadd.f32 %v14134_v55, %v8843_v59  ;;  %v8951_v50 = vmax.f32 %v8841_v45, 0.0 }
 0xac7   : > { %v8954_v31 = vmax.f32 %v8852_v21, 0.0 }
 0xac8   : > { %v8952_v39 = vmax.f32 %v8844_v25, 0.0 }
 0xac9   : > { %v8992_v8 = vpack.c.bf16 %v8954_v31, %v8953_v14 }
 0xaca   : > { %v8991_v37 = vpack.c.bf16 %v8952_v39, %v8951_v50 }
 0xacc   : > { %10953 = vmatprep.mubr.bf16.mxu0 %v8991_v37 }
 0xacd   : > { %10954 = vmatmul.mubr.bf16.gmra.mrb[252].mxu0 %v8992_v8 }
 0xad2   : > { %v10879_v27 = vpop.f32.mrb[40].mxu1 }
 0xad3   : > { %v8865_v20 = vadd.f32 %v10879_v27, %v14134_v55  ;;  %v8856_v38 = vpop.f32.mrb[41].mxu1 }
 0xad4   : > { %v8857_v62 = vadd.f32 %v14134_v55, %v8856_v38  ;;  %v10880_v58 = vpop.f32.mrb[42].mxu1 }
 0xad5   : > { %v8868_v28 = vadd.f32 %v10880_v58, %v14134_v55  ;;  %v8859_v15 = vpop.f32.mrb[43].mxu1  ;;  %v8957_v7 = vmax.f32 %v8865_v20, 0.0 }
 0xad6   : > { %v8860_v41 = vadd.f32 %v14134_v55, %v8859_v15  ;;  %v8955_v6 = vmax.f32 %v8857_v62, 0.0 }
 0xad7   : > { %v8958_v16 = vmax.f32 %v8868_v28, 0.0 }
 0xad8   : > { %v8956_v18 = vmax.f32 %v8860_v41, 0.0 }
 0xad9   : > { %v8994_v47 = vpack.c.bf16 %v8958_v16, %v8957_v7 }
 0xada   : > { %v8993_v43 = vpack.c.bf16 %v8956_v18, %v8955_v6 }
 0xadc   : > { %10957 = vmatprep.mubr.bf16.mxu0 %v8993_v43 }
 0xadd   : > { %10958 = vmatmul.mubr.bf16.gmra.mrb[0].mxu0 %v8994_v47 }
 0xae2   : > { %v10883_v63 = vpop.f32.mrb[44].mxu1 }
 0xae3   : > { %v8881_v4 = vadd.f32 %v10883_v63, %v14134_v55  ;;  %v8872_v10 = vpop.f32.mrb[45].mxu1 }
 0xae4   : > { %v8873_v49 = vadd.f32 %v14134_v55, %v8872_v10  ;;  %v10884_v36 = vpop.f32.mrb[46].mxu1 }
 0xae5   : > { %v8884_v56 = vadd.f32 %v10884_v36, %v14134_v55  ;;  %v8875_v0 = vpop.f32.mrb[47].mxu1  ;;  %v8961_v61 = vmax.f32 %v8881_v4, 0.0 }
 0xae6   : > { %v8876_v51 = vadd.f32 %v14134_v55, %v8875_v0  ;;  %v8959_v44 = vmax.f32 %v8873_v49, 0.0 }
 0xae7   : > { %v8962_v2 = vmax.f32 %v8884_v56, 0.0 }
 0xae8   : > { %v8960_v35 = vmax.f32 %v8876_v51, 0.0 }
 0xae9   : > { %v8996_v46 = vpack.c.bf16 %v8962_v2, %v8961_v61 }
 0xaea   : > { %v8995_v54 = vpack.c.bf16 %v8960_v35, %v8959_v44 }
 0xaec   : > { %10961 = vmatprep.mubr.bf16.mxu0 %v8995_v54 }
 0xaed   : > { %10962 = vmatmul.mubr.bf16.gmra.mrb[4].mxu0 %v8996_v46 }
 0xaf2   : > { %v10887_v29 = vpop.f32.mrb[48].mxu1 }
 0xaf3   : > { %v8897_v17 = vadd.f32 %v10887_v29, %v14134_v55  ;;  %v8888_v3 = vpop.f32.mrb[49].mxu1 }
 0xaf4   : > { %v8889_v48 = vadd.f32 %v14134_v55, %v8888_v3  ;;  %v10888_v30 = vpop.f32.mrb[50].mxu1 }
 0xaf5   : > { %v8900_v32 = vadd.f32 %v10888_v30, %v14134_v55  ;;  %v8891_v60 = vpop.f32.mrb[51].mxu1  ;;  %v8965_v53 = vmax.f32 %v8897_v17, 0.0 }
 0xaf6   : > { %v8892_v57 = vadd.f32 %v14134_v55, %v8891_v60  ;;  %v8963_v19 = vmax.f32 %v8889_v48, 0.0 }
 0xaf7   : > { %v8966_v11 = vmax.f32 %v8900_v32, 0.0 }
 0xaf8   : > { %v8964_v13 = vmax.f32 %v8892_v57, 0.0 }
 0xaf9   : > { %v8998_v40 = vpack.c.bf16 %v8966_v11, %v8965_v53 }
 0xafa   : > { %v8997_v26 = vpack.c.bf16 %v8964_v13, %v8963_v19 }
 0xafc   : > { %10965 = vmatprep.mubr.bf16.mxu0 %v8997_v26 }
 0xafd   : > { %10966 = vmatmul.mubr.bf16.gmra.mrb[8].mxu0 %v8998_v40 }
 0xb12   : > { %v10907_v52 = vpop.f32.mrb[204].mxu0 }
 0xb13   : > { %v9115_v5 = vadd.f32 %v10907_v52, %v14227_v34  ;;  %v9106_v42 = vpop.f32.mrb[205].mxu0 }
 0xb14   : > { %v9107_v33 = vadd.f32 %v14227_v34, %v9106_v42  ;;  %v10908_v55 = vpop.f32.mrb[206].mxu0 }
 0xb15   : > { %v9118_v12 = vadd.f32 %v10908_v55, %v14227_v34  ;;  %v9109_v24 = vpop.f32.mrb[207].mxu0  ;;  %v9363_v9 = vmax.f32 %v9115_v5, 0.0 }
 0xb16   : > { %v9110_v1 = vadd.f32 %v14227_v34, %v9109_v24  ;;  %v9361_v45 = vmax.f32 %v9107_v33, 0.0 }
 0xb17   : > { %v9364_v23 = vmax.f32 %v9118_v12, 0.0 }
 0xb18   : > { %v9362_v22 = vmax.f32 %v9110_v1, 0.0 }
 0xb19   : > { %v9426_v21 = vpack.c.bf16 %v9364_v23, %v9363_v9 }
 0xb1a   : > { %v9425_v59 = vpack.c.bf16 %v9362_v22, %v9361_v45  ;;  %v10911_v25 = vpop.f32.mrb[208].mxu0 }
 0xb1b   : > { %v9131_v14 = vadd.f32 %v10911_v25, %v14227_v34  ;;  %v9122_v31 = vpop.f32.mrb[209].mxu0 }
 0xb1c   : > { %v9123_v50 = vadd.f32 %v14227_v34, %v9122_v31  ;;  %v10912_v39 = vpop.f32.mrb[210].mxu0  ;;  %10985 = vmatprep.mubr.bf16.mxu1 %v9425_v59 }
 0xb1d   : > { %v9134_v8 = vadd.f32 %v10912_v39, %v14227_v34  ;;  %v9125_v37 = vpop.f32.mrb[211].mxu0  ;;  %10986 = vmatmul.mubr.bf16.vlgmr.msra.gmra.mrb[52].mxu1 %v9426_v21  ;;  %v9367_v20 = vmax.f32 %v9131_v14, 0.0 }
 0xb1e   : > { %v9126_v27 = vadd.f32 %v14227_v34, %v9125_v37  ;;  %v9365_v62 = vmax.f32 %v9123_v50, 0.0 }
 0xb1f   : > { %v9368_v38 = vmax.f32 %v9134_v8, 0.0 }
 0xb20   : > { %v9366_v58 = vmax.f32 %v9126_v27, 0.0 }
 0xb21   : > { %v9428_v28 = vpack.c.bf16 %v9368_v38, %v9367_v20 }
 0xb22   : > { %v9427_v15 = vpack.c.bf16 %v9366_v58, %v9365_v62  ;;  %v10915_v41 = vpop.f32.mrb[212].mxu0 }
 0xb23   : > { %v9147_v7 = vadd.f32 %v10915_v41, %v14227_v34  ;;  %v9138_v16 = vpop.f32.mrb[213].mxu0 }
 0xb24   : > { %v9139_v6 = vadd.f32 %v14227_v34, %v9138_v16  ;;  %v10916_v18 = vpop.f32.mrb[214].mxu0  ;;  %10989 = vmatprep.mubr.bf16.mxu1 %v9427_v15 }
 0xb25   : > { %v9150_v47 = vadd.f32 %v10916_v18, %v14227_v34  ;;  %v9141_v43 = vpop.f32.mrb[215].mxu0  ;;  %10990 = vmatmul.mubr.bf16.gmra.mrb[56].mxu1 %v9428_v28  ;;  %v9371_v4 = vmax.f32 %v9147_v7, 0.0 }
 0xb26   : > { %v9142_v63 = vadd.f32 %v14227_v34, %v9141_v43  ;;  %v9369_v49 = vmax.f32 %v9139_v6, 0.0 }
 0xb27   : > { %v9372_v10 = vmax.f32 %v9150_v47, 0.0 }
 0xb28   : > { %v9370_v36 = vmax.f32 %v9142_v63, 0.0 }
 0xb29   : > { %v9430_v56 = vpack.c.bf16 %v9372_v10, %v9371_v4 }
 0xb2a   : > { %v9429_v0 = vpack.c.bf16 %v9370_v36, %v9369_v49  ;;  %v10919_v51 = vpop.f32.mrb[216].mxu0 }
 0xb2b   : > { %v9163_v61 = vadd.f32 %v10919_v51, %v14227_v34  ;;  %v9154_v2 = vpop.f32.mrb[217].mxu0 }
 0xb2c   : > { %v9155_v44 = vadd.f32 %v14227_v34, %v9154_v2  ;;  %v10920_v35 = vpop.f32.mrb[218].mxu0  ;;  %10993 = vmatprep.mubr.bf16.mxu1 %v9429_v0 }
 0xb2d   : > { %v9166_v46 = vadd.f32 %v10920_v35, %v14227_v34  ;;  %v9157_v54 = vpop.f32.mrb[219].mxu0  ;;  %10994 = vmatmul.mubr.bf16.gmra.mrb[60].mxu1 %v9430_v56  ;;  %v9375_v17 = vmax.f32 %v9163_v61, 0.0 }
 0xb2e   : > { %v9158_v29 = vadd.f32 %v14227_v34, %v9157_v54  ;;  %v9373_v48 = vmax.f32 %v9155_v44, 0.0 }
 0xb2f   : > { %v9376_v3 = vmax.f32 %v9166_v46, 0.0 }
 0xb30   : > { %v9374_v30 = vmax.f32 %v9158_v29, 0.0 }
 0xb31   : > { %v9432_v32 = vpack.c.bf16 %v9376_v3, %v9375_v17 }
 0xb32   : > { %v9431_v60 = vpack.c.bf16 %v9374_v30, %v9373_v48  ;;  %v10923_v57 = vpop.f32.mrb[220].mxu0 }
 0xb33   : > { %v9179_v53 = vadd.f32 %v10923_v57, %v14227_v34  ;;  %v9170_v11 = vpop.f32.mrb[221].mxu0 }
 0xb34   : > { %v9171_v19 = vadd.f32 %v14227_v34, %v9170_v11  ;;  %v10924_v13 = vpop.f32.mrb[222].mxu0  ;;  %10997 = vmatprep.mubr.bf16.mxu1 %v9431_v60 }
 0xb35   : > { %v9182_v40 = vadd.f32 %v10924_v13, %v14227_v34  ;;  %v9173_v26 = vpop.f32.mrb[223].mxu0  ;;  %10998 = vmatmul.mubr.bf16.gmra.mrb[64].mxu1 %v9432_v32  ;;  %v9379_v5 = vmax.f32 %v9179_v53, 0.0 }
 0xb36   : > { %v9174_v52 = vadd.f32 %v14227_v34, %v9173_v26  ;;  %v9377_v33 = vmax.f32 %v9171_v19, 0.0 }
 0xb37   : > { %v9380_v42 = vmax.f32 %v9182_v40, 0.0 }
 0xb38   : > { %v9378_v55 = vmax.f32 %v9174_v52, 0.0 }
 0xb39   : > { %v9434_v12 = vpack.c.bf16 %v9380_v42, %v9379_v5 }
 0xb3a   : > { %v9433_v24 = vpack.c.bf16 %v9378_v55, %v9377_v33  ;;  %v10927_v1 = vpop.f32.mrb[224].mxu0 }
 0xb3b   : > { %v9195_v9 = vadd.f32 %v10927_v1, %v14227_v34  ;;  %v9186_v23 = vpop.f32.mrb[225].mxu0 }
 0xb3c   : > { %v9187_v45 = vadd.f32 %v14227_v34, %v9186_v23  ;;  %v10928_v22 = vpop.f32.mrb[226].mxu0  ;;  %11001 = vmatprep.mubr.bf16.mxu1 %v9433_v24 }
 0xb3d   : > { %v9198_v21 = vadd.f32 %v10928_v22, %v14227_v34  ;;  %v9189_v59 = vpop.f32.mrb[227].mxu0  ;;  %11002 = vmatmul.mubr.bf16.gmra.mrb[68].mxu1 %v9434_v12  ;;  %v9383_v14 = vmax.f32 %v9195_v9, 0.0 }
 0xb3e   : > { %v9190_v25 = vadd.f32 %v14227_v34, %v9189_v59  ;;  %v9381_v50 = vmax.f32 %v9187_v45, 0.0 }
 0xb3f   : > { %v9384_v31 = vmax.f32 %v9198_v21, 0.0 }
 0xb40   : > { %v9382_v39 = vmax.f32 %v9190_v25, 0.0 }
 0xb41   : > { %v9436_v8 = vpack.c.bf16 %v9384_v31, %v9383_v14 }
 0xb42   : > { %v9435_v37 = vpack.c.bf16 %v9382_v39, %v9381_v50  ;;  %v10931_v27 = vpop.f32.mrb[228].mxu0 }
 0xb43   : > { %v9211_v20 = vadd.f32 %v10931_v27, %v14227_v34  ;;  %v9202_v38 = vpop.f32.mrb[229].mxu0 }
 0xb44   : > { %v9203_v62 = vadd.f32 %v14227_v34, %v9202_v38  ;;  %v10932_v58 = vpop.f32.mrb[230].mxu0  ;;  %11005 = vmatprep.mubr.bf16.mxu1 %v9435_v37 }
 0xb45   : > { %v9214_v28 = vadd.f32 %v10932_v58, %v14227_v34  ;;  %v9205_v15 = vpop.f32.mrb[231].mxu0  ;;  %11006 = vmatmul.mubr.bf16.gmra.mrb[72].mxu1 %v9436_v8  ;;  %v9387_v7 = vmax.f32 %v9211_v20, 0.0 }
 0xb46   : > { %v9206_v41 = vadd.f32 %v14227_v34, %v9205_v15  ;;  %v9385_v6 = vmax.f32 %v9203_v62, 0.0 }
 0xb47   : > { %v9388_v16 = vmax.f32 %v9214_v28, 0.0 }
 0xb48   : > { %v9386_v18 = vmax.f32 %v9206_v41, 0.0 }
 0xb49   : > { %v9438_v47 = vpack.c.bf16 %v9388_v16, %v9387_v7 }
 0xb4a   : > { %v9437_v43 = vpack.c.bf16 %v9386_v18, %v9385_v6 }
 0xb4c   : > { %11009 = vmatprep.mubr.bf16.mxu1 %v9437_v43 }
 0xb4d   : > { %11010 = vmatmul.mubr.bf16.gmra.mrb[76].mxu1 %v9438_v47 }
 0xb50   : > { %v10935_v63 = vpop.f32.mrb[232].mxu0 }
 0xb51   : > { %v9227_v4 = vadd.f32 %v10935_v63, %v14227_v34  ;;  %v9218_v10 = vpop.f32.mrb[233].mxu0 }
 0xb52   : > { %v9219_v49 = vadd.f32 %v14227_v34, %v9218_v10  ;;  %v10936_v36 = vpop.f32.mrb[234].mxu0 }
 0xb53   : > { %v9230_v56 = vadd.f32 %v10936_v36, %v14227_v34  ;;  %v9221_v0 = vpop.f32.mrb[235].mxu0  ;;  %v9391_v61 = vmax.f32 %v9227_v4, 0.0 }
 0xb54   : > { %v9222_v51 = vadd.f32 %v14227_v34, %v9221_v0  ;;  %v9389_v44 = vmax.f32 %v9219_v49, 0.0 }
 0xb55   : > { %v9392_v2 = vmax.f32 %v9230_v56, 0.0 }
 0xb56   : > { %v9390_v35 = vmax.f32 %v9222_v51, 0.0 }
 0xb57   : > { %v9440_v46 = vpack.c.bf16 %v9392_v2, %v9391_v61 }
 0xb58   : > { %v9439_v54 = vpack.c.bf16 %v9390_v35, %v9389_v44 }
 0xb5a   : > { %11013 = vmatprep.mubr.bf16.mxu1 %v9439_v54 }
 0xb5b   : > { %11014 = vmatmul.mubr.bf16.gmra.mrb[80].mxu1 %v9440_v46 }
 0xb60   : > { %v10939_v29 = vpop.f32.mrb[236].mxu0 }
 0xb61   : > { %v9243_v17 = vadd.f32 %v10939_v29, %v14227_v34  ;;  %v9234_v3 = vpop.f32.mrb[237].mxu0 }
 0xb62   : > { %v9235_v48 = vadd.f32 %v14227_v34, %v9234_v3  ;;  %v10940_v30 = vpop.f32.mrb[238].mxu0 }
 0xb63   : > { %v9246_v32 = vadd.f32 %v10940_v30, %v14227_v34  ;;  %v9237_v60 = vpop.f32.mrb[239].mxu0  ;;  %v9395_v53 = vmax.f32 %v9243_v17, 0.0 }
 0xb64   : > { %v9238_v57 = vadd.f32 %v14227_v34, %v9237_v60  ;;  %v9393_v19 = vmax.f32 %v9235_v48, 0.0 }
 0xb65   : > { %v9396_v11 = vmax.f32 %v9246_v32, 0.0 }
 0xb66   : > { %v9394_v13 = vmax.f32 %v9238_v57, 0.0 }
 0xb67   : > { %v9442_v40 = vpack.c.bf16 %v9396_v11, %v9395_v53 }
 0xb68   : > { %v9441_v26 = vpack.c.bf16 %v9394_v13, %v9393_v19 }
 0xb6a   : > { %11017 = vmatprep.mubr.bf16.mxu1 %v9441_v26 }
 0xb6b   : > { %11018 = vmatmul.mubr.bf16.gmra.mrb[84].mxu1 %v9442_v40 }
 0xb70   : > { %v10943_v52 = vpop.f32.mrb[240].mxu0 }
 0xb71   : > { %v9259_v5 = vadd.f32 %v10943_v52, %v14227_v34  ;;  %v9250_v42 = vpop.f32.mrb[241].mxu0 }
 0xb72   : > { %v9251_v33 = vadd.f32 %v14227_v34, %v9250_v42  ;;  %v10944_v55 = vpop.f32.mrb[242].mxu0 }
 0xb73   : > { %v9262_v12 = vadd.f32 %v10944_v55, %v14227_v34  ;;  %v9253_v24 = vpop.f32.mrb[243].mxu0  ;;  %v9399_v9 = vmax.f32 %v9259_v5, 0.0 }
 0xb74   : > { %v9254_v1 = vadd.f32 %v14227_v34, %v9253_v24  ;;  %v9397_v45 = vmax.f32 %v9251_v33, 0.0 }
 0xb75   : > { %v9400_v23 = vmax.f32 %v9262_v12, 0.0 }
 0xb76   : > { %v9398_v22 = vmax.f32 %v9254_v1, 0.0 }
 0xb77   : > { %v9444_v21 = vpack.c.bf16 %v9400_v23, %v9399_v9 }
 0xb78   : > { %v9443_v59 = vpack.c.bf16 %v9398_v22, %v9397_v45 }
 0xb7a   : > { %11021 = vmatprep.mubr.bf16.mxu1 %v9443_v59 }
 0xb7b   : > { %11022 = vmatmul.mubr.bf16.gmra.mrb[88].mxu1 %v9444_v21 }
 0xb80   : > { %v10947_v25 = vpop.f32.mrb[244].mxu0 }
 0xb81   : > { %v9275_v14 = vadd.f32 %v10947_v25, %v14227_v34  ;;  %v9266_v31 = vpop.f32.mrb[245].mxu0 }
 0xb82   : > { %v9267_v50 = vadd.f32 %v14227_v34, %v9266_v31  ;;  %v10948_v39 = vpop.f32.mrb[246].mxu0 }
 0xb83   : > { %v9278_v8 = vadd.f32 %v10948_v39, %v14227_v34  ;;  %v9269_v37 = vpop.f32.mrb[247].mxu0  ;;  %v9403_v20 = vmax.f32 %v9275_v14, 0.0 }
 0xb84   : > { %v9270_v27 = vadd.f32 %v14227_v34, %v9269_v37  ;;  %v9401_v62 = vmax.f32 %v9267_v50, 0.0 }
 0xb85   : > { %v9404_v38 = vmax.f32 %v9278_v8, 0.0 }
 0xb86   : > { %v9402_v58 = vmax.f32 %v9270_v27, 0.0 }
 0xb87   : > { %v9446_v28 = vpack.c.bf16 %v9404_v38, %v9403_v20 }
 0xb88   : > { %v9445_v15 = vpack.c.bf16 %v9402_v58, %v9401_v62 }
 0xb8a   : > { %11025 = vmatprep.mubr.bf16.mxu1 %v9445_v15 }
 0xb8b   : > { %11026 = vmatmul.mubr.bf16.gmra.mrb[92].mxu1 %v9446_v28 }
 0xb90   : > { %v10951_v41 = vpop.f32.mrb[248].mxu0 }
 0xb91   : > { %v9291_v7 = vadd.f32 %v10951_v41, %v14227_v34  ;;  %v9282_v16 = vpop.f32.mrb[249].mxu0 }
 0xb92   : > { %v9283_v6 = vadd.f32 %v14227_v34, %v9282_v16  ;;  %v10952_v18 = vpop.f32.mrb[250].mxu0 }
 0xb93   : > { %v9294_v47 = vadd.f32 %v10952_v18, %v14227_v34  ;;  %v9285_v43 = vpop.f32.mrb[251].mxu0  ;;  %v9407_v4 = vmax.f32 %v9291_v7, 0.0 }
 0xb94   : > { %v9286_v63 = vadd.f32 %v14227_v34, %v9285_v43  ;;  %v9405_v49 = vmax.f32 %v9283_v6, 0.0 }
 0xb95   : > { %v9408_v10 = vmax.f32 %v9294_v47, 0.0 }
 0xb96   : > { %v9406_v36 = vmax.f32 %v9286_v63, 0.0  ;;  %v14296_v63 = vld [vmem:[%s14568_s11] ss:$0 sm:$0xff] }
 0xb97   : > { %v9448_v56 = vpack.c.bf16 %v9408_v10, %v9407_v4 }
 0xb98   : > { %v9447_v0 = vpack.c.bf16 %v9406_v36, %v9405_v49  ;;  %v9819_v49 = vld [vmem:[%s13729_s19 + $0x10] sm:$0xff] }
 0xb9a   : > { %11029 = vmatprep.mubr.bf16.mxu1 %v9447_v0 }
 0xb9b   : > { %11030 = vmatmul.mubr.bf16.gmra.mrb[96].mxu1 %v9448_v56 }
 0xba0   : > { %v10955_v51 = vpop.f32.mrb[252].mxu0 }
 0xba1   : > { %v9307_v61 = vadd.f32 %v10955_v51, %v14227_v34  ;;  %v9298_v2 = vpop.f32.mrb[253].mxu0  ;;  %v9817_v51 = vld [vmem:[%s13729_s19] sm:$0xff] }
 0xba2   : > { %v9299_v44 = vadd.f32 %v14227_v34, %v9298_v2  ;;  %v10956_v35 = vpop.f32.mrb[254].mxu0 }
 0xba3   : > { %v9310_v46 = vadd.f32 %v10956_v35, %v14227_v34  ;;  %v9301_v54 = vpop.f32.mrb[255].mxu0  ;;  %v9411_v17 = vmax.f32 %v9307_v61, 0.0  ;;  %v9820_v35 = vld [vmem:[%s13729_s19 + $0x18] sm:$0xff] }
 0xba4   : > { %v9302_v29 = vadd.f32 %v14227_v34, %v9301_v54  ;;  %v9409_v48 = vmax.f32 %v9299_v44, 0.0 }
 0xba5   : > { %v9412_v3 = vmax.f32 %v9310_v46, 0.0 }
 0xba6   : > { %v9410_v30 = vmax.f32 %v9302_v29, 0.0  ;;  %v9818_v29 = vld [vmem:[%s13729_s19 + $0x8] sm:$0xff] }
 0xba7   : > { %v9450_v32 = vpack.c.bf16 %v9412_v3, %v9411_v17 }
 0xba8   : > { %v9449_v60 = vpack.c.bf16 %v9410_v30, %v9409_v48 }
 0xbaa   : > { %11033 = vmatprep.mubr.bf16.mxu1 %v9449_v60 }
 0xbab   : > { %11034 = vmatmul.mubr.bf16.gmra.mrb[100].mxu1 %v9450_v32  ;;  %v9823_v32 = vld [vmem:[%s13729_s19 + $0x30] sm:$0xff] }
 0xbb0   : > { %v10959_v57 = vpop.f32.mrb[0].mxu0 }
 0xbb1   : > { %v9323_v53 = vadd.f32 %v10959_v57, %v14227_v34  ;;  %v9314_v11 = vpop.f32.mrb[1].mxu0 }
 0xbb2   : > { %v9315_v19 = vadd.f32 %v14227_v34, %v9314_v11  ;;  %v10960_v13 = vpop.f32.mrb[2].mxu0  ;;  %v9821_v11 = vld [vmem:[%s13729_s19 + $0x20] sm:$0xff] }
 0xbb3   : > { %v9326_v40 = vadd.f32 %v10960_v13, %v14227_v34  ;;  %v9317_v26 = vpop.f32.mrb[3].mxu0  ;;  %v9415_v5 = vmax.f32 %v9323_v53, 0.0 }
 0xbb4   : > { %v9318_v52 = vadd.f32 %v14227_v34, %v9317_v26  ;;  %v9413_v33 = vmax.f32 %v9315_v19, 0.0  ;;  %v9824_v26 = vld [vmem:[%s13729_s19 + $0x38] sm:$0xff] }
 0xbb5   : > { %v9416_v42 = vmax.f32 %v9326_v40, 0.0 }
 0xbb6   : > { %v9414_v55 = vmax.f32 %v9318_v52, 0.0 }
 0xbb7   : > { %v9452_v12 = vpack.c.bf16 %v9416_v42, %v9415_v5  ;;  %v9822_v42 = vld [vmem:[%s13729_s19 + $0x28] sm:$0xff] }
 0xbb8   : > { %v9451_v24 = vpack.c.bf16 %v9414_v55, %v9413_v33 }
 0xbba   : > { %11037 = vmatprep.mubr.bf16.mxu1 %v9451_v24 }
 0xbbb   : > { %11038 = vmatmul.mubr.bf16.gmra.mrb[104].mxu1 %v9452_v12 }
 0xbc0   : > { %v10963_v1 = vpop.f32.mrb[4].mxu0 }
 0xbc1   : > { %v9339_v9 = vadd.f32 %v10963_v1, %v14227_v34  ;;  %v9330_v23 = vpop.f32.mrb[5].mxu0  ;;  %v9827_v1 = vld [vmem:[%s13729_s19 + $0x50] sm:$0xff] }
 0xbc2   : > { %v9331_v45 = vadd.f32 %v14227_v34, %v9330_v23  ;;  %v10964_v22 = vpop.f32.mrb[6].mxu0 }
 0xbc3   : > { %v9342_v21 = vadd.f32 %v10964_v22, %v14227_v34  ;;  %v9333_v59 = vpop.f32.mrb[7].mxu0  ;;  %v9419_v14 = vmax.f32 %v9339_v9, 0.0  ;;  %v9825_v22 = vld [vmem:[%s13729_s19 + $0x40] sm:$0xff] }
 0xbc4   : > { %v9334_v25 = vadd.f32 %v14227_v34, %v9333_v59  ;;  %v9417_v50 = vmax.f32 %v9331_v45, 0.0 }
 0xbc5   : > { %v9420_v31 = vmax.f32 %v9342_v21, 0.0 }
 0xbc6   : > { %v9418_v39 = vmax.f32 %v9334_v25, 0.0 }
 0xbc7   : > { %v9454_v8 = vpack.c.bf16 %v9420_v31, %v9419_v14  ;;  %v9828_v14 = vld [vmem:[%s13729_s19 + $0x58] sm:$0xff] }
 0xbc8   : > { %v9453_v37 = vpack.c.bf16 %v9418_v39, %v9417_v50  ;;  %v9826_v39 = vld [vmem:[%s13729_s19 + $0x48] sm:$0xff] }
 0xbca   : > { %11041 = vmatprep.mubr.bf16.mxu1 %v9453_v37 }
 0xbcb   : > { %11042 = vmatmul.mubr.bf16.gmra.mrb[108].mxu1 %v9454_v8 }
 0xbd0   : > { %v10967_v27 = vpop.f32.mrb[8].mxu0 }
 0xbd1   : > { %v9355_v20 = vadd.f32 %v10967_v27, %v14227_v34  ;;  %v9346_v38 = vpop.f32.mrb[9].mxu0 }
 0xbd2   : > { %v9347_v62 = vadd.f32 %v14227_v34, %v9346_v38  ;;  %v10968_v58 = vpop.f32.mrb[10].mxu0  ;;  %v9831_v38 = vld [vmem:[%s13729_s19 + $0x70] sm:$0xff] }
 0xbd3   : > { %v9358_v28 = vadd.f32 %v10968_v58, %v14227_v34  ;;  %v9349_v15 = vpop.f32.mrb[11].mxu0  ;;  %v9423_v7 = vmax.f32 %v9355_v20, 0.0 }
 0xbd4   : > { %v9350_v41 = vadd.f32 %v14227_v34, %v9349_v15  ;;  %v9421_v6 = vmax.f32 %v9347_v62, 0.0  ;;  %v9829_v15 = vld [vmem:[%s13729_s19 + $0x60] sm:$0xff] }
 0xbd5   : > { %v9424_v16 = vmax.f32 %v9358_v28, 0.0 }
 0xbd6   : > { %v9422_v18 = vmax.f32 %v9350_v41, 0.0 }
 0xbd7   : > { %v9456_v47 = vpack.c.bf16 %v9424_v16, %v9423_v7 }
 0xbd8   : > { %v9455_v43 = vpack.c.bf16 %v9422_v18, %v9421_v6  ;;  %v9832_v6 = vld [vmem:[%s13729_s19 + $0x78] sm:$0xff] }
 0xbda   : > { %11045 = vmatprep.mubr.bf16.mxu1 %v9455_v43  ;;  %v9830_v43 = vld [vmem:[%s13729_s19 + $0x68] sm:$0xff] }
 0xbdb   : > { %11046 = vmatmul.mubr.bf16.gmra.mrb[112].mxu1 %v9456_v47 }
 0xbf0   : > { %v10987_v4 = vpop.f32.mrb[52].mxu1 }
 0xbf1   : > { %v9571_v34 = vadd.f32 %v10987_v4, %v14296_v63  ;;  %v9562_v10 = vpop.f32.mrb[53].mxu1 }
 0xbf2   : > { %v9563_v36 = vadd.f32 %v14296_v63, %v9562_v10  ;;  %v10988_v56 = vpop.f32.mrb[54].mxu1 }
 0xbf3   : > { %v9883_v0 = vadd.f32 %v9819_v49, %v9571_v34  ;;  %v9574_v61 = vadd.f32 %v10988_v56, %v14296_v63  ;;  %v9565_v2 = vpop.f32.mrb[55].mxu1 }
 0xbf4   : > { %v9881_v44 = vadd.f32 %v9817_v51, %v9563_v36  ;;  %v9566_v46 = vadd.f32 %v14296_v63, %v9565_v2  ;;  %v9835_v36 = vld [vmem:[%s13729_s19 + $0x90] sm:$0xff] }
 0xbf5   : > { %9947 = vst.msk [vmem:[%s13729_s19 + $0x10] sm:$0xff] %vm7700_vm2, %v9883_v0  ;;  %v9884_v54 = vadd.f32 %v9820_v35, %v9574_v61  ;;  %v9833_v61 = vld [vmem:[%s13729_s19 + $0x80] sm:$0xff] }
 0xbf6   : > { %9945 = vst.msk [vmem:[%s13729_s19] sm:$0xff] %vm7700_vm2, %v9881_v44  ;;  %v9882_v17 = vadd.f32 %v9818_v29, %v9566_v46  ;;  %v9836_v46 = vld [vmem:[%s13729_s19 + $0x98] sm:$0xff] }
 0xbf7   : > { %9948 = vst.msk [vmem:[%s13729_s19 + $0x18] sm:$0xff] %vm7700_vm2, %v9884_v54 }
 0xbf8   : > { %9946 = vst.msk [vmem:[%s13729_s19 + $0x8] sm:$0xff] %vm7700_vm2, %v9882_v17  ;;  %v10991_v3 = vpop.f32.mrb[56].mxu1  ;;  %v9834_v17 = vld [vmem:[%s13729_s19 + $0x88] sm:$0xff] }
 0xbf9   : > { %v9587_v48 = vadd.f32 %v10991_v3, %v14296_v63  ;;  %v9578_v30 = vpop.f32.mrb[57].mxu1 }
 0xbfa   : > { %v9579_v60 = vadd.f32 %v14296_v63, %v9578_v30  ;;  %v10992_v57 = vpop.f32.mrb[58].mxu1 }
 0xbfb   : > { %v9887_v53 = vadd.f32 %v9823_v32, %v9587_v48  ;;  %v9590_v19 = vadd.f32 %v10992_v57, %v14296_v63  ;;  %v9581_v13 = vpop.f32.mrb[59].mxu1 }
 0xbfc   : > { %v9885_v40 = vadd.f32 %v9821_v11, %v9579_v60  ;;  %v9582_v52 = vadd.f32 %v14296_v63, %v9581_v13  ;;  %v9839_v60 = vld [vmem:[%s13729_s19 + $0xb0] sm:$0xff] }
 0xbfd   : > { %9951 = vst.msk [vmem:[%s13729_s19 + $0x30] sm:$0xff] %vm7700_vm2, %v9887_v53  ;;  %v9888_v5 = vadd.f32 %v9824_v26, %v9590_v19  ;;  %v9837_v19 = vld [vmem:[%s13729_s19 + $0xa0] sm:$0xff] }
 0xbfe   : > { %9949 = vst.msk [vmem:[%s13729_s19 + $0x20] sm:$0xff] %vm7700_vm2, %v9885_v40  ;;  %v9886_v33 = vadd.f32 %v9822_v42, %v9582_v52  ;;  %v9840_v52 = vld [vmem:[%s13729_s19 + $0xb8] sm:$0xff] }
 0xbff   : > { %9952 = vst.msk [vmem:[%s13729_s19 + $0x38] sm:$0xff] %vm7700_vm2, %v9888_v5 }
 0xc00   : > { %9950 = vst.msk [vmem:[%s13729_s19 + $0x28] sm:$0xff] %vm7700_vm2, %v9886_v33  ;;  %v10995_v55 = vpop.f32.mrb[60].mxu1  ;;  %v9838_v33 = vld [vmem:[%s13729_s19 + $0xa8] sm:$0xff] }
 0xc01   : > { %v9603_v12 = vadd.f32 %v10995_v55, %v14296_v63  ;;  %v9594_v24 = vpop.f32.mrb[61].mxu1 }
 0xc02   : > { %v9595_v9 = vadd.f32 %v14296_v63, %v9594_v24  ;;  %v10996_v23 = vpop.f32.mrb[62].mxu1 }
 0xc03   : > { %v9891_v45 = vadd.f32 %v9827_v1, %v9603_v12  ;;  %v9606_v21 = vadd.f32 %v10996_v23, %v14296_v63  ;;  %v9597_v59 = vpop.f32.mrb[63].mxu1 }
 0xc04   : > { %v9889_v25 = vadd.f32 %v9825_v22, %v9595_v9  ;;  %v9598_v31 = vadd.f32 %v14296_v63, %v9597_v59  ;;  %v9843_v9 = vld [vmem:[%s13729_s19 + $0xd0] sm:$0xff] }
 0xc05   : > { %9955 = vst.msk [vmem:[%s13729_s19 + $0x50] sm:$0xff] %vm7700_vm2, %v9891_v45  ;;  %v9892_v50 = vadd.f32 %v9828_v14, %v9606_v21  ;;  %v9841_v21 = vld [vmem:[%s13729_s19 + $0xc0] sm:$0xff] }
 0xc06   : > { %9953 = vst.msk [vmem:[%s13729_s19 + $0x40] sm:$0xff] %vm7700_vm2, %v9889_v25  ;;  %v9890_v8 = vadd.f32 %v9826_v39, %v9598_v31  ;;  %v9844_v31 = vld [vmem:[%s13729_s19 + $0xd8] sm:$0xff] }
 0xc07   : > { %9956 = vst.msk [vmem:[%s13729_s19 + $0x58] sm:$0xff] %vm7700_vm2, %v9892_v50 }
 0xc08   : > { %9954 = vst.msk [vmem:[%s13729_s19 + $0x48] sm:$0xff] %vm7700_vm2, %v9890_v8  ;;  %v10999_v37 = vpop.f32.mrb[64].mxu1  ;;  %v9842_v8 = vld [vmem:[%s13729_s19 + $0xc8] sm:$0xff] }
 0xc09   : > { %v9619_v27 = vadd.f32 %v10999_v37, %v14296_v63  ;;  %v9610_v20 = vpop.f32.mrb[65].mxu1 }
 0xc0a   : > { %v9611_v62 = vadd.f32 %v14296_v63, %v9610_v20  ;;  %v11000_v58 = vpop.f32.mrb[66].mxu1 }
 0xc0b   : > { %v9895_v28 = vadd.f32 %v9831_v38, %v9619_v27  ;;  %v9622_v41 = vadd.f32 %v11000_v58, %v14296_v63  ;;  %v9613_v7 = vpop.f32.mrb[67].mxu1 }
 0xc0c   : > { %v9893_v16 = vadd.f32 %v9829_v15, %v9611_v62  ;;  %v9614_v18 = vadd.f32 %v14296_v63, %v9613_v7  ;;  %v9847_v62 = vld [vmem:[%s13729_s19 + $0xf0] sm:$0xff] }
 0xc0d   : > { %9959 = vst.msk [vmem:[%s13729_s19 + $0x70] sm:$0xff] %vm7700_vm2, %v9895_v28  ;;  %v9896_v47 = vadd.f32 %v9832_v6, %v9622_v41  ;;  %v9845_v41 = vld [vmem:[%s13729_s19 + $0xe0] sm:$0xff] }
 0xc0e   : > { %9957 = vst.msk [vmem:[%s13729_s19 + $0x60] sm:$0xff] %vm7700_vm2, %v9893_v16  ;;  %v9894_v4 = vadd.f32 %v9830_v43, %v9614_v18  ;;  %v9848_v18 = vld [vmem:[%s13729_s19 + $0xf8] sm:$0xff] }
 0xc0f   : > { %9960 = vst.msk [vmem:[%s13729_s19 + $0x78] sm:$0xff] %vm7700_vm2, %v9896_v47 }
 0xc10   : > { %9958 = vst.msk [vmem:[%s13729_s19 + $0x68] sm:$0xff] %vm7700_vm2, %v9894_v4  ;;  %v11003_v34 = vpop.f32.mrb[68].mxu1  ;;  %v9846_v4 = vld [vmem:[%s13729_s19 + $0xe8] sm:$0xff] }
 0xc11   : > { %v9635_v10 = vadd.f32 %v11003_v34, %v14296_v63  ;;  %v9626_v49 = vpop.f32.mrb[69].mxu1 }
 0xc12   : > { %v9627_v56 = vadd.f32 %v14296_v63, %v9626_v49  ;;  %v11004_v0 = vpop.f32.mrb[70].mxu1 }
 0xc13   : > { %v9899_v51 = vadd.f32 %v9835_v36, %v9635_v10  ;;  %v9638_v2 = vadd.f32 %v11004_v0, %v14296_v63  ;;  %v9629_v44 = vpop.f32.mrb[71].mxu1 }
 0xc14   : > { %v9897_v35 = vadd.f32 %v9833_v61, %v9627_v56  ;;  %v9630_v54 = vadd.f32 %v14296_v63, %v9629_v44  ;;  %v9851_v56 = vld [vmem:[%s13729_s19 + $0x110] sm:$0xff] }
 0xc15   : > { %9963 = vst.msk [vmem:[%s13729_s19 + $0x90] sm:$0xff] %vm7700_vm2, %v9899_v51  ;;  %v9900_v29 = vadd.f32 %v9836_v46, %v9638_v2  ;;  %v9849_v2 = vld [vmem:[%s13729_s19 + $0x100] sm:$0xff] }
 0xc16   : > { %9961 = vst.msk [vmem:[%s13729_s19 + $0x80] sm:$0xff] %vm7700_vm2, %v9897_v35  ;;  %v9898_v3 = vadd.f32 %v9834_v17, %v9630_v54  ;;  %v9852_v54 = vld [vmem:[%s13729_s19 + $0x118] sm:$0xff] }
 0xc17   : > { %9964 = vst.msk [vmem:[%s13729_s19 + $0x98] sm:$0xff] %vm7700_vm2, %v9900_v29 }
 0xc18   : > { %9962 = vst.msk [vmem:[%s13729_s19 + $0x88] sm:$0xff] %vm7700_vm2, %v9898_v3  ;;  %v11007_v48 = vpop.f32.mrb[72].mxu1  ;;  %v9850_v3 = vld [vmem:[%s13729_s19 + $0x108] sm:$0xff] }
 0xc19   : > { %v9651_v30 = vadd.f32 %v11007_v48, %v14296_v63  ;;  %v9642_v32 = vpop.f32.mrb[73].mxu1 }
 0xc1a   : > { %v9643_v57 = vadd.f32 %v14296_v63, %v9642_v32  ;;  %v11008_v53 = vpop.f32.mrb[74].mxu1 }
 0xc1b   : > { %v9903_v11 = vadd.f32 %v9839_v60, %v9651_v30  ;;  %v9654_v13 = vadd.f32 %v11008_v53, %v14296_v63  ;;  %v9645_v40 = vpop.f32.mrb[75].mxu1 }
 0xc1c   : > { %v9901_v26 = vadd.f32 %v9837_v19, %v9643_v57  ;;  %v9646_v5 = vadd.f32 %v14296_v63, %v9645_v40  ;;  %v9855_v57 = vld [vmem:[%s13729_s19 + $0x130] sm:$0xff] }
 0xc1d   : > { %9967 = vst.msk [vmem:[%s13729_s19 + $0xb0] sm:$0xff] %vm7700_vm2, %v9903_v11  ;;  %v9904_v42 = vadd.f32 %v9840_v52, %v9654_v13  ;;  %v9853_v13 = vld [vmem:[%s13729_s19 + $0x120] sm:$0xff] }
 0xc1e   : > { %9965 = vst.msk [vmem:[%s13729_s19 + $0xa0] sm:$0xff] %vm7700_vm2, %v9901_v26  ;;  %v9902_v55 = vadd.f32 %v9838_v33, %v9646_v5  ;;  %v9856_v5 = vld [vmem:[%s13729_s19 + $0x138] sm:$0xff] }
 0xc1f   : > { %9968 = vst.msk [vmem:[%s13729_s19 + $0xb8] sm:$0xff] %vm7700_vm2, %v9904_v42 }
 0xc20   : > { %9966 = vst.msk [vmem:[%s13729_s19 + $0xa8] sm:$0xff] %vm7700_vm2, %v9902_v55  ;;  %v11011_v12 = vpop.f32.mrb[76].mxu1  ;;  %v9854_v55 = vld [vmem:[%s13729_s19 + $0x128] sm:$0xff] }
 0xc21   : > { %v9667_v24 = vadd.f32 %v11011_v12, %v14296_v63  ;;  %v9658_v1 = vpop.f32.mrb[77].mxu1 }
 0xc22   : > { %v9659_v23 = vadd.f32 %v14296_v63, %v9658_v1  ;;  %v11012_v45 = vpop.f32.mrb[78].mxu1 }
 0xc23   : > { %v9907_v22 = vadd.f32 %v9843_v9, %v9667_v24  ;;  %v9670_v59 = vadd.f32 %v11012_v45, %v14296_v63  ;;  %v9661_v25 = vpop.f32.mrb[79].mxu1 }
 0xc24   : > { %v9905_v14 = vadd.f32 %v9841_v21, %v9659_v23  ;;  %v9662_v50 = vadd.f32 %v14296_v63, %v9661_v25  ;;  %v9859_v23 = vld [vmem:[%s13729_s19 + $0x150] sm:$0xff] }
 0xc25   : > { %9971 = vst.msk [vmem:[%s13729_s19 + $0xd0] sm:$0xff] %vm7700_vm2, %v9907_v22  ;;  %v9908_v39 = vadd.f32 %v9844_v31, %v9670_v59  ;;  %v9857_v59 = vld [vmem:[%s13729_s19 + $0x140] sm:$0xff] }
 0xc26   : > { %9969 = vst.msk [vmem:[%s13729_s19 + $0xc0] sm:$0xff] %vm7700_vm2, %v9905_v14  ;;  %v9906_v37 = vadd.f32 %v9842_v8, %v9662_v50  ;;  %v9860_v50 = vld [vmem:[%s13729_s19 + $0x158] sm:$0xff] }
 0xc27   : > { %9972 = vst.msk [vmem:[%s13729_s19 + $0xd8] sm:$0xff] %vm7700_vm2, %v9908_v39 }
 0xc28   : > { %9970 = vst.msk [vmem:[%s13729_s19 + $0xc8] sm:$0xff] %vm7700_vm2, %v9906_v37  ;;  %v9858_v37 = vld [vmem:[%s13729_s19 + $0x148] sm:$0xff] }
 0xc2e   : > { %v11015_v27 = vpop.f32.mrb[80].mxu1 }
 0xc2f   : > { %v9683_v20 = vadd.f32 %v11015_v27, %v14296_v63  ;;  %v9674_v38 = vpop.f32.mrb[81].mxu1 }
 0xc30   : > { %v9675_v58 = vadd.f32 %v14296_v63, %v9674_v38  ;;  %v11016_v28 = vpop.f32.mrb[82].mxu1 }
 0xc31   : > { %v9911_v15 = vadd.f32 %v9847_v62, %v9683_v20  ;;  %v9686_v7 = vadd.f32 %v11016_v28, %v14296_v63  ;;  %v9677_v16 = vpop.f32.mrb[83].mxu1 }
 0xc32   : > { %v9909_v6 = vadd.f32 %v9845_v41, %v9675_v58  ;;  %v9678_v47 = vadd.f32 %v14296_v63, %v9677_v16  ;;  %v9863_v58 = vld [vmem:[%s13729_s19 + $0x170] sm:$0xff] }
 0xc33   : > { %9975 = vst.msk [vmem:[%s13729_s19 + $0xf0] sm:$0xff] %vm7700_vm2, %v9911_v15  ;;  %v9912_v43 = vadd.f32 %v9848_v18, %v9686_v7  ;;  %v9861_v7 = vld [vmem:[%s13729_s19 + $0x160] sm:$0xff] }
 0xc34   : > { %9973 = vst.msk [vmem:[%s13729_s19 + $0xe0] sm:$0xff] %vm7700_vm2, %v9909_v6  ;;  %v9910_v34 = vadd.f32 %v9846_v4, %v9678_v47  ;;  %v9864_v47 = vld [vmem:[%s13729_s19 + $0x178] sm:$0xff] }
 0xc35   : > { %9976 = vst.msk [vmem:[%s13729_s19 + $0xf8] sm:$0xff] %vm7700_vm2, %v9912_v43 }
 0xc36   : > { %9974 = vst.msk [vmem:[%s13729_s19 + $0xe8] sm:$0xff] %vm7700_vm2, %v9910_v34  ;;  %v9862_v34 = vld [vmem:[%s13729_s19 + $0x168] sm:$0xff] }
 0xc3e   : > { %v11019_v10 = vpop.f32.mrb[84].mxu1 }
 0xc3f   : > { %v9699_v49 = vadd.f32 %v11019_v10, %v14296_v63  ;;  %v9690_v36 = vpop.f32.mrb[85].mxu1 }
 0xc40   : > { %v9691_v0 = vadd.f32 %v14296_v63, %v9690_v36  ;;  %v11020_v51 = vpop.f32.mrb[86].mxu1 }
 0xc41   : > { %v9915_v61 = vadd.f32 %v9851_v56, %v9699_v49  ;;  %v9702_v44 = vadd.f32 %v11020_v51, %v14296_v63  ;;  %v9693_v35 = vpop.f32.mrb[87].mxu1 }
 0xc42   : > { %v9913_v46 = vadd.f32 %v9849_v2, %v9691_v0  ;;  %v9694_v29 = vadd.f32 %v14296_v63, %v9693_v35  ;;  %v9867_v0 = vld [vmem:[%s13729_s19 + $0x190] sm:$0xff] }
 0xc43   : > { %9979 = vst.msk [vmem:[%s13729_s19 + $0x110] sm:$0xff] %vm7700_vm2, %v9915_v61  ;;  %v9916_v17 = vadd.f32 %v9852_v54, %v9702_v44  ;;  %v9865_v44 = vld [vmem:[%s13729_s19 + $0x180] sm:$0xff] }
 0xc44   : > { %9977 = vst.msk [vmem:[%s13729_s19 + $0x100] sm:$0xff] %vm7700_vm2, %v9913_v46  ;;  %v9914_v48 = vadd.f32 %v9850_v3, %v9694_v29  ;;  %v9868_v29 = vld [vmem:[%s13729_s19 + $0x198] sm:$0xff] }
 0xc45   : > { %9980 = vst.msk [vmem:[%s13729_s19 + $0x118] sm:$0xff] %vm7700_vm2, %v9916_v17 }
 0xc46   : > { %9978 = vst.msk [vmem:[%s13729_s19 + $0x108] sm:$0xff] %vm7700_vm2, %v9914_v48  ;;  %v9866_v48 = vld [vmem:[%s13729_s19 + $0x188] sm:$0xff] }
 0xc4e   : > { %v11023_v30 = vpop.f32.mrb[88].mxu1 }
 0xc4f   : > { %v9715_v32 = vadd.f32 %v11023_v30, %v14296_v63  ;;  %v9706_v60 = vpop.f32.mrb[89].mxu1 }
 0xc50   : > { %v9707_v53 = vadd.f32 %v14296_v63, %v9706_v60  ;;  %v11024_v11 = vpop.f32.mrb[90].mxu1 }
 0xc51   : > { %v9919_v19 = vadd.f32 %v9855_v57, %v9715_v32  ;;  %v9718_v40 = vadd.f32 %v11024_v11, %v14296_v63  ;;  %v9709_v26 = vpop.f32.mrb[91].mxu1 }
 0xc52   : > { %v9917_v52 = vadd.f32 %v9853_v13, %v9707_v53  ;;  %v9710_v42 = vadd.f32 %v14296_v63, %v9709_v26  ;;  %v9871_v53 = vld [vmem:[%s13729_s19 + $0x1b0] sm:$0xff] }
 0xc53   : > { %9983 = vst.msk [vmem:[%s13729_s19 + $0x130] sm:$0xff] %vm7700_vm2, %v9919_v19  ;;  %v9920_v33 = vadd.f32 %v9856_v5, %v9718_v40  ;;  %v9869_v40 = vld [vmem:[%s13729_s19 + $0x1a0] sm:$0xff] }
 0xc54   : > { %9981 = vst.msk [vmem:[%s13729_s19 + $0x120] sm:$0xff] %vm7700_vm2, %v9917_v52  ;;  %v9918_v12 = vadd.f32 %v9854_v55, %v9710_v42  ;;  %v9872_v42 = vld [vmem:[%s13729_s19 + $0x1b8] sm:$0xff] }
 0xc55   : > { %9984 = vst.msk [vmem:[%s13729_s19 + $0x138] sm:$0xff] %vm7700_vm2, %v9920_v33 }
 0xc56   : > { %9982 = vst.msk [vmem:[%s13729_s19 + $0x128] sm:$0xff] %vm7700_vm2, %v9918_v12  ;;  %v9870_v12 = vld [vmem:[%s13729_s19 + $0x1a8] sm:$0xff] }
 0xc5e   : > { %v11027_v24 = vpop.f32.mrb[92].mxu1 }
 0xc5f   : > { %v9731_v1 = vadd.f32 %v11027_v24, %v14296_v63  ;;  %v9722_v9 = vpop.f32.mrb[93].mxu1 }
 0xc60   : > { %v9723_v45 = vadd.f32 %v14296_v63, %v9722_v9  ;;  %v11028_v22 = vpop.f32.mrb[94].mxu1 }
 0xc61   : > { %v9923_v21 = vadd.f32 %v9859_v23, %v9731_v1  ;;  %v9734_v25 = vadd.f32 %v11028_v22, %v14296_v63  ;;  %v9725_v14 = vpop.f32.mrb[95].mxu1 }
 0xc62   : > { %v9921_v31 = vadd.f32 %v9857_v59, %v9723_v45  ;;  %v9726_v39 = vadd.f32 %v14296_v63, %v9725_v14  ;;  %v9875_v45 = vld [vmem:[%s13729_s19 + $0x1d0] sm:$0xff] }
 0xc63   : > { %9987 = vst.msk [vmem:[%s13729_s19 + $0x150] sm:$0xff] %vm7700_vm2, %v9923_v21  ;;  %v9924_v8 = vadd.f32 %v9860_v50, %v9734_v25  ;;  %v9873_v25 = vld [vmem:[%s13729_s19 + $0x1c0] sm:$0xff] }
 0xc64   : > { %9985 = vst.msk [vmem:[%s13729_s19 + $0x140] sm:$0xff] %vm7700_vm2, %v9921_v31  ;;  %v9922_v27 = vadd.f32 %v9858_v37, %v9726_v39  ;;  %v9876_v39 = vld [vmem:[%s13729_s19 + $0x1d8] sm:$0xff] }
 0xc65   : > { %9988 = vst.msk [vmem:[%s13729_s19 + $0x158] sm:$0xff] %vm7700_vm2, %v9924_v8 }
 0xc66   : > { %9986 = vst.msk [vmem:[%s13729_s19 + $0x148] sm:$0xff] %vm7700_vm2, %v9922_v27  ;;  %v9874_v27 = vld [vmem:[%s13729_s19 + $0x1c8] sm:$0xff] }
 0xc6e   : > { %v11031_v20 = vpop.f32.mrb[96].mxu1 }
 0xc6f   : > { %v9747_v38 = vadd.f32 %v11031_v20, %v14296_v63  ;;  %v9738_v62 = vpop.f32.mrb[97].mxu1 }
 0xc70   : > { %v9739_v28 = vadd.f32 %v14296_v63, %v9738_v62  ;;  %v11032_v15 = vpop.f32.mrb[98].mxu1 }
 0xc71   : > { %v9927_v41 = vadd.f32 %v9863_v58, %v9747_v38  ;;  %v9750_v16 = vadd.f32 %v11032_v15, %v14296_v63  ;;  %v9741_v6 = vpop.f32.mrb[99].mxu1 }
 0xc72   : > { %v9925_v18 = vadd.f32 %v9861_v7, %v9739_v28  ;;  %v9742_v43 = vadd.f32 %v14296_v63, %v9741_v6  ;;  %v9879_v28 = vld [vmem:[%s13729_s19 + $0x1f0] sm:$0xff] }
 0xc73   : > { %9991 = vst.msk [vmem:[%s13729_s19 + $0x170] sm:$0xff] %vm7700_vm2, %v9927_v41  ;;  %v9928_v4 = vadd.f32 %v9864_v47, %v9750_v16  ;;  %v9877_v16 = vld [vmem:[%s13729_s19 + $0x1e0] sm:$0xff] }
 0xc74   : > { %9989 = vst.msk [vmem:[%s13729_s19 + $0x160] sm:$0xff] %vm7700_vm2, %v9925_v18  ;;  %v9926_v10 = vadd.f32 %v9862_v34, %v9742_v43  ;;  %v9880_v43 = vld [vmem:[%s13729_s19 + $0x1f8] sm:$0xff] }
 0xc75   : > { %9992 = vst.msk [vmem:[%s13729_s19 + $0x178] sm:$0xff] %vm7700_vm2, %v9928_v4 }
 0xc76   : > { %9990 = vst.msk [vmem:[%s13729_s19 + $0x168] sm:$0xff] %vm7700_vm2, %v9926_v10  ;;  %v9878_v10 = vld [vmem:[%s13729_s19 + $0x1e8] sm:$0xff] }
 0xc7e   : > { %v11035_v49 = vpop.f32.mrb[100].mxu1 }
 0xc7f   : > { %v9763_v36 = vadd.f32 %v11035_v49, %v14296_v63  ;;  %v9754_v56 = vpop.f32.mrb[101].mxu1 }
 0xc80   : > { %v9755_v51 = vadd.f32 %v14296_v63, %v9754_v56  ;;  %v11036_v61 = vpop.f32.mrb[102].mxu1 }
 0xc81   : > { %v9931_v2 = vadd.f32 %v9867_v0, %v9763_v36  ;;  %v9766_v35 = vadd.f32 %v11036_v61, %v14296_v63  ;;  %v9757_v46 = vpop.f32.mrb[103].mxu1 }
 0xc82   : > { %v9929_v54 = vadd.f32 %v9865_v44, %v9755_v51  ;;  %v9758_v17 = vadd.f32 %v14296_v63, %v9757_v46 }
 0xc83   : > { %9995 = vst.msk [vmem:[%s13729_s19 + $0x190] sm:$0xff] %vm7700_vm2, %v9931_v2  ;;  %v9932_v3 = vadd.f32 %v9868_v29, %v9766_v35 }
 0xc84   : > { %9993 = vst.msk [vmem:[%s13729_s19 + $0x180] sm:$0xff] %vm7700_vm2, %v9929_v54  ;;  %v9930_v30 = vadd.f32 %v9866_v48, %v9758_v17 }
 0xc85   : > { %9996 = vst.msk [vmem:[%s13729_s19 + $0x198] sm:$0xff] %vm7700_vm2, %v9932_v3 }
 0xc86   : > { %9994 = vst.msk [vmem:[%s13729_s19 + $0x188] sm:$0xff] %vm7700_vm2, %v9930_v30 }
 0xc8e   : > { %v11039_v32 = vpop.f32.mrb[104].mxu1 }
 0xc8f   : > { %v9779_v60 = vadd.f32 %v11039_v32, %v14296_v63  ;;  %v9770_v57 = vpop.f32.mrb[105].mxu1 }
 0xc90   : > { %v9771_v11 = vadd.f32 %v14296_v63, %v9770_v57  ;;  %v11040_v19 = vpop.f32.mrb[106].mxu1 }
 0xc91   : > { %v9935_v13 = vadd.f32 %v9871_v53, %v9779_v60  ;;  %v9782_v26 = vadd.f32 %v11040_v19, %v14296_v63  ;;  %v9773_v52 = vpop.f32.mrb[107].mxu1 }
 0xc92   : > { %v9933_v5 = vadd.f32 %v9869_v40, %v9771_v11  ;;  %v9774_v33 = vadd.f32 %v14296_v63, %v9773_v52 }
 0xc93   : > { %9999 = vst.msk [vmem:[%s13729_s19 + $0x1b0] sm:$0xff] %vm7700_vm2, %v9935_v13  ;;  %v9936_v55 = vadd.f32 %v9872_v42, %v9782_v26 }
 0xc94   : > { %9997 = vst.msk [vmem:[%s13729_s19 + $0x1a0] sm:$0xff] %vm7700_vm2, %v9933_v5  ;;  %v9934_v24 = vadd.f32 %v9870_v12, %v9774_v33 }
 0xc95   : > { %10000 = vst.msk [vmem:[%s13729_s19 + $0x1b8] sm:$0xff] %vm7700_vm2, %v9936_v55 }
 0xc96   : > { %9998 = vst.msk [vmem:[%s13729_s19 + $0x1a8] sm:$0xff] %vm7700_vm2, %v9934_v24 }
 0xc9e   : > { %v11043_v1 = vpop.f32.mrb[108].mxu1 }
 0xc9f   : > { %v9795_v9 = vadd.f32 %v11043_v1, %v14296_v63  ;;  %v9786_v23 = vpop.f32.mrb[109].mxu1 }
 0xca0   : > { %v9787_v22 = vadd.f32 %v14296_v63, %v9786_v23  ;;  %v11044_v21 = vpop.f32.mrb[110].mxu1 }
 0xca1   : > { %v9939_v59 = vadd.f32 %v9875_v45, %v9795_v9  ;;  %v9798_v14 = vadd.f32 %v11044_v21, %v14296_v63  ;;  %v9789_v31 = vpop.f32.mrb[111].mxu1 }
 0xca2   : > { %v9937_v50 = vadd.f32 %v9873_v25, %v9787_v22  ;;  %v9790_v8 = vadd.f32 %v14296_v63, %v9789_v31 }
 0xca3   : > { %10003 = vst.msk [vmem:[%s13729_s19 + $0x1d0] sm:$0xff] %vm7700_vm2, %v9939_v59  ;;  %v9940_v37 = vadd.f32 %v9876_v39, %v9798_v14 }
 0xca4   : > { %10001 = vst.msk [vmem:[%s13729_s19 + $0x1c0] sm:$0xff] %vm7700_vm2, %v9937_v50  ;;  %v9938_v20 = vadd.f32 %v9874_v27, %v9790_v8 }
 0xca5   : > { %10004 = vst.msk [vmem:[%s13729_s19 + $0x1d8] sm:$0xff] %vm7700_vm2, %v9940_v37 }
 0xca6   : > { %10002 = vst.msk [vmem:[%s13729_s19 + $0x1c8] sm:$0xff] %vm7700_vm2, %v9938_v20 }
 0xcae   : > { %v11047_v38 = vpop.f32.mrb[112].mxu1 }
 0xcaf   : > { %v9811_v62 = vadd.f32 %v11047_v38, %v14296_v63  ;;  %v9802_v58 = vpop.f32.mrb[113].mxu1 }
 0xcb0   : > { %v9803_v15 = vadd.f32 %v14296_v63, %v9802_v58  ;;  %v11048_v41 = vpop.f32.mrb[114].mxu1 }
 0xcb1   : > { %v9943_v7 = vadd.f32 %v9879_v28, %v9811_v62  ;;  %v9814_v6 = vadd.f32 %v11048_v41, %v14296_v63  ;;  %v9805_v18 = vpop.f32.mrb[115].mxu1 }
 0xcb2   : > { %v9941_v47 = vadd.f32 %v9877_v16, %v9803_v15  ;;  %v9806_v4 = vadd.f32 %v14296_v63, %v9805_v18 }
 0xcb3   : > { %10007 = vst.msk [vmem:[%s13729_s19 + $0x1f0] sm:$0xff] %vm7700_vm2, %v9943_v7  ;;  %v9944_v34 = vadd.f32 %v9880_v43, %v9814_v6 }
 0xcb4   : > { %10005 = vst.msk [vmem:[%s13729_s19 + $0x1e0] sm:$0xff] %vm7700_vm2, %v9941_v47  ;;  %v9942_v49 = vadd.f32 %v9878_v10, %v9806_v4 }
 0xcb5   : > { %10008 = vst.msk [vmem:[%s13729_s19 + $0x1f8] sm:$0xff] %vm7700_vm2, %v9944_v34 }
 0xcb6   : > { %10006 = vst.msk [vmem:[%s13729_s19 + $0x1e8] sm:$0xff] %vm7700_vm2, %v9942_v49 }
 0xcb7 PF: > { %s23_s21 = sadd.s32 1, %s11792_s21  }
 0xcb8   : > { %p20_p3 = scmp.ge.s32.totalorder %s23_s21, 4  }
 0xcba   :  { %22 = sbr.rel (!%p20_p3) target bundleno = 1 (0x1), region = 122 }
 0xcc1   :  { %10031 = vsyncpa [#allocation3], 1 }
 0xcc2   :  { %10033 = vsyncpa [#allocation3 + $0x1], 1 }

</bundles_post_ra>
